<compile_context>
chip_gen: v7x
topology: tpu7x:2x2x1
jax: 0.10.0
libtpu: 0.0.40
codegen_flags: <defaults>
</compile_context>

<pallas_src>
import functools
import math

import jax
import jax.numpy as jnp
from jax.experimental import pallas as pl
from jax.experimental.pallas import tpu as pltpu

# ---------------------------------------------------------------------------
# Synthetic BERT configuration (hidden size fixed to 768 by the classifier).
# ---------------------------------------------------------------------------
VOCAB = 128          # synthetic vocab (bert-base uses 30522; gather is glue anyway)
MAX_POS = 32
TYPE_VOCAB = 2
HIDDEN = 768
N_HEADS = 12
HEAD_DIM = HIDDEN // N_HEADS
INTERMEDIATE = 3072
NUM_LAYERS = 2       # TODO(synk): bert-base-uncased has 12 layers; 2 keeps the synthetic
                     # script fast — per-layer shapes/semantics are identical.
LN_EPS = 1e-12
NUM_CLASSES = 2


# ---------------------------------------------------------------------------
# Tiling helpers
# ---------------------------------------------------------------------------
def _lane_tile(n, cap):
    """Largest divisor of n that is a multiple of 128 and <= cap (else full n)."""
    if n % 128 != 0:
        return n
    t = min(n, (cap // 128) * 128)
    while t >= 128:
        if n % t == 0:
            return t
        t -= 128
    return n


def _row_tile(m, cap=256):
    """Largest divisor of m that is a multiple of 8 and <= cap (else full m)."""
    if m <= cap:
        return m
    t = (cap // 8) * 8
    while t >= 8:
        if m % t == 0:
            return t
        t -= 8
    return m


# ---------------------------------------------------------------------------
# Pallas kernels
# ---------------------------------------------------------------------------
def linear_kernel(x_ref, w_ref, b_ref, o_ref, acc_ref, *, activation):
    """y = act(x @ w + b); bf16 operands, f32 accumulation over grid axis 2 (K)."""
    kk = pl.program_id(2)

    @pl.when(kk == 0)
    def _():
        acc_ref[...] = jnp.zeros_like(acc_ref)

    acc_ref[...] += jnp.dot(x_ref[...], w_ref[...],
                            preferred_element_type=jnp.float32)

    @pl.when(kk == pl.num_programs(2) - 1)
    def _():
        y = acc_ref[...] + b_ref[...]                       # f32 epilogue
        if activation == "gelu":        # exact (erf) GELU, as used by HF BERT
            y = 0.5 * y * (1.0 + jax.lax.erf(y * 0.7071067811865476))
        elif activation == "tanh":
            y = jnp.tanh(y)
        o_ref[...] = y.astype(o_ref.dtype)


def attn_kernel(q_ref, k_ref, v_ref, bias_ref, o_ref, *, scale):
    """One batch element, all heads at once: softmax(q k^T * scale + mask_bias) @ v."""
    q = q_ref[...]                                          # (nH, S, dh) bf16
    k = k_ref[...]
    v = v_ref[...]
    # Batched dot_general contracting on dh (no explicit transpose of k).
    s = jnp.einsum("hqd,hkd->hqk", q, k,
                   preferred_element_type=jnp.float32) * scale
    s = s + bias_ref[...]                                   # (1, 1, S) broadcast
    m = jnp.max(s, axis=-1, keepdims=True)
    p = jnp.exp(s - m)
    denom = jnp.sum(p, axis=-1, keepdims=True)
    p = p * pl.reciprocal(denom, approx=True)               # EUP, not VALU
    ctx = jnp.einsum("hqk,hkd->hqd", p.astype(v.dtype), v,
                     preferred_element_type=jnp.float32)
    o_ref[...] = ctx.astype(o_ref.dtype)


def layernorm_kernel(x_ref, *rest, eps, has_residual):
    """LayerNorm with optional fused residual add (saves one HBM round-trip)."""
    if has_residual:
        res_ref, g_ref, b_ref, o_ref = rest
        x = x_ref[...].astype(jnp.float32) + res_ref[...].astype(jnp.float32)
    else:
        g_ref, b_ref, o_ref = rest
        x = x_ref[...].astype(jnp.float32)
    mu = jnp.mean(x, axis=-1, keepdims=True)
    d = x - mu
    var = jnp.mean(d * d, axis=-1, keepdims=True)
    inv = jax.lax.rsqrt(var + eps)
    o_ref[...] = ((d * inv) * g_ref[...] + b_ref[...]).astype(o_ref.dtype)


def head_kernel(cls_ref, pw_ref, pb_ref, cw_ref, cb_ref, lab_ref, posw_ref,
                logits_ref, loss_ref):
    """Fused BERT pooler (dense+tanh on CLS) + dropout(identity) + classifier + weighted BCE."""
    pooled = jnp.dot(cls_ref[...], pw_ref[...],
                     preferred_element_type=jnp.float32) + pb_ref[...]
    pooled = jnp.tanh(pooled)
    # TODO(synk): nn.Dropout(0.3) is identity in eval/inference mode (no RNG dependence).
    logits = jnp.dot(pooled, cw_ref[...],
                     preferred_element_type=jnp.float32) + cb_ref[...]
    logits_ref[...] = logits.astype(logits_ref.dtype)

    # PyTorch BCEWithLogitsLoss(pos_weight=pw), reduction='mean' over all B*C elements.
    z = lab_ref[...]
    pw = posw_ref[...]

    def softplus(t):
        return jnp.maximum(t, 0.0) + jnp.log(1.0 + jnp.exp(-jnp.abs(t)))

    l = pw * z * softplus(-logits) + (1.0 - z) * softplus(logits)
    loss_ref[...] = jnp.sum(l, keepdims=True) / l.size


# ---------------------------------------------------------------------------
# Pallas wrappers
# ---------------------------------------------------------------------------
def linear(x, w, b, activation="none", out_dtype=jnp.bfloat16,
           tm_cap=256, tk_cap=768, tn_cap=512):
    M, K = x.shape
    _, N = w.shape
    x = x.astype(jnp.bfloat16)
    w = w.astype(jnp.bfloat16)
    tm = _row_tile(M, tm_cap)
    tk = _lane_tile(K, tk_cap)
    tn = _lane_tile(N, tn_cap)
    kern = functools.partial(linear_kernel, activation=activation)
    return pl.pallas_call(
        kern,
        out_shape=jax.ShapeDtypeStruct((M, N), out_dtype),
        grid_spec=pltpu.PrefetchScalarGridSpec(
            num_scalar_prefetch=0,
            grid=(M // tm, N // tn, K // tk),
            in_specs=[
                pl.BlockSpec((tm, tk), lambda i, j, kk: (i, kk)),
                pl.BlockSpec((tk, tn), lambda i, j, kk: (kk, j)),
                pl.BlockSpec((1, tn), lambda i, j, kk: (0, j)),
            ],
            out_specs=pl.BlockSpec((tm, tn), lambda i, j, kk: (i, j)),
            scratch_shapes=[pltpu.VMEM((tm, tn), jnp.float32)],
        ),
        compiler_params=pltpu.CompilerParams(
            dimension_semantics=("parallel", "parallel", "arbitrary")),
    )(x, w, b.reshape(1, N).astype(jnp.float32))


def attention(q, k, v, bias, n_heads):
    """q/k/v: (B*n_heads, S, dh) bf16; bias: (B, 1, S) f32 additive mask bias."""
    BH, S, dh = q.shape
    B = BH // n_heads
    kern = functools.partial(attn_kernel, scale=1.0 / math.sqrt(dh))
    return pl.pallas_call(
        kern,
        out_shape=jax.ShapeDtypeStruct((BH, S, dh), jnp.bfloat16),
        grid=(B,),
        in_specs=[
            pl.BlockSpec((n_heads, S, dh), lambda b: (b, 0, 0)),
            pl.BlockSpec((n_heads, S, dh), lambda b: (b, 0, 0)),
            pl.BlockSpec((n_heads, S, dh), lambda b: (b, 0, 0)),
            pl.BlockSpec((1, 1, S), lambda b: (b, 0, 0)),
        ],
        out_specs=pl.BlockSpec((n_heads, S, dh), lambda b: (b, 0, 0)),
        compiler_params=pltpu.CompilerParams(dimension_semantics=("parallel",)),
    )(q.astype(jnp.bfloat16), k.astype(jnp.bfloat16), v.astype(jnp.bfloat16), bias)


def layer_norm(x, gamma, beta, residual=None, eps=LN_EPS, out_dtype=jnp.bfloat16):
    M, H = x.shape
    tm = _row_tile(M, 256)
    has_res = residual is not None
    kern = functools.partial(layernorm_kernel, eps=eps, has_residual=has_res)

    in_specs = [pl.BlockSpec((tm, H), lambda i: (i, 0))]
    args = [x]
    if has_res:
        in_specs.append(pl.BlockSpec((tm, H), lambda i: (i, 0)))
        args.append(residual)
    in_specs += [pl.BlockSpec((1, H), lambda i: (0, 0)),
                 pl.BlockSpec((1, H), lambda i: (0, 0))]
    args += [gamma.reshape(1, H).astype(jnp.float32),
             beta.reshape(1, H).astype(jnp.float32)]

    return pl.pallas_call(
        kern,
        out_shape=jax.ShapeDtypeStruct((M, H), out_dtype),
        grid=(M // tm,),
        in_specs=in_specs,
        out_specs=pl.BlockSpec((tm, H), lambda i: (i, 0)),
        compiler_params=pltpu.CompilerParams(dimension_semantics=("parallel",)),
    )(*args)


def pooler_classifier_bce(cls_tok, pool_w, pool_b, cls_w, cls_b, labels, pos_weight):
    """Single fused launch for all the tiny (B,768)/(B,2) head work."""
    B, H = cls_tok.shape
    C = cls_w.shape[1]
    logits, loss = pl.pallas_call(
        head_kernel,
        out_shape=(jax.ShapeDtypeStruct((B, C), jnp.float32),
                   jax.ShapeDtypeStruct((1, 1), jnp.float32)),
    )(cls_tok.astype(jnp.bfloat16),
      pool_w.astype(jnp.bfloat16),
      pool_b.reshape(1, H).astype(jnp.float32),
      cls_w.astype(jnp.float32),
      cls_b.reshape(1, C).astype(jnp.float32),
      labels.astype(jnp.float32),
      pos_weight.reshape(1, C).astype(jnp.float32))
    return logits, loss[0, 0]


# ---------------------------------------------------------------------------
# Model forward (glue in plain JAX around the Pallas kernels)
# ---------------------------------------------------------------------------
def encoder_layer(x, p, bias, B, S):
    # Fused Q/K/V projection: one 768x2304 matmul instead of three 768x768.
    qkv = linear(x, p["w_qkv"], p["b_qkv"])                     # (B*S, 3*HIDDEN) bf16
    qkv = qkv.reshape(B, S, 3, N_HEADS, HEAD_DIM)

    def heads(i):
        return (qkv[:, :, i]
                .transpose(0, 2, 1, 3)
                .reshape(B * N_HEADS, S, HEAD_DIM))

    ctx = attention(heads(0), heads(1), heads(2), bias, N_HEADS)
    ctx = (ctx.reshape(B, N_HEADS, S, HEAD_DIM)
              .transpose(0, 2, 1, 3)
              .reshape(B * S, HIDDEN))

    attn_out = linear(ctx, p["wo"], p["bo"])
    x = layer_norm(attn_out, p["ln1_g"], p["ln1_b"], residual=x)   # fused residual add

    h = linear(x, p["w1"], p["b1"], activation="gelu")
    ffn = linear(h, p["w2"], p["b2"])
    x = layer_norm(ffn, p["ln2_g"], p["ln2_b"], residual=x)        # fused residual add
    return x


def weighted_bce_bert_forward(params, ids, mask, token_type_ids, labels, pos_weight):
    B, S = ids.shape
    pos_ids = jnp.broadcast_to(jnp.arange(S)[None, :], (B, S))

    emb = (jnp.take(params["word_emb"], ids, axis=0)
           + jnp.take(params["pos_emb"], pos_ids, axis=0)
           + jnp.take(params["type_emb"], token_type_ids, axis=0))
    x = emb.reshape(B * S, HIDDEN)
    x = layer_norm(x, params["emb_ln_g"], params["emb_ln_b"])
    # TODO(synk): embedding dropout omitted (inference mode => identity).

    bias = ((1.0 - mask.astype(jnp.float32)) * -1e9).reshape(B, 1, S)

    for layer_params in params["layers"]:
        x = encoder_layer(x, layer_params, bias, B, S)

    # BERT pooler (dense + tanh on [CLS]) + dropout(identity) + classifier + BCE, fused.
    cls_tok = x.reshape(B, S, HIDDEN)[:, 0]
    logits, loss = pooler_classifier_bce(
        cls_tok, params["pool_w"], params["pool_b"],
        params["cls_w"], params["cls_b"], labels, pos_weight)

    # hidden_states is None with default BertConfig (output_hidden_states=False)
    return loss, logits


# ---------------------------------------------------------------------------
# Deterministic parameter init (dense matmul weights stored in bf16; f32 accumulation
# in-kernel keeps the logits close to the f32 reference).
# ---------------------------------------------------------------------------
def init_params(key):
    keys = iter(jax.random.split(key, 256))

    def dense(fi, fo, dtype=jnp.bfloat16):
        w = (jax.random.normal(next(keys), (fi, fo), jnp.float32) * 0.02).astype(dtype)
        return w, jnp.zeros((fo,), jnp.float32)

    p = {
        "word_emb": jax.random.normal(next(keys), (VOCAB, HIDDEN), jnp.float32) * 0.02,
        "pos_emb": jax.random.normal(next(keys), (MAX_POS, HIDDEN), jnp.float32) * 0.02,
        "type_emb": jax.random.normal(next(keys), (TYPE_VOCAB, HIDDEN), jnp.float32) * 0.02,
        "emb_ln_g": jnp.ones((HIDDEN,), jnp.float32),
        "emb_ln_b": jnp.zeros((HIDDEN,), jnp.float32),
        "layers": [],
    }
    for _ in range(NUM_LAYERS):
        lp = {}
        lp["w_qkv"], lp["b_qkv"] = dense(HIDDEN, 3 * HIDDEN)      # fused Q|K|V
        lp["wo"], lp["bo"] = dense(HIDDEN, HIDDEN)
        lp["ln1_g"] = jnp.ones((HIDDEN,), jnp.float32)
        lp["ln1_b"] = jnp.zeros((HIDDEN,), jnp.float32)
        lp["w1"], lp["b1"] = dense(HIDDEN, INTERMEDIATE)
        lp["w2"], lp["b2"] = dense(INTERMEDIATE, HIDDEN)
        lp["ln2_g"] = jnp.ones((HIDDEN,), jnp.float32)
        lp["ln2_b"] = jnp.zeros((HIDDEN,), jnp.float32)
        p["layers"].append(lp)

    p["pool_w"], p["pool_b"] = dense(HIDDEN, HIDDEN)
    p["cls_w"], p["cls_b"] = dense(HIDDEN, NUM_CLASSES, dtype=jnp.float32)
    return p


# ---------------------------------------------------------------------------
if __name__ == "__main__":
    key = jax.random.PRNGKey(0)
    pkey, ikey = jax.random.split(key)

    B, S = 2, 8
    params = init_params(pkey)

    ids = jax.random.randint(ikey, (B, S), 1, VOCAB, dtype=jnp.int32)
    mask = jnp.array([[1, 1, 1, 1, 1, 1, 1, 1],
                      [1, 1, 1, 1, 1, 1, 0, 0]], dtype=jnp.float32)
    token_type_ids = jnp.zeros((B, S), dtype=jnp.int32)
    labels = jnp.array([[1.0, 0.0],
                        [0.0, 1.0]], dtype=jnp.float32)
    pos_weight = jnp.array([1.0, 2.0], dtype=jnp.float32)

    fwd = jax.jit(weighted_bce_bert_forward)
    loss, logits = fwd(params, ids, mask, token_type_ids, labels, pos_weight)
    jax.block_until_ready((loss, logits))

    assert logits.shape == (B, NUM_CLASSES)
    assert loss.shape == ()
    assert bool(jnp.isfinite(loss)) and bool(jnp.all(jnp.isfinite(logits)))
    print("KERNEL_OK")
</pallas_src>

<mosaic_0001>
module attributes {stable_mosaic.version = 11 : i64} {
  func.func @layernorm_kernel(%arg0: i32, %arg1: memref<16x768xf32, #tpu.memory_space<vmem>>, %arg2: memref<1x768xf32, #tpu.memory_space<vmem>>, %arg3: memref<1x768xf32, #tpu.memory_space<vmem>>, %arg4: memref<16x768xbf16, #tpu.memory_space<vmem>>) attributes {dimension_semantics = [#tpu.dimension_semantics<parallel>], iteration_bounds = array<i64: 1>, scalar_prefetch = 0 : i64, scratch_operands = 0 : i64, tpu.core_type = #tpu.core_type<tc>, window_params = [{transform_indices = @transform_0, window_bounds = array<i64: 16, 768>}, {pipeline_mode = #tpu.pipeline_mode<synchronous>, transform_indices = @transform_1, window_bounds = array<i64: 1, 768>}, {pipeline_mode = #tpu.pipeline_mode<synchronous>, transform_indices = @transform_2, window_bounds = array<i64: 1, 768>}, {transform_indices = @transform_3, window_bounds = array<i64: 16, 768>}]} {
    %c0 = arith.constant 0 : index
    %c0_0 = arith.constant 0 : index
    %0 = vector.load %arg1[%c0, %c0_0] : memref<16x768xf32, #tpu.memory_space<vmem>>, vector<16x768xf32>
    %cst = arith.constant dense<0.000000e+00> : vector<16xf32>
    %1 = vector.multi_reduction <add>, %0, %cst [1] : vector<16x768xf32> to vector<16xf32>
    %2 = vector.shape_cast %1 : vector<16xf32> to vector<16x1xf32>
    %cst_1 = arith.constant 7.680000e+02 : f32
    %3 = vector.broadcast %cst_1 : f32 to vector<16x1xf32>
    %4 = arith.divf %2, %3 : vector<16x1xf32>
    %5 = vector.broadcast %4 : vector<16x1xf32> to vector<16x768xf32>
    %6 = arith.subf %0, %5 : vector<16x768xf32>
    %7 = arith.mulf %6, %6 : vector<16x768xf32>
    %cst_2 = arith.constant dense<0.000000e+00> : vector<16xf32>
    %8 = vector.multi_reduction <add>, %7, %cst_2 [1] : vector<16x768xf32> to vector<16xf32>
    %9 = vector.shape_cast %8 : vector<16xf32> to vector<16x1xf32>
    %cst_3 = arith.constant 7.680000e+02 : f32
    %10 = vector.broadcast %cst_3 : f32 to vector<16x1xf32>
    %11 = arith.divf %9, %10 : vector<16x1xf32>
    %cst_4 = arith.constant 9.99999996E-13 : f32
    %12 = vector.broadcast %cst_4 : f32 to vector<16x1xf32>
    %13 = arith.addf %11, %12 : vector<16x1xf32>
    %14 = math.rsqrt %13 : vector<16x1xf32>
    %15 = vector.broadcast %14 : vector<16x1xf32> to vector<16x768xf32>
    %16 = arith.mulf %6, %15 : vector<16x768xf32>
    %c0_5 = arith.constant 0 : index
    %c0_6 = arith.constant 0 : index
    %17 = vector.load %arg2[%c0_5, %c0_6] : memref<1x768xf32, #tpu.memory_space<vmem>>, vector<1x768xf32>
    %18 = vector.broadcast %17 : vector<1x768xf32> to vector<16x768xf32>
    %19 = arith.mulf %16, %18 : vector<16x768xf32>
    %c0_7 = arith.constant 0 : index
    %c0_8 = arith.constant 0 : index
    %20 = vector.load %arg3[%c0_7, %c0_8] : memref<1x768xf32, #tpu.memory_space<vmem>>, vector<1x768xf32>
    %21 = vector.broadcast %20 : vector<1x768xf32> to vector<16x768xf32>
    %22 = arith.addf %19, %21 : vector<16x768xf32>
    %23 = arith.truncf %22 : vector<16x768xf32> to vector<16x768xbf16>
    %c0_9 = arith.constant 0 : index
    %c0_10 = arith.constant 0 : index
    %24 = vector.load %arg4[%c0_9, %c0_10] : memref<16x768xbf16, #tpu.memory_space<vmem>>, vector<16x768xbf16>
    tpu.vector_store %arg4[%c0_9, %c0_10], %23 {strides = array<i32>} : memref<16x768xbf16, #tpu.memory_space<vmem>>, vector<16x768xbf16>,
    return
  }
  func.func @transform_0(%arg0: i32) -> (i32, i32) {
    %c0_i32 = arith.constant 0 : i32
    %c0_i32_0 = arith.constant 0 : i32
    return %arg0, %c0_i32 : i32, i32
  }
  func.func @transform_1(%arg0: i32) -> (i32, i32) {
    %c0_i32 = arith.constant 0 : i32
    %c0_i32_0 = arith.constant 0 : i32
    %c0_i32_1 = arith.constant 0 : i32
    return %c0_i32, %c0_i32_0 : i32, i32
  }
  func.func @transform_2(%arg0: i32) -> (i32, i32) {
    %c0_i32 = arith.constant 0 : i32
    %c0_i32_0 = arith.constant 0 : i32
    %c0_i32_1 = arith.constant 0 : i32
    return %c0_i32, %c0_i32_0 : i32, i32
  }
  func.func @transform_3(%arg0: i32) -> (i32, i32) {
    %c0_i32 = arith.constant 0 : i32
    %c0_i32_0 = arith.constant 0 : i32
    return %arg0, %c0_i32 : i32, i32
  }
}

module attributes {stable_mosaic.version = 11 : i64} {
  func.func @linear_kernel(%arg0: i32, %arg1: i32, %arg2: i32, %arg3: memref<16x768xbf16, #tpu.memory_space<vmem>>, %arg4: memref<768x384xbf16, #tpu.memory_space<vmem>>, %arg5: memref<1x384xf32, #tpu.memory_space<vmem>>, %arg6: memref<16x384xbf16, #tpu.memory_space<vmem>>, %arg7: memref<16x384xf32, #tpu.memory_space<vmem>>) attributes {dimension_semantics = [#tpu.dimension_semantics<parallel>, #tpu.dimension_semantics<parallel>, #tpu.dimension_semantics<arbitrary>], iteration_bounds = array<i64: 1, 6, 1>, scalar_prefetch = 0 : i64, scratch_operands = 1 : i64, tpu.core_type = #tpu.core_type<tc>, window_params = [{transform_indices = @transform_0, window_bounds = array<i64: 16, 768>}, {transform_indices = @transform_1, window_bounds = array<i64: 768, 384>}, {transform_indices = @transform_2, window_bounds = array<i64: 1, 384>}, {transform_indices = @transform_3, window_bounds = array<i64: 16, 384>}]} {
    %c0_i32 = arith.constant 0 : i32
    %0 = arith.cmpi eq, %arg2, %c0_i32 : i32
    %1 = arith.extui %0 : i1 to i32
    %c0_i32_0 = arith.constant 0 : i32
    %2 = arith.cmpi ne, %1, %c0_i32_0 : i32
    scf.if %2 {
      %cst_10 = arith.constant 0.000000e+00 : f32
      %12 = vector.broadcast %cst_10 : f32 to vector<16x384xf32>
      %c0_11 = arith.constant 0 : index
      %c0_12 = arith.constant 0 : index
      %13 = vector.load %arg7[%c0_11, %c0_12] : memref<16x384xf32, #tpu.memory_space<vmem>>, vector<16x384xf32>
      tpu.vector_store %arg7[%c0_11, %c0_12], %12 {strides = array<i32>} : memref<16x384xf32, #tpu.memory_space<vmem>>, vector<16x384xf32>,
    } else {
    }
    %c0 = arith.constant 0 : index
    %c0_1 = arith.constant 0 : index
    %3 = vector.load %arg7[%c0, %c0_1] : memref<16x384xf32, #tpu.memory_space<vmem>>, vector<16x384xf32>
    %c0_2 = arith.constant 0 : index
    %c0_3 = arith.constant 0 : index
    %4 = vector.load %arg3[%c0_2, %c0_3] : memref<16x768xbf16, #tpu.memory_space<vmem>>, vector<16x768xbf16>
    %c0_4 = arith.constant 0 : index
    %c0_5 = arith.constant 0 : index
    %5 = vector.load %arg4[%c0_4, %c0_5] : memref<768x384xbf16, #tpu.memory_space<vmem>>, vector<768x384xbf16>
    %cst = arith.constant dense<0.000000e+00> : vector<16x384xf32>
    %6 = tpu.matmul %4, %5, %cst {dimension_numbers = #tpu.dot_dimension_numbers<[1], [0], [0], [1], [0, 0, 1, 1], [], []>} : vector<16x768xbf16>, vector<768x384xbf16>, vector<16x384xf32> -> vector<16x384xf32>
    %7 = arith.addf %3, %6 : vector<16x384xf32>
    %c0_6 = arith.constant 0 : index
    %c0_7 = arith.constant 0 : index
    %8 = vector.load %arg7[%c0_6, %c0_7] : memref<16x384xf32, #tpu.memory_space<vmem>>, vector<16x384xf32>
    tpu.vector_store %arg7[%c0_6, %c0_7], %7 {strides = array<i32>} : memref<16x384xf32, #tpu.memory_space<vmem>>, vector<16x384xf32>,
    %c0_i32_8 = arith.constant 0 : i32
    %9 = arith.cmpi eq, %arg2, %c0_i32_8 : i32
    %10 = arith.extui %9 : i1 to i32
    %c0_i32_9 = arith.constant 0 : i32
    %11 = arith.cmpi ne, %10, %c0_i32_9 : i32
    scf.if %11 {
      %c0_10 = arith.constant 0 : index
      %c0_11 = arith.constant 0 : index
      %12 = vector.load %arg7[%c0_10, %c0_11] : memref<16x384xf32, #tpu.memory_space<vmem>>, vector<16x384xf32>
      %c0_12 = arith.constant 0 : index
      %c0_13 = arith.constant 0 : index
      %13 = vector.load %arg5[%c0_12, %c0_13] : memref<1x384xf32, #tpu.memory_space<vmem>>, vector<1x384xf32>
      %14 = vector.broadcast %13 : vector<1x384xf32> to vector<16x384xf32>
      %15 = arith.addf %12, %14 : vector<16x384xf32>
      %16 = arith.truncf %15 : vector<16x384xf32> to vector<16x384xbf16>
      %c0_14 = arith.constant 0 : index
      %c0_15 = arith.constant 0 : index
      %17 = vector.load %arg6[%c0_14, %c0_15] : memref<16x384xbf16, #tpu.memory_space<vmem>>, vector<16x384xbf16>
      tpu.vector_store %arg6[%c0_14, %c0_15], %16 {strides = array<i32>} : memref<16x384xbf16, #tpu.memory_space<vmem>>, vector<16x384xbf16>,
    } else {
    }
    return
  }
  func.func @transform_0(%arg0: i32, %arg1: i32, %arg2: i32) -> (i32, i32) {
    %c0_i32 = arith.constant 0 : i32
    return %arg0, %arg2 : i32, i32
  }
  func.func @transform_1(%arg0: i32, %arg1: i32, %arg2: i32) -> (i32, i32) {
    %c0_i32 = arith.constant 0 : i32
    return %arg2, %arg1 : i32, i32
  }
  func.func @transform_2(%arg0: i32, %arg1: i32, %arg2: i32) -> (i32, i32) {
    %c0_i32 = arith.constant 0 : i32
    %c0_i32_0 = arith.constant 0 : i32
    return %c0_i32, %arg1 : i32, i32
  }
  func.func @transform_3(%arg0: i32, %arg1: i32, %arg2: i32) -> (i32, i32) {
    %c0_i32 = arith.constant 0 : i32
    return %arg0, %arg1 : i32, i32
  }
}

module attributes {stable_mosaic.version = 11 : i64} {
  func.func @attn_kernel(%arg0: i32, %arg1: memref<12x8x64xbf16, #tpu.memory_space<vmem>>, %arg2: memref<12x8x64xbf16, #tpu.memory_space<vmem>>, %arg3: memref<12x8x64xbf16, #tpu.memory_space<vmem>>, %arg4: memref<1x1x8xf32, #tpu.memory_space<vmem>>, %arg5: memref<12x8x64xbf16, #tpu.memory_space<vmem>>) attributes {dimension_semantics = [#tpu.dimension_semantics<parallel>], iteration_bounds = array<i64: 2>, scalar_prefetch = 0 : i64, scratch_operands = 0 : i64, tpu.core_type = #tpu.core_type<tc>, window_params = [{transform_indices = @transform_0, window_bounds = array<i64: 12, 8, 64>}, {transform_indices = @transform_1, window_bounds = array<i64: 12, 8, 64>}, {transform_indices = @transform_2, window_bounds = array<i64: 12, 8, 64>}, {transform_indices = @transform_3, window_bounds = array<i64: 1, 1, 8>}, {transform_indices = @transform_4, window_bounds = array<i64: 12, 8, 64>}]} {
    %c0 = arith.constant 0 : index
    %c0_0 = arith.constant 0 : index
    %c0_1 = arith.constant 0 : index
    %0 = vector.load %arg1[%c0, %c0_0, %c0_1] : memref<12x8x64xbf16, #tpu.memory_space<vmem>>, vector<12x8x64xbf16>
    %c0_2 = arith.constant 0 : index
    %c0_3 = arith.constant 0 : index
    %c0_4 = arith.constant 0 : index
    %1 = vector.load %arg2[%c0_2, %c0_3, %c0_4] : memref<12x8x64xbf16, #tpu.memory_space<vmem>>, vector<12x8x64xbf16>
    %c0_5 = arith.constant 0 : index
    %c0_6 = arith.constant 0 : index
    %c0_7 = arith.constant 0 : index
    %2 = vector.load %arg3[%c0_5, %c0_6, %c0_7] : memref<12x8x64xbf16, #tpu.memory_space<vmem>>, vector<12x8x64xbf16>
    "tpu.trace_start"() <{level = 10 : i32, message = "hqd,hkd->hqk"}> : () -> ()
    %cst = arith.constant dense<0.000000e+00> : vector<12x8x8xf32>
    %3 = tpu.matmul %0, %1, %cst {dimension_numbers = #tpu.dot_dimension_numbers<[2], [2], [1], [1], [0, 0, 0, 1, 1, 1], [0], [0]>} : vector<12x8x64xbf16>, vector<12x8x64xbf16>, vector<12x8x8xf32> -> vector<12x8x8xf32>
    "tpu.trace_stop"() : () -> ()
    %cst_8 = arith.constant 1.250000e-01 : f32
    %4 = vector.broadcast %cst_8 : f32 to vector<12x8x8xf32>
    %5 = arith.mulf %3, %4 : vector<12x8x8xf32>
    %c0_9 = arith.constant 0 : index
    %c0_10 = arith.constant 0 : index
    %c0_11 = arith.constant 0 : index
    %6 = vector.load %arg4[%c0_9, %c0_10, %c0_11] : memref<1x1x8xf32, #tpu.memory_space<vmem>>, vector<1x1x8xf32>
    %7 = vector.broadcast %6 : vector<1x1x8xf32> to vector<12x8x8xf32>
    %8 = arith.addf %5, %7 : vector<12x8x8xf32>
    %cst_12 = arith.constant dense<0xFF800000> : vector<12x8xf32>
    %9 = vector.multi_reduction <maximumf>, %8, %cst_12 [2] : vector<12x8x8xf32> to vector<12x8xf32>
    %10 = vector.shape_cast %9 : vector<12x8xf32> to vector<12x8x1xf32>
    %11 = vector.broadcast %10 : vector<12x8x1xf32> to vector<12x8x8xf32>
    %12 = arith.subf %8, %11 : vector<12x8x8xf32>
    %13 = math.exp %12 : vector<12x8x8xf32>
    %cst_13 = arith.constant dense<0.000000e+00> : vector<12x8xf32>
    %14 = vector.multi_reduction <add>, %13, %cst_13 [2] : vector<12x8x8xf32> to vector<12x8xf32>
    %15 = vector.shape_cast %14 : vector<12x8xf32> to vector<12x8x1xf32>
    %16 = tpu.reciprocal %15 {approx = true} : vector<12x8x1xf32> -> vector<12x8x1xf32>
    %17 = vector.broadcast %16 : vector<12x8x1xf32> to vector<12x8x8xf32>
    %18 = arith.mulf %13, %17 : vector<12x8x8xf32>
    %19 = arith.truncf %18 : vector<12x8x8xf32> to vector<12x8x8xbf16>
    "tpu.trace_start"() <{level = 10 : i32, message = "hqk,hkd->hqd"}> : () -> ()
    %cst_14 = arith.constant dense<0.000000e+00> : vector<12x8x64xf32>
    %20 = tpu.matmul %19, %2, %cst_14 {dimension_numbers = #tpu.dot_dimension_numbers<[2], [1], [1], [2], [0, 0, 0, 1, 1, 2], [0], [0]>} : vector<12x8x8xbf16>, vector<12x8x64xbf16>, vector<12x8x64xf32> -> vector<12x8x64xf32>
    "tpu.trace_stop"() : () -> ()
    %21 = arith.truncf %20 : vector<12x8x64xf32> to vector<12x8x64xbf16>
    %c0_15 = arith.constant 0 : index
    %c0_16 = arith.constant 0 : index
    %c0_17 = arith.constant 0 : index
    %22 = vector.load %arg5[%c0_15, %c0_16, %c0_17] : memref<12x8x64xbf16, #tpu.memory_space<vmem>>, vector<12x8x64xbf16>
    tpu.vector_store %arg5[%c0_15, %c0_16, %c0_17], %21 {strides = array<i32>} : memref<12x8x64xbf16, #tpu.memory_space<vmem>>, vector<12x8x64xbf16>,
    return
  }
  func.func @transform_0(%arg0: i32) -> (i32, i32, i32) {
    %c0_i32 = arith.constant 0 : i32
    %c0_i32_0 = arith.constant 0 : i32
    %c0_i32_1 = arith.constant 0 : i32
    return %arg0, %c0_i32, %c0_i32_0 : i32, i32, i32
  }
  func.func @transform_1(%arg0: i32) -> (i32, i32, i32) {
    %c0_i32 = arith.constant 0 : i32
    %c0_i32_0 = arith.constant 0 : i32
    %c0_i32_1 = arith.constant 0 : i32
    return %arg0, %c0_i32, %c0_i32_0 : i32, i32, i32
  }
  func.func @transform_2(%arg0: i32) -> (i32, i32, i32) {
    %c0_i32 = arith.constant 0 : i32
    %c0_i32_0 = arith.constant 0 : i32
    %c0_i32_1 = arith.constant 0 : i32
    return %arg0, %c0_i32, %c0_i32_0 : i32, i32, i32
  }
  func.func @transform_3(%arg0: i32) -> (i32, i32, i32) {
    %c0_i32 = arith.constant 0 : i32
    %c0_i32_0 = arith.constant 0 : i32
    %c0_i32_1 = arith.constant 0 : i32
    return %arg0, %c0_i32, %c0_i32_0 : i32, i32, i32
  }
  func.func @transform_4(%arg0: i32) -> (i32, i32, i32) {
    %c0_i32 = arith.constant 0 : i32
    %c0_i32_0 = arith.constant 0 : i32
    %c0_i32_1 = arith.constant 0 : i32
    return %arg0, %c0_i32, %c0_i32_0 : i32, i32, i32
  }
}

module attributes {stable_mosaic.version = 11 : i64} {
  func.func @linear_kernel(%arg0: i32, %arg1: i32, %arg2: i32, %arg3: memref<16x768xbf16, #tpu.memory_space<vmem>>, %arg4: memref<768x384xbf16, #tpu.memory_space<vmem>>, %arg5: memref<1x384xf32, #tpu.memory_space<vmem>>, %arg6: memref<16x384xbf16, #tpu.memory_space<vmem>>, %arg7: memref<16x384xf32, #tpu.memory_space<vmem>>) attributes {dimension_semantics = [#tpu.dimension_semantics<parallel>, #tpu.dimension_semantics<parallel>, #tpu.dimension_semantics<arbitrary>], iteration_bounds = array<i64: 1, 2, 1>, scalar_prefetch = 0 : i64, scratch_operands = 1 : i64, tpu.core_type = #tpu.core_type<tc>, window_params = [{transform_indices = @transform_0, window_bounds = array<i64: 16, 768>}, {transform_indices = @transform_1, window_bounds = array<i64: 768, 384>}, {transform_indices = @transform_2, window_bounds = array<i64: 1, 384>}, {transform_indices = @transform_3, window_bounds = array<i64: 16, 384>}]} {
    %c0_i32 = arith.constant 0 : i32
    %0 = arith.cmpi eq, %arg2, %c0_i32 : i32
    %1 = arith.extui %0 : i1 to i32
    %c0_i32_0 = arith.constant 0 : i32
    %2 = arith.cmpi ne, %1, %c0_i32_0 : i32
    scf.if %2 {
      %cst_10 = arith.constant 0.000000e+00 : f32
      %12 = vector.broadcast %cst_10 : f32 to vector<16x384xf32>
      %c0_11 = arith.constant 0 : index
      %c0_12 = arith.constant 0 : index
      %13 = vector.load %arg7[%c0_11, %c0_12] : memref<16x384xf32, #tpu.memory_space<vmem>>, vector<16x384xf32>
      tpu.vector_store %arg7[%c0_11, %c0_12], %12 {strides = array<i32>} : memref<16x384xf32, #tpu.memory_space<vmem>>, vector<16x384xf32>,
    } else {
    }
    %c0 = arith.constant 0 : index
    %c0_1 = arith.constant 0 : index
    %3 = vector.load %arg7[%c0, %c0_1] : memref<16x384xf32, #tpu.memory_space<vmem>>, vector<16x384xf32>
    %c0_2 = arith.constant 0 : index
    %c0_3 = arith.constant 0 : index
    %4 = vector.load %arg3[%c0_2, %c0_3] : memref<16x768xbf16, #tpu.memory_space<vmem>>, vector<16x768xbf16>
    %c0_4 = arith.constant 0 : index
    %c0_5 = arith.constant 0 : index
    %5 = vector.load %arg4[%c0_4, %c0_5] : memref<768x384xbf16, #tpu.memory_space<vmem>>, vector<768x384xbf16>
    %cst = arith.constant dense<0.000000e+00> : vector<16x384xf32>
    %6 = tpu.matmul %4, %5, %cst {dimension_numbers = #tpu.dot_dimension_numbers<[1], [0], [0], [1], [0, 0, 1, 1], [], []>} : vector<16x768xbf16>, vector<768x384xbf16>, vector<16x384xf32> -> vector<16x384xf32>
    %7 = arith.addf %3, %6 : vector<16x384xf32>
    %c0_6 = arith.constant 0 : index
    %c0_7 = arith.constant 0 : index
    %8 = vector.load %arg7[%c0_6, %c0_7] : memref<16x384xf32, #tpu.memory_space<vmem>>, vector<16x384xf32>
    tpu.vector_store %arg7[%c0_6, %c0_7], %7 {strides = array<i32>} : memref<16x384xf32, #tpu.memory_space<vmem>>, vector<16x384xf32>,
    %c0_i32_8 = arith.constant 0 : i32
    %9 = arith.cmpi eq, %arg2, %c0_i32_8 : i32
    %10 = arith.extui %9 : i1 to i32
    %c0_i32_9 = arith.constant 0 : i32
    %11 = arith.cmpi ne, %10, %c0_i32_9 : i32
    scf.if %11 {
      %c0_10 = arith.constant 0 : index
      %c0_11 = arith.constant 0 : index
      %12 = vector.load %arg7[%c0_10, %c0_11] : memref<16x384xf32, #tpu.memory_space<vmem>>, vector<16x384xf32>
      %c0_12 = arith.constant 0 : index
      %c0_13 = arith.constant 0 : index
      %13 = vector.load %arg5[%c0_12, %c0_13] : memref<1x384xf32, #tpu.memory_space<vmem>>, vector<1x384xf32>
      %14 = vector.broadcast %13 : vector<1x384xf32> to vector<16x384xf32>
      %15 = arith.addf %12, %14 : vector<16x384xf32>
      %16 = arith.truncf %15 : vector<16x384xf32> to vector<16x384xbf16>
      %c0_14 = arith.constant 0 : index
      %c0_15 = arith.constant 0 : index
      %17 = vector.load %arg6[%c0_14, %c0_15] : memref<16x384xbf16, #tpu.memory_space<vmem>>, vector<16x384xbf16>
      tpu.vector_store %arg6[%c0_14, %c0_15], %16 {strides = array<i32>} : memref<16x384xbf16, #tpu.memory_space<vmem>>, vector<16x384xbf16>,
    } else {
    }
    return
  }
  func.func @transform_0(%arg0: i32, %arg1: i32, %arg2: i32) -> (i32, i32) {
    %c0_i32 = arith.constant 0 : i32
    return %arg0, %arg2 : i32, i32
  }
  func.func @transform_1(%arg0: i32, %arg1: i32, %arg2: i32) -> (i32, i32) {
    %c0_i32 = arith.constant 0 : i32
    return %arg2, %arg1 : i32, i32
  }
  func.func @transform_2(%arg0: i32, %arg1: i32, %arg2: i32) -> (i32, i32) {
    %c0_i32 = arith.constant 0 : i32
    %c0_i32_0 = arith.constant 0 : i32
    return %c0_i32, %arg1 : i32, i32
  }
  func.func @transform_3(%arg0: i32, %arg1: i32, %arg2: i32) -> (i32, i32) {
    %c0_i32 = arith.constant 0 : i32
    return %arg0, %arg1 : i32, i32
  }
}

module attributes {stable_mosaic.version = 11 : i64} {
  func.func @layernorm_kernel(%arg0: i32, %arg1: memref<16x768xbf16, #tpu.memory_space<vmem>>, %arg2: memref<16x768xbf16, #tpu.memory_space<vmem>>, %arg3: memref<1x768xf32, #tpu.memory_space<vmem>>, %arg4: memref<1x768xf32, #tpu.memory_space<vmem>>, %arg5: memref<16x768xbf16, #tpu.memory_space<vmem>>) attributes {dimension_semantics = [#tpu.dimension_semantics<parallel>], iteration_bounds = array<i64: 1>, scalar_prefetch = 0 : i64, scratch_operands = 0 : i64, tpu.core_type = #tpu.core_type<tc>, window_params = [{transform_indices = @transform_0, window_bounds = array<i64: 16, 768>}, {transform_indices = @transform_1, window_bounds = array<i64: 16, 768>}, {pipeline_mode = #tpu.pipeline_mode<synchronous>, transform_indices = @transform_2, window_bounds = array<i64: 1, 768>}, {pipeline_mode = #tpu.pipeline_mode<synchronous>, transform_indices = @transform_3, window_bounds = array<i64: 1, 768>}, {transform_indices = @transform_4, window_bounds = array<i64: 16, 768>}]} {
    %c0 = arith.constant 0 : index
    %c0_0 = arith.constant 0 : index
    %0 = vector.load %arg1[%c0, %c0_0] : memref<16x768xbf16, #tpu.memory_space<vmem>>, vector<16x768xbf16>
    %1 = arith.extf %0 : vector<16x768xbf16> to vector<16x768xf32>
    %c0_1 = arith.constant 0 : index
    %c0_2 = arith.constant 0 : index
    %2 = vector.load %arg2[%c0_1, %c0_2] : memref<16x768xbf16, #tpu.memory_space<vmem>>, vector<16x768xbf16>
    %3 = arith.extf %2 : vector<16x768xbf16> to vector<16x768xf32>
    %4 = arith.addf %1, %3 : vector<16x768xf32>
    %cst = arith.constant dense<0.000000e+00> : vector<16xf32>
    %5 = vector.multi_reduction <add>, %4, %cst [1] : vector<16x768xf32> to vector<16xf32>
    %6 = vector.shape_cast %5 : vector<16xf32> to vector<16x1xf32>
    %cst_3 = arith.constant 7.680000e+02 : f32
    %7 = vector.broadcast %cst_3 : f32 to vector<16x1xf32>
    %8 = arith.divf %6, %7 : vector<16x1xf32>
    %9 = vector.broadcast %8 : vector<16x1xf32> to vector<16x768xf32>
    %10 = arith.subf %4, %9 : vector<16x768xf32>
    %11 = arith.mulf %10, %10 : vector<16x768xf32>
    %cst_4 = arith.constant dense<0.000000e+00> : vector<16xf32>
    %12 = vector.multi_reduction <add>, %11, %cst_4 [1] : vector<16x768xf32> to vector<16xf32>
    %13 = vector.shape_cast %12 : vector<16xf32> to vector<16x1xf32>
    %cst_5 = arith.constant 7.680000e+02 : f32
    %14 = vector.broadcast %cst_5 : f32 to vector<16x1xf32>
    %15 = arith.divf %13, %14 : vector<16x1xf32>
    %cst_6 = arith.constant 9.99999996E-13 : f32
    %16 = vector.broadcast %cst_6 : f32 to vector<16x1xf32>
    %17 = arith.addf %15, %16 : vector<16x1xf32>
    %18 = math.rsqrt %17 : vector<16x1xf32>
    %19 = vector.broadcast %18 : vector<16x1xf32> to vector<16x768xf32>
    %20 = arith.mulf %10, %19 : vector<16x768xf32>
    %c0_7 = arith.constant 0 : index
    %c0_8 = arith.constant 0 : index
    %21 = vector.load %arg3[%c0_7, %c0_8] : memref<1x768xf32, #tpu.memory_space<vmem>>, vector<1x768xf32>
    %22 = vector.broadcast %21 : vector<1x768xf32> to vector<16x768xf32>
    %23 = arith.mulf %20, %22 : vector<16x768xf32>
    %c0_9 = arith.constant 0 : index
    %c0_10 = arith.constant 0 : index
    %24 = vector.load %arg4[%c0_9, %c0_10] : memref<1x768xf32, #tpu.memory_space<vmem>>, vector<1x768xf32>
    %25 = vector.broadcast %24 : vector<1x768xf32> to vector<16x768xf32>
    %26 = arith.addf %23, %25 : vector<16x768xf32>
    %27 = arith.truncf %26 : vector<16x768xf32> to vector<16x768xbf16>
    %c0_11 = arith.constant 0 : index
    %c0_12 = arith.constant 0 : index
    %28 = vector.load %arg5[%c0_11, %c0_12] : memref<16x768xbf16, #tpu.memory_space<vmem>>, vector<16x768xbf16>
    tpu.vector_store %arg5[%c0_11, %c0_12], %27 {strides = array<i32>} : memref<16x768xbf16, #tpu.memory_space<vmem>>, vector<16x768xbf16>,
    return
  }
  func.func @transform_0(%arg0: i32) -> (i32, i32) {
    %c0_i32 = arith.constant 0 : i32
    %c0_i32_0 = arith.constant 0 : i32
    return %arg0, %c0_i32 : i32, i32
  }
  func.func @transform_1(%arg0: i32) -> (i32, i32) {
    %c0_i32 = arith.constant 0 : i32
    %c0_i32_0 = arith.constant 0 : i32
    return %arg0, %c0_i32 : i32, i32
  }
  func.func @transform_2(%arg0: i32) -> (i32, i32) {
    %c0_i32 = arith.constant 0 : i32
    %c0_i32_0 = arith.constant 0 : i32
    %c0_i32_1 = arith.constant 0 : i32
    return %c0_i32, %c0_i32_0 : i32, i32
  }
  func.func @transform_3(%arg0: i32) -> (i32, i32) {
    %c0_i32 = arith.constant 0 : i32
    %c0_i32_0 = arith.constant 0 : i32
    %c0_i32_1 = arith.constant 0 : i32
    return %c0_i32, %c0_i32_0 : i32, i32
  }
  func.func @transform_4(%arg0: i32) -> (i32, i32) {
    %c0_i32 = arith.constant 0 : i32
    %c0_i32_0 = arith.constant 0 : i32
    return %arg0, %c0_i32 : i32, i32
  }
}

module attributes {stable_mosaic.version = 11 : i64} {
  func.func @linear_kernel(%arg0: i32, %arg1: i32, %arg2: i32, %arg3: memref<16x768xbf16, #tpu.memory_space<vmem>>, %arg4: memref<768x512xbf16, #tpu.memory_space<vmem>>, %arg5: memref<1x512xf32, #tpu.memory_space<vmem>>, %arg6: memref<16x512xbf16, #tpu.memory_space<vmem>>, %arg7: memref<16x512xf32, #tpu.memory_space<vmem>>) attributes {dimension_semantics = [#tpu.dimension_semantics<parallel>, #tpu.dimension_semantics<parallel>, #tpu.dimension_semantics<arbitrary>], iteration_bounds = array<i64: 1, 6, 1>, scalar_prefetch = 0 : i64, scratch_operands = 1 : i64, tpu.core_type = #tpu.core_type<tc>, window_params = [{transform_indices = @transform_0, window_bounds = array<i64: 16, 768>}, {transform_indices = @transform_1, window_bounds = array<i64: 768, 512>}, {transform_indices = @transform_2, window_bounds = array<i64: 1, 512>}, {transform_indices = @transform_3, window_bounds = array<i64: 16, 512>}]} {
    %c0_i32 = arith.constant 0 : i32
    %0 = arith.cmpi eq, %arg2, %c0_i32 : i32
    %1 = arith.extui %0 : i1 to i32
    %c0_i32_0 = arith.constant 0 : i32
    %2 = arith.cmpi ne, %1, %c0_i32_0 : i32
    scf.if %2 {
      %cst_10 = arith.constant 0.000000e+00 : f32
      %12 = vector.broadcast %cst_10 : f32 to vector<16x512xf32>
      %c0_11 = arith.constant 0 : index
      %c0_12 = arith.constant 0 : index
      %13 = vector.load %arg7[%c0_11, %c0_12] : memref<16x512xf32, #tpu.memory_space<vmem>>, vector<16x512xf32>
      tpu.vector_store %arg7[%c0_11, %c0_12], %12 {strides = array<i32>} : memref<16x512xf32, #tpu.memory_space<vmem>>, vector<16x512xf32>,
    } else {
    }
    %c0 = arith.constant 0 : index
    %c0_1 = arith.constant 0 : index
    %3 = vector.load %arg7[%c0, %c0_1] : memref<16x512xf32, #tpu.memory_space<vmem>>, vector<16x512xf32>
    %c0_2 = arith.constant 0 : index
    %c0_3 = arith.constant 0 : index
    %4 = vector.load %arg3[%c0_2, %c0_3] : memref<16x768xbf16, #tpu.memory_space<vmem>>, vector<16x768xbf16>
    %c0_4 = arith.constant 0 : index
    %c0_5 = arith.constant 0 : index
    %5 = vector.load %arg4[%c0_4, %c0_5] : memref<768x512xbf16, #tpu.memory_space<vmem>>, vector<768x512xbf16>
    %cst = arith.constant dense<0.000000e+00> : vector<16x512xf32>
    %6 = tpu.matmul %4, %5, %cst {dimension_numbers = #tpu.dot_dimension_numbers<[1], [0], [0], [1], [0, 0, 1, 1], [], []>} : vector<16x768xbf16>, vector<768x512xbf16>, vector<16x512xf32> -> vector<16x512xf32>
    %7 = arith.addf %3, %6 : vector<16x512xf32>
    %c0_6 = arith.constant 0 : index
    %c0_7 = arith.constant 0 : index
    %8 = vector.load %arg7[%c0_6, %c0_7] : memref<16x512xf32, #tpu.memory_space<vmem>>, vector<16x512xf32>
    tpu.vector_store %arg7[%c0_6, %c0_7], %7 {strides = array<i32>} : memref<16x512xf32, #tpu.memory_space<vmem>>, vector<16x512xf32>,
    %c0_i32_8 = arith.constant 0 : i32
    %9 = arith.cmpi eq, %arg2, %c0_i32_8 : i32
    %10 = arith.extui %9 : i1 to i32
    %c0_i32_9 = arith.constant 0 : i32
    %11 = arith.cmpi ne, %10, %c0_i32_9 : i32
    scf.if %11 {
      %c0_10 = arith.constant 0 : index
      %c0_11 = arith.constant 0 : index
      %12 = vector.load %arg7[%c0_10, %c0_11] : memref<16x512xf32, #tpu.memory_space<vmem>>, vector<16x512xf32>
      %c0_12 = arith.constant 0 : index
      %c0_13 = arith.constant 0 : index
      %13 = vector.load %arg5[%c0_12, %c0_13] : memref<1x512xf32, #tpu.memory_space<vmem>>, vector<1x512xf32>
      %14 = vector.broadcast %13 : vector<1x512xf32> to vector<16x512xf32>
      %15 = arith.addf %12, %14 : vector<16x512xf32>
      %cst_14 = arith.constant 5.000000e-01 : f32
      %16 = vector.broadcast %cst_14 : f32 to vector<16x512xf32>
      %17 = arith.mulf %16, %15 : vector<16x512xf32>
      %cst_15 = arith.constant 0.707106769 : f32
      %18 = vector.broadcast %cst_15 : f32 to vector<16x512xf32>
      %19 = arith.mulf %15, %18 : vector<16x512xf32>
      %20 = math.erf %19 : vector<16x512xf32>
      %cst_16 = arith.constant 1.000000e+00 : f32
      %21 = vector.broadcast %cst_16 : f32 to vector<16x512xf32>
      %22 = arith.addf %21, %20 : vector<16x512xf32>
      %23 = arith.mulf %17, %22 : vector<16x512xf32>
      %24 = arith.truncf %23 : vector<16x512xf32> to vector<16x512xbf16>
      %c0_17 = arith.constant 0 : index
      %c0_18 = arith.constant 0 : index
      %25 = vector.load %arg6[%c0_17, %c0_18] : memref<16x512xbf16, #tpu.memory_space<vmem>>, vector<16x512xbf16>
      tpu.vector_store %arg6[%c0_17, %c0_18], %24 {strides = array<i32>} : memref<16x512xbf16, #tpu.memory_space<vmem>>, vector<16x512xbf16>,
    } else {
    }
    return
  }
  func.func @transform_0(%arg0: i32, %arg1: i32, %arg2: i32) -> (i32, i32) {
    %c0_i32 = arith.constant 0 : i32
    return %arg0, %arg2 : i32, i32
  }
  func.func @transform_1(%arg0: i32, %arg1: i32, %arg2: i32) -> (i32, i32) {
    %c0_i32 = arith.constant 0 : i32
    return %arg2, %arg1 : i32, i32
  }
  func.func @transform_2(%arg0: i32, %arg1: i32, %arg2: i32) -> (i32, i32) {
    %c0_i32 = arith.constant 0 : i32
    %c0_i32_0 = arith.constant 0 : i32
    return %c0_i32, %arg1 : i32, i32
  }
  func.func @transform_3(%arg0: i32, %arg1: i32, %arg2: i32) -> (i32, i32) {
    %c0_i32 = arith.constant 0 : i32
    return %arg0, %arg1 : i32, i32
  }
}

module attributes {stable_mosaic.version = 11 : i64} {
  func.func @linear_kernel(%arg0: i32, %arg1: i32, %arg2: i32, %arg3: memref<16x768xbf16, #tpu.memory_space<vmem>>, %arg4: memref<768x384xbf16, #tpu.memory_space<vmem>>, %arg5: memref<1x384xf32, #tpu.memory_space<vmem>>, %arg6: memref<16x384xbf16, #tpu.memory_space<vmem>>, %arg7: memref<16x384xf32, #tpu.memory_space<vmem>>) attributes {dimension_semantics = [#tpu.dimension_semantics<parallel>, #tpu.dimension_semantics<parallel>, #tpu.dimension_semantics<arbitrary>], iteration_bounds = array<i64: 1, 2, 4>, scalar_prefetch = 0 : i64, scratch_operands = 1 : i64, tpu.core_type = #tpu.core_type<tc>, window_params = [{transform_indices = @transform_0, window_bounds = array<i64: 16, 768>}, {transform_indices = @transform_1, window_bounds = array<i64: 768, 384>}, {transform_indices = @transform_2, window_bounds = array<i64: 1, 384>}, {transform_indices = @transform_3, window_bounds = array<i64: 16, 384>}]} {
    %c0_i32 = arith.constant 0 : i32
    %0 = arith.cmpi eq, %arg2, %c0_i32 : i32
    %1 = arith.extui %0 : i1 to i32
    %c0_i32_0 = arith.constant 0 : i32
    %2 = arith.cmpi ne, %1, %c0_i32_0 : i32
    scf.if %2 {
      %cst_9 = arith.constant 0.000000e+00 : f32
      %12 = vector.broadcast %cst_9 : f32 to vector<16x384xf32>
      %c0_10 = arith.constant 0 : index
      %c0_11 = arith.constant 0 : index
      %13 = vector.load %arg7[%c0_10, %c0_11] : memref<16x384xf32, #tpu.memory_space<vmem>>, vector<16x384xf32>
      tpu.vector_store %arg7[%c0_10, %c0_11], %12 {strides = array<i32>} : memref<16x384xf32, #tpu.memory_space<vmem>>, vector<16x384xf32>,
    } else {
    }
    %c0 = arith.constant 0 : index
    %c0_1 = arith.constant 0 : index
    %3 = vector.load %arg7[%c0, %c0_1] : memref<16x384xf32, #tpu.memory_space<vmem>>, vector<16x384xf32>
    %c0_2 = arith.constant 0 : index
    %c0_3 = arith.constant 0 : index
    %4 = vector.load %arg3[%c0_2, %c0_3] : memref<16x768xbf16, #tpu.memory_space<vmem>>, vector<16x768xbf16>
    %c0_4 = arith.constant 0 : index
    %c0_5 = arith.constant 0 : index
    %5 = vector.load %arg4[%c0_4, %c0_5] : memref<768x384xbf16, #tpu.memory_space<vmem>>, vector<768x384xbf16>
    %cst = arith.constant dense<0.000000e+00> : vector<16x384xf32>
    %6 = tpu.matmul %4, %5, %cst {dimension_numbers = #tpu.dot_dimension_numbers<[1], [0], [0], [1], [0, 0, 1, 1], [], []>} : vector<16x768xbf16>, vector<768x384xbf16>, vector<16x384xf32> -> vector<16x384xf32>
    %7 = arith.addf %3, %6 : vector<16x384xf32>
    %c0_6 = arith.constant 0 : index
    %c0_7 = arith.constant 0 : index
    %8 = vector.load %arg7[%c0_6, %c0_7] : memref<16x384xf32, #tpu.memory_space<vmem>>, vector<16x384xf32>
    tpu.vector_store %arg7[%c0_6, %c0_7], %7 {strides = array<i32>} : memref<16x384xf32, #tpu.memory_space<vmem>>, vector<16x384xf32>,
    %c3_i32 = arith.constant 3 : i32
    %9 = arith.cmpi eq, %arg2, %c3_i32 : i32
    %10 = arith.extui %9 : i1 to i32
    %c0_i32_8 = arith.constant 0 : i32
    %11 = arith.cmpi ne, %10, %c0_i32_8 : i32
    scf.if %11 {
      %c0_9 = arith.constant 0 : index
      %c0_10 = arith.constant 0 : index
      %12 = vector.load %arg7[%c0_9, %c0_10] : memref<16x384xf32, #tpu.memory_space<vmem>>, vector<16x384xf32>
      %c0_11 = arith.constant 0 : index
      %c0_12 = arith.constant 0 : index
      %13 = vector.load %arg5[%c0_11, %c0_12] : memref<1x384xf32, #tpu.memory_space<vmem>>, vector<1x384xf32>
      %14 = vector.broadcast %13 : vector<1x384xf32> to vector<16x384xf32>
      %15 = arith.addf %12, %14 : vector<16x384xf32>
      %16 = arith.truncf %15 : vector<16x384xf32> to vector<16x384xbf16>
      %c0_13 = arith.constant 0 : index
      %c0_14 = arith.constant 0 : index
      %17 = vector.load %arg6[%c0_13, %c0_14] : memref<16x384xbf16, #tpu.memory_space<vmem>>, vector<16x384xbf16>
      tpu.vector_store %arg6[%c0_13, %c0_14], %16 {strides = array<i32>} : memref<16x384xbf16, #tpu.memory_space<vmem>>, vector<16x384xbf16>,
    } else {
    }
    return
  }
  func.func @transform_0(%arg0: i32, %arg1: i32, %arg2: i32) -> (i32, i32) {
    %c0_i32 = arith.constant 0 : i32
    return %arg0, %arg2 : i32, i32
  }
  func.func @transform_1(%arg0: i32, %arg1: i32, %arg2: i32) -> (i32, i32) {
    %c0_i32 = arith.constant 0 : i32
    return %arg2, %arg1 : i32, i32
  }
  func.func @transform_2(%arg0: i32, %arg1: i32, %arg2: i32) -> (i32, i32) {
    %c0_i32 = arith.constant 0 : i32
    %c0_i32_0 = arith.constant 0 : i32
    return %c0_i32, %arg1 : i32, i32
  }
  func.func @transform_3(%arg0: i32, %arg1: i32, %arg2: i32) -> (i32, i32) {
    %c0_i32 = arith.constant 0 : i32
    return %arg0, %arg1 : i32, i32
  }
}

module attributes {stable_mosaic.version = 11 : i64} {
  func.func @linear_kernel(%arg0: i32, %arg1: i32, %arg2: i32, %arg3: memref<16x768xbf16, #tpu.memory_space<vmem>>, %arg4: memref<768x384xbf16, #tpu.memory_space<vmem>>, %arg5: memref<1x384xf32, #tpu.memory_space<vmem>>, %arg6: memref<16x384xbf16, #tpu.memory_space<vmem>>, %arg7: memref<16x384xf32, #tpu.memory_space<vmem>>) attributes {dimension_semantics = [#tpu.dimension_semantics<parallel>, #tpu.dimension_semantics<parallel>, #tpu.dimension_semantics<arbitrary>], iteration_bounds = array<i64: 1, 6, 1>, scalar_prefetch = 0 : i64, scratch_operands = 1 : i64, tpu.core_type = #tpu.core_type<tc>, window_params = [{transform_indices = @transform_0, window_bounds = array<i64: 16, 768>}, {transform_indices = @transform_1, window_bounds = array<i64: 768, 384>}, {transform_indices = @transform_2, window_bounds = array<i64: 1, 384>}, {transform_indices = @transform_3, window_bounds = array<i64: 16, 384>}]} {
    %c0_i32 = arith.constant 0 : i32
    %0 = arith.cmpi eq, %arg2, %c0_i32 : i32
    %1 = arith.extui %0 : i1 to i32
    %c0_i32_0 = arith.constant 0 : i32
    %2 = arith.cmpi ne, %1, %c0_i32_0 : i32
    scf.if %2 {
      %cst_10 = arith.constant 0.000000e+00 : f32
      %12 = vector.broadcast %cst_10 : f32 to vector<16x384xf32>
      %c0_11 = arith.constant 0 : index
      %c0_12 = arith.constant 0 : index
      %13 = vector.load %arg7[%c0_11, %c0_12] : memref<16x384xf32, #tpu.memory_space<vmem>>, vector<16x384xf32>
      tpu.vector_store %arg7[%c0_11, %c0_12], %12 {strides = array<i32>} : memref<16x384xf32, #tpu.memory_space<vmem>>, vector<16x384xf32>,
    } else {
    }
    %c0 = arith.constant 0 : index
    %c0_1 = arith.constant 0 : index
    %3 = vector.load %arg7[%c0, %c0_1] : memref<16x384xf32, #tpu.memory_space<vmem>>, vector<16x384xf32>
    %c0_2 = arith.constant 0 : index
    %c0_3 = arith.constant 0 : index
    %4 = vector.load %arg3[%c0_2, %c0_3] : memref<16x768xbf16, #tpu.memory_space<vmem>>, vector<16x768xbf16>
    %c0_4 = arith.constant 0 : index
    %c0_5 = arith.constant 0 : index
    %5 = vector.load %arg4[%c0_4, %c0_5] : memref<768x384xbf16, #tpu.memory_space<vmem>>, vector<768x384xbf16>
    %cst = arith.constant dense<0.000000e+00> : vector<16x384xf32>
    %6 = tpu.matmul %4, %5, %cst {dimension_numbers = #tpu.dot_dimension_numbers<[1], [0], [0], [1], [0, 0, 1, 1], [], []>} : vector<16x768xbf16>, vector<768x384xbf16>, vector<16x384xf32> -> vector<16x384xf32>
    %7 = arith.addf %3, %6 : vector<16x384xf32>
    %c0_6 = arith.constant 0 : index
    %c0_7 = arith.constant 0 : index
    %8 = vector.load %arg7[%c0_6, %c0_7] : memref<16x384xf32, #tpu.memory_space<vmem>>, vector<16x384xf32>
    tpu.vector_store %arg7[%c0_6, %c0_7], %7 {strides = array<i32>} : memref<16x384xf32, #tpu.memory_space<vmem>>, vector<16x384xf32>,
    %c0_i32_8 = arith.constant 0 : i32
    %9 = arith.cmpi eq, %arg2, %c0_i32_8 : i32
    %10 = arith.extui %9 : i1 to i32
    %c0_i32_9 = arith.constant 0 : i32
    %11 = arith.cmpi ne, %10, %c0_i32_9 : i32
    scf.if %11 {
      %c0_10 = arith.constant 0 : index
      %c0_11 = arith.constant 0 : index
      %12 = vector.load %arg7[%c0_10, %c0_11] : memref<16x384xf32, #tpu.memory_space<vmem>>, vector<16x384xf32>
      %c0_12 = arith.constant 0 : index
      %c0_13 = arith.constant 0 : index
      %13 = vector.load %arg5[%c0_12, %c0_13] : memref<1x384xf32, #tpu.memory_space<vmem>>, vector<1x384xf32>
      %14 = vector.broadcast %13 : vector<1x384xf32> to vector<16x384xf32>
      %15 = arith.addf %12, %14 : vector<16x384xf32>
      %16 = arith.truncf %15 : vector<16x384xf32> to vector<16x384xbf16>
      %c0_14 = arith.constant 0 : index
      %c0_15 = arith.constant 0 : index
      %17 = vector.load %arg6[%c0_14, %c0_15] : memref<16x384xbf16, #tpu.memory_space<vmem>>, vector<16x384xbf16>
      tpu.vector_store %arg6[%c0_14, %c0_15], %16 {strides = array<i32>} : memref<16x384xbf16, #tpu.memory_space<vmem>>, vector<16x384xbf16>,
    } else {
    }
    return
  }
  func.func @transform_0(%arg0: i32, %arg1: i32, %arg2: i32) -> (i32, i32) {
    %c0_i32 = arith.constant 0 : i32
    return %arg0, %arg2 : i32, i32
  }
  func.func @transform_1(%arg0: i32, %arg1: i32, %arg2: i32) -> (i32, i32) {
    %c0_i32 = arith.constant 0 : i32
    return %arg2, %arg1 : i32, i32
  }
  func.func @transform_2(%arg0: i32, %arg1: i32, %arg2: i32) -> (i32, i32) {
    %c0_i32 = arith.constant 0 : i32
    %c0_i32_0 = arith.constant 0 : i32
    return %c0_i32, %arg1 : i32, i32
  }
  func.func @transform_3(%arg0: i32, %arg1: i32, %arg2: i32) -> (i32, i32) {
    %c0_i32 = arith.constant 0 : i32
    return %arg0, %arg1 : i32, i32
  }
}

module attributes {stable_mosaic.version = 11 : i64} {
  func.func @head_kernel(%arg0: memref<2x768xbf16, #tpu.memory_space<vmem>>, %arg1: memref<768x768xbf16, #tpu.memory_space<vmem>>, %arg2: memref<1x768xf32, #tpu.memory_space<vmem>>, %arg3: memref<768x2xf32, #tpu.memory_space<vmem>>, %arg4: memref<1x2xf32, #tpu.memory_space<vmem>>, %arg5: memref<2x2xf32, #tpu.memory_space<vmem>>, %arg6: memref<1x2xf32, #tpu.memory_space<vmem>>, %arg7: memref<2x2xf32, #tpu.memory_space<vmem>>, %arg8: memref<1x1xf32, #tpu.memory_space<vmem>>) attributes {dimension_semantics = [], scalar_prefetch = 0 : i64, scratch_operands = 0 : i64, tpu.core_type = #tpu.core_type<tc>} {
    %c0 = arith.constant 0 : index
    %c0_0 = arith.constant 0 : index
    %0 = vector.load %arg0[%c0, %c0_0] : memref<2x768xbf16, #tpu.memory_space<vmem>>, vector<2x768xbf16>
    %c0_1 = arith.constant 0 : index
    %c0_2 = arith.constant 0 : index
    %1 = vector.load %arg1[%c0_1, %c0_2] : memref<768x768xbf16, #tpu.memory_space<vmem>>, vector<768x768xbf16>
    %cst = arith.constant dense<0.000000e+00> : vector<2x768xf32>
    %2 = tpu.matmul %0, %1, %cst {dimension_numbers = #tpu.dot_dimension_numbers<[1], [0], [0], [1], [0, 0, 1, 1], [], []>} : vector<2x768xbf16>, vector<768x768xbf16>, vector<2x768xf32> -> vector<2x768xf32>
    %c0_3 = arith.constant 0 : index
    %c0_4 = arith.constant 0 : index
    %3 = vector.load %arg2[%c0_3, %c0_4] : memref<1x768xf32, #tpu.memory_space<vmem>>, vector<1x768xf32>
    %4 = vector.broadcast %3 : vector<1x768xf32> to vector<2x768xf32>
    %5 = arith.addf %2, %4 : vector<2x768xf32>
    %6 = math.tanh %5 : vector<2x768xf32>
    %c0_5 = arith.constant 0 : index
    %c0_6 = arith.constant 0 : index
    %7 = vector.load %arg3[%c0_5, %c0_6] : memref<768x2xf32, #tpu.memory_space<vmem>>, vector<768x2xf32>
    %cst_7 = arith.constant dense<0.000000e+00> : vector<2x2xf32>
    %8 = tpu.matmul %6, %7, %cst_7 {dimension_numbers = #tpu.dot_dimension_numbers<[1], [0], [0], [1], [0, 0, 1, 1], [], []>} : vector<2x768xf32>, vector<768x2xf32>, vector<2x2xf32> -> vector<2x2xf32>
    %c0_8 = arith.constant 0 : index
    %c0_9 = arith.constant 0 : index
    %9 = vector.load %arg4[%c0_8, %c0_9] : memref<1x2xf32, #tpu.memory_space<vmem>>, vector<1x2xf32>
    %10 = vector.broadcast %9 : vector<1x2xf32> to vector<2x2xf32>
    %11 = arith.addf %8, %10 : vector<2x2xf32>
    %c0_10 = arith.constant 0 : index
    %c0_11 = arith.constant 0 : index
    %12 = vector.load %arg7[%c0_10, %c0_11] : memref<2x2xf32, #tpu.memory_space<vmem>>, vector<2x2xf32>
    tpu.vector_store %arg7[%c0_10, %c0_11], %11 {strides = array<i32>} : memref<2x2xf32, #tpu.memory_space<vmem>>, vector<2x2xf32>,
    %c0_12 = arith.constant 0 : index
    %c0_13 = arith.constant 0 : index
    %13 = vector.load %arg5[%c0_12, %c0_13] : memref<2x2xf32, #tpu.memory_space<vmem>>, vector<2x2xf32>
    %c0_14 = arith.constant 0 : index
    %c0_15 = arith.constant 0 : index
    %14 = vector.load %arg6[%c0_14, %c0_15] : memref<1x2xf32, #tpu.memory_space<vmem>>, vector<1x2xf32>
    %15 = vector.broadcast %14 : vector<1x2xf32> to vector<2x2xf32>
    %16 = arith.mulf %15, %13 : vector<2x2xf32>
    %cst_16 = arith.constant 0.000000e+00 : f32
    %17 = vector.broadcast %cst_16 : f32 to vector<2x2xf32>
    %18 = arith.subf %17, %11 : vector<2x2xf32>
    %cst_17 = arith.constant 0.000000e+00 : f32
    %19 = vector.broadcast %cst_17 : f32 to vector<2x2xf32>
    %20 = arith.maximumf %18, %19 : vector<2x2xf32>
    %21 = math.absf %18 : vector<2x2xf32>
    %cst_18 = arith.constant 0.000000e+00 : f32
    %22 = vector.broadcast %cst_18 : f32 to vector<2x2xf32>
    %23 = arith.subf %22, %21 : vector<2x2xf32>
    %24 = math.exp %23 : vector<2x2xf32>
    %cst_19 = arith.constant 1.000000e+00 : f32
    %25 = vector.broadcast %cst_19 : f32 to vector<2x2xf32>
    %26 = arith.addf %25, %24 : vector<2x2xf32>
    %27 = math.log %26 : vector<2x2xf32>
    %28 = arith.addf %20, %27 : vector<2x2xf32>
    %29 = arith.mulf %16, %28 : vector<2x2xf32>
    %cst_20 = arith.constant 1.000000e+00 : f32
    %30 = vector.broadcast %cst_20 : f32 to vector<2x2xf32>
    %31 = arith.subf %30, %13 : vector<2x2xf32>
    %cst_21 = arith.constant 0.000000e+00 : f32
    %32 = vector.broadcast %cst_21 : f32 to vector<2x2xf32>
    %33 = arith.maximumf %11, %32 : vector<2x2xf32>
    %34 = math.absf %11 : vector<2x2xf32>
    %cst_22 = arith.constant 0.000000e+00 : f32
    %35 = vector.broadcast %cst_22 : f32 to vector<2x2xf32>
    %36 = arith.subf %35, %34 : vector<2x2xf32>
    %37 = math.exp %36 : vector<2x2xf32>
    %cst_23 = arith.constant 1.000000e+00 : f32
    %38 = vector.broadcast %cst_23 : f32 to vector<2x2xf32>
    %39 = arith.addf %38, %37 : vector<2x2xf32>
    %40 = math.log %39 : vector<2x2xf32>
    %41 = arith.addf %33, %40 : vector<2x2xf32>
    %42 = arith.mulf %31, %41 : vector<2x2xf32>
    %43 = arith.addf %29, %42 : vector<2x2xf32>
    %44 = vector.shape_cast %43 : vector<2x2xf32> to vector<1x2x2xf32>
    %cst_24 = arith.constant dense<0.000000e+00> : vector<1xf32>
    %45 = vector.multi_reduction <add>, %44, %cst_24 [1, 2] : vector<1x2x2xf32> to vector<1xf32>
    %46 = vector.shape_cast %45 : vector<1xf32> to vector<1x1x1xf32>
    %47 = vector.extract %46[0, 0, 0] : f32 from vector<1x1x1xf32>
    %48 = vector.broadcast %47 : f32 to vector<1x1xf32>
    %cst_25 = arith.constant 4.000000e+00 : f32
    %49 = vector.broadcast %cst_25 : f32 to vector<1x1xf32>
    %50 = arith.divf %48, %49 : vector<1x1xf32>
    %c0_26 = arith.constant 0 : index
    %c0_27 = arith.constant 0 : index
    %51 = vector.load %arg8[%c0_26, %c0_27] : memref<1x1xf32, #tpu.memory_space<vmem>>, vector<1x1xf32>
    tpu.vector_store %arg8[%c0_26, %c0_27], %50 {strides = array<i32>} : memref<1x1xf32, #tpu.memory_space<vmem>>, vector<1x1xf32>,
    return
  }
}

</mosaic_0001>

<bundles_post_ra>
// kernel: weighted_bce_bert_forward.16
= control target key start
LH: loop header
LB: loop body
LE: loop exit
PB: predicated region body
PF: predicated region fallthrough
CT: control target
= control target key end

     0   :  { %v101_v61 = vlaneseq  ;;  %s384_s0 = inlined_call_operand.vmem [shape: f32[16,768], index: 0, kind: input, shape index: {}]   ;;  %s385_s1 = inlined_call_operand.vmem [shape: f32[1,768], index: 1, kind: input, shape index: {}]   ;;  %s386_s2 = inlined_call_operand.vmem [shape: f32[1,768], index: 2, kind: input, shape index: {}]   ;;  %s387_s3 = inlined_call_operand.vmem [shape: bf16[16,768], index: 3, kind: output, shape index: {}]  }
   0x1   :  { %v14_v0 = vld [vmem:[%s384_s0] sm:$0xff]  ;;  %v15_v1 = vld [vmem:[%s384_s0 + $0x8] sm:$0xff]  ;;  %v16_v2 = vld [vmem:[%s384_s0 + $0x10] sm:$0xff] }
   0x2   :  { %v17_v3 = vld [vmem:[%s384_s0 + $0x18] sm:$0xff]  ;;  %v26_v4 = vadd.f32 %v15_v1, %v14_v0  ;;  %v20_v5 = vld [vmem:[%s384_s0 + $0x30] sm:$0xff]  ;;  %v22_v7 = vld [vmem:[%s384_s0 + $0x40] sm:$0xff] }
   0x3   :  { %v21_v6 = vld [vmem:[%s384_s0 + $0x38] sm:$0xff]  ;;  %v18_v10 = vld [vmem:[%s384_s0 + $0x20] sm:$0xff]  ;;  %v23_v11 = vld [vmem:[%s384_s0 + $0x48] sm:$0xff] }
   0x4   :  { %v27_v8 = vadd.f32 %v26_v4, %v16_v2  ;;  %v33_v9 = vadd.f32 %v21_v6, %v20_v5  ;;  %v19_v14 = vld [vmem:[%s384_s0 + $0x28] sm:$0xff]  ;;  %v24_v15 = vld [vmem:[%s384_s0 + $0x50] sm:$0xff]  ;;  %v25_v18 = vld [vmem:[%s384_s0 + $0x58] sm:$0xff] }
   0x6   :  { %v28_v12 = vadd.f32 %v27_v8, %v17_v3  ;;  %v34_v13 = vadd.f32 %v33_v9, %v22_v7 }
   0x8   :  { %v29_v16 = vadd.f32 %v28_v12, %v18_v10  ;;  %v35_v17 = vadd.f32 %v34_v13, %v23_v11 }
   0xa   :  { %v30_v19 = vadd.f32 %v29_v16, %v19_v14  ;;  %v36_v20 = vadd.f32 %v35_v17, %v24_v15 }
   0xc   :  { %31 = vadd.xlane.f32.xlu0 %v30_v19  ;;  %v37_v21 = vadd.f32 %v36_v20, %v25_v18 }
  0x10   :  { %38 = vadd.xlane.f32.xlu0 %v37_v21 }
  0x99   :  { %v32_v22 = vpop.xlane.xlu0 %31 }
  0x9a   :  { %v41_v23 = vmul.f32 0.0013020834, %v32_v22 }
  0x9c   :  { %v305_v24 = vsub.f32 %v14_v0, %v41_v23  ;;  %v307_v25 = vsub.f32 %v15_v1, %v41_v23  ;;  %v309_v26 = vsub.f32 %v16_v2, %v41_v23  ;;  %v311_v28 = vsub.f32 %v17_v3, %v41_v23 }
  0x9d   :  { %v39_v27 = vpop.xlane.xlu0 %38  ;;  %v317_v32 = vsub.f32 %v18_v10, %v41_v23  ;;  %v48_v38 = vsub.f32 %v19_v14, %v41_v23  ;;  %v102_v1 = vshrl.u32 %v101_v61, 7 }
  0x9e   :  { %v42_v29 = vmul.f32 0.0013020834, %v39_v27  ;;  %v55_v30 = vmul.f32 %v305_v24, %v305_v24  ;;  %v56_v31 = vmul.f32 %v307_v25, %v307_v25  ;;  %v57_v33 = vmul.f32 %v309_v26, %v309_v26 }
  0x9f   :  { %v58_v39 = vmul.f32 %v311_v28, %v311_v28  ;;  %v59_v44 = vmul.f32 %v317_v32, %v317_v32  ;;  %v60_v49 = vmul.f32 %v48_v38, %v48_v38  ;;  %v103_v4 = vsub.s32 0, %v102_v1 }
  0xa0   :  { %v67_v34 = vadd.f32 %v56_v31, %v55_v30  ;;  %v321_v35 = vsub.f32 %v20_v5, %v42_v29  ;;  %v323_v36 = vsub.f32 %v21_v6, %v42_v29  ;;  %v325_v37 = vsub.f32 %v22_v7, %v42_v29  ;;  %v99_v6 = vld [vmem:[%s385_s1] sm:$0x3f] }
  0xa1   :  { %v329_v41 = vsub.f32 %v23_v11, %v42_v29  ;;  %v337_v46 = vsub.f32 %v24_v15, %v42_v29  ;;  %v341_v51 = vsub.f32 %v25_v18, %v42_v29  ;;  %v107_v5 = vsub.s32 1, %v102_v1  ;;  %v143_v11 = vld [vmem:[%s386_s2] sm:$0x3f] }
  0xa2   :  { %v68_v40 = vadd.f32 %v67_v34, %v57_v33  ;;  %v61_v42 = vmul.f32 %v321_v35, %v321_v35  ;;  %v62_v43 = vmul.f32 %v323_v36, %v323_v36  ;;  %v63_v47 = vmul.f32 %v325_v37, %v325_v37 }
  0xa3   :  { %v64_v52 = vmul.f32 %v329_v41, %v329_v41  ;;  %v65_v55 = vmul.f32 %v337_v46, %v337_v46  ;;  %v66_v57 = vmul.f32 %v341_v51, %v341_v51  ;;  %v111_v7 = vsub.s32 2, %v102_v1 }
  0xa4   :  { %v69_v45 = vadd.f32 %v68_v40, %v58_v39  ;;  %v74_v48 = vadd.f32 %v62_v43, %v61_v42  ;;  %v115_v8 = vsub.s32 3, %v102_v1  ;;  %v119_v9 = vsub.s32 4, %v102_v1 }
  0xa5   :  { %v123_v10 = vsub.s32 5, %v102_v1  ;;  %v104_v12 = vrot.slane %v99_v6, %v103_v4  ;;  %v108_v13 = vrot.slane %v99_v6, %v107_v5  ;;  %v112_v14 = vrot.slane %v99_v6, %v111_v7 }
  0xa6   :  { %v70_v50 = vadd.f32 %v69_v45, %v59_v44  ;;  %v75_v53 = vadd.f32 %v74_v48, %v63_v47  ;;  %v116_v15 = vrot.slane %v99_v6, %v115_v8  ;;  %v120_v16 = vrot.slane %v99_v6, %v119_v9 }
  0xa7   :  { %v124_v17 = vrot.slane %v99_v6, %v123_v10  ;;  %v148_v19 = vrot.slane %v143_v11, %v103_v4  ;;  %v152_v20 = vrot.slane %v143_v11, %v107_v5  ;;  %v156_v21 = vrot.slane %v143_v11, %v111_v7 }
  0xa8   :  { %v71_v54 = vadd.f32 %v70_v50, %v60_v49  ;;  %v76_v56 = vadd.f32 %v75_v53, %v64_v52  ;;  %v160_v22 = vrot.slane %v143_v11, %v115_v8  ;;  %v164_v31 = vrot.slane %v143_v11, %v119_v9 }
  0xa9   :  { %v168_v33 = vrot.slane %v143_v11, %v123_v10 }
  0xaa   :  { %72 = vadd.xlane.f32.xlu1 %v71_v54  ;;  %v77_v58 = vadd.f32 %v76_v56, %v65_v55 }
  0xac   :  { %v78_v59 = vadd.f32 %v77_v58, %v66_v57 }
  0xae   :  { %79 = vadd.xlane.f32.xlu1 %v78_v59 }
 0x137   :  { %v73_v60 = vpop.xlane.xlu1 %72 }
 0x138   :  { %v81_v62 = vmul.f32 0.0013020834, %v73_v60 }
 0x13a   :  { %v83_v63 = vadd.f32 1e-12, %v81_v62 }
 0x13b   :  { %v80_v0 = vpop.xlane.xlu1 %79 }
 0x13c   :  { %245 = vrsqrt.f32 %v83_v63  ;;  %v82_v2 = vmul.f32 0.0013020834, %v80_v0 }
 0x13e   :  { %v84_v3 = vadd.f32 1e-12, %v82_v2 }
 0x140   :  { %247 = vrsqrt.f32 %v84_v3 }
 0x146   :  { %v246_v18 = vpop.eup %245 }
 0x147   :  { %v87_v23 = vmul.f32 %v246_v18, %v305_v24  ;;  %v88_v27 = vmul.f32 %v246_v18, %v307_v25  ;;  %v89_v29 = vmul.f32 %v246_v18, %v309_v26  ;;  %v90_v30 = vmul.f32 %v246_v18, %v311_v28 }
 0x148   :  { %v91_v34 = vmul.f32 %v246_v18, %v317_v32  ;;  %v92_v39 = vmul.f32 %v246_v18, %v48_v38 }
 0x149   :  { %v131_v40 = vmul.f32 %v104_v12, %v87_v23  ;;  %v132_v42 = vmul.f32 %v108_v13, %v88_v27  ;;  %v133_v43 = vmul.f32 %v112_v14, %v89_v29  ;;  %v134_v44 = vmul.f32 %v116_v15, %v90_v30 }
 0x14a   :  { %v248_v45 = vpop.eup %247  ;;  %v135_v47 = vmul.f32 %v120_v16, %v91_v34  ;;  %v136_v48 = vmul.f32 %v124_v17, %v92_v39 }
 0x14b   :  { %v175_v49 = vadd.f32 %v148_v19, %v131_v40  ;;  %v176_v24 = vadd.f32 %v152_v20, %v132_v42  ;;  %v177_v50 = vadd.f32 %v156_v21, %v133_v43  ;;  %v178_v25 = vadd.f32 %v160_v22, %v134_v44 }
 0x14c   :  { %v179_v52 = vadd.f32 %v164_v31, %v135_v47  ;;  %v180_v26 = vadd.f32 %v168_v33, %v136_v48  ;;  %v93_v28 = vmul.f32 %v248_v45, %v321_v35  ;;  %v94_v53 = vmul.f32 %v248_v45, %v323_v36 }
 0x14d   :  { %v239_v54 = vpack.c.bf16 %v176_v24, %v175_v49  ;;  %v240_v32 = vpack.c.bf16 %v178_v25, %v177_v50  ;;  %v95_v38 = vmul.f32 %v248_v45, %v325_v37  ;;  %v96_v55 = vmul.f32 %v248_v45, %v329_v41 }
 0x14e   :  { %v241_v56 = vpack.c.bf16 %v180_v26, %v179_v52  ;;  %v97_v57 = vmul.f32 %v248_v45, %v337_v46  ;;  %v98_v58 = vmul.f32 %v248_v45, %v341_v51  ;;  %v137_v59 = vmul.f32 %v104_v12, %v93_v28 }
 0x14f   :  { %223 = vst [vmem:[%s387_s3] sm:$0xff] %v239_v54  ;;  %224 = vst [vmem:[%s387_s3 + $0x8] sm:$0xff] %v240_v32  ;;  %v138_v35 = vmul.f32 %v108_v13, %v94_v53  ;;  %v139_v36 = vmul.f32 %v112_v14, %v95_v38  ;;  %v140_v60 = vmul.f32 %v116_v15, %v96_v55 }
 0x150   :  { %225 = vst [vmem:[%s387_s3 + $0x10] sm:$0xff] %v241_v56  ;;  %v141_v37 = vmul.f32 %v120_v16, %v97_v57  ;;  %v142_v41 = vmul.f32 %v124_v17, %v98_v58  ;;  %v181_v46 = vadd.f32 %v148_v19, %v137_v59 }
 0x151   :  { %v182_v51 = vadd.f32 %v152_v20, %v138_v35  ;;  %v183_v61 = vadd.f32 %v156_v21, %v139_v36  ;;  %v184_v62 = vadd.f32 %v160_v22, %v140_v60 }
 0x152   :  { %v185_v63 = vadd.f32 %v164_v31, %v141_v37  ;;  %v186_v0 = vadd.f32 %v168_v33, %v142_v41 }
 0x153   :  { %v242_v1 = vpack.c.bf16 %v182_v51, %v181_v46  ;;  %v243_v2 = vpack.c.bf16 %v184_v62, %v183_v61 }
 0x154   :  { %v244_v3 = vpack.c.bf16 %v186_v0, %v185_v63 }
 0x155   :  { %226 = vst [vmem:[%s387_s3 + $0x18] sm:$0xff] %v242_v1  ;;  %227 = vst [vmem:[%s387_s3 + $0x20] sm:$0xff] %v243_v2 }
 0x156   :  { %228 = vst [vmem:[%s387_s3 + $0x28] sm:$0xff] %v244_v3 }

// kernel: weighted_bce_bert_forward.18
= control target key start
LH: loop header
LB: loop body
LE: loop exit
PB: predicated region body
PF: predicated region fallthrough
CT: control target
= control target key end

     0   :  { %s2013_s15 = smov 0   ;;  %s2390_s0 = inlined_call_operand.vmem [shape: bf16[24,8,64], index: 0, kind: input, shape index: {}]   ;;  %s2391_s1 = inlined_call_operand.vmem [shape: bf16[24,8,64], index: 1, kind: input, shape index: {}]   ;;  %s2392_s2 = inlined_call_operand.vmem [shape: bf16[24,8,64], index: 2, kind: input, shape index: {}]   ;;  %s2393_s3 = inlined_call_operand.vmem [shape: f32[2,1,8], index: 3, kind: input, shape index: {}]   ;;  %s2394_s4 = inlined_call_operand.vmem [shape: bf16[24,8,64], index: 4, kind: output, shape index: {}]  }
   0x1 LB: > { %s2019_s16 = sadd.s32 4294967295, %s1984_s15   ;;  %p1696_p0 = scmp.ge.s32.totalorder %s1984_s15, 1  ;;  %s1984_s15 = sphi %s2013_s15, %s14_s15  }
   0x2   : > { %p193_p1 = scmp.lt.s32.totalorder %s1984_s15, 3 }
   0x4   : > { %p194_p2 = pnand %p1696_p0, %p193_p1 }
   0x5   : > { %s232_s17 = smul.u32 (!%p194_p2), 12, %s2019_s16  ;;  %v1986_v0 = vmov (!%p194_p2), 0.0   ;;  %vm1987_vm0 = vmmov (!%p194_p2), 0   ;;  %vm296_vm1 = vcmask (!%p194_p2), 523264   ;;  %p250_p4 = scmp.lt.s32.totalorder (!%p194_p2), %s2019_s16, 1  ;;  %vm880_vm2 = vcmask (!%p194_p2), 64512  }
   0x6   : > { %197 = sbr.rel (%p194_p2) target bundleno = 816 (0x330), region = 36  ;;  %1776 = vmatprep.subr.bf16.mxu0 (!%p194_p2), %v1986_v0  ;;  %1782 = vmatprep.subr.bf16.mxu1 (!%p194_p2), %v1986_v0  ;;  %vm1028_vm3 = vcmask (!%p194_p2), 1043456   ;;  %vm1590_vm4 = vcmask (!%p194_p2), 519168  }
   0x7   : > { %p233_p3 = scmp.lt.s32.totalorder (!%p194_p2), %s232_s17, 23  ;;  %1778 = vmatprep.mubr.msk.bf16.mxu0 (!%p194_p2), %vm1987_vm0, %v1986_v0  ;;  %1784 = vmatprep.mubr.msk.bf16.mxu1 (!%p194_p2), %vm1987_vm0, %v1986_v0 }
   0xd   : > { %s2396_s17 = smov (!%p233_p3, %s232_s17), 23  ;;  %s2398_s16 = smov (!%p250_p4, %s2019_s16), 1 }
   0xe   : > { %s2030_s18 = sshll.u32 %s2396_s17, 2  ;;  %s252_s27 = scalar_lea.vmem %s2393_s3, %s2398_s16 }
   0xf   : > { %s2036_s21 = scalar_lea.vmem %s2391_s1, %s2030_s18  ;;  %s2046_s24 = scalar_lea.vmem %s2390_s0, %s2030_s18  ;;  %v2133_v39 = vld [vmem:[%s252_s27] ss:$0 sm:$0xff] }
  0x10   : > { %v272_v1 = vld [vmem:[%s2036_s21] sm:$0xf]  ;;  %v273_v2 = vld [vmem:[%s2036_s21 + $0x4] sm:$0xf]  ;;  %v274_v5 = vld [vmem:[%s2036_s21 + $0x8] sm:$0xf]  ;;  %s2243_s30 = scalar_lea.vmem %s2392_s2, %s2030_s18  ;;  %s2361_s7 = scalar_lea.vmem %s2394_s4, %s2030_s18 }
  0x11   : > { %v301_v3 = vsel %vm296_vm1, %v272_v1, 0  ;;  %v347_v4 = vsel %vm296_vm1, %v273_v2, 0  ;;  %v275_v6 = vld [vmem:[%s2036_s21 + $0xc] sm:$0xf]  ;;  %v260_v7 = vld [vmem:[%s2046_s24] sm:$0xf] }
  0x12   : > { %1777 = vmatpush3.bf16.xpose.msra.mxu0 %v301_v3  ;;  %1783 = vmatpush3.bf16.xpose.msra.mxu1 %v347_v4  ;;  %v261_v8 = vld [vmem:[%s2046_s24 + $0x4] sm:$0xf]  ;;  %v393_v9 = vsel %vm296_vm1, %v274_v5, 0  ;;  %v439_v10 = vsel %vm296_vm1, %v275_v6, 0  ;;  %v276_v11 = vld [vmem:[%s2036_s21 + $0x10] sm:$0xf] }
  0x13   : > { %1788 = vmatprep.subr.bf16.mxu0 %v1986_v0  ;;  %1794 = vmatprep.subr.bf16.mxu1 %v1986_v0  ;;  %v277_v12 = vld [vmem:[%s2036_s21 + $0x14] sm:$0xf]  ;;  %v262_v13 = vld [vmem:[%s2046_s24 + $0x8] sm:$0xf]  ;;  %v263_v14 = vld [vmem:[%s2046_s24 + $0xc] sm:$0xf] }
  0x14   : > { %v485_v15 = vsel %vm296_vm1, %v276_v11, 0  ;;  %v531_v16 = vsel %vm296_vm1, %v277_v12, 0  ;;  %v278_v17 = vld [vmem:[%s2036_s21 + $0x18] sm:$0xf]  ;;  %v279_v18 = vld [vmem:[%s2036_s21 + $0x1c] sm:$0xf] }
  0x15   : > { %v264_v19 = vld [vmem:[%s2046_s24 + $0x10] sm:$0xf]  ;;  %v265_v20 = vld [vmem:[%s2046_s24 + $0x14] sm:$0xf]  ;;  %v577_v21 = vsel %vm296_vm1, %v278_v17, 0  ;;  %v623_v22 = vsel %vm296_vm1, %v279_v18, 0 }
  0x16   : > { %v280_v23 = vld [vmem:[%s2036_s21 + $0x20] sm:$0xf]  ;;  %v281_v24 = vld [vmem:[%s2036_s21 + $0x24] sm:$0xf]  ;;  %v266_v25 = vld [vmem:[%s2046_s24 + $0x18] sm:$0xf] }
  0x17   : > { %v267_v26 = vld [vmem:[%s2046_s24 + $0x1c] sm:$0xf]  ;;  %v669_v27 = vsel %vm296_vm1, %v280_v23, 0  ;;  %v715_v28 = vsel %vm296_vm1, %v281_v24, 0  ;;  %v282_v29 = vld [vmem:[%s2036_s21 + $0x28] sm:$0xf] }
  0x18   : > { %v283_v30 = vld [vmem:[%s2036_s21 + $0x2c] sm:$0xf]  ;;  %v268_v31 = vld [vmem:[%s2046_s24 + $0x20] sm:$0xf]  ;;  %v269_v32 = vld [vmem:[%s2046_s24 + $0x24] sm:$0xf] }
  0x19   : > { %1779 = vmatmul.mubr.msk.bf16.vlgmr.msra.gmra.mrb[0].mxu0 %vm296_vm1, %v260_v7  ;;  %1785 = vmatmul.mubr.msk.bf16.vlgmr.msra.gmra.mrb[0].mxu1 %vm296_vm1, %v261_v8  ;;  %v761_v33 = vsel %vm296_vm1, %v282_v29, 0  ;;  %v807_v34 = vsel %vm296_vm1, %v283_v30, 0  ;;  %v270_v35 = vld [vmem:[%s2046_s24 + $0x28] sm:$0xf]  ;;  %v271_v36 = vld [vmem:[%s2046_s24 + $0x2c] sm:$0xf] }
  0x1a   : > { %1789 = vmatpush3.bf16.xpose.msra.mxu0 %v393_v9  ;;  %1795 = vmatpush3.bf16.xpose.msra.mxu1 %v439_v10 }
  0x1b   : > { %1790 = vmatprep.mubr.msk.bf16.mxu0 %vm1987_vm0, %v1986_v0  ;;  %1796 = vmatprep.mubr.msk.bf16.mxu1 %vm1987_vm0, %v1986_v0 }
  0x1c   : > { %1800 = vmatprep.subr.bf16.mxu0 %v1986_v0  ;;  %1806 = vmatprep.subr.bf16.mxu1 %v1986_v0 }
  0x21   : > { %1791 = vmatmul.mubr.msk.bf16.vlgmr.msra.gmra.mrb[4].mxu0 %vm296_vm1, %v262_v13  ;;  %1797 = vmatmul.mubr.msk.bf16.vlgmr.msra.gmra.mrb[4].mxu1 %vm296_vm1, %v263_v14 }
  0x22   : > { %1801 = vmatpush3.bf16.xpose.msra.mxu0 %v485_v15  ;;  %1807 = vmatpush3.bf16.xpose.msra.mxu1 %v531_v16 }
  0x23   : > { %1802 = vmatprep.mubr.msk.bf16.mxu0 %vm1987_vm0, %v1986_v0  ;;  %1808 = vmatprep.mubr.msk.bf16.mxu1 %vm1987_vm0, %v1986_v0 }
  0x24   : > { %1812 = vmatprep.subr.bf16.mxu0 %v1986_v0  ;;  %1818 = vmatprep.subr.bf16.mxu1 %v1986_v0 }
  0x29   : > { %1803 = vmatmul.mubr.msk.bf16.vlgmr.msra.gmra.mrb[8].mxu0 %vm296_vm1, %v264_v19  ;;  %1809 = vmatmul.mubr.msk.bf16.vlgmr.msra.gmra.mrb[8].mxu1 %vm296_vm1, %v265_v20 }
  0x2a   : > { %1813 = vmatpush3.bf16.xpose.msra.mxu0 %v577_v21  ;;  %1819 = vmatpush3.bf16.xpose.msra.mxu1 %v623_v22 }
  0x2b   : > { %1814 = vmatprep.mubr.msk.bf16.mxu0 %vm1987_vm0, %v1986_v0  ;;  %1820 = vmatprep.mubr.msk.bf16.mxu1 %vm1987_vm0, %v1986_v0 }
  0x2c   : > { %1824 = vmatprep.subr.bf16.mxu0 %v1986_v0  ;;  %1830 = vmatprep.subr.bf16.mxu1 %v1986_v0 }
  0x31   : > { %1815 = vmatmul.mubr.msk.bf16.vlgmr.msra.gmra.mrb[12].mxu0 %vm296_vm1, %v266_v25  ;;  %1821 = vmatmul.mubr.msk.bf16.vlgmr.msra.gmra.mrb[12].mxu1 %vm296_vm1, %v267_v26 }
  0x32   : > { %1825 = vmatpush3.bf16.xpose.msra.mxu0 %v669_v27  ;;  %1831 = vmatpush3.bf16.xpose.msra.mxu1 %v715_v28 }
  0x33   : > { %1826 = vmatprep.mubr.msk.bf16.mxu0 %vm1987_vm0, %v1986_v0  ;;  %1832 = vmatprep.mubr.msk.bf16.mxu1 %vm1987_vm0, %v1986_v0 }
  0x34   : > { %1836 = vmatprep.subr.bf16.mxu0 %v1986_v0  ;;  %1842 = vmatprep.subr.bf16.mxu1 %v1986_v0 }
  0x39   : > { %1827 = vmatmul.mubr.msk.bf16.vlgmr.msra.gmra.mrb[16].mxu0 %vm296_vm1, %v268_v31  ;;  %1833 = vmatmul.mubr.msk.bf16.vlgmr.msra.gmra.mrb[16].mxu1 %vm296_vm1, %v269_v32 }
  0x3a   : > { %1837 = vmatpush3.bf16.xpose.msra.mxu0 %v761_v33  ;;  %1843 = vmatpush3.bf16.xpose.msra.mxu1 %v807_v34 }
  0x3b   : > { %1838 = vmatprep.mubr.msk.bf16.mxu0 %vm1987_vm0, %v1986_v0  ;;  %1844 = vmatprep.mubr.msk.bf16.mxu1 %vm1987_vm0, %v1986_v0 }
  0x3c   : > { %1848 = vmatprep.subr.bf16.mxu0 %v1986_v0  ;;  %1854 = vmatprep.subr.bf16.mxu1 %v1986_v0 }
  0x41   : > { %1839 = vmatmul.mubr.msk.bf16.vlgmr.msra.gmra.mrb[20].mxu0 %vm296_vm1, %v270_v35  ;;  %1845 = vmatmul.mubr.msk.bf16.vlgmr.msra.gmra.mrb[20].mxu1 %vm296_vm1, %v271_v36 }
  0x42   : > { %1850 = vmatprep.mubr.msk.bf16.mxu0 %vm1987_vm0, %v1986_v0  ;;  %1856 = vmatprep.mubr.msk.bf16.mxu1 %vm1987_vm0, %v1986_v0 }
  0xec   : > { %v337_v37 = vpop.f32.mrb[0].mxu0  ;;  %v383_v38 = vpop.f32.mrb[0].mxu1 }
  0xed   : > { %v849_v40 = vmul.f32 0.125, %v337_v37  ;;  %v1780_v41 = vpop.f32.mrb[1].mxu0  ;;  %v850_v42 = vmul.f32 0.125, %v383_v38  ;;  %v1786_v43 = vpop.f32.mrb[1].mxu1 }
  0xee   : > { %v340_v44 = vpop.f32.mrb[2].mxu0  ;;  %v386_v45 = vpop.f32.mrb[2].mxu1 }
  0xef   : > { %v1781_v46 = vpop.f32.mrb[3].mxu0  ;;  %v1787_v47 = vpop.f32.mrb[3].mxu1  ;;  %v2136_v48 = vadd.f32 %v2133_v39, %v849_v40  ;;  %v2139_v49 = vadd.f32 %v2133_v39, %v850_v42 }
  0xf1   : > { %v881_v50 = vsel %vm880_vm2, %v2136_v48, -inf  ;;  %v884_v51 = vsel %vm880_vm2, %v2139_v49, -inf }
  0xf2   : > { %882 = vmax.xlane.f32.xlu0 %v881_v50 }
  0xf4   : > { %v429_v52 = vpop.f32.mrb[4].mxu0  ;;  %v475_v53 = vpop.f32.mrb[4].mxu1 }
  0xf5   : > { %v851_v54 = vmul.f32 0.125, %v429_v52  ;;  %v1792_v55 = vpop.f32.mrb[5].mxu0  ;;  %v852_v56 = vmul.f32 0.125, %v475_v53  ;;  %v1798_v57 = vpop.f32.mrb[5].mxu1 }
  0xf6   : > { %885 = vmax.xlane.f32.xlu0 %v884_v51  ;;  %v432_v58 = vpop.f32.mrb[6].mxu0  ;;  %v478_v59 = vpop.f32.mrb[6].mxu1 }
  0xf7   : > { %v1793_v60 = vpop.f32.mrb[7].mxu0  ;;  %v1799_v61 = vpop.f32.mrb[7].mxu1  ;;  %v2146_v62 = vadd.f32 %v2133_v39, %v851_v54  ;;  %v2149_v63 = vadd.f32 %v2133_v39, %v852_v56 }
  0xf9   : > { %v887_v1 = vsel %vm880_vm2, %v2146_v62, -inf  ;;  %v890_v2 = vsel %vm880_vm2, %v2149_v63, -inf }
  0xfa   : > { %888 = vmax.xlane.f32.xlu1 %v887_v1 }
  0xfc   : > { %v521_v3 = vpop.f32.mrb[8].mxu0  ;;  %v567_v4 = vpop.f32.mrb[8].mxu1 }
  0xfd   : > { %v853_v5 = vmul.f32 0.125, %v521_v3  ;;  %v854_v6 = vmul.f32 0.125, %v567_v4  ;;  %v1804_v7 = vpop.f32.mrb[9].mxu0  ;;  %v1810_v8 = vpop.f32.mrb[9].mxu1 }
  0xfe   : > { %891 = vmax.xlane.f32.xlu1 %v890_v2  ;;  %v524_v9 = vpop.f32.mrb[10].mxu0  ;;  %v570_v10 = vpop.f32.mrb[10].mxu1 }
  0xff   : > { %v1805_v11 = vpop.f32.mrb[11].mxu0  ;;  %v1811_v12 = vpop.f32.mrb[11].mxu1  ;;  %v2156_v13 = vadd.f32 %v2133_v39, %v854_v6  ;;  %v2159_v14 = vadd.f32 %v2133_v39, %v853_v5 }
 0x101   : > { %v896_v15 = vsel %vm880_vm2, %v2156_v13, -inf  ;;  %v893_v16 = vsel %vm880_vm2, %v2159_v14, -inf }
 0x102   : > { %897 = vmax.xlane.f32.xlu1 %v896_v15  ;;  %894 = vmax.xlane.f32.xlu0 %v893_v16 }
 0x104   : > { %v613_v17 = vpop.f32.mrb[12].mxu0  ;;  %v659_v18 = vpop.f32.mrb[12].mxu1 }
 0x105   : > { %v855_v19 = vmul.f32 0.125, %v613_v17  ;;  %v856_v20 = vmul.f32 0.125, %v659_v18  ;;  %v1816_v21 = vpop.f32.mrb[13].mxu0  ;;  %v1822_v22 = vpop.f32.mrb[13].mxu1 }
 0x106   : > { %v616_v23 = vpop.f32.mrb[14].mxu0  ;;  %v662_v24 = vpop.f32.mrb[14].mxu1 }
 0x107   : > { %v1817_v25 = vpop.f32.mrb[15].mxu0  ;;  %v1823_v26 = vpop.f32.mrb[15].mxu1  ;;  %v2166_v27 = vadd.f32 %v2133_v39, %v856_v20  ;;  %v2169_v28 = vadd.f32 %v2133_v39, %v855_v19 }
 0x109   : > { %v902_v29 = vsel %vm880_vm2, %v2166_v27, -inf  ;;  %v899_v30 = vsel %vm880_vm2, %v2169_v28, -inf }
 0x10a   : > { %903 = vmax.xlane.f32.xlu1 %v902_v29  ;;  %900 = vmax.xlane.f32.xlu0 %v899_v30 }
 0x10c   : > { %v705_v31 = vpop.f32.mrb[16].mxu0  ;;  %v751_v32 = vpop.f32.mrb[16].mxu1 }
 0x10d   : > { %v857_v33 = vmul.f32 0.125, %v705_v31  ;;  %v858_v34 = vmul.f32 0.125, %v751_v32  ;;  %v1828_v35 = vpop.f32.mrb[17].mxu0  ;;  %v1834_v36 = vpop.f32.mrb[17].mxu1 }
 0x10e   : > { %v708_v37 = vpop.f32.mrb[18].mxu0  ;;  %v754_v38 = vpop.f32.mrb[18].mxu1 }
 0x10f   : > { %v1829_v40 = vpop.f32.mrb[19].mxu0  ;;  %v1835_v41 = vpop.f32.mrb[19].mxu1  ;;  %v2176_v42 = vadd.f32 %v2133_v39, %v858_v34  ;;  %v2179_v43 = vadd.f32 %v2133_v39, %v857_v33 }
 0x111   : > { %v908_v44 = vsel %vm880_vm2, %v2176_v42, -inf  ;;  %v905_v45 = vsel %vm880_vm2, %v2179_v43, -inf }
 0x112   : > { %909 = vmax.xlane.f32.xlu1 %v908_v44  ;;  %906 = vmax.xlane.f32.xlu0 %v905_v45 }
 0x114   : > { %v797_v46 = vpop.f32.mrb[20].mxu0  ;;  %v843_v47 = vpop.f32.mrb[20].mxu1 }
 0x115   : > { %v859_v50 = vmul.f32 0.125, %v797_v46  ;;  %v860_v51 = vmul.f32 0.125, %v843_v47  ;;  %v1840_v52 = vpop.f32.mrb[21].mxu0  ;;  %v1846_v53 = vpop.f32.mrb[21].mxu1  ;;  %v284_v47 = vld [vmem:[%s2243_s30] sm:$0xf] }
 0x116   : > { %v800_v54 = vpop.f32.mrb[22].mxu0  ;;  %v846_v55 = vpop.f32.mrb[22].mxu1  ;;  %v1030_v52 = vsel %vm1028_vm3, %v284_v47, 0  ;;  %v285_v53 = vld [vmem:[%s2243_s30 + $0x4] sm:$0xf] }
 0x117   : > { %v1841_v56 = vpop.f32.mrb[23].mxu0  ;;  %v1847_v57 = vpop.f32.mrb[23].mxu1  ;;  %v2186_v58 = vadd.f32 %v2133_v39, %v860_v51  ;;  %v2189_v59 = vadd.f32 %v2133_v39, %v859_v50  ;;  %1849 = vmatpush3.bf16.msra.mxu0 %v1030_v52  ;;  %v1076_v55 = vsel %vm1028_vm3, %v285_v53, 0 }
 0x118   : > { %1860 = vmatprep.subr.bf16.mxu0 %v1986_v0  ;;  %1855 = vmatpush3.bf16.msra.mxu1 %v1076_v55 }
 0x119   : > { %v914_v60 = vsel %vm880_vm2, %v2186_v58, -inf  ;;  %v911_v61 = vsel %vm880_vm2, %v2189_v59, -inf  ;;  %1866 = vmatprep.subr.bf16.mxu1 %v1986_v0 }
 0x11a   : > { %915 = vmax.xlane.f32.xlu1 %v914_v60  ;;  %912 = vmax.xlane.f32.xlu0 %v911_v61  ;;  %v287_v61 = vld [vmem:[%s2243_s30 + $0xc] sm:$0xf] }
 0x17f   : > { %v883_v1 = vpop.xlane.xlu0 %882 }
 0x180   : > { %v917_v2 = vsub.f32 %v2136_v48, %v883_v1 }
 0x182   : > { %v929_v3 = vmul.f32 1.442695, %v917_v2  ;;  %v1168_v2 = vsel %vm1028_vm3, %v287_v61, 0 }
 0x183   : > { %v886_v4 = vpop.xlane.xlu0 %885 }
 0x184   : > { %1930 = vpow2.f32 %v929_v3  ;;  %v918_v5 = vsub.f32 %v2139_v49, %v886_v4 }
 0x186   : > { %v931_v6 = vmul.f32 1.442695, %v918_v5 }
 0x187   : > { %v889_v7 = vpop.xlane.xlu1 %888 }
 0x188   : > { %1932 = vpow2.f32 %v931_v6  ;;  %v919_v39 = vsub.f32 %v2146_v62, %v889_v7  ;;  %v288_v6 = vld [vmem:[%s2243_s30 + $0x10] sm:$0xf] }
 0x189   : > { %v1214_v7 = vsel %vm1028_vm3, %v288_v6, 0 }
 0x18a   : > { %v933_v8 = vmul.f32 1.442695, %v919_v39  ;;  %v289_v39 = vld [vmem:[%s2243_s30 + $0x14] sm:$0xf] }
 0x18b   : > { %v892_v9 = vpop.xlane.xlu1 %891 }
 0x18c   : > { %1934 = vpow2.f32 %v933_v8  ;;  %v920_v10 = vsub.f32 %v2149_v63, %v892_v9  ;;  %v1260_v8 = vsel %vm1028_vm3, %v289_v39, 0  ;;  %v290_v9 = vld [vmem:[%s2243_s30 + $0x18] sm:$0xf] }
 0x18e   : > { %v2199_v11 = vpop.eup %1930  ;;  %v935_v12 = vmul.f32 1.442695, %v920_v10  ;;  %v2277_v10 = vsel %vm1028_vm3, %v290_v9, 0 }
 0x18f   : > { %v898_v15 = vpop.xlane.xlu1 %897  ;;  %v895_v48 = vpop.xlane.xlu0 %894  ;;  %v953_v16 = vsel %vm880_vm2, %v2199_v11, 0.0 }
 0x190   : > { %1936 = vpow2.f32 %v935_v12  ;;  %v922_v49 = vsub.f32 %v2156_v13, %v898_v15  ;;  %v921_v17 = vsub.f32 %v2159_v14, %v895_v48  ;;  %954 = vadd.xlane.f32.xlu0 %v953_v16  ;;  %v291_v12 = vld [vmem:[%s2243_s30 + $0x1c] sm:$0xf]  ;;  %v292_v48 = vld [vmem:[%s2243_s30 + $0x20] sm:$0xf] }
 0x191   : > { %v2281_v15 = vsel %vm1028_vm3, %v291_v12, 0  ;;  %v2285_v16 = vsel %vm1028_vm3, %v292_v48, 0 }
 0x192   : > { %v2205_v62 = vpop.eup %1932  ;;  %v939_v18 = vmul.f32 1.442695, %v922_v49  ;;  %v937_v19 = vmul.f32 1.442695, %v921_v17  ;;  %v293_v49 = vld [vmem:[%s2243_s30 + $0x24] sm:$0xf] }
 0x193   : > { %v956_v63 = vsel %vm880_vm2, %v2205_v62, 0.0  ;;  %v2289_v17 = vsel %vm1028_vm3, %v293_v49, 0 }
 0x194   : > { %1938 = vpow2.f32 %v939_v18  ;;  %957 = vadd.xlane.f32.xlu1 %v956_v63  ;;  %v294_v18 = vld [vmem:[%s2243_s30 + $0x28] sm:$0xf]  ;;  %v295_v63 = vld [vmem:[%s2243_s30 + $0x2c] sm:$0xf] }
 0x195   : > { %1940 = vpow2.f32 %v937_v19  ;;  %v2293_v19 = vsel %vm1028_vm3, %v294_v18, 0 }
 0x196   : > { %v2209_v20 = vpop.eup %1934 }
 0x197   : > { %v904_v21 = vpop.xlane.xlu1 %903  ;;  %v901_v22 = vpop.xlane.xlu0 %900  ;;  %v959_v13 = vsel %vm880_vm2, %v2209_v20, 0.0 }
 0x198   : > { %v924_v14 = vsub.f32 %v2166_v27, %v904_v21  ;;  %v923_v23 = vsub.f32 %v2169_v28, %v901_v22  ;;  %960 = vadd.xlane.f32.xlu0 %v959_v13  ;;  %v2297_v21 = vsel %vm1028_vm3, %v295_v63, 0 }
 0x19a   : > { %v2215_v24 = vpop.eup %1936  ;;  %v943_v25 = vmul.f32 1.442695, %v924_v14  ;;  %v941_v26 = vmul.f32 1.442695, %v923_v23 }
 0x19b   : > { %v962_v29 = vsel %vm880_vm2, %v2215_v24, 0.0 }
 0x19c   : > { %1942 = vpow2.f32 %v943_v25  ;;  %963 = vadd.xlane.f32.xlu1 %v962_v29 }
 0x19d   : > { %1944 = vpow2.f32 %v941_v26 }
 0x19e   : > { %v2219_v30 = vpop.eup %1938 }
 0x19f   : > { %v2221_v31 = vpop.eup %1940  ;;  %v910_v32 = vpop.xlane.xlu1 %909  ;;  %v968_v27 = vsel %vm880_vm2, %v2219_v30, 0.0 }
 0x1a0   : > { %v907_v33 = vpop.xlane.xlu0 %906  ;;  %v926_v28 = vsub.f32 %v2176_v42, %v910_v32  ;;  %969 = vadd.xlane.f32.xlu1 %v968_v27  ;;  %v965_v35 = vsel %vm880_vm2, %v2221_v31, 0.0 }
 0x1a1   : > { %v925_v34 = vsub.f32 %v2179_v43, %v907_v33  ;;  %966 = vadd.xlane.f32.xlu0 %v965_v35 }
 0x1a2   : > { %v947_v36 = vmul.f32 1.442695, %v926_v28 }
 0x1a3   : > { %v945_v37 = vmul.f32 1.442695, %v925_v34 }
 0x1a4   : > { %1946 = vpow2.f32 %v947_v36 }
 0x1a5   : > { %1948 = vpow2.f32 %v945_v37 }
 0x1a6   : > { %v2229_v38 = vpop.eup %1942 }
 0x1a7   : > { %v2231_v40 = vpop.eup %1944  ;;  %v916_v41 = vpop.xlane.xlu1 %915  ;;  %v974_v42 = vsel %vm880_vm2, %v2229_v38, 0.0 }
 0x1a8   : > { %v913_v44 = vpop.xlane.xlu0 %912  ;;  %v928_v43 = vsub.f32 %v2186_v58, %v916_v41  ;;  %975 = vadd.xlane.f32.xlu1 %v974_v42  ;;  %v971_v46 = vsel %vm880_vm2, %v2231_v40, 0.0 }
 0x1a9   : > { %v927_v45 = vsub.f32 %v2189_v59, %v913_v44  ;;  %972 = vadd.xlane.f32.xlu0 %v971_v46  ;;  %v286_v59 = vld [vmem:[%s2243_s30 + $0x8] sm:$0xf] }
 0x1aa   : > { %v951_v50 = vmul.f32 1.442695, %v928_v43  ;;  %v1122_v60 = vsel %vm1028_vm3, %v286_v59, 0 }
 0x1ab   : > { %v949_v51 = vmul.f32 1.442695, %v927_v45 }
 0x1ac   : > { %1950 = vpow2.f32 %v951_v50 }
 0x1ad   : > { %1952 = vpow2.f32 %v949_v51 }
 0x1ae   : > { %v2249_v54 = vpop.eup %1946 }
 0x1af   : > { %v2252_v56 = vpop.eup %1948  ;;  %v980_v57 = vsel %vm880_vm2, %v2249_v54, 0.0 }
 0x1b0   : > { %981 = vadd.xlane.f32.xlu1 %v980_v57  ;;  %v977_v58 = vsel %vm880_vm2, %v2252_v56, 0.0 }
 0x1b1   : > { %978 = vadd.xlane.f32.xlu0 %v977_v58 }
 0x1b6   : > { %v2262_v1 = vpop.eup %1950 }
 0x1b7   : > { %v2265_v3 = vpop.eup %1952  ;;  %v986_v4 = vsel %vm880_vm2, %v2262_v1, 0.0 }
 0x1b8   : > { %987 = vadd.xlane.f32.xlu1 %v986_v4  ;;  %v983_v5 = vsel %vm880_vm2, %v2265_v3, 0.0 }
 0x1b9   : > { %984 = vadd.xlane.f32.xlu0 %v983_v5 }
 0x21d   : > { %v955_v22 = vpop.xlane.xlu0 %954 }
 0x21e   : > { %1954 = vrcp.f32 %v955_v22 }
 0x221   : > { %v958_v13 = vpop.xlane.xlu1 %957 }
 0x222   : > { %1956 = vrcp.f32 %v958_v13 }
 0x225   : > { %v961_v14 = vpop.xlane.xlu0 %960 }
 0x226   : > { %1958 = vrcp.f32 %v961_v14 }
 0x228   : > { %v1955_v23 = vpop.eup %1954 }
 0x229   : > { %v1001_v25 = vmul.f32 %v1955_v23, %v2199_v11  ;;  %v964_v26 = vpop.xlane.xlu1 %963 }
 0x22a   : > { %1960 = vrcp.f32 %v964_v26 }
 0x22b   : > { %v1013_v29 = vpack.c.bf16 %v1001_v25, %v1001_v25 }
 0x22c   : > { %v1957_v32 = vpop.eup %1956 }
 0x22d   : > { %v1002_v33 = vmul.f32 %v1957_v32, %v2205_v62  ;;  %v970_v27 = vpop.xlane.xlu1 %969  ;;  %1851 = vmatmul.mubr.msk.bf16.vlgmr.msra.gmra.mrb[24].mxu0 %vm880_vm2, %v1013_v29 }
 0x22e   : > { %1962 = vrcp.f32 %v970_v27  ;;  %v967_v28 = vpop.xlane.xlu0 %966  ;;  %1861 = vmatpush3.bf16.msra.mxu0 %v1122_v60  ;;  %1862 = vmatprep.mubr.msk.bf16.mxu0 %vm1987_vm0, %v1986_v0 }
 0x22f   : > { %1964 = vrcp.f32 %v967_v28  ;;  %v1014_v34 = vpack.c.bf16 %v1002_v33, %v1002_v33  ;;  %1872 = vmatprep.subr.bf16.mxu0 %v1986_v0 }
 0x230   : > { %v1959_v11 = vpop.eup %1958 }
 0x231   : > { %v1003_v35 = vmul.f32 %v1959_v11, %v2209_v20  ;;  %1857 = vmatmul.mubr.msk.bf16.vlgmr.msra.gmra.mrb[24].mxu1 %vm880_vm2, %v1014_v34 }
 0x232   : > { %1867 = vmatpush3.bf16.msra.mxu1 %v1168_v2  ;;  %1868 = vmatprep.mubr.msk.bf16.mxu1 %vm1987_vm0, %v1986_v0 }
 0x233   : > { %v1015_v62 = vpack.c.bf16 %v1003_v35, %v1003_v35  ;;  %1878 = vmatprep.subr.bf16.mxu1 %v1986_v0 }
 0x234   : > { %v1961_v36 = vpop.eup %1960 }
 0x235   : > { %v1004_v37 = vmul.f32 %v1961_v36, %v2215_v24  ;;  %v976_v41 = vpop.xlane.xlu1 %975  ;;  %1863 = vmatmul.mubr.msk.bf16.vlgmr.msra.gmra.mrb[28].mxu0 %vm880_vm2, %v1015_v62 }
 0x236   : > { %1966 = vrcp.f32 %v976_v41  ;;  %v973_v44 = vpop.xlane.xlu0 %972  ;;  %1873 = vmatpush3.bf16.msra.mxu0 %v1214_v7  ;;  %1874 = vmatprep.mubr.msk.bf16.mxu0 %vm1987_vm0, %v1986_v0 }
 0x237   : > { %1968 = vrcp.f32 %v973_v44  ;;  %v1016_v20 = vpack.c.bf16 %v1004_v37, %v1004_v37  ;;  %1884 = vmatprep.subr.bf16.mxu0 %v1986_v0 }
 0x238   : > { %v1963_v42 = vpop.eup %1962 }
 0x239   : > { %v1965_v43 = vpop.eup %1964  ;;  %1869 = vmatmul.mubr.msk.bf16.vlgmr.msra.gmra.mrb[28].mxu1 %vm880_vm2, %v1016_v20  ;;  %v1006_v24 = vmul.f32 %v1963_v42, %v2219_v30 }
 0x23a   : > { %v1005_v45 = vmul.f32 %v1965_v43, %v2221_v31  ;;  %1879 = vmatpush3.bf16.msra.mxu1 %v1260_v8  ;;  %1880 = vmatprep.mubr.msk.bf16.mxu1 %vm1987_vm0, %v1986_v0 }
 0x23b   : > { %1890 = vmatprep.subr.bf16.mxu1 %v1986_v0  ;;  %v1018_v51 = vpack.c.bf16 %v1006_v24, %v1006_v24 }
 0x23c   : > { %v1017_v46 = vpack.c.bf16 %v1005_v45, %v1005_v45 }
 0x23d   : > { %v982_v47 = vpop.xlane.xlu1 %981 }
 0x23e   : > { %1970 = vrcp.f32 %v982_v47  ;;  %1875 = vmatmul.mubr.msk.bf16.vlgmr.msra.gmra.mrb[32].mxu0 %vm880_vm2, %v1017_v46  ;;  %v979_v50 = vpop.xlane.xlu0 %978 }
 0x23f   : > { %1972 = vrcp.f32 %v979_v50  ;;  %1885 = vmatpush3.bf16.msra.mxu0 %v2277_v10  ;;  %1886 = vmatprep.mubr.msk.bf16.mxu0 %vm1987_vm0, %v1986_v0 }
 0x240   : > { %v1967_v31 = vpop.eup %1966  ;;  %1896 = vmatprep.subr.bf16.mxu0 %v1986_v0 }
 0x241   : > { %v1969_v52 = vpop.eup %1968  ;;  %1881 = vmatmul.mubr.msk.bf16.vlgmr.msra.gmra.mrb[32].mxu1 %vm880_vm2, %v1018_v51  ;;  %v1008_v53 = vmul.f32 %v1967_v31, %v2229_v38 }
 0x242   : > { %v1007_v30 = vmul.f32 %v1969_v52, %v2231_v40  ;;  %1891 = vmatpush3.bf16.msra.mxu1 %v2281_v15  ;;  %1892 = vmatprep.mubr.msk.bf16.mxu1 %vm1987_vm0, %v1986_v0 }
 0x243   : > { %1902 = vmatprep.subr.bf16.mxu1 %v1986_v0  ;;  %v1020_v59 = vpack.c.bf16 %v1008_v53, %v1008_v53 }
 0x244   : > { %v1019_v55 = vpack.c.bf16 %v1007_v30, %v1007_v30 }
 0x245   : > { %v988_v57 = vpop.xlane.xlu1 %987 }
 0x246   : > { %1974 = vrcp.f32 %v988_v57  ;;  %1887 = vmatmul.mubr.msk.bf16.vlgmr.msra.gmra.mrb[36].mxu0 %vm880_vm2, %v1019_v55  ;;  %v985_v58 = vpop.xlane.xlu0 %984 }
 0x247   : > { %1976 = vrcp.f32 %v985_v58  ;;  %1897 = vmatpush3.bf16.msra.mxu0 %v2285_v16  ;;  %1898 = vmatprep.mubr.msk.bf16.mxu0 %vm1987_vm0, %v1986_v0 }
 0x248   : > { %v1971_v40 = vpop.eup %1970  ;;  %1908 = vmatprep.subr.bf16.mxu0 %v1986_v0 }
 0x249   : > { %v1973_v60 = vpop.eup %1972  ;;  %1893 = vmatmul.mubr.msk.bf16.vlgmr.msra.gmra.mrb[36].mxu1 %vm880_vm2, %v1020_v59  ;;  %v1010_v61 = vmul.f32 %v1971_v40, %v2249_v54 }
 0x24a   : > { %v1009_v38 = vmul.f32 %v1973_v60, %v2252_v56  ;;  %1903 = vmatpush3.bf16.msra.mxu1 %v2289_v17  ;;  %1904 = vmatprep.mubr.msk.bf16.mxu1 %vm1987_vm0, %v1986_v0 }
 0x24b   : > { %1914 = vmatprep.subr.bf16.mxu1 %v1986_v0  ;;  %v1022_v4 = vpack.c.bf16 %v1010_v61, %v1010_v61 }
 0x24c   : > { %v1021_v2 = vpack.c.bf16 %v1009_v38, %v1009_v38 }
 0x24e   : > { %1899 = vmatmul.mubr.msk.bf16.vlgmr.msra.gmra.mrb[40].mxu0 %vm880_vm2, %v1021_v2 }
 0x24f   : > { %1909 = vmatpush3.bf16.msra.mxu0 %v2293_v19  ;;  %1910 = vmatprep.mubr.msk.bf16.mxu0 %vm1987_vm0, %v1986_v0 }
 0x250   : > { %v1975_v56 = vpop.eup %1974 }
 0x251   : > { %v1977_v5 = vpop.eup %1976  ;;  %1905 = vmatmul.mubr.msk.bf16.vlgmr.msra.gmra.mrb[40].mxu1 %vm880_vm2, %v1022_v4  ;;  %v1012_v54 = vmul.f32 %v1975_v56, %v2262_v1 }
 0x252   : > { %v1011_v6 = vmul.f32 %v1977_v5, %v2265_v3  ;;  %1915 = vmatpush3.bf16.msra.mxu1 %v2297_v21  ;;  %1916 = vmatprep.mubr.msk.bf16.mxu1 %vm1987_vm0, %v1986_v0 }
 0x253   : > { %v1024_v39 = vpack.c.bf16 %v1012_v54, %v1012_v54 }
 0x254   : > { %v1023_v7 = vpack.c.bf16 %v1011_v6, %v1011_v6 }
 0x256   : > { %1911 = vmatmul.mubr.msk.bf16.vlgmr.msra.gmra.mrb[44].mxu0 %vm880_vm2, %v1023_v7 }
 0x259   : > { %1917 = vmatmul.mubr.msk.bf16.vlgmr.msra.gmra.mrb[44].mxu1 %vm880_vm2, %v1024_v39 }
 0x300   : > { %v1066_v3 = vpop.f32.mrb[24].mxu0 }
 0x301   : > { %v1578_v8 = vpack.c.bf16 %v1066_v3, %v1066_v3  ;;  %v1852_v0 = vpop.f32.mrb[25].mxu0 }
 0x302   : > { %v1069_v9 = vpop.f32.mrb[26].mxu0 }
 0x303   : > { %1591 = vst.msk [vmem:[%s2361_s7] sm:$0xf] %vm1590_vm4, %v1578_v8  ;;  %v1853_v1 = vpop.f32.mrb[27].mxu0 }
 0x304   : > { %v1112_v10 = vpop.f32.mrb[24].mxu1 }
 0x305   : > { %v1579_v12 = vpack.c.bf16 %v1112_v10, %v1112_v10  ;;  %v1858_v15 = vpop.f32.mrb[25].mxu1 }
 0x306   : > { %v1115_v48 = vpop.f32.mrb[26].mxu1 }
 0x307   : > { %1592 = vst.msk [vmem:[%s2361_s7 + $0x4] sm:$0xf] %vm1590_vm4, %v1579_v12  ;;  %v1859_v16 = vpop.f32.mrb[27].mxu1 }
 0x308   : > { %v1158_v49 = vpop.f32.mrb[28].mxu0 }
 0x309   : > { %v1580_v17 = vpack.c.bf16 %v1158_v49, %v1158_v49  ;;  %v1864_v18 = vpop.f32.mrb[29].mxu0 }
 0x30a   : > { %v1161_v19 = vpop.f32.mrb[30].mxu0 }
 0x30b   : > { %1593 = vst.msk [vmem:[%s2361_s7 + $0x8] sm:$0xf] %vm1590_vm4, %v1580_v17  ;;  %v1865_v63 = vpop.f32.mrb[31].mxu0 }
 0x30c   : > { %v1204_v21 = vpop.f32.mrb[28].mxu1 }
 0x30d   : > { %v1581_v22 = vpack.c.bf16 %v1204_v21, %v1204_v21  ;;  %v1870_v13 = vpop.f32.mrb[29].mxu1 }
 0x30e   : > { %v1207_v14 = vpop.f32.mrb[30].mxu1 }
 0x30f   : > { %1594 = vst.msk [vmem:[%s2361_s7 + $0xc] sm:$0xf] %vm1590_vm4, %v1581_v22  ;;  %v1871_v23 = vpop.f32.mrb[31].mxu1 }
 0x311   : > { %v1250_v25 = vpop.f32.mrb[32].mxu0 }
 0x312   : > { %v1582_v26 = vpack.c.bf16 %v1250_v25, %v1250_v25  ;;  %v1876_v29 = vpop.f32.mrb[33].mxu0 }
 0x313   : > { %v1253_v32 = vpop.f32.mrb[34].mxu0 }
 0x314   : > { %1595 = vst.msk [vmem:[%s2361_s7 + $0x10] sm:$0xf] %vm1590_vm4, %v1582_v26  ;;  %v1877_v33 = vpop.f32.mrb[35].mxu0  ;;  %v1296_v27 = vpop.f32.mrb[32].mxu1 }
 0x315   : > { %v1583_v28 = vpack.c.bf16 %v1296_v27, %v1296_v27  ;;  %v1882_v34 = vpop.f32.mrb[33].mxu1 }
 0x316   : > { %v1299_v11 = vpop.f32.mrb[34].mxu1 }
 0x317   : > { %1596 = vst.msk [vmem:[%s2361_s7 + $0x14] sm:$0xf] %vm1590_vm4, %v1583_v28  ;;  %v1883_v35 = vpop.f32.mrb[35].mxu1 }
 0x319   : > { %v1342_v62 = vpop.f32.mrb[36].mxu0 }
 0x31a   : > { %v1584_v36 = vpack.c.bf16 %v1342_v62, %v1342_v62  ;;  %v1888_v37 = vpop.f32.mrb[37].mxu0 }
 0x31b   : > { %v1345_v41 = vpop.f32.mrb[38].mxu0 }
 0x31c   : > { %1597 = vst.msk [vmem:[%s2361_s7 + $0x18] sm:$0xf] %vm1590_vm4, %v1584_v36  ;;  %v1889_v44 = vpop.f32.mrb[39].mxu0  ;;  %v1388_v20 = vpop.f32.mrb[36].mxu1 }
 0x31d   : > { %v1585_v42 = vpack.c.bf16 %v1388_v20, %v1388_v20  ;;  %v1894_v43 = vpop.f32.mrb[37].mxu1 }
 0x31e   : > { %v1391_v45 = vpop.f32.mrb[38].mxu1 }
 0x31f   : > { %1598 = vst.msk [vmem:[%s2361_s7 + $0x1c] sm:$0xf] %vm1590_vm4, %v1585_v42  ;;  %v1895_v24 = vpop.f32.mrb[39].mxu1 }
 0x321   : > { %v1434_v46 = vpop.f32.mrb[40].mxu0 }
 0x322   : > { %v1586_v47 = vpack.c.bf16 %v1434_v46, %v1434_v46  ;;  %v1900_v50 = vpop.f32.mrb[41].mxu0 }
 0x323   : > { %v1437_v51 = vpop.f32.mrb[42].mxu0 }
 0x324   : > { %1599 = vst.msk [vmem:[%s2361_s7 + $0x20] sm:$0xf] %vm1590_vm4, %v1586_v47  ;;  %v1901_v31 = vpop.f32.mrb[43].mxu0  ;;  %v1480_v52 = vpop.f32.mrb[40].mxu1 }
 0x325   : > { %v1587_v30 = vpack.c.bf16 %v1480_v52, %v1480_v52  ;;  %v1906_v53 = vpop.f32.mrb[41].mxu1 }
 0x326   : > { %v1483_v55 = vpop.f32.mrb[42].mxu1 }
 0x327   : > { %1600 = vst.msk [vmem:[%s2361_s7 + $0x24] sm:$0xf] %vm1590_vm4, %v1587_v30  ;;  %v1907_v57 = vpop.f32.mrb[43].mxu1 }
 0x329   : > { %v1526_v58 = vpop.f32.mrb[44].mxu0 }
 0x32a   : > { %v1588_v59 = vpack.c.bf16 %v1526_v58, %v1526_v58  ;;  %v1912_v40 = vpop.f32.mrb[45].mxu0 }
 0x32b   : > { %v1529_v60 = vpop.f32.mrb[46].mxu0 }
 0x32c   : > { %1601 = vst.msk [vmem:[%s2361_s7 + $0x28] sm:$0xf] %vm1590_vm4, %v1588_v59  ;;  %v1913_v38 = vpop.f32.mrb[47].mxu0  ;;  %v1572_v61 = vpop.f32.mrb[44].mxu1 }
 0x32d   : > { %v1589_v2 = vpack.c.bf16 %v1572_v61, %v1572_v61  ;;  %v1918_v4 = vpop.f32.mrb[45].mxu1 }
 0x32e   : > { %v1575_v56 = vpop.f32.mrb[46].mxu1 }
 0x32f   : > { %1602 = vst.msk [vmem:[%s2361_s7 + $0x2c] sm:$0xf] %vm1590_vm4, %v1589_v2  ;;  %v1919_v5 = vpop.f32.mrb[47].mxu1 }
 0x330 PF: > { %s14_s15 = sadd.s32 1, %s1984_s15  }
 0x331   : > { %p11_p5 = scmp.ge.s32.totalorder %s14_s15, 4  }
 0x333   :  { %13 = sbr.rel (!%p11_p5) target bundleno = 1 (0x1), region = 75 }

// kernel: weighted_bce_bert_forward.17
= control target key start
LH: loop header
LB: loop body
LE: loop exit
PB: predicated region body
PF: predicated region fallthrough
CT: control target
= control target key end

     0   :  { %8 = vsyncpa [#allocation4], 0  ;;  %s2702_s0 = inlined_call_operand.vmem [shape: bf16[16,768], index: 0, kind: input, shape index: {}]   ;;  %s2703_s1 = inlined_call_operand.hbm [shape: bf16[768,2304], index: 1, kind: input, shape index: {}]   ;;  %s2704_s2 = inlined_call_operand.vmem [shape: f32[1,2304], index: 2, kind: input, shape index: {}]   ;;  %s2705_s3 = inlined_call_operand.vmem [shape: bf16[16,2304], index: 3, kind: output, shape index: {}]  }
   0x1   :  { %10 = vsyncpa [#allocation4 + $0x1], 0  ;;  %s2382_s12 = smov 0   ;;  %s2384_s13 = smov 0  }
   0x2   :  { %s2386_s14 = smov 0   ;;  %s2388_s15 = smov 0  }
   0x3   :  { %s2390_s16 = smov 0   ;;  %s2392_s17 = smov 0  }
   0x4 LB: > { %s1766_s18 = sadd.s32 4294967295, %s2356_s17   ;;  %s31_s19 = sadd.s32 1, %s2352_s16  ;;  %s2356_s17 = sphi %s2392_s17, %s16_s17   ;;  %s2352_s16 = sphi %s2390_s16, %s2716_s16   ;;  %s2348_s15 = sphi %s2388_s15, %s2715_s15   ;;  %s2344_s14 = sphi %s2386_s14, %s2714_s14   ;;  %s2340_s13 = sphi %s2384_s13, %s2713_s13   ;;  %s2336_s12 = sphi %s2382_s12, %s2712_s12  }
   0x5   : > { %p33_p0 = scmp.ge.s32.totalorder %s31_s19, 6  ;;  %s72_s20 = sadd.s32 1, %s2344_s14 }
   0x6   : > { %p79_p1 = scmp.ne.s32.totalorder %s2344_s14, %s2340_s13  ;;  %p80_p2 = scmp.eq.s32.totalorder %s2356_s17, 0 }
   0x7   : > { %s2718_s19 = smov (%p33_p0, %s31_s19), 0  ;;  %p85_p4 = scmp.ne.s32.totalorder %s2340_s13, %s2336_s12 }
   0x8   : > { %p2418_p3 = por %p80_p2, %p79_p1  ;;  %s68_s22 = ssub.s32 %s2352_s16, %s2718_s19 }
   0x9   : > { %p86_p5 = scmp.eq.s32.totalorder %s1766_s18, 0  ;;  %p70_p6 = scmp.eq.s32.totalorder %s68_s22, 0 }
   0xa   : > { %p137_p7 = scmp.eq.s32.totalorder %s1766_s18, 5  ;;  %p2023_p10 = scmp.lt.s32.totalorder %s2356_s17, 6 }
   0xb   : > { %p2425_p8 = por %p86_p5, %p85_p4  ;;  %s178_s26 = sand.u32 1, %s2344_s14  }
   0xc   : > { %s2430_s24 = scalar_select %p70_p6, %s2344_s14, %s72_s20  }
   0xd   : > { %p2432_p9 = por %p137_p7, %p79_p1  ;;  %s1934_s27 = smul.u32 192, %s2352_s16 }
   0xe   : > { %s2014_s28 = smul.u32 1152, %s178_s26  ;;  %p2446_p11 = pnand %p2023_p10, %p2418_p3 }
   0xf   : > { %s2708_s25 = scalar_select %p2432_p9, 1, 0 }
  0x10   : > { %s2442_s4 = scalar_lea.hbm %s2703_s1, %s1934_s27  ;;  %s182_s6 = scalar_lea.vmem [#allocation3], %s2014_s28 }
  0x11   : > { %s192_s7 = sshll.u32 %s182_s6, 4  ;;  %s2453_s8 = scalar_lea.sflag [#allocation4], %s178_s26  ;;  %s2450_s7 = int_to_ptr.vmem [resolvable:$true] %s192_s7 }
  0x12   : > { %s2276_s9 = scalar_lea.hbm %s2442_s4, 18432  ;;  %p2278_p0 = pneg %p2446_p11 }
  0x13   : > { %p2277_p13 = scmp.ne.s32.totalorder %s2442_s4, %s2276_s9  ;;  %s2281_s12 = scalar_lea.hbm %s2703_s1, 110592 }
  0x14   : > { %p2282_p3 = scmp.lt.u32.totalorder %s2442_s4, %s2703_s1  ;;  %p2283_p4 = scmp.lt.u32.totalorder %s2281_s12, %s2276_s9 }
  0x15   : > { %p2279_p1 = pnand %p2278_p0, %p2277_p13  ;;  %p2285_p6 = scmp.lt.u32.totalorder %s2276_s9, %s2442_s4 }
  0x16   : > { %p2284_p5 = por %p2283_p4, %p2282_p3 }
  0x17   : > { %p2280_p2 = pneg %p2279_p1 }
  0x18   : > { %p2286_p7 = por %p2285_p6, %p2284_p5 }
  0x1a   : > { %p2287_p10 = pnand %p2286_p7, %p2280_p2 }
  0x1c   : > { %2290 = shalt.err (!%p2287_p10)
}
  0x1d   : > { %s2291_s21 = scalar_lea.vmem %s2450_s7, 18432  ;;  %s2358_s22 = smov [#allocation3]  }
  0x1e   : > { %p2292_p13 = scmp.ne.s32.totalorder %s2450_s7, %s2291_s21  ;;  %s2296_s26 = sshll.u32 %s2358_s22, 4  ;;  %s2297_s26 = int_to_ptr.vmem [resolvable:$false] %s2296_s26 }
  0x1f   : > { %s2298_s27 = scalar_lea.vmem %s2297_s26, 36864  ;;  %p2299_p9 = scmp.lt.s32.totalorder %s2450_s7, %s2297_s26 }
  0x20   : > { %p2294_p1 = pnand %p2292_p13, %p2278_p0  ;;  %p2300_p3 = scmp.lt.s32.totalorder %s2298_s27, %s2291_s21 }
  0x22   : > { %p2295_p12 = pneg %p2294_p1  ;;  %p2301_p4 = por %p2300_p3, %p2299_p9 }
  0x24   : > { %p2302_p5 = pnand %p2301_p4, %p2295_p12 }
  0x26   : > { %2305 = shalt.err (!%p2302_p5)
}
  0x27   : > { %s2359_s28 = smov 1152   ;;  %s2360_s29 = smov 192  }
  0x28   : > { %s2361_s30 = smov 12   ;;  %p208_p0 = scmp.lt.s32.totalorder %s2356_s17, 7 }
  0x29   : > { %2022 = dma.hbm_to_vmem [thread:$0]  (!%p2446_p11), %s2442_s4, 18432, %s2450_s7, %s2453_s8, %s2359_s28, %s2360_s29, %s2361_s30  }
  0x2a   : > { %p2710_p2 = scmp.ge.s32.totalorder %s2356_s17, 1 }
  0x2c   : > { %p209_p6 = pnand %p2710_p2, %p208_p0 }
  0x2d   : > { %s2485_s6 = sand.u32 (!%p209_p6), 1, %s2340_s13  }
  0x2e   : > { %212 = sbr.rel (%p209_p6) target bundleno = 447 (0x1bf), region = 32  ;;  %s215_s10 = scalar_lea.sflag (!%p209_p6), [#allocation4], %s2485_s6 }
  0x2f   : > { %s2015_s9 = smul.u32 (!%p209_p6), 1152, %s2485_s6 }
  0x31   : > { %s2489_s11 = scalar_lea.vmem (!%p209_p6), [#allocation3], %s2015_s9 }
  0x35   : > { %2331 = dma.done.wait (%p2425_p8), %s215_s10, 18432  }
  0x36   : > { %2333 = vsyncadd (%p2425_p8), %s215_s10, 4294948864  ;;  %v2075_v0 = vld [vmem:[%s2489_s11 + $0x4] ss:$12 sps:$4 sm:$0xff]   ;;  %v2079_v2 = vld [vmem:[%s2489_s11] ss:$12 sps:$4 sm:$0xff]   ;;  %s268_s28 = smul.u32 3, %s2348_s15 }
  0x37   : > { %v2077_v1 = vld [vmem:[%s2489_s11 + $0x184] ss:$12 sps:$4 sm:$0xff]   ;;  %1288 = vmatprep.subr.bf16.mxu1 %v2075_v0  ;;  %v2080_v3 = vld [vmem:[%s2489_s11 + $0x180] ss:$12 sps:$4 sm:$0xff]   ;;  %v2081_v4 = vld [vmem:[%s2489_s11 + $0x1c] ss:$12 sps:$4 sm:$0xff]  }
  0x38   : > { %1331 = vmatprep.subr.bf16.mxu0 %v2077_v1  ;;  %1289 = vmatpush1.bf16.msra.mxu1 %v2079_v2  ;;  %v2083_v5 = vld [vmem:[%s2489_s11 + $0x19c] ss:$12 sps:$4 sm:$0xff]   ;;  %v2085_v6 = vld [vmem:[%s2489_s11 + $0x18] ss:$12 sps:$4 sm:$0xff]   ;;  %v2087_v8 = vld [vmem:[%s2489_s11 + $0x34] ss:$12 sps:$4 sm:$0xff]  }
  0x39   : > { %1332 = vmatpush1.bf16.msra.mxu0 %v2080_v3  ;;  %1290 = vmatprep.subr.bf16.mxu1 %v2081_v4  ;;  %v2086_v7 = vld [vmem:[%s2489_s11 + $0x198] ss:$12 sps:$4 sm:$0xff]   ;;  %v2089_v9 = vld [vmem:[%s2489_s11 + $0x1b4] ss:$12 sps:$4 sm:$0xff]   ;;  %v2091_v10 = vld [vmem:[%s2489_s11 + $0x30] ss:$12 sps:$4 sm:$0xff]  }
  0x3a   : > { %1333 = vmatprep.subr.bf16.mxu0 %v2083_v5  ;;  %v2092_v11 = vld [vmem:[%s2489_s11 + $0x1b0] ss:$12 sps:$4 sm:$0xff]   ;;  %v2093_v12 = vld [vmem:[%s2489_s11 + $0x4c] ss:$12 sps:$4 sm:$0xff]   ;;  %v2097_v14 = vld [vmem:[%s2489_s11 + $0x48] ss:$12 sps:$4 sm:$0xff]  }
  0x3b   : > { %v2095_v13 = vld [vmem:[%s2489_s11 + $0x1cc] ss:$12 sps:$4 sm:$0xff]   ;;  %v2098_v15 = vld [vmem:[%s2489_s11 + $0x1c8] ss:$12 sps:$4 sm:$0xff]   ;;  %v2099_v16 = vld [vmem:[%s2489_s11 + $0x64] ss:$12 sps:$4 sm:$0xff]  }
  0x3c   : > { %1291 = vmatpush1.bf16.msra.mxu1 %v2085_v6  ;;  %v2101_v17 = vld [vmem:[%s2489_s11 + $0x1e4] ss:$12 sps:$4 sm:$0xff]   ;;  %v2103_v18 = vld [vmem:[%s2489_s11 + $0x60] ss:$12 sps:$4 sm:$0xff]   ;;  %v2105_v20 = vld [vmem:[%s2489_s11 + $0x7c] ss:$12 sps:$4 sm:$0xff]  }
  0x3d   : > { %1334 = vmatpush1.bf16.msra.mxu0 %v2086_v7  ;;  %1292 = vmatprep.subr.bf16.mxu1 %v2087_v8  ;;  %v2104_v19 = vld [vmem:[%s2489_s11 + $0x1e0] ss:$12 sps:$4 sm:$0xff]   ;;  %v2107_v21 = vld [vmem:[%s2489_s11 + $0x1fc] ss:$12 sps:$4 sm:$0xff]   ;;  %v2109_v22 = vld [vmem:[%s2489_s11 + $0x78] ss:$12 sps:$4 sm:$0xff]  }
  0x3e   : > { %1335 = vmatprep.subr.bf16.mxu0 %v2089_v9  ;;  %v2110_v23 = vld [vmem:[%s2489_s11 + $0x1f8] ss:$12 sps:$4 sm:$0xff]   ;;  %v2111_v24 = vld [vmem:[%s2489_s11 + $0x94] ss:$12 sps:$4 sm:$0xff]   ;;  %v2115_v26 = vld [vmem:[%s2489_s11 + $0x90] ss:$12 sps:$4 sm:$0xff]  }
  0x3f   : > { %v2113_v25 = vld [vmem:[%s2489_s11 + $0x214] ss:$12 sps:$4 sm:$0xff]   ;;  %v2116_v27 = vld [vmem:[%s2489_s11 + $0x210] ss:$12 sps:$4 sm:$0xff]   ;;  %v2117_v28 = vld [vmem:[%s2489_s11 + $0xac] ss:$12 sps:$4 sm:$0xff]  }
  0x40   : > { %1293 = vmatpush1.bf16.msra.mxu1 %v2091_v10  ;;  %v2119_v29 = vld [vmem:[%s2489_s11 + $0x22c] ss:$12 sps:$4 sm:$0xff]   ;;  %v2121_v30 = vld [vmem:[%s2489_s11 + $0xa8] ss:$12 sps:$4 sm:$0xff]   ;;  %v2123_v32 = vld [vmem:[%s2489_s11 + $0xc4] ss:$12 sps:$4 sm:$0xff]  }
  0x41   : > { %1336 = vmatpush1.bf16.msra.mxu0 %v2092_v11  ;;  %1294 = vmatprep.subr.bf16.mxu1 %v2093_v12  ;;  %v2122_v31 = vld [vmem:[%s2489_s11 + $0x228] ss:$12 sps:$4 sm:$0xff]   ;;  %v2125_v33 = vld [vmem:[%s2489_s11 + $0x244] ss:$12 sps:$4 sm:$0xff]   ;;  %v2127_v34 = vld [vmem:[%s2489_s11 + $0xc0] ss:$12 sps:$4 sm:$0xff]  }
  0x42   : > { %1337 = vmatprep.subr.bf16.mxu0 %v2095_v13  ;;  %v2128_v35 = vld [vmem:[%s2489_s11 + $0x240] ss:$12 sps:$4 sm:$0xff]   ;;  %v2129_v36 = vld [vmem:[%s2489_s11 + $0xdc] ss:$12 sps:$4 sm:$0xff]   ;;  %v2133_v38 = vld [vmem:[%s2489_s11 + $0xd8] ss:$12 sps:$4 sm:$0xff]  }
  0x43   : > { %v2131_v37 = vld [vmem:[%s2489_s11 + $0x25c] ss:$12 sps:$4 sm:$0xff]   ;;  %v2134_v39 = vld [vmem:[%s2489_s11 + $0x258] ss:$12 sps:$4 sm:$0xff]   ;;  %v2135_v40 = vld [vmem:[%s2489_s11 + $0xf4] ss:$12 sps:$4 sm:$0xff]  }
  0x44   : > { %1295 = vmatpush1.bf16.msra.mxu1 %v2097_v14  ;;  %v2137_v41 = vld [vmem:[%s2489_s11 + $0x274] ss:$12 sps:$4 sm:$0xff]   ;;  %v2139_v42 = vld [vmem:[%s2489_s11 + $0xf0] ss:$12 sps:$4 sm:$0xff]   ;;  %v2141_v44 = vld [vmem:[%s2489_s11 + $0x10c] ss:$12 sps:$4 sm:$0xff]  }
  0x45   : > { %1338 = vmatpush1.bf16.msra.mxu0 %v2098_v15  ;;  %1296 = vmatprep.subr.bf16.mxu1 %v2099_v16  ;;  %v2140_v43 = vld [vmem:[%s2489_s11 + $0x270] ss:$12 sps:$4 sm:$0xff]   ;;  %v2143_v45 = vld [vmem:[%s2489_s11 + $0x28c] ss:$12 sps:$4 sm:$0xff]   ;;  %v2145_v46 = vld [vmem:[%s2489_s11 + $0x108] ss:$12 sps:$4 sm:$0xff]  }
  0x46   : > { %1339 = vmatprep.subr.bf16.mxu0 %v2101_v17  ;;  %v2146_v47 = vld [vmem:[%s2489_s11 + $0x288] ss:$12 sps:$4 sm:$0xff]   ;;  %v2147_v48 = vld [vmem:[%s2489_s11 + $0x124] ss:$12 sps:$4 sm:$0xff]   ;;  %v2151_v52 = vld [vmem:[%s2489_s11 + $0x120] ss:$12 sps:$4 sm:$0xff]  }
  0x47   : > { %v2173_v49 = vld [vmem:[%s2702_s0 + $0x4] ss:$24 sps:$4 sm:$0xff]   ;;  %v2152_v53 = vld [vmem:[%s2489_s11 + $0x2a0] ss:$12 sps:$4 sm:$0xff]   ;;  %v2169_v0 = vld [vmem:[%s2489_s11 + $0x168] ss:$12 sps:$4 sm:$0xff]  }
  0x48   : > { %1297 = vmatpush1.bf16.msra.mxu1 %v2103_v18  ;;  %v2149_v50 = vld [vmem:[%s2489_s11 + $0x2a4] ss:$12 sps:$4 sm:$0xff]   ;;  %1320 = vmatprep.mubr.bf16.mxu1 %v2173_v49  ;;  %v2153_v54 = vld [vmem:[%s2489_s11 + $0x13c] ss:$12 sps:$4 sm:$0xff]   ;;  %v2159_v58 = vld [vmem:[%s2489_s11 + $0x154] ss:$12 sps:$4 sm:$0xff]  }
  0x49   : > { %1340 = vmatpush1.bf16.msra.mxu0 %v2104_v19  ;;  %1298 = vmatprep.subr.bf16.mxu1 %v2105_v20  ;;  %v2551_v51 = vld [vmem:[%s2702_s0 + $0xc] ss:$24 sps:$4 sm:$0xff]   ;;  %v2155_v55 = vld [vmem:[%s2489_s11 + $0x2bc] ss:$12 sps:$4 sm:$0xff]   ;;  %v2161_v59 = vld [vmem:[%s2489_s11 + $0x2d4] ss:$12 sps:$4 sm:$0xff]  }
  0x4a   : > { %1341 = vmatprep.subr.bf16.mxu0 %v2107_v21  ;;  %1363 = vmatprep.mubr.bf16.mxu0 %v2551_v51  ;;  %v2157_v56 = vld [vmem:[%s2489_s11 + $0x138] ss:$12 sps:$4 sm:$0xff]   ;;  %v2163_v60 = vld [vmem:[%s2489_s11 + $0x150] ss:$12 sps:$4 sm:$0xff]   ;;  %v2170_v1 = vld [vmem:[%s2489_s11 + $0x2e8] ss:$12 sps:$4 sm:$0xff]  }
  0x4b   : > { %v2158_v57 = vld [vmem:[%s2489_s11 + $0x2b8] ss:$12 sps:$4 sm:$0xff]   ;;  %v2164_v61 = vld [vmem:[%s2489_s11 + $0x2d0] ss:$12 sps:$4 sm:$0xff]   ;;  %v2577_v4 = vld [vmem:[%s2702_s0 + $0x8] ss:$24 sps:$4 sm:$0xff]  }
  0x4c   : > { %1299 = vmatpush1.bf16.msra.mxu1 %v2109_v22  ;;  %v2165_v62 = vld [vmem:[%s2489_s11 + $0x16c] ss:$12 sps:$4 sm:$0xff]   ;;  %v2179_v2 = vld [vmem:[%s2489_s11 + $0x304] ss:$12 sps:$4 sm:$0xff]   ;;  %v2180_v5 = vld [vmem:[%s2489_s11 + $0xc8] ss:$12 sps:$4 sm:$0xff]  }
  0x4d   : > { %1342 = vmatpush1.bf16.msra.mxu0 %v2110_v23  ;;  %1300 = vmatprep.subr.bf16.mxu1 %v2111_v24  ;;  %v2167_v63 = vld [vmem:[%s2489_s11 + $0x2ec] ss:$12 sps:$4 sm:$0xff]   ;;  %v2181_v7 = vld [vmem:[%s2489_s11 + $0x8] ss:$12 sps:$4 sm:$0xff]   ;;  %v2187_v14 = vld [vmem:[%s2489_s11 + $0x330] ss:$12 sps:$4 sm:$0xff]  }
  0x4e   : > { %1343 = vmatprep.subr.bf16.mxu0 %v2113_v25  ;;  %v2572_v3 = vld [vmem:[%s2702_s0] ss:$24 sps:$4 sm:$0xff]   ;;  %v2184_v8 = vld [vmem:[%s2489_s11 + $0x31c] ss:$12 sps:$4 sm:$0xff]   ;;  %v2199_v20 = vld [vmem:[%s2489_s11 + $0x364] ss:$12 sps:$4 sm:$0xff]  }
  0x4f   : > { %v2177_v6 = vld [vmem:[%s2489_s11 + $0x300] ss:$12 sps:$4 sm:$0xff]   ;;  %v2182_v10 = vld [vmem:[%s2489_s11 + $0x318] ss:$12 sps:$4 sm:$0xff]   ;;  %v2195_v17 = vld [vmem:[%s2489_s11 + $0x110] ss:$12 sps:$4 sm:$0xff]  }
  0x50   : > { %1301 = vmatpush1.bf16.msra.mxu1 %v2115_v26  ;;  %v2185_v9 = vld [vmem:[%s2489_s11 + $0xe0] ss:$12 sps:$4 sm:$0xff]   ;;  %v2190_v13 = vld [vmem:[%s2489_s11 + $0xf8] ss:$12 sps:$4 sm:$0xff]   ;;  %v2192_v18 = vld [vmem:[%s2489_s11 + $0x348] ss:$12 sps:$4 sm:$0xff]  }
  0x51   : > { %1344 = vmatpush1.bf16.msra.mxu0 %v2116_v27  ;;  %1302 = vmatprep.subr.bf16.mxu1 %v2117_v28  ;;  %v2186_v11 = vld [vmem:[%s2489_s11 + $0x20] ss:$12 sps:$4 sm:$0xff]   ;;  %v2191_v15 = vld [vmem:[%s2489_s11 + $0x38] ss:$12 sps:$4 sm:$0xff]   ;;  %v2196_v19 = vld [vmem:[%s2489_s11 + $0x50] ss:$12 sps:$4 sm:$0xff]  }
  0x52   : > { %1345 = vmatprep.subr.bf16.mxu0 %v2119_v29  ;;  %v2189_v12 = vld [vmem:[%s2489_s11 + $0x334] ss:$12 sps:$4 sm:$0xff]   ;;  %v2194_v16 = vld [vmem:[%s2489_s11 + $0x34c] ss:$12 sps:$4 sm:$0xff]   ;;  %v2204_v24 = vld [vmem:[%s2489_s11 + $0x37c] ss:$12 sps:$4 sm:$0xff]  }
  0x53   : > { %v2200_v21 = vld [vmem:[%s2489_s11 + $0x128] ss:$12 sps:$4 sm:$0xff]   ;;  %v2197_v22 = vld [vmem:[%s2489_s11 + $0x360] ss:$12 sps:$4 sm:$0xff]   ;;  %v2202_v26 = vld [vmem:[%s2489_s11 + $0x378] ss:$12 sps:$4 sm:$0xff]  }
  0x54   : > { %1303 = vmatpush1.bf16.msra.mxu1 %v2121_v30  ;;  %v2201_v23 = vld [vmem:[%s2489_s11 + $0x68] ss:$12 sps:$4 sm:$0xff]   ;;  %v2205_v25 = vld [vmem:[%s2489_s11 + $0x140] ss:$12 sps:$4 sm:$0xff]   ;;  %v2210_v29 = vld [vmem:[%s2489_s11 + $0x158] ss:$12 sps:$4 sm:$0xff]  }
  0x55   : > { %1346 = vmatpush1.bf16.msra.mxu0 %v2122_v31  ;;  %1304 = vmatprep.subr.bf16.mxu1 %v2123_v32  ;;  %v2206_v27 = vld [vmem:[%s2489_s11 + $0x80] ss:$12 sps:$4 sm:$0xff]   ;;  %v2207_v30 = vld [vmem:[%s2489_s11 + $0x390] ss:$12 sps:$4 sm:$0xff]   ;;  %v2211_v31 = vld [vmem:[%s2489_s11 + $0x98] ss:$12 sps:$4 sm:$0xff]  }
  0x56   : > { %1347 = vmatprep.subr.bf16.mxu0 %v2125_v33  ;;  %v2209_v28 = vld [vmem:[%s2489_s11 + $0x394] ss:$12 sps:$4 sm:$0xff]   ;;  %v2214_v32 = vld [vmem:[%s2489_s11 + $0x3ac] ss:$12 sps:$4 sm:$0xff]   ;;  %v2215_v33 = vld [vmem:[%s2489_s11 + $0x170] ss:$12 sps:$4 sm:$0xff]  }
  0x57   : > { %p269_p8 = scmp.lt.s32.totalorder %s268_s28, 17  ;;  %s2016_s10 = smul.u32 24, %s2485_s6 }
  0x58   : > { %1305 = vmatpush1.bf16.msra.mxu1 %v2127_v34  ;;  %v2212_v34 = vld [vmem:[%s2489_s11 + $0x3a8] ss:$12 sps:$4 sm:$0xff]   ;;  %p2711_p9 = scmp.ne.s32.totalorder %s2708_s25, 0 }
  0x59   : > { %1348 = vmatpush1.bf16.msra.mxu0 %v2128_v35  ;;  %1306 = vmatprep.subr.bf16.mxu1 %v2129_v36  ;;  %v2216_v35 = vld [vmem:[%s2489_s11 + $0xb0] ss:$12 sps:$4 sm:$0xff]   ;;  %s2720_s28 = smov (!%p269_p8, %s268_s28), 17  ;;  %s1939_s6 = smul.u32 (%p2711_p9), 12, %s2348_s15 }
  0x5a   : > { %1349 = vmatprep.subr.bf16.mxu0 %v2131_v37  ;;  %v2219_v36 = vld [vmem:[%s2489_s11 + $0x3c4] ss:$12 sps:$4 sm:$0xff]   ;;  %v2220_v37 = vld [vmem:[%s2489_s11 + $0x248] ss:$12 sps:$4 sm:$0xff]   ;;  %s271_s9 = scalar_lea.vmem %s2704_s2, %s2720_s28 }
  0x5b   : > { %s1620_s5 = scalar_lea.vmem (%p2711_p9), %s2705_s3, %s1939_s6 }
  0x5c   : > { %1307 = vmatpush1.bf16.msra.mxu1 %v2133_v38  ;;  %v2217_v38 = vld [vmem:[%s2489_s11 + $0x3c0] ss:$12 sps:$4 sm:$0xff]  }
  0x5d   : > { %1350 = vmatpush1.bf16.msra.mxu0 %v2134_v39  ;;  %1308 = vmatprep.subr.bf16.mxu1 %v2135_v40  ;;  %v2221_v39 = vld [vmem:[%s2489_s11 + $0x188] ss:$12 sps:$4 sm:$0xff]  }
  0x5e   : > { %1351 = vmatprep.subr.bf16.mxu0 %v2137_v41  ;;  %v2224_v40 = vld [vmem:[%s2489_s11 + $0x3dc] ss:$12 sps:$4 sm:$0xff]   ;;  %v2225_v41 = vld [vmem:[%s2489_s11 + $0x260] ss:$12 sps:$4 sm:$0xff]  }
  0x60   : > { %1309 = vmatpush1.bf16.msra.mxu1 %v2139_v42  ;;  %v2222_v42 = vld [vmem:[%s2489_s11 + $0x3d8] ss:$12 sps:$4 sm:$0xff]  }
  0x61   : > { %1352 = vmatpush1.bf16.msra.mxu0 %v2140_v43  ;;  %1310 = vmatprep.subr.bf16.mxu1 %v2141_v44  ;;  %v2226_v43 = vld [vmem:[%s2489_s11 + $0x1a0] ss:$12 sps:$4 sm:$0xff]  }
  0x62   : > { %1353 = vmatprep.subr.bf16.mxu0 %v2143_v45  ;;  %v2624_v44 = vld [vmem:[%s2702_s0 + $0x14] ss:$24 sps:$4 sm:$0xff]  }
  0x63   : > { %v2229_v45 = vld [vmem:[%s2489_s11 + $0x3f4] ss:$12 sps:$4 sm:$0xff]  }
  0x64   : > { %1311 = vmatpush1.bf16.msra.mxu1 %v2145_v46  ;;  %v2230_v46 = vld [vmem:[%s2489_s11 + $0x278] ss:$12 sps:$4 sm:$0xff]  }
  0x65   : > { %1354 = vmatpush1.bf16.msra.mxu0 %v2146_v47  ;;  %1312 = vmatprep.subr.bf16.mxu1 %v2147_v48  ;;  %v2227_v47 = vld [vmem:[%s2489_s11 + $0x3f0] ss:$12 sps:$4 sm:$0xff]   ;;  %v2231_v48 = vld [vmem:[%s2489_s11 + $0x1b8] ss:$12 sps:$4 sm:$0xff]  }
  0x66   : > { %1355 = vmatprep.subr.bf16.mxu0 %v2149_v50  ;;  %v2235_v50 = vld [vmem:[%s2489_s11 + $0x290] ss:$12 sps:$4 sm:$0xff]  }
  0x68   : > { %1313 = vmatpush1.bf16.msra.mxu1 %v2151_v52  ;;  %v2232_v52 = vld [vmem:[%s2489_s11 + $0x408] ss:$12 sps:$4 sm:$0xff]  }
  0x69   : > { %1356 = vmatpush1.bf16.msra.mxu0 %v2152_v53  ;;  %1314 = vmatprep.subr.bf16.mxu1 %v2153_v54  ;;  %v2236_v53 = vld [vmem:[%s2489_s11 + $0x1d0] ss:$12 sps:$4 sm:$0xff]  }
  0x6a   : > { %1357 = vmatprep.subr.bf16.mxu0 %v2155_v55  ;;  %v2239_v54 = vld [vmem:[%s2489_s11 + $0x424] ss:$12 sps:$4 sm:$0xff]   ;;  %v2237_v55 = vld [vmem:[%s2489_s11 + $0x420] ss:$12 sps:$4 sm:$0xff]  }
  0x6c   : > { %1315 = vmatpush1.bf16.msra.mxu1 %v2157_v56  ;;  %v2241_v56 = vld [vmem:[%s2489_s11 + $0x1e8] ss:$12 sps:$4 sm:$0xff]  }
  0x6d   : > { %1358 = vmatpush1.bf16.msra.mxu0 %v2158_v57  ;;  %1316 = vmatprep.subr.bf16.mxu1 %v2159_v58  ;;  %v2244_v57 = vld [vmem:[%s2489_s11 + $0x43c] ss:$12 sps:$4 sm:$0xff]   ;;  %v2245_v58 = vld [vmem:[%s2489_s11 + $0x2c0] ss:$12 sps:$4 sm:$0xff]  }
  0x6e   : > { %1359 = vmatprep.subr.bf16.mxu0 %v2161_v59  ;;  %v2242_v59 = vld [vmem:[%s2489_s11 + $0x438] ss:$12 sps:$4 sm:$0xff]  }
  0x70   : > { %1317 = vmatpush1.bf16.msra.mxu1 %v2163_v60  ;;  %v2246_v60 = vld [vmem:[%s2489_s11 + $0x200] ss:$12 sps:$4 sm:$0xff]  }
  0x71   : > { %1360 = vmatpush1.bf16.msra.mxu0 %v2164_v61  ;;  %1318 = vmatprep.subr.bf16.mxu1 %v2165_v62  ;;  %v2249_v61 = vld [vmem:[%s2489_s11 + $0x454] ss:$12 sps:$4 sm:$0xff]   ;;  %v2250_v62 = vld [vmem:[%s2489_s11 + $0x2d8] ss:$12 sps:$4 sm:$0xff]  }
  0x72   : > { %1361 = vmatprep.subr.bf16.mxu0 %v2167_v63  ;;  %v2247_v63 = vld [vmem:[%s2489_s11 + $0x450] ss:$12 sps:$4 sm:$0xff]  }
  0x74   : > { %1319 = vmatpush1.bf16.msra.mxu1 %v2169_v0  ;;  %v2251_v0 = vld [vmem:[%s2489_s11 + $0x218] ss:$12 sps:$4 sm:$0xff]  }
  0x75   : > { %1362 = vmatpush1.bf16.msra.mxu0 %v2170_v1  ;;  %1940 = vmatprep.subr.bf16.mxu1 %v2180_v5  ;;  %v2254_v1 = vld [vmem:[%s2489_s11 + $0x46c] ss:$12 sps:$4 sm:$0xff]   ;;  %v2256_v5 = vld [vmem:[%s2489_s11 + $0x230] ss:$12 sps:$4 sm:$0xff]  }
  0x76   : > { %1374 = vmatprep.subr.bf16.mxu0 %v2179_v2  ;;  %v2255_v2 = vld [vmem:[%s2489_s11 + $0x2f0] ss:$12 sps:$4 sm:$0xff]  }
  0x77   : > { %1321 = vmatmul.mubr.bf16.vlgmr.msra.gmra.mrb[0].mxu1 %v2572_v3 }
  0x78   : > { %1364 = vmatmul.mubr.bf16.vlgmr.msra.gmra.mrb[0].mxu0 %v2577_v4  ;;  %1941 = vmatpush3.bf16.msra.mxu1 %v2181_v7  ;;  %v2257_v7 = vld [vmem:[%s2702_s0 + $0x10] ss:$24 sps:$4 sm:$0xff]  }
  0x79   : > { %1375 = vmatpush1.bf16.msra.mxu0 %v2177_v6  ;;  %1942 = vmatprep.subr.bf16.mxu1 %v2185_v9  ;;  %v2260_v6 = vld [vmem:[%s2489_s11 + $0x3c8] ss:$12 sps:$4 sm:$0xff]   ;;  %v2262_v9 = vld [vmem:[%s2489_s11 + $0x3e0] ss:$12 sps:$4 sm:$0xff]  }
  0x7a   : > { %1376 = vmatprep.subr.bf16.mxu0 %v2184_v8  ;;  %1449 = vmatprep.mubr.bf16.mxu1 %v2173_v49  ;;  %v2234_v49 = vld [vmem:[%s2489_s11 + $0x40c] ss:$12 sps:$4 sm:$0xff]   ;;  %v2261_v8 = vld [vmem:[%s2489_s11 + $0x308] ss:$12 sps:$4 sm:$0xff]  }
  0x7b   : > { %1406 = vmatprep.mubr.bf16.mxu0 %v2624_v44 }
  0x7c   : > { %1943 = vmatpush3.bf16.msra.mxu1 %v2186_v11  ;;  %v2264_v11 = vld [vmem:[%s2489_s11 + $0x3f8] ss:$12 sps:$4 sm:$0xff]  }
  0x7d   : > { %1377 = vmatpush1.bf16.msra.mxu0 %v2182_v10  ;;  %1944 = vmatprep.subr.bf16.mxu1 %v2190_v13  ;;  %v2263_v10 = vld [vmem:[%s2489_s11 + $0x320] ss:$12 sps:$4 sm:$0xff]   ;;  %v2266_v13 = vld [vmem:[%s2489_s11 + $0x410] ss:$12 sps:$4 sm:$0xff]  }
  0x7e   : > { %1378 = vmatprep.subr.bf16.mxu0 %v2189_v12  ;;  %v2265_v12 = vld [vmem:[%s2489_s11 + $0x338] ss:$12 sps:$4 sm:$0xff]  }
  0x80   : > { %1945 = vmatpush3.bf16.msra.mxu1 %v2191_v15  ;;  %v2269_v15 = vld [vmem:[%s2489_s11 + $0x368] ss:$12 sps:$4 sm:$0xff]  }
  0x81   : > { %1379 = vmatpush1.bf16.msra.mxu0 %v2187_v14  ;;  %1946 = vmatprep.subr.bf16.mxu1 %v2195_v17  ;;  %v2267_v14 = vld [vmem:[%s2489_s11 + $0x350] ss:$12 sps:$4 sm:$0xff]   ;;  %v2271_v17 = vld [vmem:[%s2489_s11 + $0x380] ss:$12 sps:$4 sm:$0xff]  }
  0x82   : > { %1380 = vmatprep.subr.bf16.mxu0 %v2194_v16  ;;  %v2270_v16 = vld [vmem:[%s2489_s11 + $0x440] ss:$12 sps:$4 sm:$0xff]  }
  0x84   : > { %1947 = vmatpush3.bf16.msra.mxu1 %v2196_v19  ;;  %v2273_v19 = vld [vmem:[%s2489_s11 + $0x398] ss:$12 sps:$4 sm:$0xff]  }
  0x85   : > { %1381 = vmatpush1.bf16.msra.mxu0 %v2192_v18  ;;  %1948 = vmatprep.subr.bf16.mxu1 %v2200_v21  ;;  %v2272_v18 = vld [vmem:[%s2489_s11 + $0x458] ss:$12 sps:$4 sm:$0xff]   ;;  %v2275_v21 = vld [vmem:[%s2489_s11 + $0x3b0] ss:$12 sps:$4 sm:$0xff]  }
  0x86   : > { %1382 = vmatprep.subr.bf16.mxu0 %v2199_v20  ;;  %v2274_v20 = vld [vmem:[%s2489_s11 + $0x470] ss:$12 sps:$4 sm:$0xff]  }
  0x88   : > { %1949 = vmatpush3.bf16.msra.mxu1 %v2201_v23 }
  0x89   : > { %1383 = vmatpush1.bf16.msra.mxu0 %v2197_v22  ;;  %1950 = vmatprep.subr.bf16.mxu1 %v2205_v25 }
  0x8a   : > { %1384 = vmatprep.subr.bf16.mxu0 %v2204_v24 }
  0x8c   : > { %1951 = vmatpush3.bf16.msra.mxu1 %v2206_v27 }
  0x8d   : > { %1385 = vmatpush1.bf16.msra.mxu0 %v2202_v26  ;;  %1952 = vmatprep.subr.bf16.mxu1 %v2210_v29 }
  0x8e   : > { %1386 = vmatprep.subr.bf16.mxu0 %v2209_v28 }
  0x90   : > { %1953 = vmatpush3.bf16.msra.mxu1 %v2211_v31 }
  0x91   : > { %1387 = vmatpush1.bf16.msra.mxu0 %v2207_v30  ;;  %1954 = vmatprep.subr.bf16.mxu1 %v2215_v33 }
  0x92   : > { %1388 = vmatprep.subr.bf16.mxu0 %v2214_v32  ;;  %v1563_v32 = vlaneseq }
  0x94   : > { %1955 = vmatpush3.bf16.msra.mxu1 %v2216_v35  ;;  %v1564_v33 = vshrl.u32 %v1563_v32, 7  ;;  %v1561_v35 = vld [vmem:[%s271_s9] sm:$0x7] }
  0x95   : > { %1389 = vmatpush1.bf16.msra.mxu0 %v2212_v34  ;;  %1962 = vmatprep.subr.bf16.mxu1 %v2220_v37 }
  0x96   : > { %1390 = vmatprep.subr.bf16.mxu0 %v2219_v36  ;;  %v1565_v34 = vsub.s32 0, %v1564_v33  ;;  %v1569_v36 = vsub.s32 1, %v1564_v33 }
  0x97   : > { %1450 = vmatmul.mubr.bf16.vlgmr.msra.gmra.mrb[4].mxu1 %v2572_v3  ;;  %v2252_v3 = vld [vmem:[%s2489_s11 + $0x468] ss:$12 sps:$4 sm:$0xff]  }
  0x98   : > { %1963 = vmatpush3.bf16.msra.mxu1 %v2221_v39  ;;  %1490 = vmatprep.mubr.bf16.mxu1 %v2551_v51  ;;  %v2240_v51 = vld [vmem:[%s2489_s11 + $0x2a8] ss:$12 sps:$4 sm:$0xff]   ;;  %v1566_v37 = vrot.slane %v1561_v35, %v1565_v34 }
  0x99   : > { %1391 = vmatpush1.bf16.msra.mxu0 %v2217_v38  ;;  %1964 = vmatprep.subr.bf16.mxu1 %v2225_v41 }
  0x9a   : > { %1392 = vmatprep.subr.bf16.mxu0 %v2224_v40  ;;  %v1570_v40 = vrot.slane %v1561_v35, %v1569_v36 }
  0x9c   : > { %1965 = vmatpush3.bf16.msra.mxu1 %v2226_v43 }
  0x9d   : > { %1393 = vmatpush1.bf16.msra.mxu0 %v2222_v42  ;;  %1966 = vmatprep.subr.bf16.mxu1 %v2230_v46 }
  0x9e   : > { %1394 = vmatprep.subr.bf16.mxu0 %v2229_v45 }
  0xa0   : > { %1967 = vmatpush3.bf16.msra.mxu1 %v2231_v48 }
  0xa1   : > { %1395 = vmatpush1.bf16.msra.mxu0 %v2227_v47  ;;  %1968 = vmatprep.subr.bf16.mxu1 %v2235_v50 }
  0xa2   : > { %1396 = vmatprep.subr.bf16.mxu0 %v2234_v49 }
  0xa4   : > { %1969 = vmatpush3.bf16.msra.mxu1 %v2236_v53 }
  0xa5   : > { %1397 = vmatpush1.bf16.msra.mxu0 %v2232_v52  ;;  %1970 = vmatprep.subr.bf16.mxu1 %v2240_v51 }
  0xa6   : > { %1398 = vmatprep.subr.bf16.mxu0 %v2239_v54 }
  0xa8   : > { %1971 = vmatpush3.bf16.msra.mxu1 %v2241_v56 }
  0xa9   : > { %1399 = vmatpush1.bf16.msra.mxu0 %v2237_v55  ;;  %1972 = vmatprep.subr.bf16.mxu1 %v2245_v58 }
  0xaa   : > { %1400 = vmatprep.subr.bf16.mxu0 %v2244_v57 }
  0xac   : > { %1973 = vmatpush3.bf16.msra.mxu1 %v2246_v60 }
  0xad   : > { %1401 = vmatpush1.bf16.msra.mxu0 %v2242_v59  ;;  %1974 = vmatprep.subr.bf16.mxu1 %v2250_v62 }
  0xae   : > { %1402 = vmatprep.subr.bf16.mxu0 %v2249_v61  ;;  %v1573_v61 = vsub.s32 2, %v1564_v33 }
  0xb0   : > { %1975 = vmatpush3.bf16.msra.mxu1 %v2251_v0 }
  0xb1   : > { %1403 = vmatpush1.bf16.msra.mxu0 %v2247_v63  ;;  %1976 = vmatprep.subr.bf16.mxu1 %v2255_v2 }
  0xb2   : > { %1404 = vmatprep.subr.bf16.mxu0 %v2254_v1  ;;  %v1574_v1 = vrot.slane %v1561_v35, %v1573_v61 }
  0xb4   : > { %1977 = vmatpush3.bf16.msra.mxu1 %v2256_v5 }
  0xb5   : > { %1405 = vmatpush1.bf16.msra.mxu0 %v2252_v3  ;;  %1984 = vmatprep.subr.bf16.mxu1 %v2260_v6 }
  0xb7   : > { %1491 = vmatmul.mubr.bf16.vlgmr.msra.gmra.mrb[8].mxu1 %v2577_v4  ;;  %v2268_v4 = vld [vmem:[%s2489_s11 + $0x428] ss:$12 sps:$4 sm:$0xff]   ;;  %s253_s11 = scalar_lea.vmem [#allocation5], %s2016_s10 }
  0xb8   : > { %1407 = vmatmul.mubr.bf16.vlgmr.msra.gmra.mrb[0].mxu0 %v2257_v7  ;;  %1985 = vmatpush3.bf16.msra.mxu1 %v2261_v8 }
  0xb9   : > { %1531 = vmatprep.mubr.bf16.mxu1 %v2624_v44  ;;  %1986 = vmatprep.subr.bf16.mxu1 %v2262_v9 }
  0xbc   : > { %1987 = vmatpush3.bf16.msra.mxu1 %v2263_v10 }
  0xbd   : > { %1988 = vmatprep.subr.bf16.mxu1 %v2264_v11 }
  0xc0   : > { %1989 = vmatpush3.bf16.msra.mxu1 %v2265_v12 }
  0xc1   : > { %1990 = vmatprep.subr.bf16.mxu1 %v2266_v13 }
  0xc4   : > { %1991 = vmatpush3.bf16.msra.mxu1 %v2267_v14 }
  0xc5   : > { %1992 = vmatprep.subr.bf16.mxu1 %v2268_v4 }
  0xc8   : > { %1993 = vmatpush3.bf16.msra.mxu1 %v2269_v15 }
  0xc9   : > { %1994 = vmatprep.subr.bf16.mxu1 %v2270_v16 }
  0xcc   : > { %1995 = vmatpush3.bf16.msra.mxu1 %v2271_v17 }
  0xcd   : > { %1996 = vmatprep.subr.bf16.mxu1 %v2272_v18 }
  0xd0   : > { %1997 = vmatpush3.bf16.msra.mxu1 %v2273_v19 }
  0xd1   : > { %1998 = vmatprep.subr.bf16.mxu1 %v2274_v20 }
  0xd4   : > { %1999 = vmatpush3.bf16.msra.mxu1 %v2275_v21 }
  0xd7   : > { %1532 = vmatmul.mubr.bf16.vlgmr.msra.gmra.mrb[12].mxu1 %v2257_v7 }
 0x14a   : > { %v1322_v22 = vpop.f32.mrb[0].mxu1 }
 0x14b   : > { %v1324_v23 = vpop.f32.mrb[1].mxu1 }
 0x14c   : > { %v1326_v24 = vpop.f32.mrb[2].mxu1 }
 0x14d   : > { %v1328_v25 = vpop.f32.mrb[3].mxu1 }
 0x16a   : > { %v1956_v26 = vpop.f32.mrb[4].mxu1 }
 0x16b   : > { %v1957_v27 = vpop.f32.mrb[5].mxu1 }
 0x16c   : > { %v1958_v28 = vadd.f32 %v1957_v27, %v1956_v26  ;;  %v1959_v29 = vpop.f32.mrb[6].mxu1 }
 0x16d   : > { %v1960_v30 = vpop.f32.mrb[7].mxu1 }
 0x16e   : > { %v1961_v31 = vadd.f32 %v1960_v30, %v1959_v29 }
 0x18a   : > { %v1978_v39 = vpop.f32.mrb[8].mxu1 }
 0x18b   : > { %v1408_v38 = vpop.f32.mrb[0].mxu0  ;;  %v1979_v43 = vpop.f32.mrb[9].mxu1 }
 0x18c   : > { %v2006_v41 = vadd.f32 %v1408_v38, %v1322_v22  ;;  %v1410_v42 = vpop.f32.mrb[1].mxu0  ;;  %v1980_v45 = vadd.f32 %v1979_v43, %v1978_v39  ;;  %v1981_v47 = vpop.f32.mrb[10].mxu1 }
 0x18d   : > { %v2007_v44 = vadd.f32 %v1410_v42, %v1324_v23  ;;  %v1412_v46 = vpop.f32.mrb[2].mxu0  ;;  %v1982_v52 = vpop.f32.mrb[11].mxu1 }
 0x18e   : > { %v1578_v48 = vadd.f32 %v2006_v41, %v1566_v37  ;;  %v2008_v49 = vadd.f32 %v1412_v46, %v1326_v24  ;;  %v1414_v50 = vpop.f32.mrb[3].mxu0  ;;  %v1493_v54 = vadd.f32 %v1980_v45, %v1958_v28  ;;  %v1983_v55 = vadd.f32 %v1982_v52, %v1981_v47 }
 0x18f   : > { %v1579_v53 = vadd.f32 %v2007_v44, %v1570_v40  ;;  %v2009_v51 = vadd.f32 %v1414_v50, %v1328_v25 }
 0x190   : > { %v1581_v56 = vadd.f32 %v2008_v49, %v1566_v37  ;;  %v1496_v59 = vadd.f32 %v1983_v55, %v1961_v31 }
 0x191   : > { %v1935_v57 = vpack.c.bf16 %v1579_v53, %v1578_v48  ;;  %v1582_v58 = vadd.f32 %v2009_v51, %v1570_v40 }
 0x193   : > { %1604 = vst [vmem:[%s253_s11] sm:$0xff] %v1935_v57  ;;  %v1937_v60 = vpack.c.bf16 %v1582_v58, %v1581_v56 }
 0x195   : > { %1606 = vst [vmem:[%s253_s11 + $0xc] sm:$0xff] %v1937_v60 }
 0x19a   : > { %v1635_v12 = vld [vmem:[%s253_s11] sm:$0xff] (%p2711_p9) }
 0x19b   : > { %1636 = vst [vmem:[%s1620_s5] sm:$0xff] (%p2711_p9), %v1635_v12 }
 0x19c   : > { %v1637_v13 = vld [vmem:[%s253_s11 + $0xc] sm:$0xff] (%p2711_p9) }
 0x19d   : > { %1638 = vst [vmem:[%s1620_s5 + $0x48] sm:$0xff] (%p2711_p9), %v1637_v13 }
 0x1aa   : > { %v2000_v62 = vpop.f32.mrb[12].mxu1 }
 0x1ab   : > { %v2001_v63 = vpop.f32.mrb[13].mxu1 }
 0x1ac   : > { %v2002_v0 = vadd.f32 %v2001_v63, %v2000_v62  ;;  %v2003_v2 = vpop.f32.mrb[14].mxu1 }
 0x1ad   : > { %v2004_v3 = vpop.f32.mrb[15].mxu1 }
 0x1ae   : > { %v1534_v5 = vadd.f32 %v2002_v0, %v1493_v54  ;;  %v2005_v6 = vadd.f32 %v2004_v3, %v2003_v2 }
 0x1b0   : > { %v1580_v7 = vadd.f32 %v1574_v1, %v1534_v5  ;;  %v1537_v8 = vadd.f32 %v2005_v6, %v1496_v59  ;;  %1614 = sbr.rel (!%p2711_p9) target bundleno = 447 (0x1bf), region = 48 }
 0x1b2   : > { %v1936_v9 = vpack.c.bf16 %v1580_v7, %v1580_v7  ;;  %v1583_v10 = vadd.f32 %v1574_v1, %v1537_v8 }
 0x1b4   : > { %1605 = vst [vmem:[%s253_s11 + $0x8] sm:$0xf] %v1936_v9  ;;  %v1938_v11 = vpack.c.bf16 %v1583_v10, %v1583_v10 }
 0x1b6   : > { %1607 = vst [vmem:[%s253_s11 + $0x14] sm:$0xf] %v1938_v11 }
 0x1bb   : > { %v1928_v14 = vld [vmem:[%s253_s11 + $0x8] sm:$0xf] }
 0x1bc   : > { %1929 = vst [vmem:[%s1620_s5 + $0x8] sm:$0xf] %v1928_v14 }
 0x1bd   : > { %v1930_v4 = vld [vmem:[%s253_s11 + $0x14] sm:$0xf] }
 0x1be   : > { %1931 = vst [vmem:[%s1620_s5 + $0x50] sm:$0xf] %v1930_v4 }
 0x1bf PF: > { %s16_s17 = sadd.s32 1, %s2356_s17   ;;  %s2712_s12 = smov %s2340_s13 }
 0x1c0   : > { %p13_p11 = scmp.ge.s32.totalorder %s16_s17, 8   ;;  %s2713_s13 = smov %s2344_s14 }
 0x1c1   : > { %s2714_s14 = smov %s2430_s24  ;;  %s2715_s15 = smov %s2352_s16 }
 0x1c2   : > { %s2716_s16 = smov %s2718_s19  ;;  %15 = sbr.rel (!%p13_p11) target bundleno = 4 (0x4), region = 118 }
 0x1c9   :  { %1665 = vsyncpa [#allocation4], 1 }
 0x1ca   :  { %1667 = vsyncpa [#allocation4 + $0x1], 1 }

// kernel: weighted_bce_bert_forward.20
= control target key start
LH: loop header
LB: loop body
LE: loop exit
PB: predicated region body
PF: predicated region fallthrough
CT: control target
= control target key end

     0   :  { %s428_s0 = inlined_call_operand.vmem [shape: bf16[16,768], index: 0, kind: input, shape index: {}]   ;;  %s429_s1 = inlined_call_operand.vmem [shape: bf16[16,768], index: 1, kind: input, shape index: {}]   ;;  %s430_s2 = inlined_call_operand.vmem [shape: f32[1,768], index: 2, kind: input, shape index: {}]   ;;  %s431_s3 = inlined_call_operand.vmem [shape: f32[1,768], index: 3, kind: input, shape index: {}]   ;;  %s432_s4 = inlined_call_operand.vmem [shape: bf16[16,768], index: 4, kind: output, shape index: {}]  }
   0x1   :  { %v17_v0 = vld [vmem:[%s428_s0] sm:$0xff]  ;;  %v18_v1 = vld [vmem:[%s428_s0 + $0x8] sm:$0xff]  ;;  %v19_v2 = vld [vmem:[%s428_s0 + $0x10] sm:$0xff] }
   0x2   :  { %v23_v3 = vunpack.c.l.bf16 %v17_v0  ;;  %v24_v4 = vunpack.c.h.bf16 %v17_v0  ;;  %v25_v5 = vunpack.c.l.bf16 %v18_v1  ;;  %v35_v6 = vld [vmem:[%s429_s1] sm:$0xff]  ;;  %v36_v7 = vld [vmem:[%s429_s1 + $0x8] sm:$0xff]  ;;  %v37_v8 = vld [vmem:[%s429_s1 + $0x10] sm:$0xff]  ;;  %v26_v9 = vunpack.c.h.bf16 %v18_v1 }
   0x3   :  { %v41_v10 = vunpack.c.l.bf16 %v35_v6  ;;  %v42_v11 = vunpack.c.h.bf16 %v35_v6  ;;  %v20_v12 = vld [vmem:[%s428_s0 + $0x18] sm:$0xff]  ;;  %v43_v13 = vunpack.c.l.bf16 %v36_v7  ;;  %v44_v14 = vunpack.c.h.bf16 %v36_v7  ;;  %v21_v15 = vld [vmem:[%s428_s0 + $0x20] sm:$0xff]  ;;  %v22_v24 = vld [vmem:[%s428_s0 + $0x28] sm:$0xff] }
   0x4   :  { %v27_v16 = vunpack.c.l.bf16 %v19_v2  ;;  %v45_v17 = vunpack.c.l.bf16 %v37_v8  ;;  %v38_v20 = vld [vmem:[%s429_s1 + $0x18] sm:$0xff]  ;;  %v39_v21 = vld [vmem:[%s429_s1 + $0x20] sm:$0xff]  ;;  %v28_v22 = vunpack.c.h.bf16 %v19_v2  ;;  %v29_v25 = vunpack.c.l.bf16 %v20_v12  ;;  %v40_v31 = vld [vmem:[%s429_s1 + $0x28] sm:$0xff] }
   0x5   :  { %v53_v18 = vadd.f32 %v41_v10, %v23_v3  ;;  %v54_v19 = vadd.f32 %v42_v11, %v24_v4  ;;  %v55_v23 = vadd.f32 %v43_v13, %v25_v5  ;;  %v30_v26 = vunpack.c.h.bf16 %v20_v12 }
   0x6   :  { %v46_v27 = vunpack.c.h.bf16 %v37_v8  ;;  %v56_v28 = vadd.f32 %v44_v14, %v26_v9  ;;  %v31_v30 = vunpack.c.l.bf16 %v21_v15  ;;  %v32_v32 = vunpack.c.h.bf16 %v21_v15 }
   0x7   :  { %v65_v29 = vadd.f32 %v54_v19, %v53_v18  ;;  %v47_v33 = vunpack.c.l.bf16 %v38_v20  ;;  %v48_v34 = vunpack.c.h.bf16 %v38_v20  ;;  %v49_v35 = vunpack.c.l.bf16 %v39_v21 }
   0x8   :  { %v57_v36 = vadd.f32 %v45_v17, %v27_v16  ;;  %v33_v38 = vunpack.c.l.bf16 %v22_v24  ;;  %v50_v39 = vunpack.c.h.bf16 %v39_v21  ;;  %v51_v40 = vunpack.c.l.bf16 %v40_v31 }
   0x9   :  { %v66_v37 = vadd.f32 %v65_v29, %v55_v23  ;;  %v59_v41 = vadd.f32 %v47_v33, %v29_v25  ;;  %v60_v42 = vadd.f32 %v48_v34, %v30_v26  ;;  %v61_v43 = vadd.f32 %v49_v35, %v31_v30 }
   0xa   :  { %v58_v44 = vadd.f32 %v46_v27, %v28_v22  ;;  %v34_v46 = vunpack.c.h.bf16 %v22_v24  ;;  %v52_v47 = vunpack.c.h.bf16 %v40_v31  ;;  %v62_v48 = vadd.f32 %v50_v39, %v32_v32 }
   0xb   :  { %v67_v45 = vadd.f32 %v66_v37, %v56_v28  ;;  %v72_v49 = vadd.f32 %v60_v42, %v59_v41  ;;  %v63_v51 = vadd.f32 %v51_v40, %v33_v38  ;;  %v140_v33 = vlaneseq }
   0xc   :  { %v64_v54 = vadd.f32 %v52_v47, %v34_v46  ;;  %v182_v47 = vld [vmem:[%s431_s3] sm:$0x3f] }
   0xd   :  { %v68_v50 = vadd.f32 %v67_v45, %v57_v36  ;;  %v73_v52 = vadd.f32 %v72_v49, %v61_v43 }
   0xf   :  { %v69_v53 = vadd.f32 %v68_v50, %v58_v44  ;;  %v74_v55 = vadd.f32 %v73_v52, %v62_v48 }
  0x11   :  { %70 = vadd.xlane.f32.xlu0 %v69_v53  ;;  %v75_v56 = vadd.f32 %v74_v55, %v63_v51 }
  0x13   :  { %v76_v57 = vadd.f32 %v75_v56, %v64_v54 }
  0x15   :  { %77 = vadd.xlane.f32.xlu0 %v76_v57 }
  0x9e   :  { %v71_v58 = vpop.xlane.xlu0 %70 }
  0x9f   :  { %v80_v59 = vmul.f32 0.0013020834, %v71_v58 }
  0xa1   :  { %v349_v60 = vsub.f32 %v53_v18, %v80_v59  ;;  %v351_v61 = vsub.f32 %v54_v19, %v80_v59  ;;  %v353_v62 = vsub.f32 %v55_v23, %v80_v59  ;;  %v355_v0 = vsub.f32 %v56_v28, %v80_v59 }
  0xa2   :  { %v78_v63 = vpop.xlane.xlu0 %77  ;;  %v361_v4 = vsub.f32 %v57_v36, %v80_v59  ;;  %v87_v10 = vsub.f32 %v58_v44, %v80_v59  ;;  %v141_v36 = vshrl.u32 %v140_v33, 7 }
  0xa3   :  { %v94_v1 = vmul.f32 %v349_v60, %v349_v60  ;;  %v95_v2 = vmul.f32 %v351_v61, %v351_v61  ;;  %v81_v3 = vmul.f32 0.0013020834, %v78_v63  ;;  %v96_v5 = vmul.f32 %v353_v62, %v353_v62 }
  0xa4   :  { %v97_v11 = vmul.f32 %v355_v0, %v355_v0  ;;  %v98_v16 = vmul.f32 %v361_v4, %v361_v4  ;;  %v99_v21 = vmul.f32 %v87_v10, %v87_v10  ;;  %v142_v40 = vsub.s32 0, %v141_v36 }
  0xa5   :  { %v106_v6 = vadd.f32 %v95_v2, %v94_v1  ;;  %v365_v7 = vsub.f32 %v59_v41, %v81_v3  ;;  %v367_v8 = vsub.f32 %v60_v42, %v81_v3  ;;  %v369_v9 = vsub.f32 %v61_v43, %v81_v3  ;;  %v138_v43 = vld [vmem:[%s430_s2] sm:$0x3f] }
  0xa6   :  { %v373_v13 = vsub.f32 %v62_v48, %v81_v3  ;;  %v381_v18 = vsub.f32 %v63_v51, %v81_v3  ;;  %v385_v23 = vsub.f32 %v64_v54, %v81_v3  ;;  %v146_v41 = vsub.s32 1, %v141_v36 }
  0xa7   :  { %v107_v12 = vadd.f32 %v106_v6, %v96_v5  ;;  %v100_v14 = vmul.f32 %v365_v7, %v365_v7  ;;  %v101_v15 = vmul.f32 %v367_v8, %v367_v8  ;;  %v102_v19 = vmul.f32 %v369_v9, %v369_v9 }
  0xa8   :  { %v103_v24 = vmul.f32 %v373_v13, %v373_v13  ;;  %v104_v27 = vmul.f32 %v381_v18, %v381_v18  ;;  %v105_v29 = vmul.f32 %v385_v23, %v385_v23  ;;  %v150_v42 = vsub.s32 2, %v141_v36 }
  0xa9   :  { %v108_v17 = vadd.f32 %v107_v12, %v97_v11  ;;  %v113_v20 = vadd.f32 %v101_v15, %v100_v14  ;;  %v154_v44 = vsub.s32 3, %v141_v36  ;;  %v158_v45 = vsub.s32 4, %v141_v36 }
  0xaa   :  { %v162_v46 = vsub.s32 5, %v141_v36  ;;  %v143_v48 = vrot.slane %v138_v43, %v142_v40  ;;  %v147_v49 = vrot.slane %v138_v43, %v146_v41  ;;  %v151_v50 = vrot.slane %v138_v43, %v150_v42 }
  0xab   :  { %v109_v22 = vadd.f32 %v108_v17, %v98_v16  ;;  %v114_v25 = vadd.f32 %v113_v20, %v102_v19  ;;  %v155_v51 = vrot.slane %v138_v43, %v154_v44  ;;  %v159_v52 = vrot.slane %v138_v43, %v158_v45 }
  0xac   :  { %v163_v53 = vrot.slane %v138_v43, %v162_v46  ;;  %v187_v55 = vrot.slane %v182_v47, %v142_v40  ;;  %v191_v56 = vrot.slane %v182_v47, %v146_v41  ;;  %v195_v57 = vrot.slane %v182_v47, %v150_v42 }
  0xad   :  { %v110_v26 = vadd.f32 %v109_v22, %v99_v21  ;;  %v115_v28 = vadd.f32 %v114_v25, %v103_v24  ;;  %v199_v58 = vrot.slane %v182_v47, %v154_v44  ;;  %v203_v3 = vrot.slane %v182_v47, %v158_v45 }
  0xae   :  { %v207_v5 = vrot.slane %v182_v47, %v162_v46 }
  0xaf   :  { %111 = vadd.xlane.f32.xlu1 %v110_v26  ;;  %v116_v30 = vadd.f32 %v115_v28, %v104_v27 }
  0xb1   :  { %v117_v31 = vadd.f32 %v116_v30, %v105_v29 }
  0xb3   :  { %118 = vadd.xlane.f32.xlu1 %v117_v31 }
 0x13c   :  { %v112_v32 = vpop.xlane.xlu1 %111 }
 0x13d   :  { %v120_v34 = vmul.f32 0.0013020834, %v112_v32 }
 0x13f   :  { %v122_v35 = vadd.f32 1e-12, %v120_v34 }
 0x140   :  { %v119_v37 = vpop.xlane.xlu1 %118 }
 0x141   :  { %284 = vrsqrt.f32 %v122_v35  ;;  %v121_v38 = vmul.f32 0.0013020834, %v119_v37 }
 0x143   :  { %v123_v39 = vadd.f32 1e-12, %v121_v38 }
 0x145   :  { %286 = vrsqrt.f32 %v123_v39 }
 0x14b   :  { %v285_v54 = vpop.eup %284 }
 0x14c   :  { %v126_v59 = vmul.f32 %v285_v54, %v349_v60  ;;  %v127_v63 = vmul.f32 %v285_v54, %v351_v61  ;;  %v128_v1 = vmul.f32 %v285_v54, %v353_v62  ;;  %v129_v2 = vmul.f32 %v285_v54, %v355_v0 }
 0x14d   :  { %v130_v6 = vmul.f32 %v285_v54, %v361_v4  ;;  %v131_v11 = vmul.f32 %v285_v54, %v87_v10 }
 0x14e   :  { %v170_v12 = vmul.f32 %v143_v48, %v126_v59  ;;  %v171_v14 = vmul.f32 %v147_v49, %v127_v63  ;;  %v172_v15 = vmul.f32 %v151_v50, %v128_v1  ;;  %v173_v16 = vmul.f32 %v155_v51, %v129_v2 }
 0x14f   :  { %v174_v17 = vmul.f32 %v159_v52, %v130_v6  ;;  %v175_v19 = vmul.f32 %v163_v53, %v131_v11  ;;  %v287_v20 = vpop.eup %286 }
 0x150   :  { %v214_v21 = vadd.f32 %v187_v55, %v170_v12  ;;  %v215_v60 = vadd.f32 %v191_v56, %v171_v14  ;;  %v216_v22 = vadd.f32 %v195_v57, %v172_v15  ;;  %v217_v61 = vadd.f32 %v199_v58, %v173_v16 }
 0x151   :  { %v218_v24 = vadd.f32 %v203_v3, %v174_v17  ;;  %v219_v62 = vadd.f32 %v207_v5, %v175_v19  ;;  %v132_v0 = vmul.f32 %v287_v20, %v365_v7  ;;  %v133_v25 = vmul.f32 %v287_v20, %v367_v8 }
 0x152   :  { %v278_v26 = vpack.c.bf16 %v215_v60, %v214_v21  ;;  %v279_v4 = vpack.c.bf16 %v217_v61, %v216_v22  ;;  %v134_v10 = vmul.f32 %v287_v20, %v369_v9  ;;  %v135_v27 = vmul.f32 %v287_v20, %v373_v13 }
 0x153   :  { %v280_v28 = vpack.c.bf16 %v219_v62, %v218_v24  ;;  %v136_v29 = vmul.f32 %v287_v20, %v381_v18  ;;  %v137_v30 = vmul.f32 %v287_v20, %v385_v23  ;;  %v176_v31 = vmul.f32 %v143_v48, %v132_v0 }
 0x154   :  { %262 = vst [vmem:[%s432_s4] sm:$0xff] %v278_v26  ;;  %263 = vst [vmem:[%s432_s4 + $0x8] sm:$0xff] %v279_v4  ;;  %v177_v7 = vmul.f32 %v147_v49, %v133_v25  ;;  %v178_v8 = vmul.f32 %v151_v50, %v134_v10  ;;  %v179_v32 = vmul.f32 %v155_v51, %v135_v27 }
 0x155   :  { %264 = vst [vmem:[%s432_s4 + $0x10] sm:$0xff] %v280_v28  ;;  %v180_v9 = vmul.f32 %v159_v52, %v136_v29  ;;  %v181_v13 = vmul.f32 %v163_v53, %v137_v30  ;;  %v220_v18 = vadd.f32 %v187_v55, %v176_v31 }
 0x156   :  { %v221_v23 = vadd.f32 %v191_v56, %v177_v7  ;;  %v222_v33 = vadd.f32 %v195_v57, %v178_v8  ;;  %v223_v34 = vadd.f32 %v199_v58, %v179_v32 }
 0x157   :  { %v224_v35 = vadd.f32 %v203_v3, %v180_v9  ;;  %v225_v36 = vadd.f32 %v207_v5, %v181_v13 }
 0x158   :  { %v281_v37 = vpack.c.bf16 %v221_v23, %v220_v18  ;;  %v282_v38 = vpack.c.bf16 %v223_v34, %v222_v33 }
 0x159   :  { %v283_v39 = vpack.c.bf16 %v225_v36, %v224_v35 }
 0x15a   :  { %265 = vst [vmem:[%s432_s4 + $0x18] sm:$0xff] %v281_v37  ;;  %266 = vst [vmem:[%s432_s4 + $0x20] sm:$0xff] %v282_v38 }
 0x15b   :  { %267 = vst [vmem:[%s432_s4 + $0x28] sm:$0xff] %v283_v39 }

// kernel: weighted_bce_bert_forward.19
= control target key start
LH: loop header
LB: loop body
LE: loop exit
PB: predicated region body
PF: predicated region fallthrough
CT: control target
= control target key end

     0   :  { %s2900_s12 = smov 0   ;;  %s2902_s13 = smov 0   ;;  %s3552_s0 = inlined_call_operand.vmem [shape: bf16[16,768], index: 0, kind: input, shape index: {}]   ;;  %s3553_s1 = inlined_call_operand.vmem [shape: bf16[768,768], index: 1, kind: input, shape index: {}]   ;;  %s3554_s2 = inlined_call_operand.vmem [shape: f32[1,768], index: 2, kind: input, shape index: {}]   ;;  %s3555_s3 = inlined_call_operand.vmem [shape: bf16[16,768], index: 3, kind: output, shape index: {}]  }
   0x1   :  { %s2904_s14 = smov 0   ;;  %s2906_s15 = smov 0  }
   0x2   :  { %s2908_s16 = smov 0  }
   0x3 LB: > { %s28_s17 = sadd.s32 1, %s2874_s15  ;;  %s2156_s18 = sadd.s32 4294967295, %s2878_s16   ;;  %s2878_s16 = sphi %s2908_s16, %s13_s16   ;;  %s2874_s15 = sphi %s2906_s15, %s3560_s15   ;;  %s2870_s14 = sphi %s2904_s14, %s3559_s14   ;;  %s2866_s13 = sphi %s2902_s13, %s3558_s13   ;;  %s2862_s12 = sphi %s2900_s12, %s3557_s12  }
   0x4   : > { %p30_p0 = scmp.ge.s32.totalorder %s28_s17, 2  ;;  %p76_p1 = scmp.ne.s32.totalorder %s2866_s13, %s2862_s12 }
   0x5   : > { %p77_p2 = scmp.eq.s32.totalorder %s2878_s16, 0  ;;  %p134_p4 = scmp.eq.s32.totalorder %s2156_s18, 1 }
   0x6   : > { %s3562_s17 = smov (%p30_p0, %s28_s17), 0  ;;  %s69_s20 = sadd.s32 1, %s2866_s13 }
   0x7   : > { %p78_p3 = por %p77_p2, %p76_p1  ;;  %s65_s19 = ssub.s32 %s2874_s15, %s3562_s17 }
   0x8   : > { %p67_p5 = scmp.eq.s32.totalorder %s65_s19, 0  ;;  %p2935_p6 = por %p134_p4, %p76_p1 }
   0x9   : > { %p2160_p7 = scmp.ge.s32.totalorder %s2878_s16, 2 }
   0xa   : > { %s2940_s22 = scalar_select %p67_p5, %s2866_s13, %s69_s20  }
   0xb   : > { %171 = sbr.rel (%p2160_p7) target bundleno = 135 (0x87), region = 20 }
  0x12   : > { %174 = sbr.rel (!%p78_p3) target bundleno = 135 (0x87), region = 24  ;;  %s176_s23 = sand.u32 (%p78_p3), 1, %s2866_s13  }
  0x13   : > { %s2516_s24 = smul.u32 (%p78_p3), 12, %s2874_s15 }
  0x14   : > { %s2596_s25 = smul.u32 (%p78_p3), 1152, %s176_s23 }
  0x15   : > { %s2948_s28 = scalar_lea.vmem (%p78_p3), %s3553_s1, %s2516_s24 }
  0x16   : > { %v199_v0 = vld [vmem:[%s2948_s28] sm:$0xff] (%p78_p3)  ;;  %v201_v1 = vld [vmem:[%s2948_s28 + $0x18] sm:$0xff] (%p78_p3)  ;;  %v203_v2 = vld [vmem:[%s2948_s28 + $0x30] sm:$0xff] (%p78_p3)  ;;  %s2953_s29 = scalar_lea.vmem (%p78_p3), [#allocation3], %s2596_s25 }
  0x17   : > { %200 = vst [vmem:[%s2953_s29] sm:$0xff] (%p78_p3), %v199_v0  ;;  %202 = vst [vmem:[%s2953_s29 + $0xc] sm:$0xff] (%p78_p3), %v201_v1  ;;  %v205_v3 = vld [vmem:[%s2948_s28 + $0x48] sm:$0xff] (%p78_p3)  ;;  %v207_v4 = vld [vmem:[%s2948_s28 + $0x60] sm:$0xff] (%p78_p3) }
  0x18   : > { %204 = vst [vmem:[%s2953_s29 + $0x18] sm:$0xff] (%p78_p3), %v203_v2  ;;  %v209_v5 = vld [vmem:[%s2948_s28 + $0x78] sm:$0xff] (%p78_p3)  ;;  %206 = vst [vmem:[%s2953_s29 + $0x24] sm:$0xff] (%p78_p3), %v205_v3  ;;  %v211_v6 = vld [vmem:[%s2948_s28 + $0x90] sm:$0xff] (%p78_p3) }
  0x19   : > { %208 = vst [vmem:[%s2953_s29 + $0x30] sm:$0xff] %v207_v4  ;;  %210 = vst [vmem:[%s2953_s29 + $0x3c] sm:$0xff] %v209_v5  ;;  %v213_v7 = vld [vmem:[%s2948_s28 + $0xa8] sm:$0xff]  ;;  %v215_v8 = vld [vmem:[%s2948_s28 + $0xc0] sm:$0xff] }
  0x1a   : > { %212 = vst [vmem:[%s2953_s29 + $0x48] sm:$0xff] %v211_v6  ;;  %214 = vst [vmem:[%s2953_s29 + $0x54] sm:$0xff] %v213_v7  ;;  %v217_v9 = vld [vmem:[%s2948_s28 + $0xd8] sm:$0xff]  ;;  %v219_v10 = vld [vmem:[%s2948_s28 + $0xf0] sm:$0xff] }
  0x1b   : > { %216 = vst [vmem:[%s2953_s29 + $0x60] sm:$0xff] %v215_v8  ;;  %v221_v11 = vld [vmem:[%s2948_s28 + $0x108] sm:$0xff]  ;;  %218 = vst [vmem:[%s2953_s29 + $0x6c] sm:$0xff] %v217_v9  ;;  %v223_v12 = vld [vmem:[%s2948_s28 + $0x120] sm:$0xff] }
  0x1c   : > { %220 = vst [vmem:[%s2953_s29 + $0x78] sm:$0xff] %v219_v10  ;;  %222 = vst [vmem:[%s2953_s29 + $0x84] sm:$0xff] %v221_v11  ;;  %v225_v13 = vld [vmem:[%s2948_s28 + $0x138] sm:$0xff]  ;;  %v227_v14 = vld [vmem:[%s2948_s28 + $0x150] sm:$0xff] }
  0x1d   : > { %224 = vst [vmem:[%s2953_s29 + $0x90] sm:$0xff] %v223_v12  ;;  %226 = vst [vmem:[%s2953_s29 + $0x9c] sm:$0xff] %v225_v13  ;;  %v229_v15 = vld [vmem:[%s2948_s28 + $0x168] sm:$0xff]  ;;  %v231_v16 = vld [vmem:[%s2948_s28 + $0x180] sm:$0xff] }
  0x1e   : > { %228 = vst [vmem:[%s2953_s29 + $0xa8] sm:$0xff] %v227_v14  ;;  %v233_v17 = vld [vmem:[%s2948_s28 + $0x198] sm:$0xff]  ;;  %230 = vst [vmem:[%s2953_s29 + $0xb4] sm:$0xff] %v229_v15  ;;  %v235_v18 = vld [vmem:[%s2948_s28 + $0x1b0] sm:$0xff] }
  0x1f   : > { %232 = vst [vmem:[%s2953_s29 + $0xc0] sm:$0xff] %v231_v16  ;;  %234 = vst [vmem:[%s2953_s29 + $0xcc] sm:$0xff] %v233_v17  ;;  %v237_v19 = vld [vmem:[%s2948_s28 + $0x1c8] sm:$0xff]  ;;  %v239_v20 = vld [vmem:[%s2948_s28 + $0x1e0] sm:$0xff] }
  0x20   : > { %236 = vst [vmem:[%s2953_s29 + $0xd8] sm:$0xff] %v235_v18  ;;  %238 = vst [vmem:[%s2953_s29 + $0xe4] sm:$0xff] %v237_v19  ;;  %v241_v21 = vld [vmem:[%s2948_s28 + $0x1f8] sm:$0xff]  ;;  %v243_v22 = vld [vmem:[%s2948_s28 + $0x210] sm:$0xff] }
  0x21   : > { %240 = vst [vmem:[%s2953_s29 + $0xf0] sm:$0xff] %v239_v20  ;;  %v245_v23 = vld [vmem:[%s2948_s28 + $0x228] sm:$0xff]  ;;  %242 = vst [vmem:[%s2953_s29 + $0xfc] sm:$0xff] %v241_v21  ;;  %v247_v24 = vld [vmem:[%s2948_s28 + $0x240] sm:$0xff] }
  0x22   : > { %244 = vst [vmem:[%s2953_s29 + $0x108] sm:$0xff] %v243_v22  ;;  %246 = vst [vmem:[%s2953_s29 + $0x114] sm:$0xff] %v245_v23  ;;  %v249_v25 = vld [vmem:[%s2948_s28 + $0x258] sm:$0xff]  ;;  %v251_v26 = vld [vmem:[%s2948_s28 + $0x270] sm:$0xff] }
  0x23   : > { %248 = vst [vmem:[%s2953_s29 + $0x120] sm:$0xff] %v247_v24  ;;  %250 = vst [vmem:[%s2953_s29 + $0x12c] sm:$0xff] %v249_v25  ;;  %v253_v27 = vld [vmem:[%s2948_s28 + $0x288] sm:$0xff]  ;;  %v255_v28 = vld [vmem:[%s2948_s28 + $0x2a0] sm:$0xff] }
  0x24   : > { %252 = vst [vmem:[%s2953_s29 + $0x138] sm:$0xff] %v251_v26  ;;  %v257_v29 = vld [vmem:[%s2948_s28 + $0x2b8] sm:$0xff]  ;;  %254 = vst [vmem:[%s2953_s29 + $0x144] sm:$0xff] %v253_v27  ;;  %v259_v30 = vld [vmem:[%s2948_s28 + $0x2d0] sm:$0xff] }
  0x25   : > { %256 = vst [vmem:[%s2953_s29 + $0x150] sm:$0xff] %v255_v28  ;;  %258 = vst [vmem:[%s2953_s29 + $0x15c] sm:$0xff] %v257_v29  ;;  %v261_v31 = vld [vmem:[%s2948_s28 + $0x2e8] sm:$0xff]  ;;  %v263_v32 = vld [vmem:[%s2948_s28 + $0x300] sm:$0xff] }
  0x26   : > { %260 = vst [vmem:[%s2953_s29 + $0x168] sm:$0xff] %v259_v30  ;;  %262 = vst [vmem:[%s2953_s29 + $0x174] sm:$0xff] %v261_v31  ;;  %v265_v33 = vld [vmem:[%s2948_s28 + $0x318] sm:$0xff]  ;;  %v267_v34 = vld [vmem:[%s2948_s28 + $0x330] sm:$0xff] }
  0x27   : > { %264 = vst [vmem:[%s2953_s29 + $0x180] sm:$0xff] %v263_v32  ;;  %v269_v35 = vld [vmem:[%s2948_s28 + $0x348] sm:$0xff]  ;;  %266 = vst [vmem:[%s2953_s29 + $0x18c] sm:$0xff] %v265_v33  ;;  %v271_v36 = vld [vmem:[%s2948_s28 + $0x360] sm:$0xff] }
  0x28   : > { %268 = vst [vmem:[%s2953_s29 + $0x198] sm:$0xff] %v267_v34  ;;  %270 = vst [vmem:[%s2953_s29 + $0x1a4] sm:$0xff] %v269_v35  ;;  %v273_v37 = vld [vmem:[%s2948_s28 + $0x378] sm:$0xff]  ;;  %v275_v38 = vld [vmem:[%s2948_s28 + $0x390] sm:$0xff] }
  0x29   : > { %272 = vst [vmem:[%s2953_s29 + $0x1b0] sm:$0xff] %v271_v36  ;;  %274 = vst [vmem:[%s2953_s29 + $0x1bc] sm:$0xff] %v273_v37  ;;  %v277_v39 = vld [vmem:[%s2948_s28 + $0x3a8] sm:$0xff]  ;;  %v279_v40 = vld [vmem:[%s2948_s28 + $0x3c0] sm:$0xff] }
  0x2a   : > { %276 = vst [vmem:[%s2953_s29 + $0x1c8] sm:$0xff] %v275_v38  ;;  %v281_v41 = vld [vmem:[%s2948_s28 + $0x3d8] sm:$0xff]  ;;  %278 = vst [vmem:[%s2953_s29 + $0x1d4] sm:$0xff] %v277_v39  ;;  %v283_v42 = vld [vmem:[%s2948_s28 + $0x3f0] sm:$0xff] }
  0x2b   : > { %280 = vst [vmem:[%s2953_s29 + $0x1e0] sm:$0xff] %v279_v40  ;;  %282 = vst [vmem:[%s2953_s29 + $0x1ec] sm:$0xff] %v281_v41  ;;  %v285_v43 = vld [vmem:[%s2948_s28 + $0x408] sm:$0xff]  ;;  %v287_v44 = vld [vmem:[%s2948_s28 + $0x420] sm:$0xff] }
  0x2c   : > { %284 = vst [vmem:[%s2953_s29 + $0x1f8] sm:$0xff] %v283_v42  ;;  %286 = vst [vmem:[%s2953_s29 + $0x204] sm:$0xff] %v285_v43  ;;  %v289_v45 = vld [vmem:[%s2948_s28 + $0x438] sm:$0xff]  ;;  %v291_v46 = vld [vmem:[%s2948_s28 + $0x450] sm:$0xff] }
  0x2d   : > { %288 = vst [vmem:[%s2953_s29 + $0x210] sm:$0xff] %v287_v44  ;;  %v293_v47 = vld [vmem:[%s2948_s28 + $0x468] sm:$0xff]  ;;  %290 = vst [vmem:[%s2953_s29 + $0x21c] sm:$0xff] %v289_v45  ;;  %v295_v48 = vld [vmem:[%s2948_s28 + $0x480] sm:$0xff] }
  0x2e   : > { %292 = vst [vmem:[%s2953_s29 + $0x228] sm:$0xff] %v291_v46  ;;  %294 = vst [vmem:[%s2953_s29 + $0x234] sm:$0xff] %v293_v47  ;;  %v297_v49 = vld [vmem:[%s2948_s28 + $0x498] sm:$0xff]  ;;  %v299_v50 = vld [vmem:[%s2948_s28 + $0x4b0] sm:$0xff] }
  0x2f   : > { %296 = vst [vmem:[%s2953_s29 + $0x240] sm:$0xff] %v295_v48  ;;  %298 = vst [vmem:[%s2953_s29 + $0x24c] sm:$0xff] %v297_v49  ;;  %v301_v51 = vld [vmem:[%s2948_s28 + $0x4c8] sm:$0xff]  ;;  %v303_v52 = vld [vmem:[%s2948_s28 + $0x4e0] sm:$0xff] }
  0x30   : > { %300 = vst [vmem:[%s2953_s29 + $0x258] sm:$0xff] %v299_v50  ;;  %v305_v53 = vld [vmem:[%s2948_s28 + $0x4f8] sm:$0xff]  ;;  %302 = vst [vmem:[%s2953_s29 + $0x264] sm:$0xff] %v301_v51  ;;  %v307_v54 = vld [vmem:[%s2948_s28 + $0x510] sm:$0xff] }
  0x31   : > { %304 = vst [vmem:[%s2953_s29 + $0x270] sm:$0xff] %v303_v52  ;;  %306 = vst [vmem:[%s2953_s29 + $0x27c] sm:$0xff] %v305_v53  ;;  %v309_v55 = vld [vmem:[%s2948_s28 + $0x528] sm:$0xff]  ;;  %v311_v56 = vld [vmem:[%s2948_s28 + $0x540] sm:$0xff] }
  0x32   : > { %308 = vst [vmem:[%s2953_s29 + $0x288] sm:$0xff] %v307_v54  ;;  %310 = vst [vmem:[%s2953_s29 + $0x294] sm:$0xff] %v309_v55  ;;  %v313_v57 = vld [vmem:[%s2948_s28 + $0x558] sm:$0xff]  ;;  %v315_v58 = vld [vmem:[%s2948_s28 + $0x570] sm:$0xff] }
  0x33   : > { %312 = vst [vmem:[%s2953_s29 + $0x2a0] sm:$0xff] %v311_v56  ;;  %v317_v59 = vld [vmem:[%s2948_s28 + $0x588] sm:$0xff]  ;;  %314 = vst [vmem:[%s2953_s29 + $0x2ac] sm:$0xff] %v313_v57  ;;  %v319_v60 = vld [vmem:[%s2948_s28 + $0x5a0] sm:$0xff] }
  0x34   : > { %316 = vst [vmem:[%s2953_s29 + $0x2b8] sm:$0xff] %v315_v58  ;;  %318 = vst [vmem:[%s2953_s29 + $0x2c4] sm:$0xff] %v317_v59  ;;  %v321_v61 = vld [vmem:[%s2948_s28 + $0x5b8] sm:$0xff]  ;;  %v323_v62 = vld [vmem:[%s2948_s28 + $0x5d0] sm:$0xff] }
  0x35   : > { %320 = vst [vmem:[%s2953_s29 + $0x2d0] sm:$0xff] %v319_v60  ;;  %322 = vst [vmem:[%s2953_s29 + $0x2dc] sm:$0xff] %v321_v61  ;;  %v325_v63 = vld [vmem:[%s2948_s28 + $0x5e8] sm:$0xff]  ;;  %v327_v0 = vld [vmem:[%s2948_s28 + $0x600] sm:$0xff] }
  0x36   : > { %324 = vst [vmem:[%s2953_s29 + $0x2e8] sm:$0xff] %v323_v62  ;;  %v329_v1 = vld [vmem:[%s2948_s28 + $0x618] sm:$0xff]  ;;  %326 = vst [vmem:[%s2953_s29 + $0x2f4] sm:$0xff] %v325_v63  ;;  %v331_v2 = vld [vmem:[%s2948_s28 + $0x630] sm:$0xff] }
  0x37   : > { %328 = vst [vmem:[%s2953_s29 + $0x300] sm:$0xff] %v327_v0  ;;  %330 = vst [vmem:[%s2953_s29 + $0x30c] sm:$0xff] %v329_v1  ;;  %v333_v3 = vld [vmem:[%s2948_s28 + $0x648] sm:$0xff]  ;;  %v335_v4 = vld [vmem:[%s2948_s28 + $0x660] sm:$0xff] }
  0x38   : > { %332 = vst [vmem:[%s2953_s29 + $0x318] sm:$0xff] %v331_v2  ;;  %334 = vst [vmem:[%s2953_s29 + $0x324] sm:$0xff] %v333_v3  ;;  %v337_v5 = vld [vmem:[%s2948_s28 + $0x678] sm:$0xff]  ;;  %v339_v6 = vld [vmem:[%s2948_s28 + $0x690] sm:$0xff] }
  0x39   : > { %336 = vst [vmem:[%s2953_s29 + $0x330] sm:$0xff] %v335_v4  ;;  %v341_v7 = vld [vmem:[%s2948_s28 + $0x6a8] sm:$0xff]  ;;  %338 = vst [vmem:[%s2953_s29 + $0x33c] sm:$0xff] %v337_v5  ;;  %v343_v8 = vld [vmem:[%s2948_s28 + $0x6c0] sm:$0xff] }
  0x3a   : > { %340 = vst [vmem:[%s2953_s29 + $0x348] sm:$0xff] %v339_v6  ;;  %342 = vst [vmem:[%s2953_s29 + $0x354] sm:$0xff] %v341_v7  ;;  %v345_v9 = vld [vmem:[%s2948_s28 + $0x6d8] sm:$0xff]  ;;  %v347_v10 = vld [vmem:[%s2948_s28 + $0x6f0] sm:$0xff] }
  0x3b   : > { %344 = vst [vmem:[%s2953_s29 + $0x360] sm:$0xff] %v343_v8  ;;  %346 = vst [vmem:[%s2953_s29 + $0x36c] sm:$0xff] %v345_v9  ;;  %v349_v11 = vld [vmem:[%s2948_s28 + $0x708] sm:$0xff]  ;;  %v351_v12 = vld [vmem:[%s2948_s28 + $0x720] sm:$0xff] }
  0x3c   : > { %348 = vst [vmem:[%s2953_s29 + $0x378] sm:$0xff] %v347_v10  ;;  %v353_v13 = vld [vmem:[%s2948_s28 + $0x738] sm:$0xff]  ;;  %350 = vst [vmem:[%s2953_s29 + $0x384] sm:$0xff] %v349_v11  ;;  %v355_v14 = vld [vmem:[%s2948_s28 + $0x750] sm:$0xff] }
  0x3d   : > { %352 = vst [vmem:[%s2953_s29 + $0x390] sm:$0xff] %v351_v12  ;;  %354 = vst [vmem:[%s2953_s29 + $0x39c] sm:$0xff] %v353_v13  ;;  %v357_v15 = vld [vmem:[%s2948_s28 + $0x768] sm:$0xff]  ;;  %v359_v16 = vld [vmem:[%s2948_s28 + $0x780] sm:$0xff] }
  0x3e   : > { %356 = vst [vmem:[%s2953_s29 + $0x3a8] sm:$0xff] %v355_v14  ;;  %358 = vst [vmem:[%s2953_s29 + $0x3b4] sm:$0xff] %v357_v15  ;;  %v361_v17 = vld [vmem:[%s2948_s28 + $0x798] sm:$0xff]  ;;  %v363_v18 = vld [vmem:[%s2948_s28 + $0x7b0] sm:$0xff] }
  0x3f   : > { %360 = vst [vmem:[%s2953_s29 + $0x3c0] sm:$0xff] %v359_v16  ;;  %v365_v19 = vld [vmem:[%s2948_s28 + $0x7c8] sm:$0xff]  ;;  %362 = vst [vmem:[%s2953_s29 + $0x3cc] sm:$0xff] %v361_v17  ;;  %v367_v20 = vld [vmem:[%s2948_s28 + $0x7e0] sm:$0xff] }
  0x40   : > { %364 = vst [vmem:[%s2953_s29 + $0x3d8] sm:$0xff] %v363_v18  ;;  %366 = vst [vmem:[%s2953_s29 + $0x3e4] sm:$0xff] %v365_v19  ;;  %v369_v21 = vld [vmem:[%s2948_s28 + $0x7f8] sm:$0xff]  ;;  %v371_v22 = vld [vmem:[%s2948_s28 + $0x810] sm:$0xff] }
  0x41   : > { %368 = vst [vmem:[%s2953_s29 + $0x3f0] sm:$0xff] %v367_v20  ;;  %370 = vst [vmem:[%s2953_s29 + $0x3fc] sm:$0xff] %v369_v21  ;;  %v373_v23 = vld [vmem:[%s2948_s28 + $0x828] sm:$0xff]  ;;  %v375_v24 = vld [vmem:[%s2948_s28 + $0x840] sm:$0xff] }
  0x42   : > { %372 = vst [vmem:[%s2953_s29 + $0x408] sm:$0xff] %v371_v22  ;;  %v377_v25 = vld [vmem:[%s2948_s28 + $0x858] sm:$0xff]  ;;  %374 = vst [vmem:[%s2953_s29 + $0x414] sm:$0xff] %v373_v23  ;;  %v379_v26 = vld [vmem:[%s2948_s28 + $0x870] sm:$0xff] }
  0x43   : > { %376 = vst [vmem:[%s2953_s29 + $0x420] sm:$0xff] %v375_v24  ;;  %378 = vst [vmem:[%s2953_s29 + $0x42c] sm:$0xff] %v377_v25  ;;  %v381_v27 = vld [vmem:[%s2948_s28 + $0x888] sm:$0xff]  ;;  %v383_v28 = vld [vmem:[%s2948_s28 + $0x8a0] sm:$0xff] }
  0x44   : > { %380 = vst [vmem:[%s2953_s29 + $0x438] sm:$0xff] %v379_v26  ;;  %382 = vst [vmem:[%s2953_s29 + $0x444] sm:$0xff] %v381_v27  ;;  %v385_v29 = vld [vmem:[%s2948_s28 + $0x8b8] sm:$0xff]  ;;  %v387_v30 = vld [vmem:[%s2948_s28 + $0x8d0] sm:$0xff] }
  0x45   : > { %384 = vst [vmem:[%s2953_s29 + $0x450] sm:$0xff] %v383_v28  ;;  %v389_v31 = vld [vmem:[%s2948_s28 + $0x8e8] sm:$0xff]  ;;  %386 = vst [vmem:[%s2953_s29 + $0x45c] sm:$0xff] %v385_v29  ;;  %v2164_v33 = vld [vmem:[%s2948_s28 + $0x20] sm:$0xf] }
  0x46   : > { %388 = vst [vmem:[%s2953_s29 + $0x468] sm:$0xff] %v387_v30  ;;  %390 = vst [vmem:[%s2953_s29 + $0x474] sm:$0xff] %v389_v31  ;;  %v2162_v32 = vld [vmem:[%s2948_s28 + $0x8] sm:$0xf]  ;;  %v2166_v34 = vld [vmem:[%s2948_s28 + $0x38] sm:$0xf] }
  0x47   : > { %2163 = vst [vmem:[%s2953_s29 + $0x8] sm:$0xf] %v2162_v32  ;;  %2165 = vst [vmem:[%s2953_s29 + $0x14] sm:$0xf] %v2164_v33  ;;  %v2168_v35 = vld [vmem:[%s2948_s28 + $0x50] sm:$0xf] }
  0x48   : > { %2167 = vst [vmem:[%s2953_s29 + $0x20] sm:$0xf] %v2166_v34  ;;  %v2170_v36 = vld [vmem:[%s2948_s28 + $0x68] sm:$0xf]  ;;  %v2172_v37 = vld [vmem:[%s2948_s28 + $0x80] sm:$0xf] }
  0x49   : > { %2169 = vst [vmem:[%s2953_s29 + $0x2c] sm:$0xf] %v2168_v35  ;;  %2171 = vst [vmem:[%s2953_s29 + $0x38] sm:$0xf] %v2170_v36  ;;  %v2174_v38 = vld [vmem:[%s2948_s28 + $0x98] sm:$0xf] }
  0x4a   : > { %2173 = vst [vmem:[%s2953_s29 + $0x44] sm:$0xf] %v2172_v37  ;;  %v2176_v39 = vld [vmem:[%s2948_s28 + $0xb0] sm:$0xf]  ;;  %v2178_v40 = vld [vmem:[%s2948_s28 + $0xc8] sm:$0xf] }
  0x4b   : > { %2175 = vst [vmem:[%s2953_s29 + $0x50] sm:$0xf] %v2174_v38  ;;  %2177 = vst [vmem:[%s2953_s29 + $0x5c] sm:$0xf] %v2176_v39  ;;  %v2180_v41 = vld [vmem:[%s2948_s28 + $0xe0] sm:$0xf] }
  0x4c   : > { %2179 = vst [vmem:[%s2953_s29 + $0x68] sm:$0xf] %v2178_v40  ;;  %v2182_v42 = vld [vmem:[%s2948_s28 + $0xf8] sm:$0xf]  ;;  %v2184_v43 = vld [vmem:[%s2948_s28 + $0x110] sm:$0xf] }
  0x4d   : > { %2181 = vst [vmem:[%s2953_s29 + $0x74] sm:$0xf] %v2180_v41  ;;  %2183 = vst [vmem:[%s2953_s29 + $0x80] sm:$0xf] %v2182_v42  ;;  %v2186_v44 = vld [vmem:[%s2948_s28 + $0x128] sm:$0xf] }
  0x4e   : > { %2185 = vst [vmem:[%s2953_s29 + $0x8c] sm:$0xf] %v2184_v43  ;;  %v2188_v45 = vld [vmem:[%s2948_s28 + $0x140] sm:$0xf]  ;;  %v2190_v46 = vld [vmem:[%s2948_s28 + $0x158] sm:$0xf] }
  0x4f   : > { %2187 = vst [vmem:[%s2953_s29 + $0x98] sm:$0xf] %v2186_v44  ;;  %2189 = vst [vmem:[%s2953_s29 + $0xa4] sm:$0xf] %v2188_v45  ;;  %v2192_v47 = vld [vmem:[%s2948_s28 + $0x170] sm:$0xf] }
  0x50   : > { %2191 = vst [vmem:[%s2953_s29 + $0xb0] sm:$0xf] %v2190_v46  ;;  %v2194_v48 = vld [vmem:[%s2948_s28 + $0x188] sm:$0xf]  ;;  %v2196_v49 = vld [vmem:[%s2948_s28 + $0x1a0] sm:$0xf] }
  0x51   : > { %2193 = vst [vmem:[%s2953_s29 + $0xbc] sm:$0xf] %v2192_v47  ;;  %2195 = vst [vmem:[%s2953_s29 + $0xc8] sm:$0xf] %v2194_v48  ;;  %v2198_v50 = vld [vmem:[%s2948_s28 + $0x1b8] sm:$0xf] }
  0x52   : > { %2197 = vst [vmem:[%s2953_s29 + $0xd4] sm:$0xf] %v2196_v49  ;;  %v2200_v51 = vld [vmem:[%s2948_s28 + $0x1d0] sm:$0xf]  ;;  %v2202_v52 = vld [vmem:[%s2948_s28 + $0x1e8] sm:$0xf] }
  0x53   : > { %2199 = vst [vmem:[%s2953_s29 + $0xe0] sm:$0xf] %v2198_v50  ;;  %2201 = vst [vmem:[%s2953_s29 + $0xec] sm:$0xf] %v2200_v51  ;;  %v2204_v53 = vld [vmem:[%s2948_s28 + $0x200] sm:$0xf] }
  0x54   : > { %2203 = vst [vmem:[%s2953_s29 + $0xf8] sm:$0xf] %v2202_v52  ;;  %v2206_v54 = vld [vmem:[%s2948_s28 + $0x218] sm:$0xf]  ;;  %v2208_v55 = vld [vmem:[%s2948_s28 + $0x230] sm:$0xf] }
  0x55   : > { %2205 = vst [vmem:[%s2953_s29 + $0x104] sm:$0xf] %v2204_v53  ;;  %2207 = vst [vmem:[%s2953_s29 + $0x110] sm:$0xf] %v2206_v54  ;;  %v2210_v56 = vld [vmem:[%s2948_s28 + $0x248] sm:$0xf] }
  0x56   : > { %2209 = vst [vmem:[%s2953_s29 + $0x11c] sm:$0xf] %v2208_v55  ;;  %v2212_v57 = vld [vmem:[%s2948_s28 + $0x260] sm:$0xf]  ;;  %v2214_v58 = vld [vmem:[%s2948_s28 + $0x278] sm:$0xf] }
  0x57   : > { %2211 = vst [vmem:[%s2953_s29 + $0x128] sm:$0xf] %v2210_v56  ;;  %2213 = vst [vmem:[%s2953_s29 + $0x134] sm:$0xf] %v2212_v57  ;;  %v2216_v59 = vld [vmem:[%s2948_s28 + $0x290] sm:$0xf] }
  0x58   : > { %2215 = vst [vmem:[%s2953_s29 + $0x140] sm:$0xf] %v2214_v58  ;;  %v2218_v60 = vld [vmem:[%s2948_s28 + $0x2a8] sm:$0xf]  ;;  %v2220_v61 = vld [vmem:[%s2948_s28 + $0x2c0] sm:$0xf] }
  0x59   : > { %2217 = vst [vmem:[%s2953_s29 + $0x14c] sm:$0xf] %v2216_v59  ;;  %2219 = vst [vmem:[%s2953_s29 + $0x158] sm:$0xf] %v2218_v60  ;;  %v2222_v62 = vld [vmem:[%s2948_s28 + $0x2d8] sm:$0xf] }
  0x5a   : > { %2221 = vst [vmem:[%s2953_s29 + $0x164] sm:$0xf] %v2220_v61  ;;  %v2224_v63 = vld [vmem:[%s2948_s28 + $0x2f0] sm:$0xf]  ;;  %v2226_v0 = vld [vmem:[%s2948_s28 + $0x308] sm:$0xf] }
  0x5b   : > { %2223 = vst [vmem:[%s2953_s29 + $0x170] sm:$0xf] %v2222_v62  ;;  %2225 = vst [vmem:[%s2953_s29 + $0x17c] sm:$0xf] %v2224_v63  ;;  %v2228_v1 = vld [vmem:[%s2948_s28 + $0x320] sm:$0xf] }
  0x5c   : > { %2227 = vst [vmem:[%s2953_s29 + $0x188] sm:$0xf] %v2226_v0  ;;  %v2230_v2 = vld [vmem:[%s2948_s28 + $0x338] sm:$0xf]  ;;  %v2232_v3 = vld [vmem:[%s2948_s28 + $0x350] sm:$0xf] }
  0x5d   : > { %2229 = vst [vmem:[%s2953_s29 + $0x194] sm:$0xf] %v2228_v1  ;;  %2231 = vst [vmem:[%s2953_s29 + $0x1a0] sm:$0xf] %v2230_v2  ;;  %v2234_v4 = vld [vmem:[%s2948_s28 + $0x368] sm:$0xf] }
  0x5e   : > { %2233 = vst [vmem:[%s2953_s29 + $0x1ac] sm:$0xf] %v2232_v3  ;;  %v2236_v5 = vld [vmem:[%s2948_s28 + $0x380] sm:$0xf]  ;;  %v2238_v6 = vld [vmem:[%s2948_s28 + $0x398] sm:$0xf] }
  0x5f   : > { %2235 = vst [vmem:[%s2953_s29 + $0x1b8] sm:$0xf] %v2234_v4  ;;  %2237 = vst [vmem:[%s2953_s29 + $0x1c4] sm:$0xf] %v2236_v5  ;;  %v2240_v7 = vld [vmem:[%s2948_s28 + $0x3b0] sm:$0xf] }
  0x60   : > { %2239 = vst [vmem:[%s2953_s29 + $0x1d0] sm:$0xf] %v2238_v6  ;;  %v2242_v8 = vld [vmem:[%s2948_s28 + $0x3c8] sm:$0xf]  ;;  %v2244_v9 = vld [vmem:[%s2948_s28 + $0x3e0] sm:$0xf] }
  0x61   : > { %2241 = vst [vmem:[%s2953_s29 + $0x1dc] sm:$0xf] %v2240_v7  ;;  %2243 = vst [vmem:[%s2953_s29 + $0x1e8] sm:$0xf] %v2242_v8  ;;  %v2246_v10 = vld [vmem:[%s2948_s28 + $0x3f8] sm:$0xf] }
  0x62   : > { %2245 = vst [vmem:[%s2953_s29 + $0x1f4] sm:$0xf] %v2244_v9  ;;  %v2248_v11 = vld [vmem:[%s2948_s28 + $0x410] sm:$0xf]  ;;  %v2250_v12 = vld [vmem:[%s2948_s28 + $0x428] sm:$0xf] }
  0x63   : > { %2247 = vst [vmem:[%s2953_s29 + $0x200] sm:$0xf] %v2246_v10  ;;  %2249 = vst [vmem:[%s2953_s29 + $0x20c] sm:$0xf] %v2248_v11  ;;  %v2252_v13 = vld [vmem:[%s2948_s28 + $0x440] sm:$0xf] }
  0x64   : > { %2251 = vst [vmem:[%s2953_s29 + $0x218] sm:$0xf] %v2250_v12  ;;  %v2254_v14 = vld [vmem:[%s2948_s28 + $0x458] sm:$0xf]  ;;  %v2256_v15 = vld [vmem:[%s2948_s28 + $0x470] sm:$0xf] }
  0x65   : > { %2253 = vst [vmem:[%s2953_s29 + $0x224] sm:$0xf] %v2252_v13  ;;  %2255 = vst [vmem:[%s2953_s29 + $0x230] sm:$0xf] %v2254_v14  ;;  %v2258_v16 = vld [vmem:[%s2948_s28 + $0x488] sm:$0xf] }
  0x66   : > { %2257 = vst [vmem:[%s2953_s29 + $0x23c] sm:$0xf] %v2256_v15  ;;  %v2260_v17 = vld [vmem:[%s2948_s28 + $0x4a0] sm:$0xf]  ;;  %v2262_v18 = vld [vmem:[%s2948_s28 + $0x4b8] sm:$0xf] }
  0x67   : > { %2259 = vst [vmem:[%s2953_s29 + $0x248] sm:$0xf] %v2258_v16  ;;  %2261 = vst [vmem:[%s2953_s29 + $0x254] sm:$0xf] %v2260_v17  ;;  %v2264_v19 = vld [vmem:[%s2948_s28 + $0x4d0] sm:$0xf] }
  0x68   : > { %2263 = vst [vmem:[%s2953_s29 + $0x260] sm:$0xf] %v2262_v18  ;;  %v2266_v20 = vld [vmem:[%s2948_s28 + $0x4e8] sm:$0xf]  ;;  %v2268_v21 = vld [vmem:[%s2948_s28 + $0x500] sm:$0xf] }
  0x69   : > { %2265 = vst [vmem:[%s2953_s29 + $0x26c] sm:$0xf] %v2264_v19  ;;  %2267 = vst [vmem:[%s2953_s29 + $0x278] sm:$0xf] %v2266_v20  ;;  %v2270_v22 = vld [vmem:[%s2948_s28 + $0x518] sm:$0xf] }
  0x6a   : > { %2269 = vst [vmem:[%s2953_s29 + $0x284] sm:$0xf] %v2268_v21  ;;  %v2272_v23 = vld [vmem:[%s2948_s28 + $0x530] sm:$0xf]  ;;  %v2274_v24 = vld [vmem:[%s2948_s28 + $0x548] sm:$0xf] }
  0x6b   : > { %2271 = vst [vmem:[%s2953_s29 + $0x290] sm:$0xf] %v2270_v22  ;;  %2273 = vst [vmem:[%s2953_s29 + $0x29c] sm:$0xf] %v2272_v23  ;;  %v2276_v25 = vld [vmem:[%s2948_s28 + $0x560] sm:$0xf] }
  0x6c   : > { %2275 = vst [vmem:[%s2953_s29 + $0x2a8] sm:$0xf] %v2274_v24  ;;  %v2278_v26 = vld [vmem:[%s2948_s28 + $0x578] sm:$0xf]  ;;  %v2280_v27 = vld [vmem:[%s2948_s28 + $0x590] sm:$0xf] }
  0x6d   : > { %2277 = vst [vmem:[%s2953_s29 + $0x2b4] sm:$0xf] %v2276_v25  ;;  %2279 = vst [vmem:[%s2953_s29 + $0x2c0] sm:$0xf] %v2278_v26  ;;  %v2282_v28 = vld [vmem:[%s2948_s28 + $0x5a8] sm:$0xf] }
  0x6e   : > { %2281 = vst [vmem:[%s2953_s29 + $0x2cc] sm:$0xf] %v2280_v27  ;;  %v2284_v29 = vld [vmem:[%s2948_s28 + $0x5c0] sm:$0xf]  ;;  %v2286_v30 = vld [vmem:[%s2948_s28 + $0x5d8] sm:$0xf] }
  0x6f   : > { %2283 = vst [vmem:[%s2953_s29 + $0x2d8] sm:$0xf] %v2282_v28  ;;  %2285 = vst [vmem:[%s2953_s29 + $0x2e4] sm:$0xf] %v2284_v29  ;;  %v2288_v31 = vld [vmem:[%s2948_s28 + $0x5f0] sm:$0xf] }
  0x70   : > { %2287 = vst [vmem:[%s2953_s29 + $0x2f0] sm:$0xf] %v2286_v30  ;;  %v2290_v32 = vld [vmem:[%s2948_s28 + $0x608] sm:$0xf]  ;;  %v2292_v33 = vld [vmem:[%s2948_s28 + $0x620] sm:$0xf] }
  0x71   : > { %2289 = vst [vmem:[%s2953_s29 + $0x2fc] sm:$0xf] %v2288_v31  ;;  %2291 = vst [vmem:[%s2953_s29 + $0x308] sm:$0xf] %v2290_v32  ;;  %v2294_v34 = vld [vmem:[%s2948_s28 + $0x638] sm:$0xf] }
  0x72   : > { %2293 = vst [vmem:[%s2953_s29 + $0x314] sm:$0xf] %v2292_v33  ;;  %v2296_v35 = vld [vmem:[%s2948_s28 + $0x650] sm:$0xf]  ;;  %v2298_v36 = vld [vmem:[%s2948_s28 + $0x668] sm:$0xf] }
  0x73   : > { %2295 = vst [vmem:[%s2953_s29 + $0x320] sm:$0xf] %v2294_v34  ;;  %2297 = vst [vmem:[%s2953_s29 + $0x32c] sm:$0xf] %v2296_v35  ;;  %v2300_v37 = vld [vmem:[%s2948_s28 + $0x680] sm:$0xf] }
  0x74   : > { %2299 = vst [vmem:[%s2953_s29 + $0x338] sm:$0xf] %v2298_v36  ;;  %v2302_v38 = vld [vmem:[%s2948_s28 + $0x698] sm:$0xf]  ;;  %v2304_v39 = vld [vmem:[%s2948_s28 + $0x6b0] sm:$0xf] }
  0x75   : > { %2301 = vst [vmem:[%s2953_s29 + $0x344] sm:$0xf] %v2300_v37  ;;  %2303 = vst [vmem:[%s2953_s29 + $0x350] sm:$0xf] %v2302_v38  ;;  %v2306_v40 = vld [vmem:[%s2948_s28 + $0x6c8] sm:$0xf] }
  0x76   : > { %2305 = vst [vmem:[%s2953_s29 + $0x35c] sm:$0xf] %v2304_v39  ;;  %v2308_v41 = vld [vmem:[%s2948_s28 + $0x6e0] sm:$0xf]  ;;  %v2310_v42 = vld [vmem:[%s2948_s28 + $0x6f8] sm:$0xf] }
  0x77   : > { %2307 = vst [vmem:[%s2953_s29 + $0x368] sm:$0xf] %v2306_v40  ;;  %2309 = vst [vmem:[%s2953_s29 + $0x374] sm:$0xf] %v2308_v41  ;;  %v2312_v43 = vld [vmem:[%s2948_s28 + $0x710] sm:$0xf] }
  0x78   : > { %2311 = vst [vmem:[%s2953_s29 + $0x380] sm:$0xf] %v2310_v42  ;;  %v2314_v44 = vld [vmem:[%s2948_s28 + $0x728] sm:$0xf]  ;;  %v2316_v45 = vld [vmem:[%s2948_s28 + $0x740] sm:$0xf] }
  0x79   : > { %2313 = vst [vmem:[%s2953_s29 + $0x38c] sm:$0xf] %v2312_v43  ;;  %2315 = vst [vmem:[%s2953_s29 + $0x398] sm:$0xf] %v2314_v44  ;;  %v2318_v46 = vld [vmem:[%s2948_s28 + $0x758] sm:$0xf] }
  0x7a   : > { %2317 = vst [vmem:[%s2953_s29 + $0x3a4] sm:$0xf] %v2316_v45  ;;  %v2320_v47 = vld [vmem:[%s2948_s28 + $0x770] sm:$0xf]  ;;  %v2322_v48 = vld [vmem:[%s2948_s28 + $0x788] sm:$0xf] }
  0x7b   : > { %2319 = vst [vmem:[%s2953_s29 + $0x3b0] sm:$0xf] %v2318_v46  ;;  %2321 = vst [vmem:[%s2953_s29 + $0x3bc] sm:$0xf] %v2320_v47  ;;  %v2324_v49 = vld [vmem:[%s2948_s28 + $0x7a0] sm:$0xf] }
  0x7c   : > { %2323 = vst [vmem:[%s2953_s29 + $0x3c8] sm:$0xf] %v2322_v48  ;;  %v2326_v50 = vld [vmem:[%s2948_s28 + $0x7b8] sm:$0xf]  ;;  %v2328_v51 = vld [vmem:[%s2948_s28 + $0x7d0] sm:$0xf] }
  0x7d   : > { %2325 = vst [vmem:[%s2953_s29 + $0x3d4] sm:$0xf] %v2324_v49  ;;  %2327 = vst [vmem:[%s2953_s29 + $0x3e0] sm:$0xf] %v2326_v50  ;;  %v2330_v52 = vld [vmem:[%s2948_s28 + $0x7e8] sm:$0xf] }
  0x7e   : > { %2329 = vst [vmem:[%s2953_s29 + $0x3ec] sm:$0xf] %v2328_v51  ;;  %v2332_v53 = vld [vmem:[%s2948_s28 + $0x800] sm:$0xf]  ;;  %v2334_v54 = vld [vmem:[%s2948_s28 + $0x818] sm:$0xf] }
  0x7f   : > { %2331 = vst [vmem:[%s2953_s29 + $0x3f8] sm:$0xf] %v2330_v52  ;;  %2333 = vst [vmem:[%s2953_s29 + $0x404] sm:$0xf] %v2332_v53  ;;  %v2336_v55 = vld [vmem:[%s2948_s28 + $0x830] sm:$0xf] }
  0x80   : > { %2335 = vst [vmem:[%s2953_s29 + $0x410] sm:$0xf] %v2334_v54  ;;  %v2338_v56 = vld [vmem:[%s2948_s28 + $0x848] sm:$0xf]  ;;  %v2340_v57 = vld [vmem:[%s2948_s28 + $0x860] sm:$0xf] }
  0x81   : > { %2337 = vst [vmem:[%s2953_s29 + $0x41c] sm:$0xf] %v2336_v55  ;;  %2339 = vst [vmem:[%s2953_s29 + $0x428] sm:$0xf] %v2338_v56  ;;  %v2342_v58 = vld [vmem:[%s2948_s28 + $0x878] sm:$0xf] }
  0x82   : > { %2341 = vst [vmem:[%s2953_s29 + $0x434] sm:$0xf] %v2340_v57  ;;  %v2344_v59 = vld [vmem:[%s2948_s28 + $0x890] sm:$0xf]  ;;  %v2346_v60 = vld [vmem:[%s2948_s28 + $0x8a8] sm:$0xf] }
  0x83   : > { %2343 = vst [vmem:[%s2953_s29 + $0x440] sm:$0xf] %v2342_v58  ;;  %2345 = vst [vmem:[%s2953_s29 + $0x44c] sm:$0xf] %v2344_v59  ;;  %v2348_v61 = vld [vmem:[%s2948_s28 + $0x8c0] sm:$0xf] }
  0x84   : > { %2347 = vst [vmem:[%s2953_s29 + $0x458] sm:$0xf] %v2346_v60  ;;  %v2350_v62 = vld [vmem:[%s2948_s28 + $0x8d8] sm:$0xf]  ;;  %v2352_v63 = vld [vmem:[%s2948_s28 + $0x8f0] sm:$0xf] }
  0x85   : > { %2349 = vst [vmem:[%s2953_s29 + $0x464] sm:$0xf] %v2348_v61  ;;  %2351 = vst [vmem:[%s2953_s29 + $0x470] sm:$0xf] %v2350_v62 }
  0x86   : > { %2353 = vst [vmem:[%s2953_s29 + $0x47c] sm:$0xf] %v2352_v63 }
  0x87 PF: > { %p2354_p8 = scmp.ge.s32.totalorder %s2878_s16, 1  ;;  %p602_p9 = scmp.lt.s32.totalorder %s2878_s16, 3 }
  0x89   : > { %p603_p10 = pnand %p2354_p8, %p602_p9 }
  0x8a   : > { %s609_s30 = sand.u32 (!%p603_p10), 1, %s2862_s12   ;;  %v3344_v0 = vld [vmem:[%s3552_s0 + $0x4] ss:$24 sps:$4 sm:$0xff] (!%p603_p10)   ;;  %s659_s26 = smul.u32 (!%p603_p10), 3, %s2870_s14 }
  0x8b   : > { %606 = sbr.rel (%p603_p10) target bundleno = 536 (0x218), region = 54  ;;  %v3349_v1 = vld [vmem:[%s3552_s0 + $0xc] ss:$24 sps:$4 sm:$0xff] (!%p603_p10)   ;;  %1711 = vmatprep.mubr.bf16.mxu1 (!%p603_p10), %v3344_v0 }
  0x8c   : > { %s2597_s4 = smul.u32 (!%p603_p10), 1152, %s609_s30  ;;  %1754 = vmatprep.mubr.bf16.mxu0 (!%p603_p10), %v3349_v1  ;;  %p660_p11 = scmp.lt.s32.totalorder (!%p603_p10), %s659_s26, 5 }
  0x8e   : > { %s3352_s9 = scalar_lea.vmem (!%p603_p10), [#allocation3], %s2597_s4  ;;  %s2598_s4 = smul.u32 (!%p603_p10), 24, %s609_s30 }
  0x8f   : > { %v2639_v2 = vld [vmem:[%s3352_s9 + $0x4] ss:$12 sps:$4 sm:$0xff] (!%p603_p10)   ;;  %v2643_v4 = vld [vmem:[%s3352_s9] ss:$12 sps:$4 sm:$0xff] (!%p603_p10)   ;;  %v2645_v6 = vld [vmem:[%s3352_s9 + $0x1c] ss:$12 sps:$4 sm:$0xff] (!%p603_p10)  }
  0x90   : > { %v2641_v3 = vld [vmem:[%s3352_s9 + $0x184] ss:$12 sps:$4 sm:$0xff] (!%p603_p10)   ;;  %1679 = vmatprep.subr.bf16.mxu1 (!%p603_p10), %v2639_v2  ;;  %v2644_v5 = vld [vmem:[%s3352_s9 + $0x180] ss:$12 sps:$4 sm:$0xff] (!%p603_p10)   ;;  %v2647_v7 = vld [vmem:[%s3352_s9 + $0x19c] ss:$12 sps:$4 sm:$0xff] (!%p603_p10)  }
  0x91   : > { %1722 = vmatprep.subr.bf16.mxu0 (!%p603_p10), %v2641_v3  ;;  %1680 = vmatpush1.bf16.msra.mxu1 (!%p603_p10), %v2643_v4  ;;  %v2649_v8 = vld [vmem:[%s3352_s9 + $0x18] ss:$12 sps:$4 sm:$0xff] (!%p603_p10)   ;;  %v2651_v10 = vld [vmem:[%s3352_s9 + $0x34] ss:$12 sps:$4 sm:$0xff] (!%p603_p10)   ;;  %v2655_v12 = vld [vmem:[%s3352_s9 + $0x30] ss:$12 sps:$4 sm:$0xff] (!%p603_p10)  }
  0x92   : > { %1723 = vmatpush1.bf16.msra.mxu0 %v2644_v5  ;;  %1681 = vmatprep.subr.bf16.mxu1 %v2645_v6  ;;  %v2650_v9 = vld [vmem:[%s3352_s9 + $0x198] ss:$12 sps:$4 sm:$0xff]   ;;  %v2653_v11 = vld [vmem:[%s3352_s9 + $0x1b4] ss:$12 sps:$4 sm:$0xff]   ;;  %v2656_v13 = vld [vmem:[%s3352_s9 + $0x1b0] ss:$12 sps:$4 sm:$0xff]  }
  0x93   : > { %1724 = vmatprep.subr.bf16.mxu0 %v2647_v7  ;;  %v2657_v14 = vld [vmem:[%s3352_s9 + $0x4c] ss:$12 sps:$4 sm:$0xff]   ;;  %v2661_v16 = vld [vmem:[%s3352_s9 + $0x48] ss:$12 sps:$4 sm:$0xff]   ;;  %v2663_v18 = vld [vmem:[%s3352_s9 + $0x64] ss:$12 sps:$4 sm:$0xff]  }
  0x94   : > { %v2659_v15 = vld [vmem:[%s3352_s9 + $0x1cc] ss:$12 sps:$4 sm:$0xff]   ;;  %v2662_v17 = vld [vmem:[%s3352_s9 + $0x1c8] ss:$12 sps:$4 sm:$0xff]   ;;  %v2665_v19 = vld [vmem:[%s3352_s9 + $0x1e4] ss:$12 sps:$4 sm:$0xff]  }
  0x95   : > { %1682 = vmatpush1.bf16.msra.mxu1 %v2649_v8  ;;  %v2667_v20 = vld [vmem:[%s3352_s9 + $0x60] ss:$12 sps:$4 sm:$0xff]   ;;  %v2669_v22 = vld [vmem:[%s3352_s9 + $0x7c] ss:$12 sps:$4 sm:$0xff]   ;;  %v2673_v24 = vld [vmem:[%s3352_s9 + $0x78] ss:$12 sps:$4 sm:$0xff]  }
  0x96   : > { %1725 = vmatpush1.bf16.msra.mxu0 %v2650_v9  ;;  %1683 = vmatprep.subr.bf16.mxu1 %v2651_v10  ;;  %v2668_v21 = vld [vmem:[%s3352_s9 + $0x1e0] ss:$12 sps:$4 sm:$0xff]   ;;  %v2671_v23 = vld [vmem:[%s3352_s9 + $0x1fc] ss:$12 sps:$4 sm:$0xff]   ;;  %v2674_v25 = vld [vmem:[%s3352_s9 + $0x1f8] ss:$12 sps:$4 sm:$0xff]  }
  0x97   : > { %1726 = vmatprep.subr.bf16.mxu0 %v2653_v11  ;;  %v2675_v26 = vld [vmem:[%s3352_s9 + $0x94] ss:$12 sps:$4 sm:$0xff]   ;;  %v2679_v28 = vld [vmem:[%s3352_s9 + $0x90] ss:$12 sps:$4 sm:$0xff]   ;;  %v2681_v30 = vld [vmem:[%s3352_s9 + $0xac] ss:$12 sps:$4 sm:$0xff]  }
  0x98   : > { %v2677_v27 = vld [vmem:[%s3352_s9 + $0x214] ss:$12 sps:$4 sm:$0xff]   ;;  %v2680_v29 = vld [vmem:[%s3352_s9 + $0x210] ss:$12 sps:$4 sm:$0xff]   ;;  %v2683_v31 = vld [vmem:[%s3352_s9 + $0x22c] ss:$12 sps:$4 sm:$0xff]  }
  0x99   : > { %1684 = vmatpush1.bf16.msra.mxu1 %v2655_v12  ;;  %v2685_v32 = vld [vmem:[%s3352_s9 + $0xa8] ss:$12 sps:$4 sm:$0xff]   ;;  %v2687_v34 = vld [vmem:[%s3352_s9 + $0xc4] ss:$12 sps:$4 sm:$0xff]   ;;  %v2691_v36 = vld [vmem:[%s3352_s9 + $0xc0] ss:$12 sps:$4 sm:$0xff]  }
  0x9a   : > { %1727 = vmatpush1.bf16.msra.mxu0 %v2656_v13  ;;  %1685 = vmatprep.subr.bf16.mxu1 %v2657_v14  ;;  %v2686_v33 = vld [vmem:[%s3352_s9 + $0x228] ss:$12 sps:$4 sm:$0xff]   ;;  %v2689_v35 = vld [vmem:[%s3352_s9 + $0x244] ss:$12 sps:$4 sm:$0xff]   ;;  %v2692_v37 = vld [vmem:[%s3352_s9 + $0x240] ss:$12 sps:$4 sm:$0xff]  }
  0x9b   : > { %1728 = vmatprep.subr.bf16.mxu0 %v2659_v15  ;;  %v2693_v38 = vld [vmem:[%s3352_s9 + $0xdc] ss:$12 sps:$4 sm:$0xff]   ;;  %v2697_v40 = vld [vmem:[%s3352_s9 + $0xd8] ss:$12 sps:$4 sm:$0xff]   ;;  %v2699_v42 = vld [vmem:[%s3352_s9 + $0xf4] ss:$12 sps:$4 sm:$0xff]  }
  0x9c   : > { %v2695_v39 = vld [vmem:[%s3352_s9 + $0x25c] ss:$12 sps:$4 sm:$0xff]   ;;  %v2698_v41 = vld [vmem:[%s3352_s9 + $0x258] ss:$12 sps:$4 sm:$0xff]   ;;  %v2701_v43 = vld [vmem:[%s3352_s9 + $0x274] ss:$12 sps:$4 sm:$0xff]  }
  0x9d   : > { %1686 = vmatpush1.bf16.msra.mxu1 %v2661_v16  ;;  %v2703_v44 = vld [vmem:[%s3352_s9 + $0xf0] ss:$12 sps:$4 sm:$0xff]   ;;  %v2705_v46 = vld [vmem:[%s3352_s9 + $0x10c] ss:$12 sps:$4 sm:$0xff]   ;;  %v2709_v48 = vld [vmem:[%s3352_s9 + $0x108] ss:$12 sps:$4 sm:$0xff]  }
  0x9e   : > { %1729 = vmatpush1.bf16.msra.mxu0 %v2662_v17  ;;  %1687 = vmatprep.subr.bf16.mxu1 %v2663_v18  ;;  %v2704_v45 = vld [vmem:[%s3352_s9 + $0x270] ss:$12 sps:$4 sm:$0xff]   ;;  %v2707_v47 = vld [vmem:[%s3352_s9 + $0x28c] ss:$12 sps:$4 sm:$0xff]   ;;  %v2710_v49 = vld [vmem:[%s3352_s9 + $0x288] ss:$12 sps:$4 sm:$0xff]  }
  0x9f   : > { %1730 = vmatprep.subr.bf16.mxu0 %v2665_v19  ;;  %v2711_v50 = vld [vmem:[%s3352_s9 + $0x124] ss:$12 sps:$4 sm:$0xff]   ;;  %v2715_v52 = vld [vmem:[%s3352_s9 + $0x120] ss:$12 sps:$4 sm:$0xff]   ;;  %v2717_v54 = vld [vmem:[%s3352_s9 + $0x13c] ss:$12 sps:$4 sm:$0xff]  }
  0xa0   : > { %v2713_v51 = vld [vmem:[%s3352_s9 + $0x2a4] ss:$12 sps:$4 sm:$0xff]   ;;  %v2716_v53 = vld [vmem:[%s3352_s9 + $0x2a0] ss:$12 sps:$4 sm:$0xff]   ;;  %v2719_v55 = vld [vmem:[%s3352_s9 + $0x2bc] ss:$12 sps:$4 sm:$0xff]  }
  0xa1   : > { %1688 = vmatpush1.bf16.msra.mxu1 %v2667_v20  ;;  %v2721_v56 = vld [vmem:[%s3352_s9 + $0x138] ss:$12 sps:$4 sm:$0xff]   ;;  %v2723_v58 = vld [vmem:[%s3352_s9 + $0x154] ss:$12 sps:$4 sm:$0xff]   ;;  %v2727_v60 = vld [vmem:[%s3352_s9 + $0x150] ss:$12 sps:$4 sm:$0xff]  }
  0xa2   : > { %1731 = vmatpush1.bf16.msra.mxu0 %v2668_v21  ;;  %1689 = vmatprep.subr.bf16.mxu1 %v2669_v22  ;;  %v2722_v57 = vld [vmem:[%s3352_s9 + $0x2b8] ss:$12 sps:$4 sm:$0xff]   ;;  %v2725_v59 = vld [vmem:[%s3352_s9 + $0x2d4] ss:$12 sps:$4 sm:$0xff]   ;;  %v2728_v61 = vld [vmem:[%s3352_s9 + $0x2d0] ss:$12 sps:$4 sm:$0xff]  }
  0xa3   : > { %1732 = vmatprep.subr.bf16.mxu0 %v2671_v23  ;;  %v2729_v62 = vld [vmem:[%s3352_s9 + $0x16c] ss:$12 sps:$4 sm:$0xff]   ;;  %v2733_v2 = vld [vmem:[%s3352_s9 + $0x168] ss:$12 sps:$4 sm:$0xff]   ;;  %v2743_v4 = vld [vmem:[%s3352_s9 + $0x304] ss:$12 sps:$4 sm:$0xff]  }
  0xa4   : > { %v2731_v63 = vld [vmem:[%s3352_s9 + $0x2ec] ss:$12 sps:$4 sm:$0xff]   ;;  %v2734_v3 = vld [vmem:[%s3352_s9 + $0x2e8] ss:$12 sps:$4 sm:$0xff]   ;;  %v2751_v16 = vld [vmem:[%s3352_s9 + $0x330] ss:$12 sps:$4 sm:$0xff]  }
  0xa5   : > { %1690 = vmatpush1.bf16.msra.mxu1 %v2673_v24  ;;  %v3423_v5 = vld [vmem:[%s3552_s0] ss:$24 sps:$4 sm:$0xff]   ;;  %v2744_v6 = vld [vmem:[%s3352_s9 + $0xc8] ss:$12 sps:$4 sm:$0xff]   ;;  %v2759_v19 = vld [vmem:[%s3352_s9 + $0x110] ss:$12 sps:$4 sm:$0xff]  }
  0xa6   : > { %1733 = vmatpush1.bf16.msra.mxu0 %v2674_v25  ;;  %1691 = vmatprep.subr.bf16.mxu1 %v2675_v26  ;;  %v3429_v7 = vld [vmem:[%s3552_s0 + $0x8] ss:$24 sps:$4 sm:$0xff]   ;;  %v2746_v12 = vld [vmem:[%s3352_s9 + $0x318] ss:$12 sps:$4 sm:$0xff]   ;;  %v2760_v21 = vld [vmem:[%s3352_s9 + $0x50] ss:$12 sps:$4 sm:$0xff]  }
  0xa7   : > { %1734 = vmatprep.subr.bf16.mxu0 %v2677_v27  ;;  %v2741_v8 = vld [vmem:[%s3352_s9 + $0x300] ss:$12 sps:$4 sm:$0xff]   ;;  %v2745_v9 = vld [vmem:[%s3352_s9 + $0x8] ss:$12 sps:$4 sm:$0xff]   ;;  %v2754_v15 = vld [vmem:[%s3352_s9 + $0xf8] ss:$12 sps:$4 sm:$0xff]  }
  0xa8   : > { %v2748_v10 = vld [vmem:[%s3352_s9 + $0x31c] ss:$12 sps:$4 sm:$0xff]   ;;  %v2749_v11 = vld [vmem:[%s3352_s9 + $0xe0] ss:$12 sps:$4 sm:$0xff]   ;;  %v2755_v17 = vld [vmem:[%s3352_s9 + $0x38] ss:$12 sps:$4 sm:$0xff]  }
  0xa9   : > { %1692 = vmatpush1.bf16.msra.mxu1 %v2679_v28  ;;  %v2750_v13 = vld [vmem:[%s3352_s9 + $0x20] ss:$12 sps:$4 sm:$0xff]   ;;  %v2756_v20 = vld [vmem:[%s3352_s9 + $0x348] ss:$12 sps:$4 sm:$0xff]   ;;  %v2766_v27 = vld [vmem:[%s3352_s9 + $0x378] ss:$12 sps:$4 sm:$0xff]  }
  0xaa   : > { %1735 = vmatpush1.bf16.msra.mxu0 %v2680_v29  ;;  %1693 = vmatprep.subr.bf16.mxu1 %v2681_v30  ;;  %v2753_v14 = vld [vmem:[%s3352_s9 + $0x334] ss:$12 sps:$4 sm:$0xff]   ;;  %v2758_v18 = vld [vmem:[%s3352_s9 + $0x34c] ss:$12 sps:$4 sm:$0xff]   ;;  %v2768_v25 = vld [vmem:[%s3352_s9 + $0x37c] ss:$12 sps:$4 sm:$0xff]  }
  0xab   : > { %1736 = vmatprep.subr.bf16.mxu0 %v2683_v31  ;;  %v2764_v22 = vld [vmem:[%s3352_s9 + $0x128] ss:$12 sps:$4 sm:$0xff]   ;;  %v2761_v23 = vld [vmem:[%s3352_s9 + $0x360] ss:$12 sps:$4 sm:$0xff]   ;;  %v2774_v30 = vld [vmem:[%s3352_s9 + $0x158] ss:$12 sps:$4 sm:$0xff]  }
  0xac   : > { %v2765_v24 = vld [vmem:[%s3352_s9 + $0x68] ss:$12 sps:$4 sm:$0xff]   ;;  %v2769_v26 = vld [vmem:[%s3352_s9 + $0x140] ss:$12 sps:$4 sm:$0xff]   ;;  %v2771_v31 = vld [vmem:[%s3352_s9 + $0x390] ss:$12 sps:$4 sm:$0xff]  }
  0xad   : > { %1694 = vmatpush1.bf16.msra.mxu1 %v2685_v32  ;;  %v2770_v28 = vld [vmem:[%s3352_s9 + $0x80] ss:$12 sps:$4 sm:$0xff]   ;;  %v2775_v32 = vld [vmem:[%s3352_s9 + $0x98] ss:$12 sps:$4 sm:$0xff]   ;;  %s3564_s26 = smov (!%p660_p11, %s659_s26), 5  ;;  %s644_s12 = scalar_lea.vmem [#allocation4], %s2598_s4 }
  0xae   : > { %1737 = vmatpush1.bf16.msra.mxu0 %v2686_v33  ;;  %1695 = vmatprep.subr.bf16.mxu1 %v2687_v34  ;;  %v2773_v29 = vld [vmem:[%s3352_s9 + $0x394] ss:$12 sps:$4 sm:$0xff]   ;;  %v2778_v33 = vld [vmem:[%s3352_s9 + $0x3ac] ss:$12 sps:$4 sm:$0xff]   ;;  %v2779_v34 = vld [vmem:[%s3352_s9 + $0x170] ss:$12 sps:$4 sm:$0xff]   ;;  %s662_s29 = scalar_lea.vmem %s3554_s2, %s3564_s26 }
  0xaf   : > { %1738 = vmatprep.subr.bf16.mxu0 %v2689_v35  ;;  %v2776_v35 = vld [vmem:[%s3352_s9 + $0x3a8] ss:$12 sps:$4 sm:$0xff]   ;;  %s2521_s30 = smul.u32 (%p2935_p6), 12, %s2870_s14 }
  0xb1   : > { %1696 = vmatpush1.bf16.msra.mxu1 %v2691_v36  ;;  %v2780_v36 = vld [vmem:[%s3352_s9 + $0xb0] ss:$12 sps:$4 sm:$0xff]   ;;  %s2011_s7 = scalar_lea.vmem (%p2935_p6), %s3555_s3, %s2521_s30 }
  0xb2   : > { %1739 = vmatpush1.bf16.msra.mxu0 %v2692_v37  ;;  %1697 = vmatprep.subr.bf16.mxu1 %v2693_v38  ;;  %v2783_v37 = vld [vmem:[%s3352_s9 + $0x3c4] ss:$12 sps:$4 sm:$0xff]   ;;  %v2784_v38 = vld [vmem:[%s3352_s9 + $0x248] ss:$12 sps:$4 sm:$0xff]  }
  0xb3   : > { %1740 = vmatprep.subr.bf16.mxu0 %v2695_v39  ;;  %v2781_v39 = vld [vmem:[%s3352_s9 + $0x3c0] ss:$12 sps:$4 sm:$0xff]  }
  0xb5   : > { %1698 = vmatpush1.bf16.msra.mxu1 %v2697_v40  ;;  %v2785_v40 = vld [vmem:[%s3352_s9 + $0x188] ss:$12 sps:$4 sm:$0xff]  }
  0xb6   : > { %1741 = vmatpush1.bf16.msra.mxu0 %v2698_v41  ;;  %1699 = vmatprep.subr.bf16.mxu1 %v2699_v42  ;;  %v2788_v41 = vld [vmem:[%s3352_s9 + $0x3dc] ss:$12 sps:$4 sm:$0xff]   ;;  %v3472_v42 = vld [vmem:[%s3552_s0 + $0x14] ss:$24 sps:$4 sm:$0xff]  }
  0xb7   : > { %1742 = vmatprep.subr.bf16.mxu0 %v2701_v43  ;;  %v2789_v43 = vld [vmem:[%s3352_s9 + $0x260] ss:$12 sps:$4 sm:$0xff]  }
  0xb9   : > { %1700 = vmatpush1.bf16.msra.mxu1 %v2703_v44  ;;  %v2786_v44 = vld [vmem:[%s3352_s9 + $0x3d8] ss:$12 sps:$4 sm:$0xff]  }
  0xba   : > { %1743 = vmatpush1.bf16.msra.mxu0 %v2704_v45  ;;  %1701 = vmatprep.subr.bf16.mxu1 %v2705_v46  ;;  %v2790_v45 = vld [vmem:[%s3352_s9 + $0x1a0] ss:$12 sps:$4 sm:$0xff]  }
  0xbb   : > { %1744 = vmatprep.subr.bf16.mxu0 %v2707_v47  ;;  %v2793_v46 = vld [vmem:[%s3352_s9 + $0x3f4] ss:$12 sps:$4 sm:$0xff]   ;;  %v2794_v47 = vld [vmem:[%s3352_s9 + $0x278] ss:$12 sps:$4 sm:$0xff]  }
  0xbd   : > { %1702 = vmatpush1.bf16.msra.mxu1 %v2709_v48  ;;  %v2791_v48 = vld [vmem:[%s3352_s9 + $0x3f0] ss:$12 sps:$4 sm:$0xff]  }
  0xbe   : > { %1745 = vmatpush1.bf16.msra.mxu0 %v2710_v49  ;;  %1703 = vmatprep.subr.bf16.mxu1 %v2711_v50  ;;  %v2795_v49 = vld [vmem:[%s3352_s9 + $0x1b8] ss:$12 sps:$4 sm:$0xff]  }
  0xbf   : > { %1746 = vmatprep.subr.bf16.mxu0 %v2713_v51  ;;  %v2798_v50 = vld [vmem:[%s3352_s9 + $0x40c] ss:$12 sps:$4 sm:$0xff]   ;;  %v2799_v51 = vld [vmem:[%s3352_s9 + $0x290] ss:$12 sps:$4 sm:$0xff]  }
  0xc1   : > { %1704 = vmatpush1.bf16.msra.mxu1 %v2715_v52  ;;  %v2796_v52 = vld [vmem:[%s3352_s9 + $0x408] ss:$12 sps:$4 sm:$0xff]  }
  0xc2   : > { %1747 = vmatpush1.bf16.msra.mxu0 %v2716_v53  ;;  %1705 = vmatprep.subr.bf16.mxu1 %v2717_v54  ;;  %v2800_v53 = vld [vmem:[%s3352_s9 + $0x1d0] ss:$12 sps:$4 sm:$0xff]  }
  0xc3   : > { %1748 = vmatprep.subr.bf16.mxu0 %v2719_v55  ;;  %v2803_v54 = vld [vmem:[%s3352_s9 + $0x424] ss:$12 sps:$4 sm:$0xff]   ;;  %v2801_v55 = vld [vmem:[%s3352_s9 + $0x420] ss:$12 sps:$4 sm:$0xff]  }
  0xc5   : > { %1706 = vmatpush1.bf16.msra.mxu1 %v2721_v56  ;;  %v2805_v56 = vld [vmem:[%s3352_s9 + $0x1e8] ss:$12 sps:$4 sm:$0xff]  }
  0xc6   : > { %1749 = vmatpush1.bf16.msra.mxu0 %v2722_v57  ;;  %1707 = vmatprep.subr.bf16.mxu1 %v2723_v58  ;;  %v2808_v57 = vld [vmem:[%s3352_s9 + $0x43c] ss:$12 sps:$4 sm:$0xff]   ;;  %v2809_v58 = vld [vmem:[%s3352_s9 + $0x2c0] ss:$12 sps:$4 sm:$0xff]  }
  0xc7   : > { %1750 = vmatprep.subr.bf16.mxu0 %v2725_v59  ;;  %v2806_v59 = vld [vmem:[%s3352_s9 + $0x438] ss:$12 sps:$4 sm:$0xff]  }
  0xc9   : > { %1708 = vmatpush1.bf16.msra.mxu1 %v2727_v60  ;;  %v2810_v60 = vld [vmem:[%s3352_s9 + $0x200] ss:$12 sps:$4 sm:$0xff]  }
  0xca   : > { %1751 = vmatpush1.bf16.msra.mxu0 %v2728_v61  ;;  %1709 = vmatprep.subr.bf16.mxu1 %v2729_v62  ;;  %v2813_v61 = vld [vmem:[%s3352_s9 + $0x454] ss:$12 sps:$4 sm:$0xff]   ;;  %v2814_v62 = vld [vmem:[%s3352_s9 + $0x2d8] ss:$12 sps:$4 sm:$0xff]  }
  0xcb   : > { %1752 = vmatprep.subr.bf16.mxu0 %v2731_v63  ;;  %v2811_v63 = vld [vmem:[%s3352_s9 + $0x450] ss:$12 sps:$4 sm:$0xff]  }
  0xcd   : > { %1710 = vmatpush1.bf16.msra.mxu1 %v2733_v2  ;;  %v2815_v2 = vld [vmem:[%s3352_s9 + $0x218] ss:$12 sps:$4 sm:$0xff]  }
  0xce   : > { %1753 = vmatpush1.bf16.msra.mxu0 %v2734_v3  ;;  %2522 = vmatprep.subr.bf16.mxu1 %v2744_v6  ;;  %v2818_v3 = vld [vmem:[%s3352_s9 + $0x46c] ss:$12 sps:$4 sm:$0xff]   ;;  %v2820_v6 = vld [vmem:[%s3352_s9 + $0x230] ss:$12 sps:$4 sm:$0xff]  }
  0xcf   : > { %1765 = vmatprep.subr.bf16.mxu0 %v2743_v4  ;;  %v2819_v4 = vld [vmem:[%s3352_s9 + $0x2f0] ss:$12 sps:$4 sm:$0xff]  }
  0xd0   : > { %1712 = vmatmul.mubr.bf16.vlgmr.msra.gmra.mrb[0].mxu1 %v3423_v5 }
  0xd1   : > { %1755 = vmatmul.mubr.bf16.vlgmr.msra.gmra.mrb[0].mxu0 %v3429_v7  ;;  %2523 = vmatpush3.bf16.msra.mxu1 %v2745_v9  ;;  %v2821_v9 = vld [vmem:[%s3552_s0 + $0x10] ss:$24 sps:$4 sm:$0xff]  }
  0xd2   : > { %1766 = vmatpush1.bf16.msra.mxu0 %v2741_v8  ;;  %2524 = vmatprep.subr.bf16.mxu1 %v2749_v11  ;;  %v2824_v8 = vld [vmem:[%s3352_s9 + $0x3c8] ss:$12 sps:$4 sm:$0xff]   ;;  %v2826_v11 = vld [vmem:[%s3352_s9 + $0x3e0] ss:$12 sps:$4 sm:$0xff]  }
  0xd3   : > { %1767 = vmatprep.subr.bf16.mxu0 %v2748_v10  ;;  %1840 = vmatprep.mubr.bf16.mxu1 %v3344_v0  ;;  %v2763_v0 = vld [vmem:[%s3352_s9 + $0x364] ss:$12 sps:$4 sm:$0xff]   ;;  %v2825_v10 = vld [vmem:[%s3352_s9 + $0x308] ss:$12 sps:$4 sm:$0xff]  }
  0xd4   : > { %1797 = vmatprep.mubr.bf16.mxu0 %v3472_v42 }
  0xd5   : > { %2525 = vmatpush3.bf16.msra.mxu1 %v2750_v13  ;;  %v2828_v13 = vld [vmem:[%s3352_s9 + $0x3f8] ss:$12 sps:$4 sm:$0xff]  }
  0xd6   : > { %1768 = vmatpush1.bf16.msra.mxu0 %v2746_v12  ;;  %2526 = vmatprep.subr.bf16.mxu1 %v2754_v15  ;;  %v2827_v12 = vld [vmem:[%s3352_s9 + $0x320] ss:$12 sps:$4 sm:$0xff]   ;;  %v2830_v15 = vld [vmem:[%s3352_s9 + $0x410] ss:$12 sps:$4 sm:$0xff]  }
  0xd7   : > { %1769 = vmatprep.subr.bf16.mxu0 %v2753_v14  ;;  %v2829_v14 = vld [vmem:[%s3352_s9 + $0x338] ss:$12 sps:$4 sm:$0xff]  }
  0xd9   : > { %2527 = vmatpush3.bf16.msra.mxu1 %v2755_v17  ;;  %v2833_v17 = vld [vmem:[%s3352_s9 + $0x368] ss:$12 sps:$4 sm:$0xff]  }
  0xda   : > { %1770 = vmatpush1.bf16.msra.mxu0 %v2751_v16  ;;  %2528 = vmatprep.subr.bf16.mxu1 %v2759_v19  ;;  %v2831_v16 = vld [vmem:[%s3352_s9 + $0x350] ss:$12 sps:$4 sm:$0xff]   ;;  %v2835_v19 = vld [vmem:[%s3352_s9 + $0x380] ss:$12 sps:$4 sm:$0xff]  }
  0xdb   : > { %1771 = vmatprep.subr.bf16.mxu0 %v2758_v18  ;;  %v2834_v18 = vld [vmem:[%s3352_s9 + $0x440] ss:$12 sps:$4 sm:$0xff]  }
  0xdd   : > { %2529 = vmatpush3.bf16.msra.mxu1 %v2760_v21  ;;  %v2837_v21 = vld [vmem:[%s3352_s9 + $0x398] ss:$12 sps:$4 sm:$0xff]  }
  0xde   : > { %1772 = vmatpush1.bf16.msra.mxu0 %v2756_v20  ;;  %2530 = vmatprep.subr.bf16.mxu1 %v2764_v22  ;;  %v2836_v20 = vld [vmem:[%s3352_s9 + $0x458] ss:$12 sps:$4 sm:$0xff]   ;;  %v2839_v22 = vld [vmem:[%s3352_s9 + $0x3b0] ss:$12 sps:$4 sm:$0xff]  }
  0xdf   : > { %1773 = vmatprep.subr.bf16.mxu0 %v2763_v0  ;;  %v2838_v0 = vld [vmem:[%s3352_s9 + $0x470] ss:$12 sps:$4 sm:$0xff]  }
  0xe1   : > { %2531 = vmatpush3.bf16.msra.mxu1 %v2765_v24 }
  0xe2   : > { %1774 = vmatpush1.bf16.msra.mxu0 %v2761_v23  ;;  %2532 = vmatprep.subr.bf16.mxu1 %v2769_v26 }
  0xe3   : > { %1775 = vmatprep.subr.bf16.mxu0 %v2768_v25 }
  0xe5   : > { %2533 = vmatpush3.bf16.msra.mxu1 %v2770_v28 }
  0xe6   : > { %1776 = vmatpush1.bf16.msra.mxu0 %v2766_v27  ;;  %2534 = vmatprep.subr.bf16.mxu1 %v2774_v30 }
  0xe7   : > { %1777 = vmatprep.subr.bf16.mxu0 %v2773_v29 }
  0xe9   : > { %2535 = vmatpush3.bf16.msra.mxu1 %v2775_v32 }
  0xea   : > { %1778 = vmatpush1.bf16.msra.mxu0 %v2771_v31  ;;  %2536 = vmatprep.subr.bf16.mxu1 %v2779_v34 }
  0xeb   : > { %1779 = vmatprep.subr.bf16.mxu0 %v2778_v33  ;;  %v1954_v33 = vlaneseq }
  0xed   : > { %2537 = vmatpush3.bf16.msra.mxu1 %v2780_v36  ;;  %v1955_v34 = vshrl.u32 %v1954_v33, 7  ;;  %v1952_v36 = vld [vmem:[%s662_s29] sm:$0x7] }
  0xee   : > { %1780 = vmatpush1.bf16.msra.mxu0 %v2776_v35  ;;  %2544 = vmatprep.subr.bf16.mxu1 %v2784_v38 }
  0xef   : > { %1781 = vmatprep.subr.bf16.mxu0 %v2783_v37  ;;  %v1956_v35 = vsub.s32 0, %v1955_v34  ;;  %v1960_v37 = vsub.s32 1, %v1955_v34 }
  0xf0   : > { %1841 = vmatmul.mubr.bf16.vlgmr.msra.gmra.mrb[4].mxu1 %v3423_v5  ;;  %v2816_v5 = vld [vmem:[%s3352_s9 + $0x468] ss:$12 sps:$4 sm:$0xff]  }
  0xf1   : > { %2545 = vmatpush3.bf16.msra.mxu1 %v2785_v40  ;;  %1881 = vmatprep.mubr.bf16.mxu1 %v3349_v1  ;;  %v2804_v1 = vld [vmem:[%s3352_s9 + $0x2a8] ss:$12 sps:$4 sm:$0xff]   ;;  %v1957_v38 = vrot.slane %v1952_v36, %v1956_v35 }
  0xf2   : > { %1782 = vmatpush1.bf16.msra.mxu0 %v2781_v39  ;;  %2546 = vmatprep.subr.bf16.mxu1 %v2789_v43 }
  0xf3   : > { %1783 = vmatprep.subr.bf16.mxu0 %v2788_v41  ;;  %v1961_v41 = vrot.slane %v1952_v36, %v1960_v37 }
  0xf5   : > { %2547 = vmatpush3.bf16.msra.mxu1 %v2790_v45 }
  0xf6   : > { %1784 = vmatpush1.bf16.msra.mxu0 %v2786_v44  ;;  %2548 = vmatprep.subr.bf16.mxu1 %v2794_v47 }
  0xf7   : > { %1785 = vmatprep.subr.bf16.mxu0 %v2793_v46 }
  0xf9   : > { %2549 = vmatpush3.bf16.msra.mxu1 %v2795_v49 }
  0xfa   : > { %1786 = vmatpush1.bf16.msra.mxu0 %v2791_v48  ;;  %2550 = vmatprep.subr.bf16.mxu1 %v2799_v51 }
  0xfb   : > { %1787 = vmatprep.subr.bf16.mxu0 %v2798_v50 }
  0xfd   : > { %2551 = vmatpush3.bf16.msra.mxu1 %v2800_v53 }
  0xfe   : > { %1788 = vmatpush1.bf16.msra.mxu0 %v2796_v52  ;;  %2552 = vmatprep.subr.bf16.mxu1 %v2804_v1 }
  0xff   : > { %1789 = vmatprep.subr.bf16.mxu0 %v2803_v54 }
 0x101   : > { %2553 = vmatpush3.bf16.msra.mxu1 %v2805_v56 }
 0x102   : > { %1790 = vmatpush1.bf16.msra.mxu0 %v2801_v55  ;;  %2554 = vmatprep.subr.bf16.mxu1 %v2809_v58 }
 0x103   : > { %1791 = vmatprep.subr.bf16.mxu0 %v2808_v57 }
 0x105   : > { %2555 = vmatpush3.bf16.msra.mxu1 %v2810_v60 }
 0x106   : > { %1792 = vmatpush1.bf16.msra.mxu0 %v2806_v59  ;;  %2556 = vmatprep.subr.bf16.mxu1 %v2814_v62 }
 0x107   : > { %1793 = vmatprep.subr.bf16.mxu0 %v2813_v61  ;;  %v1964_v61 = vsub.s32 2, %v1955_v34 }
 0x109   : > { %2557 = vmatpush3.bf16.msra.mxu1 %v2815_v2 }
 0x10a   : > { %1794 = vmatpush1.bf16.msra.mxu0 %v2811_v63  ;;  %2558 = vmatprep.subr.bf16.mxu1 %v2819_v4 }
 0x10b   : > { %1795 = vmatprep.subr.bf16.mxu0 %v2818_v3  ;;  %v1965_v3 = vrot.slane %v1952_v36, %v1964_v61 }
 0x10d   : > { %2559 = vmatpush3.bf16.msra.mxu1 %v2820_v6 }
 0x10e   : > { %1796 = vmatpush1.bf16.msra.mxu0 %v2816_v5  ;;  %2566 = vmatprep.subr.bf16.mxu1 %v2824_v8 }
 0x110   : > { %1882 = vmatmul.mubr.bf16.vlgmr.msra.gmra.mrb[8].mxu1 %v3429_v7  ;;  %v2832_v7 = vld [vmem:[%s3352_s9 + $0x428] ss:$12 sps:$4 sm:$0xff]  }
 0x111   : > { %1798 = vmatmul.mubr.bf16.vlgmr.msra.gmra.mrb[0].mxu0 %v2821_v9  ;;  %2567 = vmatpush3.bf16.msra.mxu1 %v2825_v10 }
 0x112   : > { %1922 = vmatprep.mubr.bf16.mxu1 %v3472_v42  ;;  %2568 = vmatprep.subr.bf16.mxu1 %v2826_v11 }
 0x115   : > { %2569 = vmatpush3.bf16.msra.mxu1 %v2827_v12 }
 0x116   : > { %2570 = vmatprep.subr.bf16.mxu1 %v2828_v13 }
 0x119   : > { %2571 = vmatpush3.bf16.msra.mxu1 %v2829_v14 }
 0x11a   : > { %2572 = vmatprep.subr.bf16.mxu1 %v2830_v15 }
 0x11d   : > { %2573 = vmatpush3.bf16.msra.mxu1 %v2831_v16 }
 0x11e   : > { %2574 = vmatprep.subr.bf16.mxu1 %v2832_v7 }
 0x121   : > { %2575 = vmatpush3.bf16.msra.mxu1 %v2833_v17 }
 0x122   : > { %2576 = vmatprep.subr.bf16.mxu1 %v2834_v18 }
 0x125   : > { %2577 = vmatpush3.bf16.msra.mxu1 %v2835_v19 }
 0x126   : > { %2578 = vmatprep.subr.bf16.mxu1 %v2836_v20 }
 0x129   : > { %2579 = vmatpush3.bf16.msra.mxu1 %v2837_v21 }
 0x12a   : > { %2580 = vmatprep.subr.bf16.mxu1 %v2838_v0 }
 0x12d   : > { %2581 = vmatpush3.bf16.msra.mxu1 %v2839_v22 }
 0x130   : > { %1923 = vmatmul.mubr.bf16.vlgmr.msra.gmra.mrb[12].mxu1 %v2821_v9 }
 0x1a3   : > { %v1713_v23 = vpop.f32.mrb[0].mxu1 }
 0x1a4   : > { %v1715_v24 = vpop.f32.mrb[1].mxu1 }
 0x1a5   : > { %v1717_v25 = vpop.f32.mrb[2].mxu1 }
 0x1a6   : > { %v1719_v26 = vpop.f32.mrb[3].mxu1 }
 0x1c3   : > { %v2538_v27 = vpop.f32.mrb[4].mxu1 }
 0x1c4   : > { %v2539_v28 = vpop.f32.mrb[5].mxu1 }
 0x1c5   : > { %v2540_v29 = vadd.f32 %v2539_v28, %v2538_v27  ;;  %v2541_v30 = vpop.f32.mrb[6].mxu1 }
 0x1c6   : > { %v2542_v31 = vpop.f32.mrb[7].mxu1 }
 0x1c7   : > { %v2543_v32 = vadd.f32 %v2542_v31, %v2541_v30 }
 0x1e3   : > { %v2560_v40 = vpop.f32.mrb[8].mxu1 }
 0x1e4   : > { %v1799_v39 = vpop.f32.mrb[0].mxu0  ;;  %v2561_v44 = vpop.f32.mrb[9].mxu1 }
 0x1e5   : > { %v2588_v42 = vadd.f32 %v1799_v39, %v1713_v23  ;;  %v1801_v43 = vpop.f32.mrb[1].mxu0  ;;  %v2562_v46 = vadd.f32 %v2561_v44, %v2560_v40  ;;  %v2563_v48 = vpop.f32.mrb[10].mxu1 }
 0x1e6   : > { %v2589_v45 = vadd.f32 %v1801_v43, %v1715_v24  ;;  %v1803_v47 = vpop.f32.mrb[2].mxu0  ;;  %v2564_v52 = vpop.f32.mrb[11].mxu1 }
 0x1e7   : > { %v1969_v49 = vadd.f32 %v2588_v42, %v1957_v38  ;;  %v2590_v50 = vadd.f32 %v1803_v47, %v1717_v25  ;;  %v1805_v51 = vpop.f32.mrb[3].mxu0  ;;  %v1884_v54 = vadd.f32 %v2562_v46, %v2540_v29  ;;  %v2565_v55 = vadd.f32 %v2564_v52, %v2563_v48 }
 0x1e8   : > { %v1970_v53 = vadd.f32 %v2589_v45, %v1961_v41  ;;  %v2591_v1 = vadd.f32 %v1805_v51, %v1719_v26 }
 0x1e9   : > { %v1972_v56 = vadd.f32 %v2590_v50, %v1957_v38  ;;  %v1887_v59 = vadd.f32 %v2565_v55, %v2543_v32 }
 0x1ea   : > { %v2517_v57 = vpack.c.bf16 %v1970_v53, %v1969_v49  ;;  %v1973_v58 = vadd.f32 %v2591_v1, %v1961_v41 }
 0x1ec   : > { %1995 = vst [vmem:[%s644_s12] sm:$0xff] %v2517_v57  ;;  %v2519_v60 = vpack.c.bf16 %v1973_v58, %v1972_v56 }
 0x1ee   : > { %1997 = vst [vmem:[%s644_s12 + $0xc] sm:$0xff] %v2519_v60 }
 0x1f3   : > { %v2026_v14 = vld [vmem:[%s644_s12] sm:$0xff] (%p2935_p6) }
 0x1f4   : > { %2027 = vst [vmem:[%s2011_s7] sm:$0xff] (%p2935_p6), %v2026_v14 }
 0x1f5   : > { %v2028_v15 = vld [vmem:[%s644_s12 + $0xc] sm:$0xff] (%p2935_p6) }
 0x1f6   : > { %2029 = vst [vmem:[%s2011_s7 + $0x18] sm:$0xff] (%p2935_p6), %v2028_v15 }
 0x203   : > { %v2582_v62 = vpop.f32.mrb[12].mxu1 }
 0x204   : > { %v2583_v63 = vpop.f32.mrb[13].mxu1 }
 0x205   : > { %v2584_v2 = vadd.f32 %v2583_v63, %v2582_v62  ;;  %v2585_v4 = vpop.f32.mrb[14].mxu1 }
 0x206   : > { %v2586_v5 = vpop.f32.mrb[15].mxu1 }
 0x207   : > { %v1925_v6 = vadd.f32 %v2584_v2, %v1884_v54  ;;  %v2587_v8 = vadd.f32 %v2586_v5, %v2585_v4 }
 0x209   : > { %v1971_v9 = vadd.f32 %v1965_v3, %v1925_v6  ;;  %v1928_v10 = vadd.f32 %v2587_v8, %v1887_v59  ;;  %2005 = sbr.rel (!%p2935_p6) target bundleno = 536 (0x218), region = 70 }
 0x20b   : > { %v2518_v11 = vpack.c.bf16 %v1971_v9, %v1971_v9  ;;  %v1974_v12 = vadd.f32 %v1965_v3, %v1928_v10 }
 0x20d   : > { %1996 = vst [vmem:[%s644_s12 + $0x8] sm:$0xf] %v2518_v11  ;;  %v2520_v13 = vpack.c.bf16 %v1974_v12, %v1974_v12 }
 0x20f   : > { %1998 = vst [vmem:[%s644_s12 + $0x14] sm:$0xf] %v2520_v13 }
 0x214   : > { %v2510_v16 = vld [vmem:[%s644_s12 + $0x8] sm:$0xf] }
 0x215   : > { %2511 = vst [vmem:[%s2011_s7 + $0x8] sm:$0xf] %v2510_v16 }
 0x216   : > { %v2512_v7 = vld [vmem:[%s644_s12 + $0x14] sm:$0xf] }
 0x217   : > { %2513 = vst [vmem:[%s2011_s7 + $0x20] sm:$0xf] %v2512_v7 }
 0x218 PF: > { %s13_s16 = sadd.s32 1, %s2878_s16   ;;  %s3557_s12 = smov %s2866_s13 }
 0x219   : > { %p10_p12 = scmp.ge.s32.totalorder %s13_s16, 4   ;;  %s3558_s13 = smov %s2940_s22 }
 0x21a   : > { %s3559_s14 = smov %s2874_s15  ;;  %s3560_s15 = smov %s3562_s17 }
 0x21b   :  { %12 = sbr.rel (!%p10_p12) target bundleno = 3 (0x3), region = 145 }

// kernel: weighted_bce_bert_forward.21
= control target key start
LH: loop header
LB: loop body
LE: loop exit
PB: predicated region body
PF: predicated region fallthrough
CT: control target
= control target key end

     0   :  { %s3042_s12 = smov 0   ;;  %s3044_s13 = smov 0   ;;  %s3722_s0 = inlined_call_operand.vmem [shape: bf16[16,768], index: 0, kind: input, shape index: {}]   ;;  %s3723_s1 = inlined_call_operand.vmem [shape: bf16[768,3072], index: 1, kind: input, shape index: {}]   ;;  %s3724_s2 = inlined_call_operand.vmem [shape: f32[1,3072], index: 2, kind: input, shape index: {}]   ;;  %s3725_s3 = inlined_call_operand.vmem [shape: bf16[16,3072], index: 3, kind: output, shape index: {}]  }
   0x1   :  { %s3046_s14 = smov 0   ;;  %s3048_s15 = smov 0  }
   0x2   :  { %s3050_s16 = smov 0  }
   0x3 LB: > { %s28_s17 = sadd.s32 1, %s3016_s15  ;;  %s2388_s18 = sadd.s32 4294967295, %s3020_s16   ;;  %s3020_s16 = sphi %s3050_s16, %s13_s16   ;;  %s3016_s15 = sphi %s3048_s15, %s3730_s15   ;;  %s3012_s14 = sphi %s3046_s14, %s3729_s14   ;;  %s3008_s13 = sphi %s3044_s13, %s3728_s13   ;;  %s3004_s12 = sphi %s3042_s12, %s3727_s12  }
   0x4   : > { %p30_p0 = scmp.ge.s32.totalorder %s28_s17, 6  ;;  %p76_p1 = scmp.ne.s32.totalorder %s3008_s13, %s3004_s12 }
   0x5   : > { %p77_p2 = scmp.eq.s32.totalorder %s3020_s16, 0  ;;  %p134_p4 = scmp.eq.s32.totalorder %s2388_s18, 5 }
   0x6   : > { %s3732_s17 = smov (%p30_p0, %s28_s17), 0  ;;  %s69_s20 = sadd.s32 1, %s3008_s13 }
   0x7   : > { %p78_p3 = por %p77_p2, %p76_p1  ;;  %s65_s19 = ssub.s32 %s3016_s15, %s3732_s17 }
   0x8   : > { %p67_p5 = scmp.eq.s32.totalorder %s65_s19, 0  ;;  %p3077_p6 = por %p134_p4, %p76_p1 }
   0x9   : > { %p2392_p7 = scmp.ge.s32.totalorder %s3020_s16, 6 }
   0xa   : > { %s3082_s22 = scalar_select %p67_p5, %s3008_s13, %s69_s20  }
   0xb   : > { %171 = sbr.rel (%p2392_p7) target bundleno = 118 (0x76), region = 20 }
  0x12   : > { %174 = sbr.rel (!%p78_p3) target bundleno = 118 (0x76), region = 24  ;;  %s176_s23 = sand.u32 (%p78_p3), 1, %s3008_s13  }
  0x13   : > { %s2605_s24 = sshll.u32 (%p78_p3), %s3016_s15, 4  ;;  %s2627_s25 = smul.u32 (%p78_p3), 1536, %s176_s23 }
  0x14   : > { %s3090_s28 = scalar_lea.vmem (%p78_p3), %s3723_s1, %s2605_s24 }
  0x15   : > { %v197_v0 = vld [vmem:[%s3090_s28] sm:$0xff] (%p78_p3)  ;;  %v199_v1 = vld [vmem:[%s3090_s28 + $0x8] sm:$0xff] (%p78_p3)  ;;  %s3098_s29 = scalar_lea.vmem (%p78_p3), [#allocation3], %s2627_s25 }
  0x16   : > { %v201_v2 = vld [vmem:[%s3090_s28 + $0x60] sm:$0xff] (%p78_p3)  ;;  %v203_v3 = vld [vmem:[%s3090_s28 + $0x68] sm:$0xff] (%p78_p3)  ;;  %198 = vst [vmem:[%s3098_s29] sm:$0xff] (%p78_p3), %v197_v0  ;;  %200 = vst [vmem:[%s3098_s29 + $0x8] sm:$0xff] (%p78_p3), %v199_v1 }
  0x17   : > { %v205_v4 = vld [vmem:[%s3090_s28 + $0xc0] sm:$0xff] (%p78_p3)  ;;  %v207_v5 = vld [vmem:[%s3090_s28 + $0xc8] sm:$0xff] (%p78_p3)  ;;  %202 = vst [vmem:[%s3098_s29 + $0x10] sm:$0xff] (%p78_p3), %v201_v2  ;;  %204 = vst [vmem:[%s3098_s29 + $0x18] sm:$0xff] (%p78_p3), %v203_v3 }
  0x18   : > { %206 = vst [vmem:[%s3098_s29 + $0x20] sm:$0xff] (%p78_p3), %v205_v4  ;;  %208 = vst [vmem:[%s3098_s29 + $0x28] sm:$0xff] (%p78_p3), %v207_v5  ;;  %v209_v6 = vld [vmem:[%s3090_s28 + $0x120] sm:$0xff] (%p78_p3)  ;;  %v211_v7 = vld [vmem:[%s3090_s28 + $0x128] sm:$0xff] (%p78_p3) }
  0x19   : > { %v213_v8 = vld [vmem:[%s3090_s28 + $0x180] sm:$0xff]  ;;  %210 = vst [vmem:[%s3098_s29 + $0x30] sm:$0xff] %v209_v6  ;;  %212 = vst [vmem:[%s3098_s29 + $0x38] sm:$0xff] %v211_v7  ;;  %v215_v9 = vld [vmem:[%s3090_s28 + $0x188] sm:$0xff] }
  0x1a   : > { %214 = vst [vmem:[%s3098_s29 + $0x40] sm:$0xff] %v213_v8  ;;  %v217_v10 = vld [vmem:[%s3090_s28 + $0x1e0] sm:$0xff]  ;;  %v219_v11 = vld [vmem:[%s3090_s28 + $0x1e8] sm:$0xff]  ;;  %216 = vst [vmem:[%s3098_s29 + $0x48] sm:$0xff] %v215_v9 }
  0x1b   : > { %218 = vst [vmem:[%s3098_s29 + $0x50] sm:$0xff] %v217_v10  ;;  %220 = vst [vmem:[%s3098_s29 + $0x58] sm:$0xff] %v219_v11  ;;  %v221_v12 = vld [vmem:[%s3090_s28 + $0x240] sm:$0xff]  ;;  %v223_v13 = vld [vmem:[%s3090_s28 + $0x248] sm:$0xff] }
  0x1c   : > { %v225_v14 = vld [vmem:[%s3090_s28 + $0x2a0] sm:$0xff]  ;;  %222 = vst [vmem:[%s3098_s29 + $0x60] sm:$0xff] %v221_v12  ;;  %224 = vst [vmem:[%s3098_s29 + $0x68] sm:$0xff] %v223_v13  ;;  %v227_v15 = vld [vmem:[%s3090_s28 + $0x2a8] sm:$0xff] }
  0x1d   : > { %226 = vst [vmem:[%s3098_s29 + $0x70] sm:$0xff] %v225_v14  ;;  %v229_v16 = vld [vmem:[%s3090_s28 + $0x300] sm:$0xff]  ;;  %v231_v17 = vld [vmem:[%s3090_s28 + $0x308] sm:$0xff]  ;;  %228 = vst [vmem:[%s3098_s29 + $0x78] sm:$0xff] %v227_v15 }
  0x1e   : > { %230 = vst [vmem:[%s3098_s29 + $0x80] sm:$0xff] %v229_v16  ;;  %232 = vst [vmem:[%s3098_s29 + $0x88] sm:$0xff] %v231_v17  ;;  %v233_v18 = vld [vmem:[%s3090_s28 + $0x360] sm:$0xff]  ;;  %v235_v19 = vld [vmem:[%s3090_s28 + $0x368] sm:$0xff] }
  0x1f   : > { %v237_v20 = vld [vmem:[%s3090_s28 + $0x3c0] sm:$0xff]  ;;  %234 = vst [vmem:[%s3098_s29 + $0x90] sm:$0xff] %v233_v18  ;;  %236 = vst [vmem:[%s3098_s29 + $0x98] sm:$0xff] %v235_v19  ;;  %v239_v21 = vld [vmem:[%s3090_s28 + $0x3c8] sm:$0xff] }
  0x20   : > { %238 = vst [vmem:[%s3098_s29 + $0xa0] sm:$0xff] %v237_v20  ;;  %v241_v22 = vld [vmem:[%s3090_s28 + $0x420] sm:$0xff]  ;;  %v243_v23 = vld [vmem:[%s3090_s28 + $0x428] sm:$0xff]  ;;  %240 = vst [vmem:[%s3098_s29 + $0xa8] sm:$0xff] %v239_v21 }
  0x21   : > { %242 = vst [vmem:[%s3098_s29 + $0xb0] sm:$0xff] %v241_v22  ;;  %244 = vst [vmem:[%s3098_s29 + $0xb8] sm:$0xff] %v243_v23  ;;  %v245_v24 = vld [vmem:[%s3090_s28 + $0x480] sm:$0xff]  ;;  %v247_v25 = vld [vmem:[%s3090_s28 + $0x488] sm:$0xff] }
  0x22   : > { %v249_v26 = vld [vmem:[%s3090_s28 + $0x4e0] sm:$0xff]  ;;  %246 = vst [vmem:[%s3098_s29 + $0xc0] sm:$0xff] %v245_v24  ;;  %248 = vst [vmem:[%s3098_s29 + $0xc8] sm:$0xff] %v247_v25  ;;  %v251_v27 = vld [vmem:[%s3090_s28 + $0x4e8] sm:$0xff] }
  0x23   : > { %250 = vst [vmem:[%s3098_s29 + $0xd0] sm:$0xff] %v249_v26  ;;  %v253_v28 = vld [vmem:[%s3090_s28 + $0x540] sm:$0xff]  ;;  %v255_v29 = vld [vmem:[%s3090_s28 + $0x548] sm:$0xff]  ;;  %252 = vst [vmem:[%s3098_s29 + $0xd8] sm:$0xff] %v251_v27 }
  0x24   : > { %254 = vst [vmem:[%s3098_s29 + $0xe0] sm:$0xff] %v253_v28  ;;  %256 = vst [vmem:[%s3098_s29 + $0xe8] sm:$0xff] %v255_v29  ;;  %v257_v30 = vld [vmem:[%s3090_s28 + $0x5a0] sm:$0xff]  ;;  %v259_v31 = vld [vmem:[%s3090_s28 + $0x5a8] sm:$0xff] }
  0x25   : > { %v261_v32 = vld [vmem:[%s3090_s28 + $0x600] sm:$0xff]  ;;  %258 = vst [vmem:[%s3098_s29 + $0xf0] sm:$0xff] %v257_v30  ;;  %260 = vst [vmem:[%s3098_s29 + $0xf8] sm:$0xff] %v259_v31  ;;  %v263_v33 = vld [vmem:[%s3090_s28 + $0x608] sm:$0xff] }
  0x26   : > { %262 = vst [vmem:[%s3098_s29 + $0x100] sm:$0xff] %v261_v32  ;;  %v265_v34 = vld [vmem:[%s3090_s28 + $0x660] sm:$0xff]  ;;  %v267_v35 = vld [vmem:[%s3090_s28 + $0x668] sm:$0xff]  ;;  %264 = vst [vmem:[%s3098_s29 + $0x108] sm:$0xff] %v263_v33 }
  0x27   : > { %266 = vst [vmem:[%s3098_s29 + $0x110] sm:$0xff] %v265_v34  ;;  %268 = vst [vmem:[%s3098_s29 + $0x118] sm:$0xff] %v267_v35  ;;  %v269_v36 = vld [vmem:[%s3090_s28 + $0x6c0] sm:$0xff]  ;;  %v271_v37 = vld [vmem:[%s3090_s28 + $0x6c8] sm:$0xff] }
  0x28   : > { %v273_v38 = vld [vmem:[%s3090_s28 + $0x720] sm:$0xff]  ;;  %270 = vst [vmem:[%s3098_s29 + $0x120] sm:$0xff] %v269_v36  ;;  %272 = vst [vmem:[%s3098_s29 + $0x128] sm:$0xff] %v271_v37  ;;  %v275_v39 = vld [vmem:[%s3090_s28 + $0x728] sm:$0xff] }
  0x29   : > { %274 = vst [vmem:[%s3098_s29 + $0x130] sm:$0xff] %v273_v38  ;;  %v277_v40 = vld [vmem:[%s3090_s28 + $0x780] sm:$0xff]  ;;  %v279_v41 = vld [vmem:[%s3090_s28 + $0x788] sm:$0xff]  ;;  %276 = vst [vmem:[%s3098_s29 + $0x138] sm:$0xff] %v275_v39 }
  0x2a   : > { %278 = vst [vmem:[%s3098_s29 + $0x140] sm:$0xff] %v277_v40  ;;  %280 = vst [vmem:[%s3098_s29 + $0x148] sm:$0xff] %v279_v41  ;;  %v281_v42 = vld [vmem:[%s3090_s28 + $0x7e0] sm:$0xff]  ;;  %v283_v43 = vld [vmem:[%s3090_s28 + $0x7e8] sm:$0xff] }
  0x2b   : > { %v285_v44 = vld [vmem:[%s3090_s28 + $0x840] sm:$0xff]  ;;  %282 = vst [vmem:[%s3098_s29 + $0x150] sm:$0xff] %v281_v42  ;;  %284 = vst [vmem:[%s3098_s29 + $0x158] sm:$0xff] %v283_v43  ;;  %v287_v45 = vld [vmem:[%s3090_s28 + $0x848] sm:$0xff] }
  0x2c   : > { %286 = vst [vmem:[%s3098_s29 + $0x160] sm:$0xff] %v285_v44  ;;  %v289_v46 = vld [vmem:[%s3090_s28 + $0x8a0] sm:$0xff]  ;;  %v291_v47 = vld [vmem:[%s3090_s28 + $0x8a8] sm:$0xff]  ;;  %288 = vst [vmem:[%s3098_s29 + $0x168] sm:$0xff] %v287_v45 }
  0x2d   : > { %290 = vst [vmem:[%s3098_s29 + $0x170] sm:$0xff] %v289_v46  ;;  %292 = vst [vmem:[%s3098_s29 + $0x178] sm:$0xff] %v291_v47  ;;  %v293_v48 = vld [vmem:[%s3090_s28 + $0x900] sm:$0xff]  ;;  %v295_v49 = vld [vmem:[%s3090_s28 + $0x908] sm:$0xff] }
  0x2e   : > { %v297_v50 = vld [vmem:[%s3090_s28 + $0x960] sm:$0xff]  ;;  %294 = vst [vmem:[%s3098_s29 + $0x180] sm:$0xff] %v293_v48  ;;  %296 = vst [vmem:[%s3098_s29 + $0x188] sm:$0xff] %v295_v49  ;;  %v299_v51 = vld [vmem:[%s3090_s28 + $0x968] sm:$0xff] }
  0x2f   : > { %298 = vst [vmem:[%s3098_s29 + $0x190] sm:$0xff] %v297_v50  ;;  %v301_v52 = vld [vmem:[%s3090_s28 + $0x9c0] sm:$0xff]  ;;  %v303_v53 = vld [vmem:[%s3090_s28 + $0x9c8] sm:$0xff]  ;;  %300 = vst [vmem:[%s3098_s29 + $0x198] sm:$0xff] %v299_v51 }
  0x30   : > { %302 = vst [vmem:[%s3098_s29 + $0x1a0] sm:$0xff] %v301_v52  ;;  %304 = vst [vmem:[%s3098_s29 + $0x1a8] sm:$0xff] %v303_v53  ;;  %v305_v54 = vld [vmem:[%s3090_s28 + $0xa20] sm:$0xff]  ;;  %v307_v55 = vld [vmem:[%s3090_s28 + $0xa28] sm:$0xff] }
  0x31   : > { %v309_v56 = vld [vmem:[%s3090_s28 + $0xa80] sm:$0xff]  ;;  %306 = vst [vmem:[%s3098_s29 + $0x1b0] sm:$0xff] %v305_v54  ;;  %308 = vst [vmem:[%s3098_s29 + $0x1b8] sm:$0xff] %v307_v55  ;;  %v311_v57 = vld [vmem:[%s3090_s28 + $0xa88] sm:$0xff] }
  0x32   : > { %310 = vst [vmem:[%s3098_s29 + $0x1c0] sm:$0xff] %v309_v56  ;;  %v313_v58 = vld [vmem:[%s3090_s28 + $0xae0] sm:$0xff]  ;;  %v315_v59 = vld [vmem:[%s3090_s28 + $0xae8] sm:$0xff]  ;;  %312 = vst [vmem:[%s3098_s29 + $0x1c8] sm:$0xff] %v311_v57 }
  0x33   : > { %314 = vst [vmem:[%s3098_s29 + $0x1d0] sm:$0xff] %v313_v58  ;;  %316 = vst [vmem:[%s3098_s29 + $0x1d8] sm:$0xff] %v315_v59  ;;  %v317_v60 = vld [vmem:[%s3090_s28 + $0xb40] sm:$0xff]  ;;  %v319_v61 = vld [vmem:[%s3090_s28 + $0xb48] sm:$0xff] }
  0x34   : > { %v321_v62 = vld [vmem:[%s3090_s28 + $0xba0] sm:$0xff]  ;;  %318 = vst [vmem:[%s3098_s29 + $0x1e0] sm:$0xff] %v317_v60  ;;  %320 = vst [vmem:[%s3098_s29 + $0x1e8] sm:$0xff] %v319_v61  ;;  %v323_v63 = vld [vmem:[%s3090_s28 + $0xba8] sm:$0xff] }
  0x35   : > { %322 = vst [vmem:[%s3098_s29 + $0x1f0] sm:$0xff] %v321_v62  ;;  %v325_v0 = vld [vmem:[%s3090_s28 + $0xc00] sm:$0xff]  ;;  %v327_v1 = vld [vmem:[%s3090_s28 + $0xc08] sm:$0xff]  ;;  %324 = vst [vmem:[%s3098_s29 + $0x1f8] sm:$0xff] %v323_v63 }
  0x36   : > { %326 = vst [vmem:[%s3098_s29 + $0x200] sm:$0xff] %v325_v0  ;;  %328 = vst [vmem:[%s3098_s29 + $0x208] sm:$0xff] %v327_v1  ;;  %v329_v2 = vld [vmem:[%s3090_s28 + $0xc60] sm:$0xff]  ;;  %v331_v3 = vld [vmem:[%s3090_s28 + $0xc68] sm:$0xff] }
  0x37   : > { %v333_v4 = vld [vmem:[%s3090_s28 + $0xcc0] sm:$0xff]  ;;  %330 = vst [vmem:[%s3098_s29 + $0x210] sm:$0xff] %v329_v2  ;;  %332 = vst [vmem:[%s3098_s29 + $0x218] sm:$0xff] %v331_v3  ;;  %v335_v5 = vld [vmem:[%s3090_s28 + $0xcc8] sm:$0xff] }
  0x38   : > { %334 = vst [vmem:[%s3098_s29 + $0x220] sm:$0xff] %v333_v4  ;;  %v337_v6 = vld [vmem:[%s3090_s28 + $0xd20] sm:$0xff]  ;;  %v339_v7 = vld [vmem:[%s3090_s28 + $0xd28] sm:$0xff]  ;;  %336 = vst [vmem:[%s3098_s29 + $0x228] sm:$0xff] %v335_v5 }
  0x39   : > { %338 = vst [vmem:[%s3098_s29 + $0x230] sm:$0xff] %v337_v6  ;;  %340 = vst [vmem:[%s3098_s29 + $0x238] sm:$0xff] %v339_v7  ;;  %v341_v8 = vld [vmem:[%s3090_s28 + $0xd80] sm:$0xff]  ;;  %v343_v9 = vld [vmem:[%s3090_s28 + $0xd88] sm:$0xff] }
  0x3a   : > { %v345_v10 = vld [vmem:[%s3090_s28 + $0xde0] sm:$0xff]  ;;  %342 = vst [vmem:[%s3098_s29 + $0x240] sm:$0xff] %v341_v8  ;;  %344 = vst [vmem:[%s3098_s29 + $0x248] sm:$0xff] %v343_v9  ;;  %v347_v11 = vld [vmem:[%s3090_s28 + $0xde8] sm:$0xff] }
  0x3b   : > { %346 = vst [vmem:[%s3098_s29 + $0x250] sm:$0xff] %v345_v10  ;;  %v349_v12 = vld [vmem:[%s3090_s28 + $0xe40] sm:$0xff]  ;;  %v351_v13 = vld [vmem:[%s3090_s28 + $0xe48] sm:$0xff]  ;;  %348 = vst [vmem:[%s3098_s29 + $0x258] sm:$0xff] %v347_v11 }
  0x3c   : > { %350 = vst [vmem:[%s3098_s29 + $0x260] sm:$0xff] %v349_v12  ;;  %352 = vst [vmem:[%s3098_s29 + $0x268] sm:$0xff] %v351_v13  ;;  %v353_v14 = vld [vmem:[%s3090_s28 + $0xea0] sm:$0xff]  ;;  %v355_v15 = vld [vmem:[%s3090_s28 + $0xea8] sm:$0xff] }
  0x3d   : > { %v357_v16 = vld [vmem:[%s3090_s28 + $0xf00] sm:$0xff]  ;;  %354 = vst [vmem:[%s3098_s29 + $0x270] sm:$0xff] %v353_v14  ;;  %356 = vst [vmem:[%s3098_s29 + $0x278] sm:$0xff] %v355_v15  ;;  %v359_v17 = vld [vmem:[%s3090_s28 + $0xf08] sm:$0xff] }
  0x3e   : > { %358 = vst [vmem:[%s3098_s29 + $0x280] sm:$0xff] %v357_v16  ;;  %v361_v18 = vld [vmem:[%s3090_s28 + $0xf60] sm:$0xff]  ;;  %v363_v19 = vld [vmem:[%s3090_s28 + $0xf68] sm:$0xff]  ;;  %360 = vst [vmem:[%s3098_s29 + $0x288] sm:$0xff] %v359_v17 }
  0x3f   : > { %362 = vst [vmem:[%s3098_s29 + $0x290] sm:$0xff] %v361_v18  ;;  %364 = vst [vmem:[%s3098_s29 + $0x298] sm:$0xff] %v363_v19  ;;  %v365_v20 = vld [vmem:[%s3090_s28 + $0xfc0] sm:$0xff]  ;;  %v367_v21 = vld [vmem:[%s3090_s28 + $0xfc8] sm:$0xff] }
  0x40   : > { %v369_v22 = vld [vmem:[%s3090_s28 + $0x1020] sm:$0xff]  ;;  %366 = vst [vmem:[%s3098_s29 + $0x2a0] sm:$0xff] %v365_v20  ;;  %368 = vst [vmem:[%s3098_s29 + $0x2a8] sm:$0xff] %v367_v21  ;;  %v371_v23 = vld [vmem:[%s3090_s28 + $0x1028] sm:$0xff] }
  0x41   : > { %370 = vst [vmem:[%s3098_s29 + $0x2b0] sm:$0xff] %v369_v22  ;;  %v373_v24 = vld [vmem:[%s3090_s28 + $0x1080] sm:$0xff]  ;;  %v375_v25 = vld [vmem:[%s3090_s28 + $0x1088] sm:$0xff]  ;;  %372 = vst [vmem:[%s3098_s29 + $0x2b8] sm:$0xff] %v371_v23 }
  0x42   : > { %374 = vst [vmem:[%s3098_s29 + $0x2c0] sm:$0xff] %v373_v24  ;;  %376 = vst [vmem:[%s3098_s29 + $0x2c8] sm:$0xff] %v375_v25  ;;  %v377_v26 = vld [vmem:[%s3090_s28 + $0x10e0] sm:$0xff]  ;;  %v379_v27 = vld [vmem:[%s3090_s28 + $0x10e8] sm:$0xff] }
  0x43   : > { %v381_v28 = vld [vmem:[%s3090_s28 + $0x1140] sm:$0xff]  ;;  %378 = vst [vmem:[%s3098_s29 + $0x2d0] sm:$0xff] %v377_v26  ;;  %380 = vst [vmem:[%s3098_s29 + $0x2d8] sm:$0xff] %v379_v27  ;;  %v383_v29 = vld [vmem:[%s3090_s28 + $0x1148] sm:$0xff] }
  0x44   : > { %382 = vst [vmem:[%s3098_s29 + $0x2e0] sm:$0xff] %v381_v28  ;;  %v385_v30 = vld [vmem:[%s3090_s28 + $0x11a0] sm:$0xff]  ;;  %v387_v31 = vld [vmem:[%s3090_s28 + $0x11a8] sm:$0xff]  ;;  %384 = vst [vmem:[%s3098_s29 + $0x2e8] sm:$0xff] %v383_v29 }
  0x45   : > { %386 = vst [vmem:[%s3098_s29 + $0x2f0] sm:$0xff] %v385_v30  ;;  %388 = vst [vmem:[%s3098_s29 + $0x2f8] sm:$0xff] %v387_v31  ;;  %v389_v32 = vld [vmem:[%s3090_s28 + $0x1200] sm:$0xff]  ;;  %v391_v33 = vld [vmem:[%s3090_s28 + $0x1208] sm:$0xff] }
  0x46   : > { %v393_v34 = vld [vmem:[%s3090_s28 + $0x1260] sm:$0xff]  ;;  %390 = vst [vmem:[%s3098_s29 + $0x300] sm:$0xff] %v389_v32  ;;  %392 = vst [vmem:[%s3098_s29 + $0x308] sm:$0xff] %v391_v33  ;;  %v395_v35 = vld [vmem:[%s3090_s28 + $0x1268] sm:$0xff] }
  0x47   : > { %394 = vst [vmem:[%s3098_s29 + $0x310] sm:$0xff] %v393_v34  ;;  %v397_v36 = vld [vmem:[%s3090_s28 + $0x12c0] sm:$0xff]  ;;  %v399_v37 = vld [vmem:[%s3090_s28 + $0x12c8] sm:$0xff]  ;;  %396 = vst [vmem:[%s3098_s29 + $0x318] sm:$0xff] %v395_v35 }
  0x48   : > { %398 = vst [vmem:[%s3098_s29 + $0x320] sm:$0xff] %v397_v36  ;;  %400 = vst [vmem:[%s3098_s29 + $0x328] sm:$0xff] %v399_v37  ;;  %v401_v38 = vld [vmem:[%s3090_s28 + $0x1320] sm:$0xff]  ;;  %v403_v39 = vld [vmem:[%s3090_s28 + $0x1328] sm:$0xff] }
  0x49   : > { %v405_v40 = vld [vmem:[%s3090_s28 + $0x1380] sm:$0xff]  ;;  %402 = vst [vmem:[%s3098_s29 + $0x330] sm:$0xff] %v401_v38  ;;  %404 = vst [vmem:[%s3098_s29 + $0x338] sm:$0xff] %v403_v39  ;;  %v407_v41 = vld [vmem:[%s3090_s28 + $0x1388] sm:$0xff] }
  0x4a   : > { %406 = vst [vmem:[%s3098_s29 + $0x340] sm:$0xff] %v405_v40  ;;  %v409_v42 = vld [vmem:[%s3090_s28 + $0x13e0] sm:$0xff]  ;;  %v411_v43 = vld [vmem:[%s3090_s28 + $0x13e8] sm:$0xff]  ;;  %408 = vst [vmem:[%s3098_s29 + $0x348] sm:$0xff] %v407_v41 }
  0x4b   : > { %410 = vst [vmem:[%s3098_s29 + $0x350] sm:$0xff] %v409_v42  ;;  %412 = vst [vmem:[%s3098_s29 + $0x358] sm:$0xff] %v411_v43  ;;  %v413_v44 = vld [vmem:[%s3090_s28 + $0x1440] sm:$0xff]  ;;  %v415_v45 = vld [vmem:[%s3090_s28 + $0x1448] sm:$0xff] }
  0x4c   : > { %v417_v46 = vld [vmem:[%s3090_s28 + $0x14a0] sm:$0xff]  ;;  %414 = vst [vmem:[%s3098_s29 + $0x360] sm:$0xff] %v413_v44  ;;  %416 = vst [vmem:[%s3098_s29 + $0x368] sm:$0xff] %v415_v45  ;;  %v419_v47 = vld [vmem:[%s3090_s28 + $0x14a8] sm:$0xff] }
  0x4d   : > { %418 = vst [vmem:[%s3098_s29 + $0x370] sm:$0xff] %v417_v46  ;;  %v421_v48 = vld [vmem:[%s3090_s28 + $0x1500] sm:$0xff]  ;;  %v423_v49 = vld [vmem:[%s3090_s28 + $0x1508] sm:$0xff]  ;;  %420 = vst [vmem:[%s3098_s29 + $0x378] sm:$0xff] %v419_v47 }
  0x4e   : > { %422 = vst [vmem:[%s3098_s29 + $0x380] sm:$0xff] %v421_v48  ;;  %424 = vst [vmem:[%s3098_s29 + $0x388] sm:$0xff] %v423_v49  ;;  %v425_v50 = vld [vmem:[%s3090_s28 + $0x1560] sm:$0xff]  ;;  %v427_v51 = vld [vmem:[%s3090_s28 + $0x1568] sm:$0xff] }
  0x4f   : > { %v429_v52 = vld [vmem:[%s3090_s28 + $0x15c0] sm:$0xff]  ;;  %426 = vst [vmem:[%s3098_s29 + $0x390] sm:$0xff] %v425_v50  ;;  %428 = vst [vmem:[%s3098_s29 + $0x398] sm:$0xff] %v427_v51  ;;  %v431_v53 = vld [vmem:[%s3090_s28 + $0x15c8] sm:$0xff] }
  0x50   : > { %430 = vst [vmem:[%s3098_s29 + $0x3a0] sm:$0xff] %v429_v52  ;;  %v433_v54 = vld [vmem:[%s3090_s28 + $0x1620] sm:$0xff]  ;;  %v435_v55 = vld [vmem:[%s3090_s28 + $0x1628] sm:$0xff]  ;;  %432 = vst [vmem:[%s3098_s29 + $0x3a8] sm:$0xff] %v431_v53 }
  0x51   : > { %434 = vst [vmem:[%s3098_s29 + $0x3b0] sm:$0xff] %v433_v54  ;;  %436 = vst [vmem:[%s3098_s29 + $0x3b8] sm:$0xff] %v435_v55  ;;  %v437_v56 = vld [vmem:[%s3090_s28 + $0x1680] sm:$0xff]  ;;  %v439_v57 = vld [vmem:[%s3090_s28 + $0x1688] sm:$0xff] }
  0x52   : > { %v441_v58 = vld [vmem:[%s3090_s28 + $0x16e0] sm:$0xff]  ;;  %438 = vst [vmem:[%s3098_s29 + $0x3c0] sm:$0xff] %v437_v56  ;;  %440 = vst [vmem:[%s3098_s29 + $0x3c8] sm:$0xff] %v439_v57  ;;  %v443_v59 = vld [vmem:[%s3090_s28 + $0x16e8] sm:$0xff] }
  0x53   : > { %442 = vst [vmem:[%s3098_s29 + $0x3d0] sm:$0xff] %v441_v58  ;;  %v445_v60 = vld [vmem:[%s3090_s28 + $0x1740] sm:$0xff]  ;;  %v447_v61 = vld [vmem:[%s3090_s28 + $0x1748] sm:$0xff]  ;;  %444 = vst [vmem:[%s3098_s29 + $0x3d8] sm:$0xff] %v443_v59 }
  0x54   : > { %446 = vst [vmem:[%s3098_s29 + $0x3e0] sm:$0xff] %v445_v60  ;;  %448 = vst [vmem:[%s3098_s29 + $0x3e8] sm:$0xff] %v447_v61  ;;  %v449_v62 = vld [vmem:[%s3090_s28 + $0x17a0] sm:$0xff]  ;;  %v451_v63 = vld [vmem:[%s3090_s28 + $0x17a8] sm:$0xff] }
  0x55   : > { %v453_v0 = vld [vmem:[%s3090_s28 + $0x1800] sm:$0xff]  ;;  %450 = vst [vmem:[%s3098_s29 + $0x3f0] sm:$0xff] %v449_v62  ;;  %452 = vst [vmem:[%s3098_s29 + $0x3f8] sm:$0xff] %v451_v63  ;;  %v455_v1 = vld [vmem:[%s3090_s28 + $0x1808] sm:$0xff] }
  0x56   : > { %454 = vst [vmem:[%s3098_s29 + $0x400] sm:$0xff] %v453_v0  ;;  %v457_v2 = vld [vmem:[%s3090_s28 + $0x1860] sm:$0xff]  ;;  %v459_v3 = vld [vmem:[%s3090_s28 + $0x1868] sm:$0xff]  ;;  %456 = vst [vmem:[%s3098_s29 + $0x408] sm:$0xff] %v455_v1 }
  0x57   : > { %458 = vst [vmem:[%s3098_s29 + $0x410] sm:$0xff] %v457_v2  ;;  %460 = vst [vmem:[%s3098_s29 + $0x418] sm:$0xff] %v459_v3  ;;  %v461_v4 = vld [vmem:[%s3090_s28 + $0x18c0] sm:$0xff]  ;;  %v463_v5 = vld [vmem:[%s3090_s28 + $0x18c8] sm:$0xff] }
  0x58   : > { %v465_v6 = vld [vmem:[%s3090_s28 + $0x1920] sm:$0xff]  ;;  %462 = vst [vmem:[%s3098_s29 + $0x420] sm:$0xff] %v461_v4  ;;  %464 = vst [vmem:[%s3098_s29 + $0x428] sm:$0xff] %v463_v5  ;;  %v467_v7 = vld [vmem:[%s3090_s28 + $0x1928] sm:$0xff] }
  0x59   : > { %466 = vst [vmem:[%s3098_s29 + $0x430] sm:$0xff] %v465_v6  ;;  %v469_v8 = vld [vmem:[%s3090_s28 + $0x1980] sm:$0xff]  ;;  %v471_v9 = vld [vmem:[%s3090_s28 + $0x1988] sm:$0xff]  ;;  %468 = vst [vmem:[%s3098_s29 + $0x438] sm:$0xff] %v467_v7 }
  0x5a   : > { %470 = vst [vmem:[%s3098_s29 + $0x440] sm:$0xff] %v469_v8  ;;  %472 = vst [vmem:[%s3098_s29 + $0x448] sm:$0xff] %v471_v9  ;;  %v473_v10 = vld [vmem:[%s3090_s28 + $0x19e0] sm:$0xff]  ;;  %v475_v11 = vld [vmem:[%s3090_s28 + $0x19e8] sm:$0xff] }
  0x5b   : > { %v477_v12 = vld [vmem:[%s3090_s28 + $0x1a40] sm:$0xff]  ;;  %474 = vst [vmem:[%s3098_s29 + $0x450] sm:$0xff] %v473_v10  ;;  %476 = vst [vmem:[%s3098_s29 + $0x458] sm:$0xff] %v475_v11  ;;  %v479_v13 = vld [vmem:[%s3090_s28 + $0x1a48] sm:$0xff] }
  0x5c   : > { %478 = vst [vmem:[%s3098_s29 + $0x460] sm:$0xff] %v477_v12  ;;  %v481_v14 = vld [vmem:[%s3090_s28 + $0x1aa0] sm:$0xff]  ;;  %v483_v15 = vld [vmem:[%s3090_s28 + $0x1aa8] sm:$0xff]  ;;  %480 = vst [vmem:[%s3098_s29 + $0x468] sm:$0xff] %v479_v13 }
  0x5d   : > { %482 = vst [vmem:[%s3098_s29 + $0x470] sm:$0xff] %v481_v14  ;;  %484 = vst [vmem:[%s3098_s29 + $0x478] sm:$0xff] %v483_v15  ;;  %v485_v16 = vld [vmem:[%s3090_s28 + $0x1b00] sm:$0xff]  ;;  %v487_v17 = vld [vmem:[%s3090_s28 + $0x1b08] sm:$0xff] }
  0x5e   : > { %v489_v18 = vld [vmem:[%s3090_s28 + $0x1b60] sm:$0xff]  ;;  %486 = vst [vmem:[%s3098_s29 + $0x480] sm:$0xff] %v485_v16  ;;  %488 = vst [vmem:[%s3098_s29 + $0x488] sm:$0xff] %v487_v17  ;;  %v491_v19 = vld [vmem:[%s3090_s28 + $0x1b68] sm:$0xff] }
  0x5f   : > { %490 = vst [vmem:[%s3098_s29 + $0x490] sm:$0xff] %v489_v18  ;;  %v493_v20 = vld [vmem:[%s3090_s28 + $0x1bc0] sm:$0xff]  ;;  %v495_v21 = vld [vmem:[%s3090_s28 + $0x1bc8] sm:$0xff]  ;;  %492 = vst [vmem:[%s3098_s29 + $0x498] sm:$0xff] %v491_v19 }
  0x60   : > { %494 = vst [vmem:[%s3098_s29 + $0x4a0] sm:$0xff] %v493_v20  ;;  %496 = vst [vmem:[%s3098_s29 + $0x4a8] sm:$0xff] %v495_v21  ;;  %v497_v22 = vld [vmem:[%s3090_s28 + $0x1c20] sm:$0xff]  ;;  %v499_v23 = vld [vmem:[%s3090_s28 + $0x1c28] sm:$0xff] }
  0x61   : > { %v501_v24 = vld [vmem:[%s3090_s28 + $0x1c80] sm:$0xff]  ;;  %498 = vst [vmem:[%s3098_s29 + $0x4b0] sm:$0xff] %v497_v22  ;;  %500 = vst [vmem:[%s3098_s29 + $0x4b8] sm:$0xff] %v499_v23  ;;  %v503_v25 = vld [vmem:[%s3090_s28 + $0x1c88] sm:$0xff] }
  0x62   : > { %502 = vst [vmem:[%s3098_s29 + $0x4c0] sm:$0xff] %v501_v24  ;;  %v505_v26 = vld [vmem:[%s3090_s28 + $0x1ce0] sm:$0xff]  ;;  %v507_v27 = vld [vmem:[%s3090_s28 + $0x1ce8] sm:$0xff]  ;;  %504 = vst [vmem:[%s3098_s29 + $0x4c8] sm:$0xff] %v503_v25 }
  0x63   : > { %506 = vst [vmem:[%s3098_s29 + $0x4d0] sm:$0xff] %v505_v26  ;;  %508 = vst [vmem:[%s3098_s29 + $0x4d8] sm:$0xff] %v507_v27  ;;  %v509_v28 = vld [vmem:[%s3090_s28 + $0x1d40] sm:$0xff]  ;;  %v511_v29 = vld [vmem:[%s3090_s28 + $0x1d48] sm:$0xff] }
  0x64   : > { %v513_v30 = vld [vmem:[%s3090_s28 + $0x1da0] sm:$0xff]  ;;  %510 = vst [vmem:[%s3098_s29 + $0x4e0] sm:$0xff] %v509_v28  ;;  %512 = vst [vmem:[%s3098_s29 + $0x4e8] sm:$0xff] %v511_v29  ;;  %v515_v31 = vld [vmem:[%s3090_s28 + $0x1da8] sm:$0xff] }
  0x65   : > { %514 = vst [vmem:[%s3098_s29 + $0x4f0] sm:$0xff] %v513_v30  ;;  %v517_v32 = vld [vmem:[%s3090_s28 + $0x1e00] sm:$0xff]  ;;  %v519_v33 = vld [vmem:[%s3090_s28 + $0x1e08] sm:$0xff]  ;;  %516 = vst [vmem:[%s3098_s29 + $0x4f8] sm:$0xff] %v515_v31 }
  0x66   : > { %518 = vst [vmem:[%s3098_s29 + $0x500] sm:$0xff] %v517_v32  ;;  %520 = vst [vmem:[%s3098_s29 + $0x508] sm:$0xff] %v519_v33  ;;  %v521_v34 = vld [vmem:[%s3090_s28 + $0x1e60] sm:$0xff]  ;;  %v523_v35 = vld [vmem:[%s3090_s28 + $0x1e68] sm:$0xff] }
  0x67   : > { %v525_v36 = vld [vmem:[%s3090_s28 + $0x1ec0] sm:$0xff]  ;;  %522 = vst [vmem:[%s3098_s29 + $0x510] sm:$0xff] %v521_v34  ;;  %524 = vst [vmem:[%s3098_s29 + $0x518] sm:$0xff] %v523_v35  ;;  %v527_v37 = vld [vmem:[%s3090_s28 + $0x1ec8] sm:$0xff] }
  0x68   : > { %526 = vst [vmem:[%s3098_s29 + $0x520] sm:$0xff] %v525_v36  ;;  %v529_v38 = vld [vmem:[%s3090_s28 + $0x1f20] sm:$0xff]  ;;  %v531_v39 = vld [vmem:[%s3090_s28 + $0x1f28] sm:$0xff]  ;;  %528 = vst [vmem:[%s3098_s29 + $0x528] sm:$0xff] %v527_v37 }
  0x69   : > { %530 = vst [vmem:[%s3098_s29 + $0x530] sm:$0xff] %v529_v38  ;;  %532 = vst [vmem:[%s3098_s29 + $0x538] sm:$0xff] %v531_v39  ;;  %v533_v40 = vld [vmem:[%s3090_s28 + $0x1f80] sm:$0xff]  ;;  %v535_v41 = vld [vmem:[%s3090_s28 + $0x1f88] sm:$0xff] }
  0x6a   : > { %v537_v42 = vld [vmem:[%s3090_s28 + $0x1fe0] sm:$0xff]  ;;  %534 = vst [vmem:[%s3098_s29 + $0x540] sm:$0xff] %v533_v40  ;;  %536 = vst [vmem:[%s3098_s29 + $0x548] sm:$0xff] %v535_v41  ;;  %v539_v43 = vld [vmem:[%s3090_s28 + $0x1fe8] sm:$0xff] }
  0x6b   : > { %538 = vst [vmem:[%s3098_s29 + $0x550] sm:$0xff] %v537_v42  ;;  %v541_v44 = vld [vmem:[%s3090_s28 + $0x2040] sm:$0xff]  ;;  %v543_v45 = vld [vmem:[%s3090_s28 + $0x2048] sm:$0xff]  ;;  %540 = vst [vmem:[%s3098_s29 + $0x558] sm:$0xff] %v539_v43 }
  0x6c   : > { %542 = vst [vmem:[%s3098_s29 + $0x560] sm:$0xff] %v541_v44  ;;  %544 = vst [vmem:[%s3098_s29 + $0x568] sm:$0xff] %v543_v45  ;;  %v545_v46 = vld [vmem:[%s3090_s28 + $0x20a0] sm:$0xff]  ;;  %v547_v47 = vld [vmem:[%s3090_s28 + $0x20a8] sm:$0xff] }
  0x6d   : > { %v549_v48 = vld [vmem:[%s3090_s28 + $0x2100] sm:$0xff]  ;;  %546 = vst [vmem:[%s3098_s29 + $0x570] sm:$0xff] %v545_v46  ;;  %548 = vst [vmem:[%s3098_s29 + $0x578] sm:$0xff] %v547_v47  ;;  %v551_v49 = vld [vmem:[%s3090_s28 + $0x2108] sm:$0xff] }
  0x6e   : > { %550 = vst [vmem:[%s3098_s29 + $0x580] sm:$0xff] %v549_v48  ;;  %v553_v50 = vld [vmem:[%s3090_s28 + $0x2160] sm:$0xff]  ;;  %v555_v51 = vld [vmem:[%s3090_s28 + $0x2168] sm:$0xff]  ;;  %552 = vst [vmem:[%s3098_s29 + $0x588] sm:$0xff] %v551_v49 }
  0x6f   : > { %554 = vst [vmem:[%s3098_s29 + $0x590] sm:$0xff] %v553_v50  ;;  %556 = vst [vmem:[%s3098_s29 + $0x598] sm:$0xff] %v555_v51  ;;  %v557_v52 = vld [vmem:[%s3090_s28 + $0x21c0] sm:$0xff]  ;;  %v559_v53 = vld [vmem:[%s3090_s28 + $0x21c8] sm:$0xff] }
  0x70   : > { %v561_v54 = vld [vmem:[%s3090_s28 + $0x2220] sm:$0xff]  ;;  %558 = vst [vmem:[%s3098_s29 + $0x5a0] sm:$0xff] %v557_v52  ;;  %560 = vst [vmem:[%s3098_s29 + $0x5a8] sm:$0xff] %v559_v53  ;;  %v563_v55 = vld [vmem:[%s3090_s28 + $0x2228] sm:$0xff] }
  0x71   : > { %562 = vst [vmem:[%s3098_s29 + $0x5b0] sm:$0xff] %v561_v54  ;;  %v565_v56 = vld [vmem:[%s3090_s28 + $0x2280] sm:$0xff]  ;;  %v567_v57 = vld [vmem:[%s3090_s28 + $0x2288] sm:$0xff]  ;;  %564 = vst [vmem:[%s3098_s29 + $0x5b8] sm:$0xff] %v563_v55 }
  0x72   : > { %566 = vst [vmem:[%s3098_s29 + $0x5c0] sm:$0xff] %v565_v56  ;;  %568 = vst [vmem:[%s3098_s29 + $0x5c8] sm:$0xff] %v567_v57  ;;  %v569_v58 = vld [vmem:[%s3090_s28 + $0x22e0] sm:$0xff]  ;;  %v571_v59 = vld [vmem:[%s3090_s28 + $0x22e8] sm:$0xff] }
  0x73   : > { %v573_v60 = vld [vmem:[%s3090_s28 + $0x2340] sm:$0xff]  ;;  %570 = vst [vmem:[%s3098_s29 + $0x5d0] sm:$0xff] %v569_v58  ;;  %572 = vst [vmem:[%s3098_s29 + $0x5d8] sm:$0xff] %v571_v59  ;;  %v575_v61 = vld [vmem:[%s3090_s28 + $0x2348] sm:$0xff] }
  0x74   : > { %574 = vst [vmem:[%s3098_s29 + $0x5e0] sm:$0xff] %v573_v60  ;;  %v577_v62 = vld [vmem:[%s3090_s28 + $0x23a0] sm:$0xff]  ;;  %v579_v63 = vld [vmem:[%s3090_s28 + $0x23a8] sm:$0xff]  ;;  %576 = vst [vmem:[%s3098_s29 + $0x5e8] sm:$0xff] %v575_v61 }
  0x75   : > { %578 = vst [vmem:[%s3098_s29 + $0x5f0] sm:$0xff] %v577_v62  ;;  %580 = vst [vmem:[%s3098_s29 + $0x5f8] sm:$0xff] %v579_v63 }
  0x76 PF: > { %p2395_p8 = scmp.ge.s32.totalorder %s3020_s16, 1  ;;  %p593_p9 = scmp.lt.s32.totalorder %s3020_s16, 7 }
  0x78   : > { %p594_p10 = pnand %p2395_p8, %p593_p9 }
  0x79   : > { %s600_s30 = sand.u32 (!%p594_p10), 1, %s3004_s12   ;;  %v2767_v0 = vld [vmem:[%s3722_s0 + $0x4] ss:$24 sps:$4 sm:$0xff] (!%p594_p10)   ;;  %s2397_s26 = sshll.u32 (!%p594_p10), %s3012_s14, 2 }
  0x7a   : > { %597 = sbr.rel (%p594_p10) target bundleno = 568 (0x238), region = 51  ;;  %1897 = vmatprep.mubr.bf16.mxu0 (!%p594_p10), %v2767_v0  ;;  %2026 = vmatprep.mubr.bf16.mxu1 (!%p594_p10), %v2767_v0  ;;  %p651_p11 = scmp.lt.s32.totalorder (!%p594_p10), %s2397_s26, 23 }
  0x7b   : > { %s2628_s4 = smul.u32 (!%p594_p10), 1536, %s600_s30 }
  0x7d   : > { %s3486_s7 = scalar_lea.vmem (!%p594_p10), [#allocation3], %s2628_s4  ;;  %s2396_s4 = sshll.u32 (!%p594_p10), %s600_s30, 5 }
  0x7e   : > { %v2669_v1 = vld [vmem:[%s3486_s7 + $0x4] ss:$16 sps:$4 sm:$0xff] (!%p594_p10)   ;;  %v2671_v2 = vld [vmem:[%s3486_s7 + $0xc] ss:$16 sps:$4 sm:$0xff] (!%p594_p10)   ;;  %v2673_v3 = vld [vmem:[%s3486_s7] ss:$16 sps:$4 sm:$0xff] (!%p594_p10)  }
  0x7f   : > { %1865 = vmatprep.subr.bf16.mxu0 (!%p594_p10), %v2669_v1  ;;  %v2674_v4 = vld [vmem:[%s3486_s7 + $0x8] ss:$16 sps:$4 sm:$0xff] (!%p594_p10)   ;;  %1994 = vmatprep.subr.bf16.mxu1 (!%p594_p10), %v2671_v2  ;;  %v2675_v5 = vld [vmem:[%s3486_s7 + $0x24] ss:$16 sps:$4 sm:$0xff] (!%p594_p10)   ;;  %v2677_v6 = vld [vmem:[%s3486_s7 + $0x2c] ss:$16 sps:$4 sm:$0xff] (!%p594_p10)  }
  0x80   : > { %1866 = vmatpush1.bf16.msra.mxu0 (!%p594_p10), %v2673_v3  ;;  %1995 = vmatpush1.bf16.msra.mxu1 (!%p594_p10), %v2674_v4  ;;  %v2679_v7 = vld [vmem:[%s3486_s7 + $0x20] ss:$16 sps:$4 sm:$0xff] (!%p594_p10)   ;;  %v2680_v8 = vld [vmem:[%s3486_s7 + $0x28] ss:$16 sps:$4 sm:$0xff] (!%p594_p10)   ;;  %v2681_v9 = vld [vmem:[%s3486_s7 + $0x44] ss:$16 sps:$4 sm:$0xff] (!%p594_p10)  }
  0x81   : > { %1867 = vmatprep.subr.bf16.mxu0 %v2675_v5  ;;  %1996 = vmatprep.subr.bf16.mxu1 %v2677_v6  ;;  %v2683_v10 = vld [vmem:[%s3486_s7 + $0x4c] ss:$16 sps:$4 sm:$0xff]   ;;  %v2685_v11 = vld [vmem:[%s3486_s7 + $0x40] ss:$16 sps:$4 sm:$0xff]   ;;  %v2686_v12 = vld [vmem:[%s3486_s7 + $0x48] ss:$16 sps:$4 sm:$0xff]  }
  0x82   : > { %v2687_v13 = vld [vmem:[%s3486_s7 + $0x64] ss:$16 sps:$4 sm:$0xff]   ;;  %v2689_v14 = vld [vmem:[%s3486_s7 + $0x6c] ss:$16 sps:$4 sm:$0xff]   ;;  %v2691_v15 = vld [vmem:[%s3486_s7 + $0x60] ss:$16 sps:$4 sm:$0xff]  }
  0x83   : > { %v2692_v16 = vld [vmem:[%s3486_s7 + $0x68] ss:$16 sps:$4 sm:$0xff]   ;;  %v2693_v17 = vld [vmem:[%s3486_s7 + $0x84] ss:$16 sps:$4 sm:$0xff]   ;;  %v2695_v18 = vld [vmem:[%s3486_s7 + $0x8c] ss:$16 sps:$4 sm:$0xff]  }
  0x84   : > { %1868 = vmatpush1.bf16.msra.mxu0 %v2679_v7  ;;  %1997 = vmatpush1.bf16.msra.mxu1 %v2680_v8  ;;  %v2697_v19 = vld [vmem:[%s3486_s7 + $0x80] ss:$16 sps:$4 sm:$0xff]   ;;  %v2698_v20 = vld [vmem:[%s3486_s7 + $0x88] ss:$16 sps:$4 sm:$0xff]   ;;  %v2699_v21 = vld [vmem:[%s3486_s7 + $0xa4] ss:$16 sps:$4 sm:$0xff]  }
  0x85   : > { %1869 = vmatprep.subr.bf16.mxu0 %v2681_v9  ;;  %1998 = vmatprep.subr.bf16.mxu1 %v2683_v10  ;;  %v2701_v22 = vld [vmem:[%s3486_s7 + $0xac] ss:$16 sps:$4 sm:$0xff]   ;;  %v2703_v23 = vld [vmem:[%s3486_s7 + $0xa0] ss:$16 sps:$4 sm:$0xff]   ;;  %v2704_v24 = vld [vmem:[%s3486_s7 + $0xa8] ss:$16 sps:$4 sm:$0xff]  }
  0x86   : > { %v2705_v25 = vld [vmem:[%s3486_s7 + $0xc4] ss:$16 sps:$4 sm:$0xff]   ;;  %v2707_v26 = vld [vmem:[%s3486_s7 + $0xcc] ss:$16 sps:$4 sm:$0xff]   ;;  %v2709_v27 = vld [vmem:[%s3486_s7 + $0xc0] ss:$16 sps:$4 sm:$0xff]  }
  0x87   : > { %v2710_v28 = vld [vmem:[%s3486_s7 + $0xc8] ss:$16 sps:$4 sm:$0xff]   ;;  %v2711_v29 = vld [vmem:[%s3486_s7 + $0xe4] ss:$16 sps:$4 sm:$0xff]   ;;  %v2713_v30 = vld [vmem:[%s3486_s7 + $0xec] ss:$16 sps:$4 sm:$0xff]  }
  0x88   : > { %1870 = vmatpush1.bf16.msra.mxu0 %v2685_v11  ;;  %1999 = vmatpush1.bf16.msra.mxu1 %v2686_v12  ;;  %v2715_v31 = vld [vmem:[%s3486_s7 + $0xe0] ss:$16 sps:$4 sm:$0xff]   ;;  %v2716_v32 = vld [vmem:[%s3486_s7 + $0xe8] ss:$16 sps:$4 sm:$0xff]   ;;  %v2717_v33 = vld [vmem:[%s3486_s7 + $0x104] ss:$16 sps:$4 sm:$0xff]  }
  0x89   : > { %1871 = vmatprep.subr.bf16.mxu0 %v2687_v13  ;;  %2000 = vmatprep.subr.bf16.mxu1 %v2689_v14  ;;  %v2719_v34 = vld [vmem:[%s3486_s7 + $0x10c] ss:$16 sps:$4 sm:$0xff]   ;;  %v2721_v35 = vld [vmem:[%s3486_s7 + $0x100] ss:$16 sps:$4 sm:$0xff]   ;;  %v2722_v36 = vld [vmem:[%s3486_s7 + $0x108] ss:$16 sps:$4 sm:$0xff]  }
  0x8a   : > { %v2723_v37 = vld [vmem:[%s3486_s7 + $0x124] ss:$16 sps:$4 sm:$0xff]   ;;  %v2725_v38 = vld [vmem:[%s3486_s7 + $0x12c] ss:$16 sps:$4 sm:$0xff]   ;;  %v2727_v39 = vld [vmem:[%s3486_s7 + $0x120] ss:$16 sps:$4 sm:$0xff]  }
  0x8b   : > { %v2728_v40 = vld [vmem:[%s3486_s7 + $0x128] ss:$16 sps:$4 sm:$0xff]   ;;  %v2729_v41 = vld [vmem:[%s3486_s7 + $0x144] ss:$16 sps:$4 sm:$0xff]   ;;  %v2731_v42 = vld [vmem:[%s3486_s7 + $0x14c] ss:$16 sps:$4 sm:$0xff]  }
  0x8c   : > { %1872 = vmatpush1.bf16.msra.mxu0 %v2691_v15  ;;  %2001 = vmatpush1.bf16.msra.mxu1 %v2692_v16  ;;  %v2733_v43 = vld [vmem:[%s3486_s7 + $0x140] ss:$16 sps:$4 sm:$0xff]   ;;  %v2734_v44 = vld [vmem:[%s3486_s7 + $0x148] ss:$16 sps:$4 sm:$0xff]   ;;  %v2735_v45 = vld [vmem:[%s3486_s7 + $0x164] ss:$16 sps:$4 sm:$0xff]  }
  0x8d   : > { %1873 = vmatprep.subr.bf16.mxu0 %v2693_v17  ;;  %2002 = vmatprep.subr.bf16.mxu1 %v2695_v18  ;;  %v2737_v46 = vld [vmem:[%s3486_s7 + $0x16c] ss:$16 sps:$4 sm:$0xff]   ;;  %v2739_v47 = vld [vmem:[%s3486_s7 + $0x160] ss:$16 sps:$4 sm:$0xff]   ;;  %v2740_v48 = vld [vmem:[%s3486_s7 + $0x168] ss:$16 sps:$4 sm:$0xff]  }
  0x8e   : > { %v2741_v49 = vld [vmem:[%s3486_s7 + $0x184] ss:$16 sps:$4 sm:$0xff]   ;;  %v2743_v50 = vld [vmem:[%s3486_s7 + $0x18c] ss:$16 sps:$4 sm:$0xff]   ;;  %v2745_v51 = vld [vmem:[%s3486_s7 + $0x180] ss:$16 sps:$4 sm:$0xff]  }
  0x8f   : > { %v2746_v52 = vld [vmem:[%s3486_s7 + $0x188] ss:$16 sps:$4 sm:$0xff]   ;;  %v2747_v53 = vld [vmem:[%s3486_s7 + $0x1a4] ss:$16 sps:$4 sm:$0xff]   ;;  %v2749_v54 = vld [vmem:[%s3486_s7 + $0x1ac] ss:$16 sps:$4 sm:$0xff]  }
  0x90   : > { %1874 = vmatpush1.bf16.msra.mxu0 %v2697_v19  ;;  %2003 = vmatpush1.bf16.msra.mxu1 %v2698_v20  ;;  %v2751_v55 = vld [vmem:[%s3486_s7 + $0x1a0] ss:$16 sps:$4 sm:$0xff]   ;;  %v2752_v56 = vld [vmem:[%s3486_s7 + $0x1a8] ss:$16 sps:$4 sm:$0xff]   ;;  %v2753_v57 = vld [vmem:[%s3486_s7 + $0x1c4] ss:$16 sps:$4 sm:$0xff]  }
  0x91   : > { %1875 = vmatprep.subr.bf16.mxu0 %v2699_v21  ;;  %2004 = vmatprep.subr.bf16.mxu1 %v2701_v22  ;;  %v2755_v58 = vld [vmem:[%s3486_s7 + $0x1cc] ss:$16 sps:$4 sm:$0xff]   ;;  %v2757_v59 = vld [vmem:[%s3486_s7 + $0x1c0] ss:$16 sps:$4 sm:$0xff]   ;;  %v2758_v60 = vld [vmem:[%s3486_s7 + $0x1c8] ss:$16 sps:$4 sm:$0xff]  }
  0x92   : > { %v2759_v61 = vld [vmem:[%s3486_s7 + $0x1e4] ss:$16 sps:$4 sm:$0xff]   ;;  %v2761_v62 = vld [vmem:[%s3486_s7 + $0x1ec] ss:$16 sps:$4 sm:$0xff]   ;;  %v2763_v63 = vld [vmem:[%s3486_s7 + $0x1e0] ss:$16 sps:$4 sm:$0xff]  }
  0x93   : > { %v2764_v0 = vld [vmem:[%s3486_s7 + $0x1e8] ss:$16 sps:$4 sm:$0xff]   ;;  %v2770_v1 = vld [vmem:[%s3486_s7 + $0x204] ss:$16 sps:$4 sm:$0xff]   ;;  %v2773_v2 = vld [vmem:[%s3486_s7 + $0x20c] ss:$16 sps:$4 sm:$0xff]  }
  0x94   : > { %1876 = vmatpush1.bf16.msra.mxu0 %v2703_v23  ;;  %2005 = vmatpush1.bf16.msra.mxu1 %v2704_v24  ;;  %v2765_v3 = vld [vmem:[%s3722_s0] ss:$24 sps:$4 sm:$0xff]   ;;  %v2776_v6 = vld [vmem:[%s3486_s7 + $0x224] ss:$16 sps:$4 sm:$0xff]   ;;  %v2779_v7 = vld [vmem:[%s3486_s7 + $0x22c] ss:$16 sps:$4 sm:$0xff]  }
  0x95   : > { %1877 = vmatprep.subr.bf16.mxu0 %v2705_v25  ;;  %2006 = vmatprep.subr.bf16.mxu1 %v2707_v26  ;;  %v2768_v4 = vld [vmem:[%s3486_s7 + $0x200] ss:$16 sps:$4 sm:$0xff]   ;;  %v2771_v5 = vld [vmem:[%s3486_s7 + $0x208] ss:$16 sps:$4 sm:$0xff]   ;;  %v2782_v10 = vld [vmem:[%s3486_s7 + $0x244] ss:$16 sps:$4 sm:$0xff]  }
  0x96   : > { %v2774_v8 = vld [vmem:[%s3486_s7 + $0x220] ss:$16 sps:$4 sm:$0xff]   ;;  %v2777_v9 = vld [vmem:[%s3486_s7 + $0x228] ss:$16 sps:$4 sm:$0xff]   ;;  %v2785_v11 = vld [vmem:[%s3486_s7 + $0x24c] ss:$16 sps:$4 sm:$0xff]  }
  0x97   : > { %v2780_v12 = vld [vmem:[%s3486_s7 + $0x240] ss:$16 sps:$4 sm:$0xff]   ;;  %v2783_v13 = vld [vmem:[%s3486_s7 + $0x248] ss:$16 sps:$4 sm:$0xff]   ;;  %v2788_v14 = vld [vmem:[%s3486_s7 + $0x264] ss:$16 sps:$4 sm:$0xff]  }
  0x98   : > { %1878 = vmatpush1.bf16.msra.mxu0 %v2709_v27  ;;  %2007 = vmatpush1.bf16.msra.mxu1 %v2710_v28  ;;  %v2791_v15 = vld [vmem:[%s3486_s7 + $0x26c] ss:$16 sps:$4 sm:$0xff]   ;;  %v2786_v16 = vld [vmem:[%s3486_s7 + $0x260] ss:$16 sps:$4 sm:$0xff]   ;;  %v2789_v17 = vld [vmem:[%s3486_s7 + $0x268] ss:$16 sps:$4 sm:$0xff]  }
  0x99   : > { %1879 = vmatprep.subr.bf16.mxu0 %v2711_v29  ;;  %2008 = vmatprep.subr.bf16.mxu1 %v2713_v30  ;;  %v2794_v18 = vld [vmem:[%s3486_s7 + $0x284] ss:$16 sps:$4 sm:$0xff]   ;;  %v2797_v19 = vld [vmem:[%s3486_s7 + $0x28c] ss:$16 sps:$4 sm:$0xff]   ;;  %v2792_v20 = vld [vmem:[%s3486_s7 + $0x280] ss:$16 sps:$4 sm:$0xff]  }
  0x9a   : > { %v2795_v21 = vld [vmem:[%s3486_s7 + $0x288] ss:$16 sps:$4 sm:$0xff]   ;;  %v2800_v22 = vld [vmem:[%s3486_s7 + $0x2a4] ss:$16 sps:$4 sm:$0xff]   ;;  %v2803_v23 = vld [vmem:[%s3486_s7 + $0x2ac] ss:$16 sps:$4 sm:$0xff]  }
  0x9b   : > { %v2798_v24 = vld [vmem:[%s3486_s7 + $0x2a0] ss:$16 sps:$4 sm:$0xff]   ;;  %v2801_v25 = vld [vmem:[%s3486_s7 + $0x2a8] ss:$16 sps:$4 sm:$0xff]   ;;  %v2806_v26 = vld [vmem:[%s3486_s7 + $0x2c4] ss:$16 sps:$4 sm:$0xff]  }
  0x9c   : > { %1880 = vmatpush1.bf16.msra.mxu0 %v2715_v31  ;;  %2009 = vmatpush1.bf16.msra.mxu1 %v2716_v32  ;;  %v2809_v27 = vld [vmem:[%s3486_s7 + $0x2cc] ss:$16 sps:$4 sm:$0xff]   ;;  %v2804_v29 = vld [vmem:[%s3486_s7 + $0x2c0] ss:$16 sps:$4 sm:$0xff]   ;;  %v2807_v30 = vld [vmem:[%s3486_s7 + $0x2c8] ss:$16 sps:$4 sm:$0xff]  }
  0x9d   : > { %1881 = vmatprep.subr.bf16.mxu0 %v2717_v33  ;;  %2010 = vmatprep.subr.bf16.mxu1 %v2719_v34  ;;  %v2866_v28 = vld [vmem:[%s3722_s0 + $0xc] ss:$24 sps:$4 sm:$0xff]   ;;  %v2810_v33 = vld [vmem:[%s3486_s7 + $0x2e0] ss:$16 sps:$4 sm:$0xff]   ;;  %v2813_v34 = vld [vmem:[%s3486_s7 + $0x2e8] ss:$16 sps:$4 sm:$0xff]  }
  0x9e   : > { %v2812_v31 = vld [vmem:[%s3486_s7 + $0x2e4] ss:$16 sps:$4 sm:$0xff]   ;;  %v2815_v32 = vld [vmem:[%s3486_s7 + $0x2ec] ss:$16 sps:$4 sm:$0xff]   ;;  %s3734_s26 = smov (!%p651_p11, %s2397_s26), 23  ;;  %s635_s12 = scalar_lea.vmem [#allocation4], %s2396_s4 }
  0x9f   : > { %s653_s29 = scalar_lea.vmem %s3724_s2, %s3734_s26  ;;  %s2610_s30 = sshll.u32 (%p3077_p6), %s3012_s14, 4 }
  0xa0   : > { %1882 = vmatpush1.bf16.msra.mxu0 %v2721_v35  ;;  %2011 = vmatpush1.bf16.msra.mxu1 %v2722_v36  ;;  %v2818_v35 = vld [vmem:[%s3486_s7 + $0x304] ss:$16 sps:$4 sm:$0xff]   ;;  %v2821_v36 = vld [vmem:[%s3486_s7 + $0x30c] ss:$16 sps:$4 sm:$0xff]  }
  0xa1   : > { %1883 = vmatprep.subr.bf16.mxu0 %v2723_v37  ;;  %2012 = vmatprep.subr.bf16.mxu1 %v2725_v38  ;;  %v2816_v37 = vld [vmem:[%s3486_s7 + $0x300] ss:$16 sps:$4 sm:$0xff]   ;;  %v2819_v38 = vld [vmem:[%s3486_s7 + $0x308] ss:$16 sps:$4 sm:$0xff]  }
  0xa4   : > { %1884 = vmatpush1.bf16.msra.mxu0 %v2727_v39  ;;  %2013 = vmatpush1.bf16.msra.mxu1 %v2728_v40  ;;  %v2824_v39 = vld [vmem:[%s3486_s7 + $0x324] ss:$16 sps:$4 sm:$0xff]   ;;  %v2827_v40 = vld [vmem:[%s3486_s7 + $0x32c] ss:$16 sps:$4 sm:$0xff]  }
  0xa5   : > { %1885 = vmatprep.subr.bf16.mxu0 %v2729_v41  ;;  %2014 = vmatprep.subr.bf16.mxu1 %v2731_v42  ;;  %v2822_v41 = vld [vmem:[%s3486_s7 + $0x320] ss:$16 sps:$4 sm:$0xff]   ;;  %v2825_v42 = vld [vmem:[%s3486_s7 + $0x328] ss:$16 sps:$4 sm:$0xff]  }
  0xa8   : > { %1886 = vmatpush1.bf16.msra.mxu0 %v2733_v43  ;;  %2015 = vmatpush1.bf16.msra.mxu1 %v2734_v44  ;;  %v2830_v43 = vld [vmem:[%s3486_s7 + $0x344] ss:$16 sps:$4 sm:$0xff]   ;;  %v2833_v44 = vld [vmem:[%s3486_s7 + $0x34c] ss:$16 sps:$4 sm:$0xff]  }
  0xa9   : > { %1887 = vmatprep.subr.bf16.mxu0 %v2735_v45  ;;  %2016 = vmatprep.subr.bf16.mxu1 %v2737_v46  ;;  %v2828_v45 = vld [vmem:[%s3486_s7 + $0x340] ss:$16 sps:$4 sm:$0xff]   ;;  %v2831_v46 = vld [vmem:[%s3486_s7 + $0x348] ss:$16 sps:$4 sm:$0xff]  }
  0xac   : > { %1888 = vmatpush1.bf16.msra.mxu0 %v2739_v47  ;;  %2017 = vmatpush1.bf16.msra.mxu1 %v2740_v48  ;;  %v2836_v47 = vld [vmem:[%s3486_s7 + $0x364] ss:$16 sps:$4 sm:$0xff]   ;;  %v2839_v48 = vld [vmem:[%s3486_s7 + $0x36c] ss:$16 sps:$4 sm:$0xff]  }
  0xad   : > { %1889 = vmatprep.subr.bf16.mxu0 %v2741_v49  ;;  %2018 = vmatprep.subr.bf16.mxu1 %v2743_v50  ;;  %v2834_v49 = vld [vmem:[%s3486_s7 + $0x360] ss:$16 sps:$4 sm:$0xff]   ;;  %v2837_v50 = vld [vmem:[%s3486_s7 + $0x368] ss:$16 sps:$4 sm:$0xff]  }
  0xb0   : > { %1890 = vmatpush1.bf16.msra.mxu0 %v2745_v51  ;;  %2019 = vmatpush1.bf16.msra.mxu1 %v2746_v52  ;;  %v2842_v51 = vld [vmem:[%s3486_s7 + $0x384] ss:$16 sps:$4 sm:$0xff]   ;;  %v2845_v52 = vld [vmem:[%s3486_s7 + $0x38c] ss:$16 sps:$4 sm:$0xff]  }
  0xb1   : > { %1891 = vmatprep.subr.bf16.mxu0 %v2747_v53  ;;  %2020 = vmatprep.subr.bf16.mxu1 %v2749_v54  ;;  %v2840_v53 = vld [vmem:[%s3486_s7 + $0x380] ss:$16 sps:$4 sm:$0xff]   ;;  %v2843_v54 = vld [vmem:[%s3486_s7 + $0x388] ss:$16 sps:$4 sm:$0xff]  }
  0xb4   : > { %1892 = vmatpush1.bf16.msra.mxu0 %v2751_v55  ;;  %2021 = vmatpush1.bf16.msra.mxu1 %v2752_v56  ;;  %v2848_v55 = vld [vmem:[%s3486_s7 + $0x3a4] ss:$16 sps:$4 sm:$0xff]   ;;  %v2851_v56 = vld [vmem:[%s3486_s7 + $0x3ac] ss:$16 sps:$4 sm:$0xff]  }
  0xb5   : > { %1893 = vmatprep.subr.bf16.mxu0 %v2753_v57  ;;  %2022 = vmatprep.subr.bf16.mxu1 %v2755_v58  ;;  %v2846_v57 = vld [vmem:[%s3486_s7 + $0x3a0] ss:$16 sps:$4 sm:$0xff]   ;;  %v2849_v58 = vld [vmem:[%s3486_s7 + $0x3a8] ss:$16 sps:$4 sm:$0xff]  }
  0xb8   : > { %1894 = vmatpush1.bf16.msra.mxu0 %v2757_v59  ;;  %2023 = vmatpush1.bf16.msra.mxu1 %v2758_v60  ;;  %v2854_v59 = vld [vmem:[%s3486_s7 + $0x3c4] ss:$16 sps:$4 sm:$0xff]   ;;  %v2857_v60 = vld [vmem:[%s3486_s7 + $0x3cc] ss:$16 sps:$4 sm:$0xff]  }
  0xb9   : > { %1895 = vmatprep.subr.bf16.mxu0 %v2759_v61  ;;  %2024 = vmatprep.subr.bf16.mxu1 %v2761_v62  ;;  %v2852_v61 = vld [vmem:[%s3486_s7 + $0x3c0] ss:$16 sps:$4 sm:$0xff]   ;;  %v2855_v62 = vld [vmem:[%s3486_s7 + $0x3c8] ss:$16 sps:$4 sm:$0xff]  }
  0xbc   : > { %1896 = vmatpush1.bf16.msra.mxu0 %v2763_v63  ;;  %2025 = vmatpush1.bf16.msra.mxu1 %v2764_v0  ;;  %v2860_v63 = vld [vmem:[%s3486_s7 + $0x3e4] ss:$16 sps:$4 sm:$0xff]   ;;  %v2863_v0 = vld [vmem:[%s3486_s7 + $0x3ec] ss:$16 sps:$4 sm:$0xff]  }
  0xbd   : > { %1908 = vmatprep.subr.bf16.mxu0 %v2770_v1  ;;  %2037 = vmatprep.subr.bf16.mxu1 %v2773_v2  ;;  %v2858_v1 = vld [vmem:[%s3486_s7 + $0x3e0] ss:$16 sps:$4 sm:$0xff]   ;;  %v2861_v2 = vld [vmem:[%s3486_s7 + $0x3e8] ss:$16 sps:$4 sm:$0xff]  }
  0xbf   : > { %1898 = vmatmul.mubr.bf16.vlgmr.msra.gmra.mrb[0].mxu0 %v2765_v3  ;;  %2027 = vmatmul.mubr.bf16.vlgmr.msra.gmra.mrb[0].mxu1 %v2765_v3  ;;  %v2869_v3 = vld [vmem:[%s3486_s7 + $0x404] ss:$16 sps:$4 sm:$0xff]  }
  0xc0   : > { %1909 = vmatpush1.bf16.msra.mxu0 %v2768_v4  ;;  %2038 = vmatpush1.bf16.msra.mxu1 %v2771_v5  ;;  %v2872_v4 = vld [vmem:[%s3486_s7 + $0x40c] ss:$16 sps:$4 sm:$0xff]   ;;  %v2864_v5 = vld [vmem:[%s3722_s0 + $0x8] ss:$24 sps:$4 sm:$0xff]  }
  0xc1   : > { %1910 = vmatprep.subr.bf16.mxu0 %v2776_v6  ;;  %2039 = vmatprep.subr.bf16.mxu1 %v2779_v7  ;;  %v2867_v6 = vld [vmem:[%s3486_s7 + $0x400] ss:$16 sps:$4 sm:$0xff]   ;;  %v2870_v7 = vld [vmem:[%s3486_s7 + $0x408] ss:$16 sps:$4 sm:$0xff]  }
  0xc2   : > { %1940 = vmatprep.mubr.bf16.mxu0 %v2866_v28  ;;  %2069 = vmatprep.mubr.bf16.mxu1 %v2866_v28  ;;  %v2900_v28 = vld [vmem:[%s3486_s7 + $0x4a8] ss:$16 sps:$4 sm:$0xff]  }
  0xc4   : > { %1911 = vmatpush1.bf16.msra.mxu0 %v2774_v8  ;;  %2040 = vmatpush1.bf16.msra.mxu1 %v2777_v9  ;;  %v2875_v8 = vld [vmem:[%s3486_s7 + $0x424] ss:$16 sps:$4 sm:$0xff]   ;;  %v2878_v9 = vld [vmem:[%s3486_s7 + $0x42c] ss:$16 sps:$4 sm:$0xff]  }
  0xc5   : > { %1912 = vmatprep.subr.bf16.mxu0 %v2782_v10  ;;  %2041 = vmatprep.subr.bf16.mxu1 %v2785_v11  ;;  %v2965_v10 = vld [vmem:[%s3722_s0 + $0x14] ss:$24 sps:$4 sm:$0xff]   ;;  %v2873_v11 = vld [vmem:[%s3486_s7 + $0x420] ss:$16 sps:$4 sm:$0xff]  }
  0xc8   : > { %1913 = vmatpush1.bf16.msra.mxu0 %v2780_v12  ;;  %2042 = vmatpush1.bf16.msra.mxu1 %v2783_v13  ;;  %v2876_v12 = vld [vmem:[%s3486_s7 + $0x428] ss:$16 sps:$4 sm:$0xff]   ;;  %v2881_v13 = vld [vmem:[%s3486_s7 + $0x444] ss:$16 sps:$4 sm:$0xff]  }
  0xc9   : > { %1914 = vmatprep.subr.bf16.mxu0 %v2788_v14  ;;  %2043 = vmatprep.subr.bf16.mxu1 %v2791_v15  ;;  %v2884_v14 = vld [vmem:[%s3486_s7 + $0x44c] ss:$16 sps:$4 sm:$0xff]   ;;  %v2879_v15 = vld [vmem:[%s3486_s7 + $0x440] ss:$16 sps:$4 sm:$0xff]  }
  0xcc   : > { %1915 = vmatpush1.bf16.msra.mxu0 %v2786_v16  ;;  %2044 = vmatpush1.bf16.msra.mxu1 %v2789_v17  ;;  %v2882_v16 = vld [vmem:[%s3486_s7 + $0x448] ss:$16 sps:$4 sm:$0xff]   ;;  %v2887_v17 = vld [vmem:[%s3486_s7 + $0x464] ss:$16 sps:$4 sm:$0xff]  }
  0xcd   : > { %1916 = vmatprep.subr.bf16.mxu0 %v2794_v18  ;;  %2045 = vmatprep.subr.bf16.mxu1 %v2797_v19  ;;  %v2890_v18 = vld [vmem:[%s3486_s7 + $0x46c] ss:$16 sps:$4 sm:$0xff]   ;;  %v2885_v19 = vld [vmem:[%s3486_s7 + $0x460] ss:$16 sps:$4 sm:$0xff]  }
  0xd0   : > { %1917 = vmatpush1.bf16.msra.mxu0 %v2792_v20  ;;  %2046 = vmatpush1.bf16.msra.mxu1 %v2795_v21  ;;  %v2888_v20 = vld [vmem:[%s3486_s7 + $0x468] ss:$16 sps:$4 sm:$0xff]   ;;  %v2893_v21 = vld [vmem:[%s3486_s7 + $0x484] ss:$16 sps:$4 sm:$0xff]  }
  0xd1   : > { %1918 = vmatprep.subr.bf16.mxu0 %v2800_v22  ;;  %2047 = vmatprep.subr.bf16.mxu1 %v2803_v23  ;;  %v2896_v22 = vld [vmem:[%s3486_s7 + $0x48c] ss:$16 sps:$4 sm:$0xff]   ;;  %v2891_v23 = vld [vmem:[%s3486_s7 + $0x480] ss:$16 sps:$4 sm:$0xff]  }
  0xd4   : > { %1919 = vmatpush1.bf16.msra.mxu0 %v2798_v24  ;;  %2048 = vmatpush1.bf16.msra.mxu1 %v2801_v25  ;;  %v2894_v24 = vld [vmem:[%s3486_s7 + $0x488] ss:$16 sps:$4 sm:$0xff]   ;;  %v2899_v25 = vld [vmem:[%s3486_s7 + $0x4a4] ss:$16 sps:$4 sm:$0xff]  }
  0xd5   : > { %1920 = vmatprep.subr.bf16.mxu0 %v2806_v26  ;;  %2049 = vmatprep.subr.bf16.mxu1 %v2809_v27  ;;  %v2902_v26 = vld [vmem:[%s3486_s7 + $0x4ac] ss:$16 sps:$4 sm:$0xff]   ;;  %v2897_v27 = vld [vmem:[%s3486_s7 + $0x4a0] ss:$16 sps:$4 sm:$0xff]  }
  0xd8   : > { %1921 = vmatpush1.bf16.msra.mxu0 %v2804_v29  ;;  %2050 = vmatpush1.bf16.msra.mxu1 %v2807_v30  ;;  %v2905_v29 = vld [vmem:[%s3486_s7 + $0x4c4] ss:$16 sps:$4 sm:$0xff]   ;;  %v2908_v30 = vld [vmem:[%s3486_s7 + $0x4cc] ss:$16 sps:$4 sm:$0xff]  }
  0xd9   : > { %1922 = vmatprep.subr.bf16.mxu0 %v2812_v31  ;;  %2051 = vmatprep.subr.bf16.mxu1 %v2815_v32  ;;  %v2903_v31 = vld [vmem:[%s3486_s7 + $0x4c0] ss:$16 sps:$4 sm:$0xff]   ;;  %v2906_v32 = vld [vmem:[%s3486_s7 + $0x4c8] ss:$16 sps:$4 sm:$0xff]  }
  0xdc   : > { %1923 = vmatpush1.bf16.msra.mxu0 %v2810_v33  ;;  %2052 = vmatpush1.bf16.msra.mxu1 %v2813_v34  ;;  %v2911_v33 = vld [vmem:[%s3486_s7 + $0x4e4] ss:$16 sps:$4 sm:$0xff]   ;;  %v2914_v34 = vld [vmem:[%s3486_s7 + $0x4ec] ss:$16 sps:$4 sm:$0xff]  }
  0xdd   : > { %1924 = vmatprep.subr.bf16.mxu0 %v2818_v35  ;;  %2053 = vmatprep.subr.bf16.mxu1 %v2821_v36  ;;  %v2909_v35 = vld [vmem:[%s3486_s7 + $0x4e0] ss:$16 sps:$4 sm:$0xff]   ;;  %v2912_v36 = vld [vmem:[%s3486_s7 + $0x4e8] ss:$16 sps:$4 sm:$0xff]  }
  0xe0   : > { %1925 = vmatpush1.bf16.msra.mxu0 %v2816_v37  ;;  %2054 = vmatpush1.bf16.msra.mxu1 %v2819_v38  ;;  %v2917_v37 = vld [vmem:[%s3486_s7 + $0x504] ss:$16 sps:$4 sm:$0xff]   ;;  %v2920_v38 = vld [vmem:[%s3486_s7 + $0x50c] ss:$16 sps:$4 sm:$0xff]  }
  0xe1   : > { %1926 = vmatprep.subr.bf16.mxu0 %v2824_v39  ;;  %2055 = vmatprep.subr.bf16.mxu1 %v2827_v40  ;;  %v2915_v39 = vld [vmem:[%s3486_s7 + $0x500] ss:$16 sps:$4 sm:$0xff]   ;;  %v2918_v40 = vld [vmem:[%s3486_s7 + $0x508] ss:$16 sps:$4 sm:$0xff]  }
  0xe4   : > { %1927 = vmatpush1.bf16.msra.mxu0 %v2822_v41  ;;  %2056 = vmatpush1.bf16.msra.mxu1 %v2825_v42  ;;  %v2923_v41 = vld [vmem:[%s3486_s7 + $0x524] ss:$16 sps:$4 sm:$0xff]   ;;  %v2926_v42 = vld [vmem:[%s3486_s7 + $0x52c] ss:$16 sps:$4 sm:$0xff]  }
  0xe5   : > { %1928 = vmatprep.subr.bf16.mxu0 %v2830_v43  ;;  %2057 = vmatprep.subr.bf16.mxu1 %v2833_v44  ;;  %v2921_v43 = vld [vmem:[%s3486_s7 + $0x520] ss:$16 sps:$4 sm:$0xff]   ;;  %v2924_v44 = vld [vmem:[%s3486_s7 + $0x528] ss:$16 sps:$4 sm:$0xff]  }
  0xe8   : > { %1929 = vmatpush1.bf16.msra.mxu0 %v2828_v45  ;;  %2058 = vmatpush1.bf16.msra.mxu1 %v2831_v46  ;;  %v2929_v45 = vld [vmem:[%s3486_s7 + $0x544] ss:$16 sps:$4 sm:$0xff]   ;;  %v2932_v46 = vld [vmem:[%s3486_s7 + $0x54c] ss:$16 sps:$4 sm:$0xff]  }
  0xe9   : > { %1930 = vmatprep.subr.bf16.mxu0 %v2836_v47  ;;  %2059 = vmatprep.subr.bf16.mxu1 %v2839_v48  ;;  %v2927_v47 = vld [vmem:[%s3486_s7 + $0x540] ss:$16 sps:$4 sm:$0xff]   ;;  %v2930_v48 = vld [vmem:[%s3486_s7 + $0x548] ss:$16 sps:$4 sm:$0xff]  }
  0xec   : > { %1931 = vmatpush1.bf16.msra.mxu0 %v2834_v49  ;;  %2060 = vmatpush1.bf16.msra.mxu1 %v2837_v50  ;;  %v2935_v49 = vld [vmem:[%s3486_s7 + $0x564] ss:$16 sps:$4 sm:$0xff]   ;;  %v2938_v50 = vld [vmem:[%s3486_s7 + $0x56c] ss:$16 sps:$4 sm:$0xff]  }
  0xed   : > { %1932 = vmatprep.subr.bf16.mxu0 %v2842_v51  ;;  %2061 = vmatprep.subr.bf16.mxu1 %v2845_v52  ;;  %v2933_v51 = vld [vmem:[%s3486_s7 + $0x560] ss:$16 sps:$4 sm:$0xff]   ;;  %v2936_v52 = vld [vmem:[%s3486_s7 + $0x568] ss:$16 sps:$4 sm:$0xff]  }
  0xf0   : > { %1933 = vmatpush1.bf16.msra.mxu0 %v2840_v53  ;;  %2062 = vmatpush1.bf16.msra.mxu1 %v2843_v54  ;;  %v2941_v53 = vld [vmem:[%s3486_s7 + $0x584] ss:$16 sps:$4 sm:$0xff]   ;;  %v2944_v54 = vld [vmem:[%s3486_s7 + $0x58c] ss:$16 sps:$4 sm:$0xff]  }
  0xf1   : > { %1934 = vmatprep.subr.bf16.mxu0 %v2848_v55  ;;  %2063 = vmatprep.subr.bf16.mxu1 %v2851_v56  ;;  %v2939_v55 = vld [vmem:[%s3486_s7 + $0x580] ss:$16 sps:$4 sm:$0xff]   ;;  %v2942_v56 = vld [vmem:[%s3486_s7 + $0x588] ss:$16 sps:$4 sm:$0xff]  }
  0xf4   : > { %1935 = vmatpush1.bf16.msra.mxu0 %v2846_v57  ;;  %2064 = vmatpush1.bf16.msra.mxu1 %v2849_v58  ;;  %v2947_v57 = vld [vmem:[%s3486_s7 + $0x5a4] ss:$16 sps:$4 sm:$0xff]   ;;  %v2950_v58 = vld [vmem:[%s3486_s7 + $0x5ac] ss:$16 sps:$4 sm:$0xff]  }
  0xf5   : > { %1936 = vmatprep.subr.bf16.mxu0 %v2854_v59  ;;  %2065 = vmatprep.subr.bf16.mxu1 %v2857_v60  ;;  %v2945_v59 = vld [vmem:[%s3486_s7 + $0x5a0] ss:$16 sps:$4 sm:$0xff]   ;;  %v2948_v60 = vld [vmem:[%s3486_s7 + $0x5a8] ss:$16 sps:$4 sm:$0xff]  }
  0xf8   : > { %1937 = vmatpush1.bf16.msra.mxu0 %v2852_v61  ;;  %2066 = vmatpush1.bf16.msra.mxu1 %v2855_v62  ;;  %v2953_v61 = vld [vmem:[%s3486_s7 + $0x5c4] ss:$16 sps:$4 sm:$0xff]   ;;  %v2956_v62 = vld [vmem:[%s3486_s7 + $0x5cc] ss:$16 sps:$4 sm:$0xff]  }
  0xf9   : > { %1938 = vmatprep.subr.bf16.mxu0 %v2860_v63  ;;  %2067 = vmatprep.subr.bf16.mxu1 %v2863_v0  ;;  %v2951_v63 = vld [vmem:[%s3486_s7 + $0x5c0] ss:$16 sps:$4 sm:$0xff]   ;;  %v2954_v0 = vld [vmem:[%s3486_s7 + $0x5c8] ss:$16 sps:$4 sm:$0xff]  }
  0xfc   : > { %1939 = vmatpush1.bf16.msra.mxu0 %v2858_v1  ;;  %2068 = vmatpush1.bf16.msra.mxu1 %v2861_v2  ;;  %v2959_v1 = vld [vmem:[%s3486_s7 + $0x5e4] ss:$16 sps:$4 sm:$0xff]   ;;  %v2962_v2 = vld [vmem:[%s3486_s7 + $0x5ec] ss:$16 sps:$4 sm:$0xff]  }
  0xfd   : > { %1951 = vmatprep.subr.bf16.mxu0 %v2869_v3  ;;  %2080 = vmatprep.subr.bf16.mxu1 %v2872_v4  ;;  %v2957_v3 = vld [vmem:[%s3486_s7 + $0x5e0] ss:$16 sps:$4 sm:$0xff]   ;;  %v2960_v4 = vld [vmem:[%s3486_s7 + $0x5e8] ss:$16 sps:$4 sm:$0xff]   ;;  %s2260_s7 = scalar_lea.vmem (%p3077_p6), %s3725_s3, %s2610_s30 }
  0xff   : > { %1941 = vmatmul.mubr.bf16.vlgmr.msra.gmra.mrb[0].mxu0 %v2864_v5  ;;  %2070 = vmatmul.mubr.bf16.vlgmr.msra.gmra.mrb[0].mxu1 %v2864_v5  ;;  %v2963_v5 = vld [vmem:[%s3722_s0 + $0x10] ss:$24 sps:$4 sm:$0xff]  }
 0x100   : > { %1952 = vmatpush1.bf16.msra.mxu0 %v2867_v6  ;;  %2081 = vmatpush1.bf16.msra.mxu1 %v2870_v7  ;;  %v2152_v6 = vlaneseq }
 0x101   : > { %1953 = vmatprep.subr.bf16.mxu0 %v2875_v8  ;;  %2082 = vmatprep.subr.bf16.mxu1 %v2878_v9 }
 0x102   : > { %1983 = vmatprep.mubr.bf16.mxu0 %v2965_v10  ;;  %2112 = vmatprep.mubr.bf16.mxu1 %v2965_v10  ;;  %v2153_v7 = vshrl.u32 %v2152_v6, 7  ;;  %v2150_v10 = vld [vmem:[%s653_s29] sm:$0xf] }
 0x104   : > { %1954 = vmatpush1.bf16.msra.mxu0 %v2873_v11  ;;  %2083 = vmatpush1.bf16.msra.mxu1 %v2876_v12  ;;  %v2154_v8 = vsub.s32 0, %v2153_v7  ;;  %v2162_v9 = vsub.s32 2, %v2153_v7  ;;  %v2158_v11 = vsub.s32 1, %v2153_v7  ;;  %v2166_v12 = vsub.s32 3, %v2153_v7 }
 0x105   : > { %1955 = vmatprep.subr.bf16.mxu0 %v2881_v13  ;;  %2084 = vmatprep.subr.bf16.mxu1 %v2884_v14 }
 0x106   : > { %v2155_v13 = vrot.slane %v2150_v10, %v2154_v8  ;;  %v2163_v14 = vrot.slane %v2150_v10, %v2162_v9 }
 0x108   : > { %1956 = vmatpush1.bf16.msra.mxu0 %v2879_v15  ;;  %2085 = vmatpush1.bf16.msra.mxu1 %v2882_v16  ;;  %v2159_v15 = vrot.slane %v2150_v10, %v2158_v11  ;;  %v2167_v16 = vrot.slane %v2150_v10, %v2166_v12 }
 0x109   : > { %1957 = vmatprep.subr.bf16.mxu0 %v2887_v17  ;;  %2086 = vmatprep.subr.bf16.mxu1 %v2890_v18 }
 0x10c   : > { %1958 = vmatpush1.bf16.msra.mxu0 %v2885_v19  ;;  %2087 = vmatpush1.bf16.msra.mxu1 %v2888_v20 }
 0x10d   : > { %1959 = vmatprep.subr.bf16.mxu0 %v2893_v21  ;;  %2088 = vmatprep.subr.bf16.mxu1 %v2896_v22 }
 0x110   : > { %1960 = vmatpush1.bf16.msra.mxu0 %v2891_v23  ;;  %2089 = vmatpush1.bf16.msra.mxu1 %v2894_v24 }
 0x111   : > { %1961 = vmatprep.subr.bf16.mxu0 %v2899_v25  ;;  %2090 = vmatprep.subr.bf16.mxu1 %v2902_v26 }
 0x114   : > { %1962 = vmatpush1.bf16.msra.mxu0 %v2897_v27  ;;  %2091 = vmatpush1.bf16.msra.mxu1 %v2900_v28 }
 0x115   : > { %1963 = vmatprep.subr.bf16.mxu0 %v2905_v29  ;;  %2092 = vmatprep.subr.bf16.mxu1 %v2908_v30 }
 0x118   : > { %1964 = vmatpush1.bf16.msra.mxu0 %v2903_v31  ;;  %2093 = vmatpush1.bf16.msra.mxu1 %v2906_v32 }
 0x119   : > { %1965 = vmatprep.subr.bf16.mxu0 %v2911_v33  ;;  %2094 = vmatprep.subr.bf16.mxu1 %v2914_v34 }
 0x11c   : > { %1966 = vmatpush1.bf16.msra.mxu0 %v2909_v35  ;;  %2095 = vmatpush1.bf16.msra.mxu1 %v2912_v36 }
 0x11d   : > { %1967 = vmatprep.subr.bf16.mxu0 %v2917_v37  ;;  %2096 = vmatprep.subr.bf16.mxu1 %v2920_v38 }
 0x120   : > { %1968 = vmatpush1.bf16.msra.mxu0 %v2915_v39  ;;  %2097 = vmatpush1.bf16.msra.mxu1 %v2918_v40 }
 0x121   : > { %1969 = vmatprep.subr.bf16.mxu0 %v2923_v41  ;;  %2098 = vmatprep.subr.bf16.mxu1 %v2926_v42 }
 0x124   : > { %1970 = vmatpush1.bf16.msra.mxu0 %v2921_v43  ;;  %2099 = vmatpush1.bf16.msra.mxu1 %v2924_v44 }
 0x125   : > { %1971 = vmatprep.subr.bf16.mxu0 %v2929_v45  ;;  %2100 = vmatprep.subr.bf16.mxu1 %v2932_v46 }
 0x128   : > { %1972 = vmatpush1.bf16.msra.mxu0 %v2927_v47  ;;  %2101 = vmatpush1.bf16.msra.mxu1 %v2930_v48 }
 0x129   : > { %1973 = vmatprep.subr.bf16.mxu0 %v2935_v49  ;;  %2102 = vmatprep.subr.bf16.mxu1 %v2938_v50 }
 0x12c   : > { %1974 = vmatpush1.bf16.msra.mxu0 %v2933_v51  ;;  %2103 = vmatpush1.bf16.msra.mxu1 %v2936_v52 }
 0x12d   : > { %1975 = vmatprep.subr.bf16.mxu0 %v2941_v53  ;;  %2104 = vmatprep.subr.bf16.mxu1 %v2944_v54 }
 0x130   : > { %1976 = vmatpush1.bf16.msra.mxu0 %v2939_v55  ;;  %2105 = vmatpush1.bf16.msra.mxu1 %v2942_v56 }
 0x131   : > { %1977 = vmatprep.subr.bf16.mxu0 %v2947_v57  ;;  %2106 = vmatprep.subr.bf16.mxu1 %v2950_v58 }
 0x134   : > { %1978 = vmatpush1.bf16.msra.mxu0 %v2945_v59  ;;  %2107 = vmatpush1.bf16.msra.mxu1 %v2948_v60 }
 0x135   : > { %1979 = vmatprep.subr.bf16.mxu0 %v2953_v61  ;;  %2108 = vmatprep.subr.bf16.mxu1 %v2956_v62 }
 0x138   : > { %1980 = vmatpush1.bf16.msra.mxu0 %v2951_v63  ;;  %2109 = vmatpush1.bf16.msra.mxu1 %v2954_v0 }
 0x139   : > { %1981 = vmatprep.subr.bf16.mxu0 %v2959_v1  ;;  %2110 = vmatprep.subr.bf16.mxu1 %v2962_v2 }
 0x13c   : > { %1982 = vmatpush1.bf16.msra.mxu0 %v2957_v3  ;;  %2111 = vmatpush1.bf16.msra.mxu1 %v2960_v4 }
 0x13f   : > { %1984 = vmatmul.mubr.bf16.vlgmr.msra.gmra.mrb[0].mxu0 %v2963_v5  ;;  %2113 = vmatmul.mubr.bf16.vlgmr.msra.gmra.mrb[0].mxu1 %v2963_v5 }
 0x212   : > { %v1985_v17 = vpop.f32.mrb[0].mxu0  ;;  %v2114_v18 = vpop.f32.mrb[0].mxu1 }
 0x213   : > { %v2172_v19 = vadd.f32 %v2155_v13, %v1985_v17  ;;  %v2174_v20 = vadd.f32 %v2163_v14, %v2114_v18  ;;  %v1987_v21 = vpop.f32.mrb[1].mxu0  ;;  %v2116_v22 = vpop.f32.mrb[1].mxu1 }
 0x214   : > { %v2173_v23 = vadd.f32 %v2159_v15, %v1987_v21  ;;  %v2175_v24 = vadd.f32 %v2167_v16, %v2116_v22  ;;  %v1989_v25 = vpop.f32.mrb[2].mxu0  ;;  %v2118_v26 = vpop.f32.mrb[2].mxu1 }
 0x215   : > { %v2188_v27 = vmul.f32 0.70710677, %v2172_v19  ;;  %v2190_v28 = vmul.f32 0.70710677, %v2174_v20  ;;  %v2176_v31 = vadd.f32 %v2155_v13, %v1989_v25  ;;  %v2178_v32 = vadd.f32 %v2163_v14, %v2118_v26  ;;  %v1991_v33 = vpop.f32.mrb[3].mxu0  ;;  %v2120_v34 = vpop.f32.mrb[3].mxu1 }
 0x216   : > { %v2189_v29 = vmul.f32 0.70710677, %v2173_v23  ;;  %v2191_v30 = vmul.f32 0.70710677, %v2175_v24  ;;  %v2177_v35 = vadd.f32 %v2159_v15, %v1991_v33  ;;  %v2179_v36 = vadd.f32 %v2167_v16, %v2120_v34 }
 0x217   : > { %2966 = verf.f32 %v2188_v27  ;;  %v2192_v37 = vmul.f32 0.70710677, %v2176_v31  ;;  %v2194_v38 = vmul.f32 0.70710677, %v2178_v32  ;;  %v2180_v43 = vmul.f32 0.5, %v2172_v19 }
 0x218   : > { %2968 = verf.f32 %v2190_v28  ;;  %v2193_v39 = vmul.f32 0.70710677, %v2177_v35  ;;  %v2195_v40 = vmul.f32 0.70710677, %v2179_v36  ;;  %v2182_v46 = vmul.f32 0.5, %v2174_v20 }
 0x219   : > { %2970 = verf.f32 %v2189_v29  ;;  %v2181_v50 = vmul.f32 0.5, %v2173_v23  ;;  %v2183_v54 = vmul.f32 0.5, %v2175_v24  ;;  %v2184_v58 = vmul.f32 0.5, %v2176_v31 }
 0x21a   : > { %2972 = verf.f32 %v2191_v30  ;;  %v2186_v62 = vmul.f32 0.5, %v2178_v32  ;;  %v2185_v3 = vmul.f32 0.5, %v2177_v35  ;;  %v2187_v7 = vmul.f32 0.5, %v2179_v36 }
 0x21b   : > { %2974 = verf.f32 %v2192_v37 }
 0x21c   : > { %2976 = verf.f32 %v2194_v38 }
 0x21d   : > { %2978 = verf.f32 %v2193_v39 }
 0x21e   : > { %2980 = verf.f32 %v2195_v40 }
 0x221   : > { %v2967_v41 = vpop.eup %2966 }
 0x222   : > { %v2969_v42 = vpop.eup %2968  ;;  %v2204_v44 = vadd.f32 1.0, %v2967_v41 }
 0x223   : > { %v2971_v45 = vpop.eup %2970  ;;  %v2206_v47 = vadd.f32 1.0, %v2969_v42 }
 0x224   : > { %v2973_v48 = vpop.eup %2972  ;;  %v2212_v49 = vmul.f32 %v2204_v44, %v2180_v43  ;;  %v2205_v51 = vadd.f32 1.0, %v2971_v45 }
 0x225   : > { %v2975_v52 = vpop.eup %2974  ;;  %v2214_v53 = vmul.f32 %v2206_v47, %v2182_v46  ;;  %v2207_v55 = vadd.f32 1.0, %v2973_v48 }
 0x226   : > { %v2977_v56 = vpop.eup %2976  ;;  %v2213_v57 = vmul.f32 %v2205_v51, %v2181_v50  ;;  %v2208_v59 = vadd.f32 1.0, %v2975_v52 }
 0x227   : > { %v2979_v60 = vpop.eup %2978  ;;  %v2215_v61 = vmul.f32 %v2207_v55, %v2183_v54  ;;  %v2210_v63 = vadd.f32 1.0, %v2977_v56 }
 0x228   : > { %v2981_v0 = vpop.eup %2980  ;;  %v2606_v1 = vpack.c.bf16 %v2213_v57, %v2212_v49  ;;  %v2216_v2 = vmul.f32 %v2208_v59, %v2184_v58  ;;  %v2209_v4 = vadd.f32 1.0, %v2979_v60 }
 0x229   : > { %v2607_v5 = vpack.c.bf16 %v2215_v61, %v2214_v53  ;;  %v2218_v6 = vmul.f32 %v2210_v63, %v2186_v62  ;;  %v2211_v8 = vadd.f32 1.0, %v2981_v0  ;;  %2254 = sbr.rel (!%p3077_p6) target bundleno = 568 (0x238), region = 67 }
 0x22a   : > { %2244 = vst [vmem:[%s635_s12] sm:$0xff] %v2606_v1  ;;  %v2217_v9 = vmul.f32 %v2209_v4, %v2185_v3 }
 0x22b   : > { %2245 = vst [vmem:[%s635_s12 + $0x8] sm:$0xff] %v2607_v5  ;;  %v2219_v10 = vmul.f32 %v2211_v8, %v2187_v7 }
 0x22c   : > { %v2608_v11 = vpack.c.bf16 %v2217_v9, %v2216_v2 }
 0x22d   : > { %v2609_v12 = vpack.c.bf16 %v2219_v10, %v2218_v6 }
 0x22e   : > { %2246 = vst [vmem:[%s635_s12 + $0x10] sm:$0xff] %v2608_v11 }
 0x22f   : > { %2247 = vst [vmem:[%s635_s12 + $0x18] sm:$0xff] %v2609_v12 }
 0x231   : > { %v2273_v13 = vld [vmem:[%s635_s12] sm:$0xff] }
 0x232   : > { %v2275_v14 = vld [vmem:[%s635_s12 + $0x8] sm:$0xff]  ;;  %2274 = vst [vmem:[%s2260_s7] sm:$0xff] %v2273_v13 }
 0x233   : > { %2276 = vst [vmem:[%s2260_s7 + $0x8] sm:$0xff] %v2275_v14 }
 0x235   : > { %v2277_v15 = vld [vmem:[%s635_s12 + $0x10] sm:$0xff] }
 0x236   : > { %v2279_v16 = vld [vmem:[%s635_s12 + $0x18] sm:$0xff]  ;;  %2278 = vst [vmem:[%s2260_s7 + $0x60] sm:$0xff] %v2277_v15 }
 0x237   : > { %2280 = vst [vmem:[%s2260_s7 + $0x68] sm:$0xff] %v2279_v16 }
 0x238 PF: > { %s13_s16 = sadd.s32 1, %s3020_s16   ;;  %s3727_s12 = smov %s3008_s13 }
 0x239   : > { %p10_p12 = scmp.ge.s32.totalorder %s13_s16, 8   ;;  %s3728_s13 = smov %s3082_s22 }
 0x23a   : > { %s3729_s14 = smov %s3016_s15  ;;  %s3730_s15 = smov %s3732_s17 }
 0x23b   :  { %12 = sbr.rel (!%p10_p12) target bundleno = 3 (0x3), region = 127 }

// kernel: weighted_bce_bert_forward.22
= control target key start
LH: loop header
LB: loop body
LE: loop exit
PB: predicated region body
PF: predicated region fallthrough
CT: control target
= control target key end

     0   :  { %s3764_s0 = inlined_call_operand.vmem [shape: bf16[16,3072], index: 0, kind: input, shape index: {}]   ;;  %s3765_s1 = inlined_call_operand.vmem [shape: bf16[3072,768], index: 1, kind: input, shape index: {}]   ;;  %s3766_s2 = inlined_call_operand.vmem [shape: f32[1,768], index: 2, kind: input, shape index: {}]   ;;  %s3767_s3 = inlined_call_operand.vmem [shape: bf16[16,768], index: 3, kind: output, shape index: {}]  }
   0x1   :  { %3769 = sst [smem:[#allocation7_spill]] %s3764_s0 }
   0x2   :  { %3770 = sst [smem:[#allocation8_spill]] %s3765_s1 }
   0x3   :  { %s3024_s12 = smov 0   ;;  %s3026_s13 = smov 0  }
   0x4   :  { %s3028_s14 = smov 0   ;;  %s3030_s15 = smov 0  }
   0x5   :  { %s3032_s16 = smov 0   ;;  %s3034_s17 = smov 0  }
   0x6   :  { %s3036_s18 = smov 0   ;;  %s3038_s19 = smov 0  }
   0x7   :  { %s3040_s20 = smov 0   ;;  %s3042_s21 = smov 0  }
   0x8   :  { %s3044_s22 = smov 0  }
   0x9 LB: > { %s2176_s23 = sadd.s32 4294967295, %s3001_s22   ;;  %s25_s24 = sadd.s32 1, %s2993_s20  ;;  %s3001_s22 = sphi %s3044_s22, %s13_s22   ;;  %s2997_s21 = sphi %s3042_s21, %s3787_s21   ;;  %s2993_s20 = sphi %s3040_s20, %s3786_s20   ;;  %s2989_s19 = sphi %s3038_s19, %s3785_s19   ;;  %s2985_s18 = sphi %s3036_s18, %s3784_s18   ;;  %s2981_s17 = sphi %s3034_s17, %s3783_s17   ;;  %s2977_s16 = sphi %s3032_s16, %s3782_s16   ;;  %s2973_s15 = sphi %s3030_s15, %s3781_s15   ;;  %s2969_s14 = sphi %s3028_s14, %s3780_s14   ;;  %s2965_s13 = sphi %s3026_s13, %s3779_s13   ;;  %s2961_s12 = sphi %s3024_s12, %s3778_s12  }
   0xa   : > { %p26_p0 = scmp.ge.s32.totalorder %s25_s24, 4  ;;  %s28_s25 = sadd.s32 1, %s2997_s21 }
   0xb   : > { %s41_s26 = sadd.s32 1, %s2981_s17  ;;  %p48_p1 = scmp.ne.s32.totalorder %s2981_s17, %s2977_s16 }
   0xc   : > { %s3789_s24 = smov (%p26_p0, %s25_s24), 0  ;;  %s3791_s25 = smov (!%p26_p0, %s28_s25), %s2997_s21 }
   0xd   : > { %s37_s27 = ssub.s32 %s2993_s20, %s3789_s24  ;;  %p49_p2 = scmp.eq.s32.totalorder %s3001_s22, 0 }
   0xe   : > { %p30_p3 = scmp.ge.s32.totalorder %s3791_s25, 2  ;;  %p39_p4 = scmp.eq.s32.totalorder %s37_s27, 0 }
   0xf   : > { %p3091_p5 = por %p49_p2, %p48_p1  ;;  %s69_s29 = sadd.s32 1, %s2973_s15 }
  0x10   : > { %s3793_s25 = smov (%p30_p3, %s3791_s25), 0  ;;  %p76_p6 = scmp.ne.s32.totalorder %s2973_s15, %s2969_s14 }
  0x11   : > { %3772 = sst [smem:[#allocation6_spill]] %s3793_s25  ;;  %s65_s4 = ssub.s32 %s2997_s21, %s3793_s25 }
  0x12   : > { %s3099_s30 = scalar_select %p39_p4, %s2981_s17, %s41_s26  }
  0x13   : > { %s66_s5 = sor.u32 %s65_s4, %s37_s27  ;;  %p121_p7 = scmp.eq.s32.totalorder %s65_s4, 0 }
  0x14   : > { %p67_p8 = scmp.eq.s32.totalorder %s66_s5, 0  ;;  %p3105_p9 = por %p76_p6, %p49_p2 }
  0x15   : > { %s123_s7 = sadd.s32 1, %s2965_s13  ;;  %p133_p10 = scmp.ne.s32.totalorder %s2965_s13, %s2961_s12 }
  0x16   : > { %s3113_s8 = scalar_select %p67_p8, %s2973_s15, %s69_s29  }
  0x17   : > { %s3116_s9 = scalar_select %p121_p7, %s2965_s13, %s123_s7  }
  0x18   : > { %p134_p11 = scmp.eq.s32.totalorder %s2176_s23, 7  ;;  %p2179_p13 = scmp.ge.s32.totalorder %s3001_s22, 8 }
  0x1a   : > { %p3118_p12 = por %p134_p11, %p133_p10  ;;  %156 = sbr.rel (%p2179_p13) target bundleno = 166 (0xa6), region = 16 }
  0x21   : > { %159 = sbr.rel (!%p3091_p5) target bundleno = 45 (0x2d), region = 20  ;;  %s161_s11 = sand.u32 (%p3091_p5), 1, %s2981_s17  }
  0x22   : > { %s2538_s26 = smul.u32 (%p3091_p5), 24, %s2993_s20  ;;  %s3775_s0 = sld [smem:[#allocation7_spill]] (%p3091_p5) }
  0x23   : > { %s2618_s27 = smul.u32 (%p3091_p5), 48, %s161_s11 }
  0x25   : > { %s163_s23 = scalar_lea.vmem (%p3091_p5), [#allocation3], %s2618_s27 }
  0x28   : > { %s169_s5 = scalar_lea.vmem %s3775_s0, %s2538_s26 }
  0x29   : > { %v182_v0 = vld [vmem:[%s169_s5] sm:$0xff]  ;;  %v184_v1 = vld [vmem:[%s169_s5 + $0x8] sm:$0xff]  ;;  %v186_v2 = vld [vmem:[%s169_s5 + $0x10] sm:$0xff] }
  0x2a   : > { %183 = vst [vmem:[%s163_s23] sm:$0xff] %v182_v0  ;;  %185 = vst [vmem:[%s163_s23 + $0x8] sm:$0xff] %v184_v1  ;;  %v188_v3 = vld [vmem:[%s169_s5 + $0x60] sm:$0xff]  ;;  %v190_v4 = vld [vmem:[%s169_s5 + $0x68] sm:$0xff] }
  0x2b   : > { %187 = vst [vmem:[%s163_s23 + $0x10] sm:$0xff] %v186_v2  ;;  %v192_v5 = vld [vmem:[%s169_s5 + $0x70] sm:$0xff]  ;;  %189 = vst [vmem:[%s163_s23 + $0x18] sm:$0xff] %v188_v3 }
  0x2c   : > { %191 = vst [vmem:[%s163_s23 + $0x20] sm:$0xff] %v190_v4  ;;  %193 = vst [vmem:[%s163_s23 + $0x28] sm:$0xff] %v192_v5 }
  0x2d PF: > { %199 = sbr.rel (!%p3105_p9) target bundleno = 166 (0xa6), region = 43  ;;  %s201_s28 = sand.u32 (%p3105_p9), 1, %s2973_s15  }
  0x2e   : > { %s2619_s7 = smul.u32 (%p3105_p9), 1152, %s201_s28  ;;  %s3776_s1 = sld [smem:[#allocation8_spill]] (%p3105_p9) }
  0x2f   : > { %s205_s11 = smul.u32 (%p3105_p9), 3, %s2997_s21 }
  0x30   : > { %s2624_s26 = smul.u32 (%p3105_p9), 576, %s2993_s20  ;;  %s3143_s6 = scalar_lea.vmem (%p3105_p9), [#allocation4], %s2619_s7 }
  0x32   : > { %s207_s27 = sadd.s32 (%p3105_p9), %s2624_s26, %s205_s11 }
  0x33   : > { %s2181_s29 = sshll.u32 (%p3105_p9), %s207_s27, 2 }
  0x34   : > { %s3138_s5 = scalar_lea.vmem %s3776_s1, %s2181_s29 }
  0x35   : > { %v224_v6 = vld [vmem:[%s3138_s5] sm:$0xff]  ;;  %v226_v7 = vld [vmem:[%s3138_s5 + $0x18] sm:$0xff]  ;;  %v228_v8 = vld [vmem:[%s3138_s5 + $0x30] sm:$0xff] }
  0x36   : > { %225 = vst [vmem:[%s3143_s6] sm:$0xff] %v224_v6  ;;  %227 = vst [vmem:[%s3143_s6 + $0xc] sm:$0xff] %v226_v7  ;;  %v230_v9 = vld [vmem:[%s3138_s5 + $0x48] sm:$0xff]  ;;  %v232_v10 = vld [vmem:[%s3138_s5 + $0x60] sm:$0xff] }
  0x37   : > { %229 = vst [vmem:[%s3143_s6 + $0x18] sm:$0xff] %v228_v8  ;;  %v234_v11 = vld [vmem:[%s3138_s5 + $0x78] sm:$0xff]  ;;  %231 = vst [vmem:[%s3143_s6 + $0x24] sm:$0xff] %v230_v9  ;;  %v236_v12 = vld [vmem:[%s3138_s5 + $0x90] sm:$0xff] }
  0x38   : > { %233 = vst [vmem:[%s3143_s6 + $0x30] sm:$0xff] %v232_v10  ;;  %235 = vst [vmem:[%s3143_s6 + $0x3c] sm:$0xff] %v234_v11  ;;  %v238_v13 = vld [vmem:[%s3138_s5 + $0xa8] sm:$0xff]  ;;  %v240_v14 = vld [vmem:[%s3138_s5 + $0xc0] sm:$0xff] }
  0x39   : > { %237 = vst [vmem:[%s3143_s6 + $0x48] sm:$0xff] %v236_v12  ;;  %239 = vst [vmem:[%s3143_s6 + $0x54] sm:$0xff] %v238_v13  ;;  %v242_v15 = vld [vmem:[%s3138_s5 + $0xd8] sm:$0xff]  ;;  %v244_v16 = vld [vmem:[%s3138_s5 + $0xf0] sm:$0xff] }
  0x3a   : > { %241 = vst [vmem:[%s3143_s6 + $0x60] sm:$0xff] %v240_v14  ;;  %v246_v17 = vld [vmem:[%s3138_s5 + $0x108] sm:$0xff]  ;;  %243 = vst [vmem:[%s3143_s6 + $0x6c] sm:$0xff] %v242_v15  ;;  %v248_v18 = vld [vmem:[%s3138_s5 + $0x120] sm:$0xff] }
  0x3b   : > { %245 = vst [vmem:[%s3143_s6 + $0x78] sm:$0xff] %v244_v16  ;;  %247 = vst [vmem:[%s3143_s6 + $0x84] sm:$0xff] %v246_v17  ;;  %v250_v19 = vld [vmem:[%s3138_s5 + $0x138] sm:$0xff]  ;;  %v252_v20 = vld [vmem:[%s3138_s5 + $0x150] sm:$0xff] }
  0x3c   : > { %249 = vst [vmem:[%s3143_s6 + $0x90] sm:$0xff] %v248_v18  ;;  %251 = vst [vmem:[%s3143_s6 + $0x9c] sm:$0xff] %v250_v19  ;;  %v254_v21 = vld [vmem:[%s3138_s5 + $0x168] sm:$0xff]  ;;  %v256_v22 = vld [vmem:[%s3138_s5 + $0x180] sm:$0xff] }
  0x3d   : > { %253 = vst [vmem:[%s3143_s6 + $0xa8] sm:$0xff] %v252_v20  ;;  %v258_v23 = vld [vmem:[%s3138_s5 + $0x198] sm:$0xff]  ;;  %255 = vst [vmem:[%s3143_s6 + $0xb4] sm:$0xff] %v254_v21  ;;  %v260_v24 = vld [vmem:[%s3138_s5 + $0x1b0] sm:$0xff] }
  0x3e   : > { %257 = vst [vmem:[%s3143_s6 + $0xc0] sm:$0xff] %v256_v22  ;;  %259 = vst [vmem:[%s3143_s6 + $0xcc] sm:$0xff] %v258_v23  ;;  %v262_v25 = vld [vmem:[%s3138_s5 + $0x1c8] sm:$0xff]  ;;  %v264_v26 = vld [vmem:[%s3138_s5 + $0x1e0] sm:$0xff] }
  0x3f   : > { %261 = vst [vmem:[%s3143_s6 + $0xd8] sm:$0xff] %v260_v24  ;;  %263 = vst [vmem:[%s3143_s6 + $0xe4] sm:$0xff] %v262_v25  ;;  %v266_v27 = vld [vmem:[%s3138_s5 + $0x1f8] sm:$0xff]  ;;  %v268_v28 = vld [vmem:[%s3138_s5 + $0x210] sm:$0xff] }
  0x40   : > { %265 = vst [vmem:[%s3143_s6 + $0xf0] sm:$0xff] %v264_v26  ;;  %v270_v29 = vld [vmem:[%s3138_s5 + $0x228] sm:$0xff]  ;;  %267 = vst [vmem:[%s3143_s6 + $0xfc] sm:$0xff] %v266_v27  ;;  %v272_v30 = vld [vmem:[%s3138_s5 + $0x240] sm:$0xff] }
  0x41   : > { %269 = vst [vmem:[%s3143_s6 + $0x108] sm:$0xff] %v268_v28  ;;  %271 = vst [vmem:[%s3143_s6 + $0x114] sm:$0xff] %v270_v29  ;;  %v274_v31 = vld [vmem:[%s3138_s5 + $0x258] sm:$0xff]  ;;  %v276_v32 = vld [vmem:[%s3138_s5 + $0x270] sm:$0xff] }
  0x42   : > { %273 = vst [vmem:[%s3143_s6 + $0x120] sm:$0xff] %v272_v30  ;;  %275 = vst [vmem:[%s3143_s6 + $0x12c] sm:$0xff] %v274_v31  ;;  %v278_v33 = vld [vmem:[%s3138_s5 + $0x288] sm:$0xff]  ;;  %v280_v34 = vld [vmem:[%s3138_s5 + $0x2a0] sm:$0xff] }
  0x43   : > { %277 = vst [vmem:[%s3143_s6 + $0x138] sm:$0xff] %v276_v32  ;;  %v282_v35 = vld [vmem:[%s3138_s5 + $0x2b8] sm:$0xff]  ;;  %279 = vst [vmem:[%s3143_s6 + $0x144] sm:$0xff] %v278_v33  ;;  %v284_v36 = vld [vmem:[%s3138_s5 + $0x2d0] sm:$0xff] }
  0x44   : > { %281 = vst [vmem:[%s3143_s6 + $0x150] sm:$0xff] %v280_v34  ;;  %283 = vst [vmem:[%s3143_s6 + $0x15c] sm:$0xff] %v282_v35  ;;  %v286_v37 = vld [vmem:[%s3138_s5 + $0x2e8] sm:$0xff]  ;;  %v288_v38 = vld [vmem:[%s3138_s5 + $0x300] sm:$0xff] }
  0x45   : > { %285 = vst [vmem:[%s3143_s6 + $0x168] sm:$0xff] %v284_v36  ;;  %287 = vst [vmem:[%s3143_s6 + $0x174] sm:$0xff] %v286_v37  ;;  %v290_v39 = vld [vmem:[%s3138_s5 + $0x318] sm:$0xff]  ;;  %v292_v40 = vld [vmem:[%s3138_s5 + $0x330] sm:$0xff] }
  0x46   : > { %289 = vst [vmem:[%s3143_s6 + $0x180] sm:$0xff] %v288_v38  ;;  %v294_v41 = vld [vmem:[%s3138_s5 + $0x348] sm:$0xff]  ;;  %291 = vst [vmem:[%s3143_s6 + $0x18c] sm:$0xff] %v290_v39  ;;  %v296_v42 = vld [vmem:[%s3138_s5 + $0x360] sm:$0xff] }
  0x47   : > { %293 = vst [vmem:[%s3143_s6 + $0x198] sm:$0xff] %v292_v40  ;;  %295 = vst [vmem:[%s3143_s6 + $0x1a4] sm:$0xff] %v294_v41  ;;  %v298_v43 = vld [vmem:[%s3138_s5 + $0x378] sm:$0xff]  ;;  %v300_v44 = vld [vmem:[%s3138_s5 + $0x390] sm:$0xff] }
  0x48   : > { %297 = vst [vmem:[%s3143_s6 + $0x1b0] sm:$0xff] %v296_v42  ;;  %299 = vst [vmem:[%s3143_s6 + $0x1bc] sm:$0xff] %v298_v43  ;;  %v302_v45 = vld [vmem:[%s3138_s5 + $0x3a8] sm:$0xff]  ;;  %v304_v46 = vld [vmem:[%s3138_s5 + $0x3c0] sm:$0xff] }
  0x49   : > { %301 = vst [vmem:[%s3143_s6 + $0x1c8] sm:$0xff] %v300_v44  ;;  %v306_v47 = vld [vmem:[%s3138_s5 + $0x3d8] sm:$0xff]  ;;  %303 = vst [vmem:[%s3143_s6 + $0x1d4] sm:$0xff] %v302_v45  ;;  %v308_v48 = vld [vmem:[%s3138_s5 + $0x3f0] sm:$0xff] }
  0x4a   : > { %305 = vst [vmem:[%s3143_s6 + $0x1e0] sm:$0xff] %v304_v46  ;;  %307 = vst [vmem:[%s3143_s6 + $0x1ec] sm:$0xff] %v306_v47  ;;  %v310_v49 = vld [vmem:[%s3138_s5 + $0x408] sm:$0xff]  ;;  %v312_v50 = vld [vmem:[%s3138_s5 + $0x420] sm:$0xff] }
  0x4b   : > { %309 = vst [vmem:[%s3143_s6 + $0x1f8] sm:$0xff] %v308_v48  ;;  %311 = vst [vmem:[%s3143_s6 + $0x204] sm:$0xff] %v310_v49  ;;  %v314_v51 = vld [vmem:[%s3138_s5 + $0x438] sm:$0xff]  ;;  %v316_v52 = vld [vmem:[%s3138_s5 + $0x450] sm:$0xff] }
  0x4c   : > { %313 = vst [vmem:[%s3143_s6 + $0x210] sm:$0xff] %v312_v50  ;;  %v318_v53 = vld [vmem:[%s3138_s5 + $0x468] sm:$0xff]  ;;  %315 = vst [vmem:[%s3143_s6 + $0x21c] sm:$0xff] %v314_v51  ;;  %v320_v54 = vld [vmem:[%s3138_s5 + $0x480] sm:$0xff] }
  0x4d   : > { %317 = vst [vmem:[%s3143_s6 + $0x228] sm:$0xff] %v316_v52  ;;  %319 = vst [vmem:[%s3143_s6 + $0x234] sm:$0xff] %v318_v53  ;;  %v322_v55 = vld [vmem:[%s3138_s5 + $0x498] sm:$0xff]  ;;  %v324_v56 = vld [vmem:[%s3138_s5 + $0x4b0] sm:$0xff] }
  0x4e   : > { %321 = vst [vmem:[%s3143_s6 + $0x240] sm:$0xff] %v320_v54  ;;  %323 = vst [vmem:[%s3143_s6 + $0x24c] sm:$0xff] %v322_v55  ;;  %v326_v57 = vld [vmem:[%s3138_s5 + $0x4c8] sm:$0xff]  ;;  %v328_v58 = vld [vmem:[%s3138_s5 + $0x4e0] sm:$0xff] }
  0x4f   : > { %325 = vst [vmem:[%s3143_s6 + $0x258] sm:$0xff] %v324_v56  ;;  %v330_v59 = vld [vmem:[%s3138_s5 + $0x4f8] sm:$0xff]  ;;  %327 = vst [vmem:[%s3143_s6 + $0x264] sm:$0xff] %v326_v57  ;;  %v332_v60 = vld [vmem:[%s3138_s5 + $0x510] sm:$0xff] }
  0x50   : > { %329 = vst [vmem:[%s3143_s6 + $0x270] sm:$0xff] %v328_v58  ;;  %331 = vst [vmem:[%s3143_s6 + $0x27c] sm:$0xff] %v330_v59  ;;  %v334_v61 = vld [vmem:[%s3138_s5 + $0x528] sm:$0xff]  ;;  %v336_v62 = vld [vmem:[%s3138_s5 + $0x540] sm:$0xff] }
  0x51   : > { %333 = vst [vmem:[%s3143_s6 + $0x288] sm:$0xff] %v332_v60  ;;  %335 = vst [vmem:[%s3143_s6 + $0x294] sm:$0xff] %v334_v61  ;;  %v338_v63 = vld [vmem:[%s3138_s5 + $0x558] sm:$0xff]  ;;  %v340_v0 = vld [vmem:[%s3138_s5 + $0x570] sm:$0xff] }
  0x52   : > { %337 = vst [vmem:[%s3143_s6 + $0x2a0] sm:$0xff] %v336_v62  ;;  %v342_v1 = vld [vmem:[%s3138_s5 + $0x588] sm:$0xff]  ;;  %339 = vst [vmem:[%s3143_s6 + $0x2ac] sm:$0xff] %v338_v63  ;;  %v344_v2 = vld [vmem:[%s3138_s5 + $0x5a0] sm:$0xff] }
  0x53   : > { %341 = vst [vmem:[%s3143_s6 + $0x2b8] sm:$0xff] %v340_v0  ;;  %343 = vst [vmem:[%s3143_s6 + $0x2c4] sm:$0xff] %v342_v1  ;;  %v346_v3 = vld [vmem:[%s3138_s5 + $0x5b8] sm:$0xff]  ;;  %v348_v4 = vld [vmem:[%s3138_s5 + $0x5d0] sm:$0xff] }
  0x54   : > { %345 = vst [vmem:[%s3143_s6 + $0x2d0] sm:$0xff] %v344_v2  ;;  %347 = vst [vmem:[%s3143_s6 + $0x2dc] sm:$0xff] %v346_v3  ;;  %v350_v5 = vld [vmem:[%s3138_s5 + $0x5e8] sm:$0xff]  ;;  %v352_v6 = vld [vmem:[%s3138_s5 + $0x600] sm:$0xff] }
  0x55   : > { %349 = vst [vmem:[%s3143_s6 + $0x2e8] sm:$0xff] %v348_v4  ;;  %v354_v7 = vld [vmem:[%s3138_s5 + $0x618] sm:$0xff]  ;;  %351 = vst [vmem:[%s3143_s6 + $0x2f4] sm:$0xff] %v350_v5  ;;  %v356_v8 = vld [vmem:[%s3138_s5 + $0x630] sm:$0xff] }
  0x56   : > { %353 = vst [vmem:[%s3143_s6 + $0x300] sm:$0xff] %v352_v6  ;;  %355 = vst [vmem:[%s3143_s6 + $0x30c] sm:$0xff] %v354_v7  ;;  %v358_v9 = vld [vmem:[%s3138_s5 + $0x648] sm:$0xff]  ;;  %v360_v10 = vld [vmem:[%s3138_s5 + $0x660] sm:$0xff] }
  0x57   : > { %357 = vst [vmem:[%s3143_s6 + $0x318] sm:$0xff] %v356_v8  ;;  %359 = vst [vmem:[%s3143_s6 + $0x324] sm:$0xff] %v358_v9  ;;  %v362_v11 = vld [vmem:[%s3138_s5 + $0x678] sm:$0xff]  ;;  %v364_v12 = vld [vmem:[%s3138_s5 + $0x690] sm:$0xff] }
  0x58   : > { %361 = vst [vmem:[%s3143_s6 + $0x330] sm:$0xff] %v360_v10  ;;  %v366_v13 = vld [vmem:[%s3138_s5 + $0x6a8] sm:$0xff]  ;;  %363 = vst [vmem:[%s3143_s6 + $0x33c] sm:$0xff] %v362_v11  ;;  %v368_v14 = vld [vmem:[%s3138_s5 + $0x6c0] sm:$0xff] }
  0x59   : > { %365 = vst [vmem:[%s3143_s6 + $0x348] sm:$0xff] %v364_v12  ;;  %367 = vst [vmem:[%s3143_s6 + $0x354] sm:$0xff] %v366_v13  ;;  %v370_v15 = vld [vmem:[%s3138_s5 + $0x6d8] sm:$0xff]  ;;  %v372_v16 = vld [vmem:[%s3138_s5 + $0x6f0] sm:$0xff] }
  0x5a   : > { %369 = vst [vmem:[%s3143_s6 + $0x360] sm:$0xff] %v368_v14  ;;  %371 = vst [vmem:[%s3143_s6 + $0x36c] sm:$0xff] %v370_v15  ;;  %v374_v17 = vld [vmem:[%s3138_s5 + $0x708] sm:$0xff]  ;;  %v376_v18 = vld [vmem:[%s3138_s5 + $0x720] sm:$0xff] }
  0x5b   : > { %373 = vst [vmem:[%s3143_s6 + $0x378] sm:$0xff] %v372_v16  ;;  %v378_v19 = vld [vmem:[%s3138_s5 + $0x738] sm:$0xff]  ;;  %375 = vst [vmem:[%s3143_s6 + $0x384] sm:$0xff] %v374_v17  ;;  %v380_v20 = vld [vmem:[%s3138_s5 + $0x750] sm:$0xff] }
  0x5c   : > { %377 = vst [vmem:[%s3143_s6 + $0x390] sm:$0xff] %v376_v18  ;;  %379 = vst [vmem:[%s3143_s6 + $0x39c] sm:$0xff] %v378_v19  ;;  %v382_v21 = vld [vmem:[%s3138_s5 + $0x768] sm:$0xff]  ;;  %v384_v22 = vld [vmem:[%s3138_s5 + $0x780] sm:$0xff] }
  0x5d   : > { %381 = vst [vmem:[%s3143_s6 + $0x3a8] sm:$0xff] %v380_v20  ;;  %383 = vst [vmem:[%s3143_s6 + $0x3b4] sm:$0xff] %v382_v21  ;;  %v386_v23 = vld [vmem:[%s3138_s5 + $0x798] sm:$0xff]  ;;  %v388_v24 = vld [vmem:[%s3138_s5 + $0x7b0] sm:$0xff] }
  0x5e   : > { %385 = vst [vmem:[%s3143_s6 + $0x3c0] sm:$0xff] %v384_v22  ;;  %v390_v25 = vld [vmem:[%s3138_s5 + $0x7c8] sm:$0xff]  ;;  %387 = vst [vmem:[%s3143_s6 + $0x3cc] sm:$0xff] %v386_v23  ;;  %v392_v26 = vld [vmem:[%s3138_s5 + $0x7e0] sm:$0xff] }
  0x5f   : > { %389 = vst [vmem:[%s3143_s6 + $0x3d8] sm:$0xff] %v388_v24  ;;  %391 = vst [vmem:[%s3143_s6 + $0x3e4] sm:$0xff] %v390_v25  ;;  %v394_v27 = vld [vmem:[%s3138_s5 + $0x7f8] sm:$0xff]  ;;  %v396_v28 = vld [vmem:[%s3138_s5 + $0x810] sm:$0xff] }
  0x60   : > { %393 = vst [vmem:[%s3143_s6 + $0x3f0] sm:$0xff] %v392_v26  ;;  %395 = vst [vmem:[%s3143_s6 + $0x3fc] sm:$0xff] %v394_v27  ;;  %v398_v29 = vld [vmem:[%s3138_s5 + $0x828] sm:$0xff]  ;;  %v400_v30 = vld [vmem:[%s3138_s5 + $0x840] sm:$0xff] }
  0x61   : > { %397 = vst [vmem:[%s3143_s6 + $0x408] sm:$0xff] %v396_v28  ;;  %v402_v31 = vld [vmem:[%s3138_s5 + $0x858] sm:$0xff]  ;;  %399 = vst [vmem:[%s3143_s6 + $0x414] sm:$0xff] %v398_v29  ;;  %v404_v32 = vld [vmem:[%s3138_s5 + $0x870] sm:$0xff] }
  0x62   : > { %401 = vst [vmem:[%s3143_s6 + $0x420] sm:$0xff] %v400_v30  ;;  %403 = vst [vmem:[%s3143_s6 + $0x42c] sm:$0xff] %v402_v31  ;;  %v406_v33 = vld [vmem:[%s3138_s5 + $0x888] sm:$0xff]  ;;  %v408_v34 = vld [vmem:[%s3138_s5 + $0x8a0] sm:$0xff] }
  0x63   : > { %405 = vst [vmem:[%s3143_s6 + $0x438] sm:$0xff] %v404_v32  ;;  %407 = vst [vmem:[%s3143_s6 + $0x444] sm:$0xff] %v406_v33  ;;  %v410_v35 = vld [vmem:[%s3138_s5 + $0x8b8] sm:$0xff]  ;;  %v412_v36 = vld [vmem:[%s3138_s5 + $0x8d0] sm:$0xff] }
  0x64   : > { %409 = vst [vmem:[%s3143_s6 + $0x450] sm:$0xff] %v408_v34  ;;  %v414_v37 = vld [vmem:[%s3138_s5 + $0x8e8] sm:$0xff]  ;;  %411 = vst [vmem:[%s3143_s6 + $0x45c] sm:$0xff] %v410_v35  ;;  %v2184_v39 = vld [vmem:[%s3138_s5 + $0x20] sm:$0xf] }
  0x65   : > { %413 = vst [vmem:[%s3143_s6 + $0x468] sm:$0xff] %v412_v36  ;;  %415 = vst [vmem:[%s3143_s6 + $0x474] sm:$0xff] %v414_v37  ;;  %v2182_v38 = vld [vmem:[%s3138_s5 + $0x8] sm:$0xf]  ;;  %v2186_v40 = vld [vmem:[%s3138_s5 + $0x38] sm:$0xf] }
  0x66   : > { %2183 = vst [vmem:[%s3143_s6 + $0x8] sm:$0xf] %v2182_v38  ;;  %2185 = vst [vmem:[%s3143_s6 + $0x14] sm:$0xf] %v2184_v39  ;;  %v2188_v41 = vld [vmem:[%s3138_s5 + $0x50] sm:$0xf] }
  0x67   : > { %2187 = vst [vmem:[%s3143_s6 + $0x20] sm:$0xf] %v2186_v40  ;;  %v2190_v42 = vld [vmem:[%s3138_s5 + $0x68] sm:$0xf]  ;;  %v2192_v43 = vld [vmem:[%s3138_s5 + $0x80] sm:$0xf] }
  0x68   : > { %2189 = vst [vmem:[%s3143_s6 + $0x2c] sm:$0xf] %v2188_v41  ;;  %2191 = vst [vmem:[%s3143_s6 + $0x38] sm:$0xf] %v2190_v42  ;;  %v2194_v44 = vld [vmem:[%s3138_s5 + $0x98] sm:$0xf] }
  0x69   : > { %2193 = vst [vmem:[%s3143_s6 + $0x44] sm:$0xf] %v2192_v43  ;;  %v2196_v45 = vld [vmem:[%s3138_s5 + $0xb0] sm:$0xf]  ;;  %v2198_v46 = vld [vmem:[%s3138_s5 + $0xc8] sm:$0xf] }
  0x6a   : > { %2195 = vst [vmem:[%s3143_s6 + $0x50] sm:$0xf] %v2194_v44  ;;  %2197 = vst [vmem:[%s3143_s6 + $0x5c] sm:$0xf] %v2196_v45  ;;  %v2200_v47 = vld [vmem:[%s3138_s5 + $0xe0] sm:$0xf] }
  0x6b   : > { %2199 = vst [vmem:[%s3143_s6 + $0x68] sm:$0xf] %v2198_v46  ;;  %v2202_v48 = vld [vmem:[%s3138_s5 + $0xf8] sm:$0xf]  ;;  %v2204_v49 = vld [vmem:[%s3138_s5 + $0x110] sm:$0xf] }
  0x6c   : > { %2201 = vst [vmem:[%s3143_s6 + $0x74] sm:$0xf] %v2200_v47  ;;  %2203 = vst [vmem:[%s3143_s6 + $0x80] sm:$0xf] %v2202_v48  ;;  %v2206_v50 = vld [vmem:[%s3138_s5 + $0x128] sm:$0xf] }
  0x6d   : > { %2205 = vst [vmem:[%s3143_s6 + $0x8c] sm:$0xf] %v2204_v49  ;;  %v2208_v51 = vld [vmem:[%s3138_s5 + $0x140] sm:$0xf]  ;;  %v2210_v52 = vld [vmem:[%s3138_s5 + $0x158] sm:$0xf] }
  0x6e   : > { %2207 = vst [vmem:[%s3143_s6 + $0x98] sm:$0xf] %v2206_v50  ;;  %2209 = vst [vmem:[%s3143_s6 + $0xa4] sm:$0xf] %v2208_v51  ;;  %v2212_v53 = vld [vmem:[%s3138_s5 + $0x170] sm:$0xf] }
  0x6f   : > { %2211 = vst [vmem:[%s3143_s6 + $0xb0] sm:$0xf] %v2210_v52  ;;  %v2214_v54 = vld [vmem:[%s3138_s5 + $0x188] sm:$0xf]  ;;  %v2216_v55 = vld [vmem:[%s3138_s5 + $0x1a0] sm:$0xf] }
  0x70   : > { %2213 = vst [vmem:[%s3143_s6 + $0xbc] sm:$0xf] %v2212_v53  ;;  %2215 = vst [vmem:[%s3143_s6 + $0xc8] sm:$0xf] %v2214_v54  ;;  %v2218_v56 = vld [vmem:[%s3138_s5 + $0x1b8] sm:$0xf] }
  0x71   : > { %2217 = vst [vmem:[%s3143_s6 + $0xd4] sm:$0xf] %v2216_v55  ;;  %v2220_v57 = vld [vmem:[%s3138_s5 + $0x1d0] sm:$0xf]  ;;  %v2222_v58 = vld [vmem:[%s3138_s5 + $0x1e8] sm:$0xf] }
  0x72   : > { %2219 = vst [vmem:[%s3143_s6 + $0xe0] sm:$0xf] %v2218_v56  ;;  %2221 = vst [vmem:[%s3143_s6 + $0xec] sm:$0xf] %v2220_v57  ;;  %v2224_v59 = vld [vmem:[%s3138_s5 + $0x200] sm:$0xf] }
  0x73   : > { %2223 = vst [vmem:[%s3143_s6 + $0xf8] sm:$0xf] %v2222_v58  ;;  %v2226_v60 = vld [vmem:[%s3138_s5 + $0x218] sm:$0xf]  ;;  %v2228_v61 = vld [vmem:[%s3138_s5 + $0x230] sm:$0xf] }
  0x74   : > { %2225 = vst [vmem:[%s3143_s6 + $0x104] sm:$0xf] %v2224_v59  ;;  %2227 = vst [vmem:[%s3143_s6 + $0x110] sm:$0xf] %v2226_v60  ;;  %v2230_v62 = vld [vmem:[%s3138_s5 + $0x248] sm:$0xf] }
  0x75   : > { %2229 = vst [vmem:[%s3143_s6 + $0x11c] sm:$0xf] %v2228_v61  ;;  %v2232_v63 = vld [vmem:[%s3138_s5 + $0x260] sm:$0xf]  ;;  %v2234_v0 = vld [vmem:[%s3138_s5 + $0x278] sm:$0xf] }
  0x76   : > { %2231 = vst [vmem:[%s3143_s6 + $0x128] sm:$0xf] %v2230_v62  ;;  %2233 = vst [vmem:[%s3143_s6 + $0x134] sm:$0xf] %v2232_v63  ;;  %v2236_v1 = vld [vmem:[%s3138_s5 + $0x290] sm:$0xf] }
  0x77   : > { %2235 = vst [vmem:[%s3143_s6 + $0x140] sm:$0xf] %v2234_v0  ;;  %v2238_v2 = vld [vmem:[%s3138_s5 + $0x2a8] sm:$0xf]  ;;  %v2240_v3 = vld [vmem:[%s3138_s5 + $0x2c0] sm:$0xf] }
  0x78   : > { %2237 = vst [vmem:[%s3143_s6 + $0x14c] sm:$0xf] %v2236_v1  ;;  %2239 = vst [vmem:[%s3143_s6 + $0x158] sm:$0xf] %v2238_v2  ;;  %v2242_v4 = vld [vmem:[%s3138_s5 + $0x2d8] sm:$0xf] }
  0x79   : > { %2241 = vst [vmem:[%s3143_s6 + $0x164] sm:$0xf] %v2240_v3  ;;  %v2244_v5 = vld [vmem:[%s3138_s5 + $0x2f0] sm:$0xf]  ;;  %v2246_v6 = vld [vmem:[%s3138_s5 + $0x308] sm:$0xf] }
  0x7a   : > { %2243 = vst [vmem:[%s3143_s6 + $0x170] sm:$0xf] %v2242_v4  ;;  %2245 = vst [vmem:[%s3143_s6 + $0x17c] sm:$0xf] %v2244_v5  ;;  %v2248_v7 = vld [vmem:[%s3138_s5 + $0x320] sm:$0xf] }
  0x7b   : > { %2247 = vst [vmem:[%s3143_s6 + $0x188] sm:$0xf] %v2246_v6  ;;  %v2250_v8 = vld [vmem:[%s3138_s5 + $0x338] sm:$0xf]  ;;  %v2252_v9 = vld [vmem:[%s3138_s5 + $0x350] sm:$0xf] }
  0x7c   : > { %2249 = vst [vmem:[%s3143_s6 + $0x194] sm:$0xf] %v2248_v7  ;;  %2251 = vst [vmem:[%s3143_s6 + $0x1a0] sm:$0xf] %v2250_v8  ;;  %v2254_v10 = vld [vmem:[%s3138_s5 + $0x368] sm:$0xf] }
  0x7d   : > { %2253 = vst [vmem:[%s3143_s6 + $0x1ac] sm:$0xf] %v2252_v9  ;;  %v2256_v11 = vld [vmem:[%s3138_s5 + $0x380] sm:$0xf]  ;;  %v2258_v12 = vld [vmem:[%s3138_s5 + $0x398] sm:$0xf] }
  0x7e   : > { %2255 = vst [vmem:[%s3143_s6 + $0x1b8] sm:$0xf] %v2254_v10  ;;  %2257 = vst [vmem:[%s3143_s6 + $0x1c4] sm:$0xf] %v2256_v11  ;;  %v2260_v13 = vld [vmem:[%s3138_s5 + $0x3b0] sm:$0xf] }
  0x7f   : > { %2259 = vst [vmem:[%s3143_s6 + $0x1d0] sm:$0xf] %v2258_v12  ;;  %v2262_v14 = vld [vmem:[%s3138_s5 + $0x3c8] sm:$0xf]  ;;  %v2264_v15 = vld [vmem:[%s3138_s5 + $0x3e0] sm:$0xf] }
  0x80   : > { %2261 = vst [vmem:[%s3143_s6 + $0x1dc] sm:$0xf] %v2260_v13  ;;  %2263 = vst [vmem:[%s3143_s6 + $0x1e8] sm:$0xf] %v2262_v14  ;;  %v2266_v16 = vld [vmem:[%s3138_s5 + $0x3f8] sm:$0xf] }
  0x81   : > { %2265 = vst [vmem:[%s3143_s6 + $0x1f4] sm:$0xf] %v2264_v15  ;;  %v2268_v17 = vld [vmem:[%s3138_s5 + $0x410] sm:$0xf]  ;;  %v2270_v18 = vld [vmem:[%s3138_s5 + $0x428] sm:$0xf] }
  0x82   : > { %2267 = vst [vmem:[%s3143_s6 + $0x200] sm:$0xf] %v2266_v16  ;;  %2269 = vst [vmem:[%s3143_s6 + $0x20c] sm:$0xf] %v2268_v17  ;;  %v2272_v19 = vld [vmem:[%s3138_s5 + $0x440] sm:$0xf] }
  0x83   : > { %2271 = vst [vmem:[%s3143_s6 + $0x218] sm:$0xf] %v2270_v18  ;;  %v2274_v20 = vld [vmem:[%s3138_s5 + $0x458] sm:$0xf]  ;;  %v2276_v21 = vld [vmem:[%s3138_s5 + $0x470] sm:$0xf] }
  0x84   : > { %2273 = vst [vmem:[%s3143_s6 + $0x224] sm:$0xf] %v2272_v19  ;;  %2275 = vst [vmem:[%s3143_s6 + $0x230] sm:$0xf] %v2274_v20  ;;  %v2278_v22 = vld [vmem:[%s3138_s5 + $0x488] sm:$0xf] }
  0x85   : > { %2277 = vst [vmem:[%s3143_s6 + $0x23c] sm:$0xf] %v2276_v21  ;;  %v2280_v23 = vld [vmem:[%s3138_s5 + $0x4a0] sm:$0xf]  ;;  %v2282_v24 = vld [vmem:[%s3138_s5 + $0x4b8] sm:$0xf] }
  0x86   : > { %2279 = vst [vmem:[%s3143_s6 + $0x248] sm:$0xf] %v2278_v22  ;;  %2281 = vst [vmem:[%s3143_s6 + $0x254] sm:$0xf] %v2280_v23  ;;  %v2284_v25 = vld [vmem:[%s3138_s5 + $0x4d0] sm:$0xf] }
  0x87   : > { %2283 = vst [vmem:[%s3143_s6 + $0x260] sm:$0xf] %v2282_v24  ;;  %v2286_v26 = vld [vmem:[%s3138_s5 + $0x4e8] sm:$0xf]  ;;  %v2288_v27 = vld [vmem:[%s3138_s5 + $0x500] sm:$0xf] }
  0x88   : > { %2285 = vst [vmem:[%s3143_s6 + $0x26c] sm:$0xf] %v2284_v25  ;;  %2287 = vst [vmem:[%s3143_s6 + $0x278] sm:$0xf] %v2286_v26  ;;  %v2290_v28 = vld [vmem:[%s3138_s5 + $0x518] sm:$0xf] }
  0x89   : > { %2289 = vst [vmem:[%s3143_s6 + $0x284] sm:$0xf] %v2288_v27  ;;  %v2292_v29 = vld [vmem:[%s3138_s5 + $0x530] sm:$0xf]  ;;  %v2294_v30 = vld [vmem:[%s3138_s5 + $0x548] sm:$0xf] }
  0x8a   : > { %2291 = vst [vmem:[%s3143_s6 + $0x290] sm:$0xf] %v2290_v28  ;;  %2293 = vst [vmem:[%s3143_s6 + $0x29c] sm:$0xf] %v2292_v29  ;;  %v2296_v31 = vld [vmem:[%s3138_s5 + $0x560] sm:$0xf] }
  0x8b   : > { %2295 = vst [vmem:[%s3143_s6 + $0x2a8] sm:$0xf] %v2294_v30  ;;  %v2298_v32 = vld [vmem:[%s3138_s5 + $0x578] sm:$0xf]  ;;  %v2300_v33 = vld [vmem:[%s3138_s5 + $0x590] sm:$0xf] }
  0x8c   : > { %2297 = vst [vmem:[%s3143_s6 + $0x2b4] sm:$0xf] %v2296_v31  ;;  %2299 = vst [vmem:[%s3143_s6 + $0x2c0] sm:$0xf] %v2298_v32  ;;  %v2302_v34 = vld [vmem:[%s3138_s5 + $0x5a8] sm:$0xf] }
  0x8d   : > { %2301 = vst [vmem:[%s3143_s6 + $0x2cc] sm:$0xf] %v2300_v33  ;;  %v2304_v35 = vld [vmem:[%s3138_s5 + $0x5c0] sm:$0xf]  ;;  %v2306_v36 = vld [vmem:[%s3138_s5 + $0x5d8] sm:$0xf] }
  0x8e   : > { %2303 = vst [vmem:[%s3143_s6 + $0x2d8] sm:$0xf] %v2302_v34  ;;  %2305 = vst [vmem:[%s3143_s6 + $0x2e4] sm:$0xf] %v2304_v35  ;;  %v2308_v37 = vld [vmem:[%s3138_s5 + $0x5f0] sm:$0xf] }
  0x8f   : > { %2307 = vst [vmem:[%s3143_s6 + $0x2f0] sm:$0xf] %v2306_v36  ;;  %v2310_v38 = vld [vmem:[%s3138_s5 + $0x608] sm:$0xf]  ;;  %v2312_v39 = vld [vmem:[%s3138_s5 + $0x620] sm:$0xf] }
  0x90   : > { %2309 = vst [vmem:[%s3143_s6 + $0x2fc] sm:$0xf] %v2308_v37  ;;  %2311 = vst [vmem:[%s3143_s6 + $0x308] sm:$0xf] %v2310_v38  ;;  %v2314_v40 = vld [vmem:[%s3138_s5 + $0x638] sm:$0xf] }
  0x91   : > { %2313 = vst [vmem:[%s3143_s6 + $0x314] sm:$0xf] %v2312_v39  ;;  %v2316_v41 = vld [vmem:[%s3138_s5 + $0x650] sm:$0xf]  ;;  %v2318_v42 = vld [vmem:[%s3138_s5 + $0x668] sm:$0xf] }
  0x92   : > { %2315 = vst [vmem:[%s3143_s6 + $0x320] sm:$0xf] %v2314_v40  ;;  %2317 = vst [vmem:[%s3143_s6 + $0x32c] sm:$0xf] %v2316_v41  ;;  %v2320_v43 = vld [vmem:[%s3138_s5 + $0x680] sm:$0xf] }
  0x93   : > { %2319 = vst [vmem:[%s3143_s6 + $0x338] sm:$0xf] %v2318_v42  ;;  %v2322_v44 = vld [vmem:[%s3138_s5 + $0x698] sm:$0xf]  ;;  %v2324_v45 = vld [vmem:[%s3138_s5 + $0x6b0] sm:$0xf] }
  0x94   : > { %2321 = vst [vmem:[%s3143_s6 + $0x344] sm:$0xf] %v2320_v43  ;;  %2323 = vst [vmem:[%s3143_s6 + $0x350] sm:$0xf] %v2322_v44  ;;  %v2326_v46 = vld [vmem:[%s3138_s5 + $0x6c8] sm:$0xf] }
  0x95   : > { %2325 = vst [vmem:[%s3143_s6 + $0x35c] sm:$0xf] %v2324_v45  ;;  %v2328_v47 = vld [vmem:[%s3138_s5 + $0x6e0] sm:$0xf]  ;;  %v2330_v48 = vld [vmem:[%s3138_s5 + $0x6f8] sm:$0xf] }
  0x96   : > { %2327 = vst [vmem:[%s3143_s6 + $0x368] sm:$0xf] %v2326_v46  ;;  %2329 = vst [vmem:[%s3143_s6 + $0x374] sm:$0xf] %v2328_v47  ;;  %v2332_v49 = vld [vmem:[%s3138_s5 + $0x710] sm:$0xf] }
  0x97   : > { %2331 = vst [vmem:[%s3143_s6 + $0x380] sm:$0xf] %v2330_v48  ;;  %v2334_v50 = vld [vmem:[%s3138_s5 + $0x728] sm:$0xf]  ;;  %v2336_v51 = vld [vmem:[%s3138_s5 + $0x740] sm:$0xf] }
  0x98   : > { %2333 = vst [vmem:[%s3143_s6 + $0x38c] sm:$0xf] %v2332_v49  ;;  %2335 = vst [vmem:[%s3143_s6 + $0x398] sm:$0xf] %v2334_v50  ;;  %v2338_v52 = vld [vmem:[%s3138_s5 + $0x758] sm:$0xf] }
  0x99   : > { %2337 = vst [vmem:[%s3143_s6 + $0x3a4] sm:$0xf] %v2336_v51  ;;  %v2340_v53 = vld [vmem:[%s3138_s5 + $0x770] sm:$0xf]  ;;  %v2342_v54 = vld [vmem:[%s3138_s5 + $0x788] sm:$0xf] }
  0x9a   : > { %2339 = vst [vmem:[%s3143_s6 + $0x3b0] sm:$0xf] %v2338_v52  ;;  %2341 = vst [vmem:[%s3143_s6 + $0x3bc] sm:$0xf] %v2340_v53  ;;  %v2344_v55 = vld [vmem:[%s3138_s5 + $0x7a0] sm:$0xf] }
  0x9b   : > { %2343 = vst [vmem:[%s3143_s6 + $0x3c8] sm:$0xf] %v2342_v54  ;;  %v2346_v56 = vld [vmem:[%s3138_s5 + $0x7b8] sm:$0xf]  ;;  %v2348_v57 = vld [vmem:[%s3138_s5 + $0x7d0] sm:$0xf] }
  0x9c   : > { %2345 = vst [vmem:[%s3143_s6 + $0x3d4] sm:$0xf] %v2344_v55  ;;  %2347 = vst [vmem:[%s3143_s6 + $0x3e0] sm:$0xf] %v2346_v56  ;;  %v2350_v58 = vld [vmem:[%s3138_s5 + $0x7e8] sm:$0xf] }
  0x9d   : > { %2349 = vst [vmem:[%s3143_s6 + $0x3ec] sm:$0xf] %v2348_v57  ;;  %v2352_v59 = vld [vmem:[%s3138_s5 + $0x800] sm:$0xf]  ;;  %v2354_v60 = vld [vmem:[%s3138_s5 + $0x818] sm:$0xf] }
  0x9e   : > { %2351 = vst [vmem:[%s3143_s6 + $0x3f8] sm:$0xf] %v2350_v58  ;;  %2353 = vst [vmem:[%s3143_s6 + $0x404] sm:$0xf] %v2352_v59  ;;  %v2356_v61 = vld [vmem:[%s3138_s5 + $0x830] sm:$0xf] }
  0x9f   : > { %2355 = vst [vmem:[%s3143_s6 + $0x410] sm:$0xf] %v2354_v60  ;;  %v2358_v62 = vld [vmem:[%s3138_s5 + $0x848] sm:$0xf]  ;;  %v2360_v63 = vld [vmem:[%s3138_s5 + $0x860] sm:$0xf] }
  0xa0   : > { %2357 = vst [vmem:[%s3143_s6 + $0x41c] sm:$0xf] %v2356_v61  ;;  %2359 = vst [vmem:[%s3143_s6 + $0x428] sm:$0xf] %v2358_v62  ;;  %v2362_v0 = vld [vmem:[%s3138_s5 + $0x878] sm:$0xf] }
  0xa1   : > { %2361 = vst [vmem:[%s3143_s6 + $0x434] sm:$0xf] %v2360_v63  ;;  %v2364_v1 = vld [vmem:[%s3138_s5 + $0x890] sm:$0xf]  ;;  %v2366_v2 = vld [vmem:[%s3138_s5 + $0x8a8] sm:$0xf] }
  0xa2   : > { %2363 = vst [vmem:[%s3143_s6 + $0x440] sm:$0xf] %v2362_v0  ;;  %2365 = vst [vmem:[%s3143_s6 + $0x44c] sm:$0xf] %v2364_v1  ;;  %v2368_v3 = vld [vmem:[%s3138_s5 + $0x8c0] sm:$0xf] }
  0xa3   : > { %2367 = vst [vmem:[%s3143_s6 + $0x458] sm:$0xf] %v2366_v2  ;;  %v2370_v4 = vld [vmem:[%s3138_s5 + $0x8d8] sm:$0xf]  ;;  %v2372_v5 = vld [vmem:[%s3138_s5 + $0x8f0] sm:$0xf] }
  0xa4   : > { %2369 = vst [vmem:[%s3143_s6 + $0x464] sm:$0xf] %v2368_v3  ;;  %2371 = vst [vmem:[%s3143_s6 + $0x470] sm:$0xf] %v2370_v4 }
  0xa5   : > { %2373 = vst [vmem:[%s3143_s6 + $0x47c] sm:$0xf] %v2372_v5 }
  0xa6 PF: > { %p2374_p0 = scmp.ge.s32.totalorder %s3001_s22, 1  ;;  %p627_p1 = scmp.lt.s32.totalorder %s3001_s22, 9 }
  0xa8   : > { %p628_p2 = pnand %p2374_p0, %p627_p1 }
  0xa9   : > { %s634_s0 = sand.u32 (!%p628_p2), 1, %s2977_s16   ;;  %s641_s23 = sand.u32 (!%p628_p2), 1, %s2969_s14  }
  0xaa   : > { %631 = sbr.rel (%p628_p2) target bundleno = 587 (0x24b), region = 73  ;;  %s668_s7 = sand.u32 (!%p628_p2), 1, %s2961_s12  }
  0xab   : > { %s2621_s28 = smul.u32 (!%p628_p2), 48, %s634_s0  ;;  %p2375_p4 = scmp.ne.s32.totalorder (!%p628_p2), %s2985_s18, 0 }
  0xac   : > { %s2622_s11 = smul.u32 (!%p628_p2), 1152, %s641_s23 }
  0xad   : > { %s2623_s26 = smul.u32 (!%p628_p2), 24, %s668_s7  ;;  %s3538_s6 = scalar_lea.vmem (!%p628_p2), [#allocation3], %s2621_s28 }
  0xae   : > { %s675_s27 = smul.u32 (!%p628_p2), 3, %s2989_s19  ;;  %s3540_s1 = scalar_lea.vmem (!%p628_p2), [#allocation4], %s2622_s11 }
  0xaf   : > { %s3542_s25 = scalar_lea.vmem (!%p628_p2), [#allocation5], %s2623_s26 }
  0xb0   : > { %p676_p3 = scmp.lt.s32.totalorder (!%p628_p2), %s675_s27, 5 }
  0xb1   : > { %686 = sbr.rel (%p2375_p4) target bundleno = 184 (0xb8), region = 85  ;;  %v3003_v6 = vmov (!%p2375_p4), 0.0  }
  0xb2   : > { %s3795_s27 = smov (!%p676_p3, %s675_s27), 5  ;;  %687 = vst [vmem:[#allocation2] sm:$0xff] (!%p2375_p4), %v3003_v6  ;;  %688 = vst [vmem:[#allocation2 + $0x8] sm:$0xff] (!%p2375_p4), %v3003_v6 }
  0xb3   : > { %s678_s5 = scalar_lea.vmem %s3766_s2, %s3795_s27  ;;  %689 = vst [vmem:[#allocation2 + $0x10] sm:$0xff] (!%p2375_p4), %v3003_v6  ;;  %690 = vst [vmem:[#allocation2 + $0x18] sm:$0xff] (!%p2375_p4), %v3003_v6 }
  0xb4   : > { %691 = vst [vmem:[#allocation2 + $0x20] sm:$0xff] (!%p2375_p4), %v3003_v6  ;;  %692 = vst [vmem:[#allocation2 + $0x28] sm:$0xff] (!%p2375_p4), %v3003_v6 }
  0xb8 PF: > { %v2714_v7 = vld [vmem:[%s3540_s1 + $0x4] ss:$12 sps:$4 sm:$0xff]   ;;  %v2718_v9 = vld [vmem:[%s3540_s1] ss:$12 sps:$4 sm:$0xff]   ;;  %v2720_v11 = vld [vmem:[%s3540_s1 + $0x1c] ss:$12 sps:$4 sm:$0xff]  }
  0xb9   : > { %v2716_v8 = vld [vmem:[%s3540_s1 + $0x184] ss:$12 sps:$4 sm:$0xff]   ;;  %1695 = vmatprep.subr.bf16.mxu1 %v2714_v7  ;;  %v2719_v10 = vld [vmem:[%s3540_s1 + $0x180] ss:$12 sps:$4 sm:$0xff]   ;;  %v2722_v12 = vld [vmem:[%s3540_s1 + $0x19c] ss:$12 sps:$4 sm:$0xff]  }
  0xba   : > { %1738 = vmatprep.subr.bf16.mxu0 %v2716_v8  ;;  %1696 = vmatpush1.bf16.msra.mxu1 %v2718_v9  ;;  %v2724_v13 = vld [vmem:[%s3540_s1 + $0x18] ss:$12 sps:$4 sm:$0xff]   ;;  %v2726_v15 = vld [vmem:[%s3540_s1 + $0x34] ss:$12 sps:$4 sm:$0xff]   ;;  %v2730_v17 = vld [vmem:[%s3540_s1 + $0x30] ss:$12 sps:$4 sm:$0xff]  }
  0xbb   : > { %1739 = vmatpush1.bf16.msra.mxu0 %v2719_v10  ;;  %1697 = vmatprep.subr.bf16.mxu1 %v2720_v11  ;;  %v2725_v14 = vld [vmem:[%s3540_s1 + $0x198] ss:$12 sps:$4 sm:$0xff]   ;;  %v2728_v16 = vld [vmem:[%s3540_s1 + $0x1b4] ss:$12 sps:$4 sm:$0xff]   ;;  %v2731_v18 = vld [vmem:[%s3540_s1 + $0x1b0] ss:$12 sps:$4 sm:$0xff]  }
  0xbc   : > { %1740 = vmatprep.subr.bf16.mxu0 %v2722_v12  ;;  %v2732_v19 = vld [vmem:[%s3540_s1 + $0x4c] ss:$12 sps:$4 sm:$0xff]   ;;  %v2736_v21 = vld [vmem:[%s3540_s1 + $0x48] ss:$12 sps:$4 sm:$0xff]   ;;  %v2738_v23 = vld [vmem:[%s3540_s1 + $0x64] ss:$12 sps:$4 sm:$0xff]  }
  0xbd   : > { %v2734_v20 = vld [vmem:[%s3540_s1 + $0x1cc] ss:$12 sps:$4 sm:$0xff]   ;;  %v2737_v22 = vld [vmem:[%s3540_s1 + $0x1c8] ss:$12 sps:$4 sm:$0xff]   ;;  %v2740_v24 = vld [vmem:[%s3540_s1 + $0x1e4] ss:$12 sps:$4 sm:$0xff]  }
  0xbe   : > { %1698 = vmatpush1.bf16.msra.mxu1 %v2724_v13  ;;  %v2742_v25 = vld [vmem:[%s3540_s1 + $0x60] ss:$12 sps:$4 sm:$0xff]   ;;  %v2744_v27 = vld [vmem:[%s3540_s1 + $0x7c] ss:$12 sps:$4 sm:$0xff]   ;;  %v2748_v29 = vld [vmem:[%s3540_s1 + $0x78] ss:$12 sps:$4 sm:$0xff]  }
  0xbf   : > { %1741 = vmatpush1.bf16.msra.mxu0 %v2725_v14  ;;  %1699 = vmatprep.subr.bf16.mxu1 %v2726_v15  ;;  %v2743_v26 = vld [vmem:[%s3540_s1 + $0x1e0] ss:$12 sps:$4 sm:$0xff]   ;;  %v2746_v28 = vld [vmem:[%s3540_s1 + $0x1fc] ss:$12 sps:$4 sm:$0xff]   ;;  %v2749_v30 = vld [vmem:[%s3540_s1 + $0x1f8] ss:$12 sps:$4 sm:$0xff]  }
  0xc0   : > { %1742 = vmatprep.subr.bf16.mxu0 %v2728_v16  ;;  %v2750_v31 = vld [vmem:[%s3540_s1 + $0x94] ss:$12 sps:$4 sm:$0xff]   ;;  %v2754_v33 = vld [vmem:[%s3540_s1 + $0x90] ss:$12 sps:$4 sm:$0xff]   ;;  %v2756_v35 = vld [vmem:[%s3540_s1 + $0xac] ss:$12 sps:$4 sm:$0xff]  }
  0xc1   : > { %v2752_v32 = vld [vmem:[%s3540_s1 + $0x214] ss:$12 sps:$4 sm:$0xff]   ;;  %v2755_v34 = vld [vmem:[%s3540_s1 + $0x210] ss:$12 sps:$4 sm:$0xff]   ;;  %v2758_v36 = vld [vmem:[%s3540_s1 + $0x22c] ss:$12 sps:$4 sm:$0xff]  }
  0xc2   : > { %1700 = vmatpush1.bf16.msra.mxu1 %v2730_v17  ;;  %v2760_v37 = vld [vmem:[%s3540_s1 + $0xa8] ss:$12 sps:$4 sm:$0xff]   ;;  %v2762_v39 = vld [vmem:[%s3540_s1 + $0xc4] ss:$12 sps:$4 sm:$0xff]   ;;  %v2766_v41 = vld [vmem:[%s3540_s1 + $0xc0] ss:$12 sps:$4 sm:$0xff]  }
  0xc3   : > { %1743 = vmatpush1.bf16.msra.mxu0 %v2731_v18  ;;  %1701 = vmatprep.subr.bf16.mxu1 %v2732_v19  ;;  %v2761_v38 = vld [vmem:[%s3540_s1 + $0x228] ss:$12 sps:$4 sm:$0xff]   ;;  %v2764_v40 = vld [vmem:[%s3540_s1 + $0x244] ss:$12 sps:$4 sm:$0xff]   ;;  %v2767_v42 = vld [vmem:[%s3540_s1 + $0x240] ss:$12 sps:$4 sm:$0xff]  }
  0xc4   : > { %1744 = vmatprep.subr.bf16.mxu0 %v2734_v20  ;;  %v2768_v43 = vld [vmem:[%s3540_s1 + $0xdc] ss:$12 sps:$4 sm:$0xff]   ;;  %v2772_v45 = vld [vmem:[%s3540_s1 + $0xd8] ss:$12 sps:$4 sm:$0xff]   ;;  %v2774_v47 = vld [vmem:[%s3540_s1 + $0xf4] ss:$12 sps:$4 sm:$0xff]  }
  0xc5   : > { %v2770_v44 = vld [vmem:[%s3540_s1 + $0x25c] ss:$12 sps:$4 sm:$0xff]   ;;  %v2773_v46 = vld [vmem:[%s3540_s1 + $0x258] ss:$12 sps:$4 sm:$0xff]   ;;  %v2776_v48 = vld [vmem:[%s3540_s1 + $0x274] ss:$12 sps:$4 sm:$0xff]  }
  0xc6   : > { %1702 = vmatpush1.bf16.msra.mxu1 %v2736_v21  ;;  %v2778_v49 = vld [vmem:[%s3540_s1 + $0xf0] ss:$12 sps:$4 sm:$0xff]   ;;  %v2780_v51 = vld [vmem:[%s3540_s1 + $0x10c] ss:$12 sps:$4 sm:$0xff]   ;;  %v2784_v53 = vld [vmem:[%s3540_s1 + $0x108] ss:$12 sps:$4 sm:$0xff]  }
  0xc7   : > { %1745 = vmatpush1.bf16.msra.mxu0 %v2737_v22  ;;  %1703 = vmatprep.subr.bf16.mxu1 %v2738_v23  ;;  %v2779_v50 = vld [vmem:[%s3540_s1 + $0x270] ss:$12 sps:$4 sm:$0xff]   ;;  %v2782_v52 = vld [vmem:[%s3540_s1 + $0x28c] ss:$12 sps:$4 sm:$0xff]   ;;  %v2785_v54 = vld [vmem:[%s3540_s1 + $0x288] ss:$12 sps:$4 sm:$0xff]  }
  0xc8   : > { %1746 = vmatprep.subr.bf16.mxu0 %v2740_v24  ;;  %v2786_v55 = vld [vmem:[%s3540_s1 + $0x124] ss:$12 sps:$4 sm:$0xff]   ;;  %v2790_v59 = vld [vmem:[%s3540_s1 + $0x120] ss:$12 sps:$4 sm:$0xff]   ;;  %v2792_v61 = vld [vmem:[%s3540_s1 + $0x13c] ss:$12 sps:$4 sm:$0xff]  }
  0xc9   : > { %v2812_v56 = vld [vmem:[%s3538_s6 + $0x4] ss:$24 sps:$4 sm:$0xff]   ;;  %v3616_v10 = vld [vmem:[%s3538_s6] ss:$24 sps:$4 sm:$0xff]   ;;  %p2526_p5 = scmp.ne.s32.totalorder %s2985_s18, 3 }
  0xca   : > { %1704 = vmatpush1.bf16.msra.mxu1 %v2742_v25  ;;  %v2788_v57 = vld [vmem:[%s3540_s1 + $0x2a4] ss:$12 sps:$4 sm:$0xff]   ;;  %1727 = vmatprep.mubr.bf16.mxu1 %v2812_v56  ;;  %v2791_v60 = vld [vmem:[%s3540_s1 + $0x2a0] ss:$12 sps:$4 sm:$0xff]   ;;  %v2794_v62 = vld [vmem:[%s3540_s1 + $0x2bc] ss:$12 sps:$4 sm:$0xff]  }
  0xcb   : > { %1747 = vmatpush1.bf16.msra.mxu0 %v2743_v26  ;;  %1705 = vmatprep.subr.bf16.mxu1 %v2744_v27  ;;  %v3597_v58 = vld [vmem:[%s3538_s6 + $0xc] ss:$24 sps:$4 sm:$0xff]   ;;  %v3619_v11 = vld [vmem:[%s3538_s6 + $0x8] ss:$24 sps:$4 sm:$0xff]  }
  0xcc   : > { %1748 = vmatprep.subr.bf16.mxu0 %v2746_v28  ;;  %1770 = vmatprep.mubr.bf16.mxu0 %v3597_v58  ;;  %v2796_v63 = vld [vmem:[%s3540_s1 + $0x138] ss:$12 sps:$4 sm:$0xff]   ;;  %v2798_v1 = vld [vmem:[%s3540_s1 + $0x154] ss:$12 sps:$4 sm:$0xff]   ;;  %v2802_v3 = vld [vmem:[%s3540_s1 + $0x150] ss:$12 sps:$4 sm:$0xff]  }
  0xcd   : > { %v2797_v0 = vld [vmem:[%s3540_s1 + $0x2b8] ss:$12 sps:$4 sm:$0xff]   ;;  %v2800_v2 = vld [vmem:[%s3540_s1 + $0x2d4] ss:$12 sps:$4 sm:$0xff]   ;;  %v2803_v4 = vld [vmem:[%s3540_s1 + $0x2d0] ss:$12 sps:$4 sm:$0xff]  }
  0xce   : > { %1706 = vmatpush1.bf16.msra.mxu1 %v2748_v29  ;;  %v2804_v5 = vld [vmem:[%s3540_s1 + $0x16c] ss:$12 sps:$4 sm:$0xff]   ;;  %v2808_v7 = vld [vmem:[%s3540_s1 + $0x168] ss:$12 sps:$4 sm:$0xff]   ;;  %v2818_v9 = vld [vmem:[%s3540_s1 + $0x304] ss:$12 sps:$4 sm:$0xff]  }
  0xcf   : > { %1749 = vmatpush1.bf16.msra.mxu0 %v2749_v30  ;;  %1707 = vmatprep.subr.bf16.mxu1 %v2750_v31  ;;  %v2806_v6 = vld [vmem:[%s3540_s1 + $0x2ec] ss:$12 sps:$4 sm:$0xff]   ;;  %v2809_v8 = vld [vmem:[%s3540_s1 + $0x2e8] ss:$12 sps:$4 sm:$0xff]   ;;  %v2826_v21 = vld [vmem:[%s3540_s1 + $0x330] ss:$12 sps:$4 sm:$0xff]  }
  0xd0   : > { %1750 = vmatprep.subr.bf16.mxu0 %v2752_v32  ;;  %v2819_v12 = vld [vmem:[%s3540_s1 + $0xc8] ss:$12 sps:$4 sm:$0xff]   ;;  %v2816_v13 = vld [vmem:[%s3540_s1 + $0x300] ss:$12 sps:$4 sm:$0xff]   ;;  %v2821_v17 = vld [vmem:[%s3540_s1 + $0x318] ss:$12 sps:$4 sm:$0xff]  }
  0xd1   : > { %v2820_v14 = vld [vmem:[%s3540_s1 + $0x8] ss:$12 sps:$4 sm:$0xff]   ;;  %v2824_v16 = vld [vmem:[%s3540_s1 + $0xe0] ss:$12 sps:$4 sm:$0xff]   ;;  %v2829_v20 = vld [vmem:[%s3540_s1 + $0xf8] ss:$12 sps:$4 sm:$0xff]  }
  0xd2   : > { %1708 = vmatpush1.bf16.msra.mxu1 %v2754_v33  ;;  %v2823_v15 = vld [vmem:[%s3540_s1 + $0x31c] ss:$12 sps:$4 sm:$0xff]   ;;  %v2825_v18 = vld [vmem:[%s3540_s1 + $0x20] ss:$12 sps:$4 sm:$0xff]   ;;  %v2830_v22 = vld [vmem:[%s3540_s1 + $0x38] ss:$12 sps:$4 sm:$0xff]  }
  0xd3   : > { %1751 = vmatpush1.bf16.msra.mxu0 %v2755_v34  ;;  %1709 = vmatprep.subr.bf16.mxu1 %v2756_v35  ;;  %v2828_v19 = vld [vmem:[%s3540_s1 + $0x334] ss:$12 sps:$4 sm:$0xff]   ;;  %v2833_v23 = vld [vmem:[%s3540_s1 + $0x34c] ss:$12 sps:$4 sm:$0xff]   ;;  %v2834_v24 = vld [vmem:[%s3540_s1 + $0x110] ss:$12 sps:$4 sm:$0xff]  }
  0xd4   : > { %1752 = vmatprep.subr.bf16.mxu0 %v2758_v36  ;;  %v2831_v25 = vld [vmem:[%s3540_s1 + $0x348] ss:$12 sps:$4 sm:$0xff]   ;;  %v2835_v26 = vld [vmem:[%s3540_s1 + $0x50] ss:$12 sps:$4 sm:$0xff]   ;;  %v2836_v29 = vld [vmem:[%s3540_s1 + $0x360] ss:$12 sps:$4 sm:$0xff]  }
  0xd5   : > { %v2838_v27 = vld [vmem:[%s3540_s1 + $0x364] ss:$12 sps:$4 sm:$0xff]   ;;  %v2839_v28 = vld [vmem:[%s3540_s1 + $0x128] ss:$12 sps:$4 sm:$0xff]   ;;  %v2844_v32 = vld [vmem:[%s3540_s1 + $0x140] ss:$12 sps:$4 sm:$0xff]  }
  0xd6   : > { %1710 = vmatpush1.bf16.msra.mxu1 %v2760_v37  ;;  %v2840_v30 = vld [vmem:[%s3540_s1 + $0x68] ss:$12 sps:$4 sm:$0xff]   ;;  %v2841_v33 = vld [vmem:[%s3540_s1 + $0x378] ss:$12 sps:$4 sm:$0xff]   ;;  %v2845_v34 = vld [vmem:[%s3540_s1 + $0x80] ss:$12 sps:$4 sm:$0xff]  }
  0xd7   : > { %1753 = vmatpush1.bf16.msra.mxu0 %v2761_v38  ;;  %1711 = vmatprep.subr.bf16.mxu1 %v2762_v39  ;;  %v2843_v31 = vld [vmem:[%s3540_s1 + $0x37c] ss:$12 sps:$4 sm:$0xff]   ;;  %v2848_v35 = vld [vmem:[%s3540_s1 + $0x394] ss:$12 sps:$4 sm:$0xff]   ;;  %v2849_v36 = vld [vmem:[%s3540_s1 + $0x158] ss:$12 sps:$4 sm:$0xff]  }
  0xd8   : > { %1754 = vmatprep.subr.bf16.mxu0 %v2764_v40  ;;  %v2846_v37 = vld [vmem:[%s3540_s1 + $0x390] ss:$12 sps:$4 sm:$0xff]   ;;  %v2850_v38 = vld [vmem:[%s3540_s1 + $0x98] ss:$12 sps:$4 sm:$0xff]  }
  0xd9   : > { %v2853_v39 = vld [vmem:[%s3540_s1 + $0x3ac] ss:$12 sps:$4 sm:$0xff]   ;;  %v2854_v40 = vld [vmem:[%s3540_s1 + $0x170] ss:$12 sps:$4 sm:$0xff]  }
  0xda   : > { %1712 = vmatpush1.bf16.msra.mxu1 %v2766_v41  ;;  %v2851_v41 = vld [vmem:[%s3540_s1 + $0x3a8] ss:$12 sps:$4 sm:$0xff]  }
  0xdb   : > { %1755 = vmatpush1.bf16.msra.mxu0 %v2767_v42  ;;  %1713 = vmatprep.subr.bf16.mxu1 %v2768_v43  ;;  %v2855_v42 = vld [vmem:[%s3540_s1 + $0xb0] ss:$12 sps:$4 sm:$0xff]  }
  0xdc   : > { %1756 = vmatprep.subr.bf16.mxu0 %v2770_v44  ;;  %v2858_v43 = vld [vmem:[%s3540_s1 + $0x3c4] ss:$12 sps:$4 sm:$0xff]   ;;  %v2859_v44 = vld [vmem:[%s3540_s1 + $0x248] ss:$12 sps:$4 sm:$0xff]  }
  0xde   : > { %1714 = vmatpush1.bf16.msra.mxu1 %v2772_v45  ;;  %v2856_v45 = vld [vmem:[%s3540_s1 + $0x3c0] ss:$12 sps:$4 sm:$0xff]  }
  0xdf   : > { %1757 = vmatpush1.bf16.msra.mxu0 %v2773_v46  ;;  %1715 = vmatprep.subr.bf16.mxu1 %v2774_v47  ;;  %v2860_v46 = vld [vmem:[%s3540_s1 + $0x188] ss:$12 sps:$4 sm:$0xff]  }
  0xe0   : > { %1758 = vmatprep.subr.bf16.mxu0 %v2776_v48  ;;  %v2863_v47 = vld [vmem:[%s3540_s1 + $0x3dc] ss:$12 sps:$4 sm:$0xff]   ;;  %v2864_v48 = vld [vmem:[%s3540_s1 + $0x260] ss:$12 sps:$4 sm:$0xff]  }
  0xe2   : > { %1716 = vmatpush1.bf16.msra.mxu1 %v2778_v49  ;;  %v2861_v49 = vld [vmem:[%s3540_s1 + $0x3d8] ss:$12 sps:$4 sm:$0xff]  }
  0xe3   : > { %1759 = vmatpush1.bf16.msra.mxu0 %v2779_v50  ;;  %1717 = vmatprep.subr.bf16.mxu1 %v2780_v51  ;;  %v2865_v50 = vld [vmem:[%s3540_s1 + $0x1a0] ss:$12 sps:$4 sm:$0xff]  }
  0xe4   : > { %1760 = vmatprep.subr.bf16.mxu0 %v2782_v52  ;;  %v3664_v51 = vld [vmem:[%s3538_s6 + $0x14] ss:$24 sps:$4 sm:$0xff]  }
  0xe5   : > { %v2868_v52 = vld [vmem:[%s3540_s1 + $0x3f4] ss:$12 sps:$4 sm:$0xff]  }
  0xe6   : > { %1718 = vmatpush1.bf16.msra.mxu1 %v2784_v53  ;;  %v2869_v53 = vld [vmem:[%s3540_s1 + $0x278] ss:$12 sps:$4 sm:$0xff]  }
  0xe7   : > { %1761 = vmatpush1.bf16.msra.mxu0 %v2785_v54  ;;  %1719 = vmatprep.subr.bf16.mxu1 %v2786_v55  ;;  %v2866_v54 = vld [vmem:[%s3540_s1 + $0x3f0] ss:$12 sps:$4 sm:$0xff]   ;;  %v2870_v55 = vld [vmem:[%s3540_s1 + $0x1b8] ss:$12 sps:$4 sm:$0xff]  }
  0xe8   : > { %1762 = vmatprep.subr.bf16.mxu0 %v2788_v57  ;;  %v2874_v57 = vld [vmem:[%s3540_s1 + $0x290] ss:$12 sps:$4 sm:$0xff]  }
  0xea   : > { %1720 = vmatpush1.bf16.msra.mxu1 %v2790_v59  ;;  %v2871_v59 = vld [vmem:[%s3540_s1 + $0x408] ss:$12 sps:$4 sm:$0xff]  }
  0xeb   : > { %1763 = vmatpush1.bf16.msra.mxu0 %v2791_v60  ;;  %1721 = vmatprep.subr.bf16.mxu1 %v2792_v61  ;;  %v2875_v60 = vld [vmem:[%s3540_s1 + $0x1d0] ss:$12 sps:$4 sm:$0xff]  }
  0xec   : > { %1764 = vmatprep.subr.bf16.mxu0 %v2794_v62  ;;  %v2878_v61 = vld [vmem:[%s3540_s1 + $0x424] ss:$12 sps:$4 sm:$0xff]   ;;  %v2876_v62 = vld [vmem:[%s3540_s1 + $0x420] ss:$12 sps:$4 sm:$0xff]  }
  0xee   : > { %1722 = vmatpush1.bf16.msra.mxu1 %v2796_v63  ;;  %v2880_v63 = vld [vmem:[%s3540_s1 + $0x1e8] ss:$12 sps:$4 sm:$0xff]  }
  0xef   : > { %1765 = vmatpush1.bf16.msra.mxu0 %v2797_v0  ;;  %1723 = vmatprep.subr.bf16.mxu1 %v2798_v1  ;;  %v2883_v0 = vld [vmem:[%s3540_s1 + $0x43c] ss:$12 sps:$4 sm:$0xff]   ;;  %v2884_v1 = vld [vmem:[%s3540_s1 + $0x2c0] ss:$12 sps:$4 sm:$0xff]  }
  0xf0   : > { %1766 = vmatprep.subr.bf16.mxu0 %v2800_v2  ;;  %v2881_v2 = vld [vmem:[%s3540_s1 + $0x438] ss:$12 sps:$4 sm:$0xff]  }
  0xf2   : > { %1724 = vmatpush1.bf16.msra.mxu1 %v2802_v3  ;;  %v2885_v3 = vld [vmem:[%s3540_s1 + $0x200] ss:$12 sps:$4 sm:$0xff]  }
  0xf3   : > { %1767 = vmatpush1.bf16.msra.mxu0 %v2803_v4  ;;  %1725 = vmatprep.subr.bf16.mxu1 %v2804_v5  ;;  %v2888_v4 = vld [vmem:[%s3540_s1 + $0x454] ss:$12 sps:$4 sm:$0xff]   ;;  %v2889_v5 = vld [vmem:[%s3540_s1 + $0x2d8] ss:$12 sps:$4 sm:$0xff]  }
  0xf4   : > { %1768 = vmatprep.subr.bf16.mxu0 %v2806_v6  ;;  %v2886_v6 = vld [vmem:[%s3540_s1 + $0x450] ss:$12 sps:$4 sm:$0xff]  }
  0xf6   : > { %1726 = vmatpush1.bf16.msra.mxu1 %v2808_v7  ;;  %v2890_v7 = vld [vmem:[%s3540_s1 + $0x218] ss:$12 sps:$4 sm:$0xff]  }
  0xf7   : > { %1769 = vmatpush1.bf16.msra.mxu0 %v2809_v8  ;;  %2544 = vmatprep.subr.bf16.mxu1 %v2819_v12  ;;  %v2893_v8 = vld [vmem:[%s3540_s1 + $0x46c] ss:$12 sps:$4 sm:$0xff]   ;;  %v2895_v12 = vld [vmem:[%s3540_s1 + $0x230] ss:$12 sps:$4 sm:$0xff]  }
  0xf8   : > { %1781 = vmatprep.subr.bf16.mxu0 %v2818_v9  ;;  %v2894_v9 = vld [vmem:[%s3540_s1 + $0x2f0] ss:$12 sps:$4 sm:$0xff]  }
  0xf9   : > { %1728 = vmatmul.mubr.bf16.vlgmr.msra.gmra.mrb[0].mxu1 %v3616_v10 }
  0xfa   : > { %1771 = vmatmul.mubr.bf16.vlgmr.msra.gmra.mrb[0].mxu0 %v3619_v11  ;;  %2545 = vmatpush3.bf16.msra.mxu1 %v2820_v14  ;;  %v2896_v14 = vld [vmem:[%s3538_s6 + $0x10] ss:$24 sps:$4 sm:$0xff]  }
  0xfb   : > { %1782 = vmatpush1.bf16.msra.mxu0 %v2816_v13  ;;  %2546 = vmatprep.subr.bf16.mxu1 %v2824_v16  ;;  %v2899_v13 = vld [vmem:[%s3540_s1 + $0x3c8] ss:$12 sps:$4 sm:$0xff]   ;;  %v2901_v16 = vld [vmem:[%s3540_s1 + $0x3e0] ss:$12 sps:$4 sm:$0xff]  }
  0xfc   : > { %1783 = vmatprep.subr.bf16.mxu0 %v2823_v15  ;;  %1856 = vmatprep.mubr.bf16.mxu1 %v2812_v56  ;;  %v2873_v56 = vld [vmem:[%s3540_s1 + $0x40c] ss:$12 sps:$4 sm:$0xff]   ;;  %v2900_v15 = vld [vmem:[%s3540_s1 + $0x308] ss:$12 sps:$4 sm:$0xff]  }
  0xfd   : > { %1813 = vmatprep.mubr.bf16.mxu0 %v3664_v51 }
  0xfe   : > { %2547 = vmatpush3.bf16.msra.mxu1 %v2825_v18  ;;  %v2903_v18 = vld [vmem:[%s3540_s1 + $0x3f8] ss:$12 sps:$4 sm:$0xff]  }
  0xff   : > { %1784 = vmatpush1.bf16.msra.mxu0 %v2821_v17  ;;  %2548 = vmatprep.subr.bf16.mxu1 %v2829_v20  ;;  %v2902_v17 = vld [vmem:[%s3540_s1 + $0x320] ss:$12 sps:$4 sm:$0xff]   ;;  %v2905_v20 = vld [vmem:[%s3540_s1 + $0x410] ss:$12 sps:$4 sm:$0xff]  }
 0x100   : > { %1785 = vmatprep.subr.bf16.mxu0 %v2828_v19  ;;  %v2904_v19 = vld [vmem:[%s3540_s1 + $0x338] ss:$12 sps:$4 sm:$0xff]  }
 0x102   : > { %2549 = vmatpush3.bf16.msra.mxu1 %v2830_v22  ;;  %v2908_v22 = vld [vmem:[%s3540_s1 + $0x368] ss:$12 sps:$4 sm:$0xff]  }
 0x103   : > { %1786 = vmatpush1.bf16.msra.mxu0 %v2826_v21  ;;  %2550 = vmatprep.subr.bf16.mxu1 %v2834_v24  ;;  %v2906_v21 = vld [vmem:[%s3540_s1 + $0x350] ss:$12 sps:$4 sm:$0xff]   ;;  %v2910_v24 = vld [vmem:[%s3540_s1 + $0x380] ss:$12 sps:$4 sm:$0xff]  }
 0x104   : > { %1787 = vmatprep.subr.bf16.mxu0 %v2833_v23  ;;  %v2909_v23 = vld [vmem:[%s3540_s1 + $0x440] ss:$12 sps:$4 sm:$0xff]  }
 0x106   : > { %2551 = vmatpush3.bf16.msra.mxu1 %v2835_v26  ;;  %v2912_v26 = vld [vmem:[%s3540_s1 + $0x398] ss:$12 sps:$4 sm:$0xff]  }
 0x107   : > { %1788 = vmatpush1.bf16.msra.mxu0 %v2831_v25  ;;  %2552 = vmatprep.subr.bf16.mxu1 %v2839_v28  ;;  %v2911_v25 = vld [vmem:[%s3540_s1 + $0x458] ss:$12 sps:$4 sm:$0xff]   ;;  %v2914_v28 = vld [vmem:[%s3540_s1 + $0x3b0] ss:$12 sps:$4 sm:$0xff]  }
 0x108   : > { %1789 = vmatprep.subr.bf16.mxu0 %v2838_v27  ;;  %v2913_v27 = vld [vmem:[%s3540_s1 + $0x470] ss:$12 sps:$4 sm:$0xff]  }
 0x10a   : > { %2553 = vmatpush3.bf16.msra.mxu1 %v2840_v30 }
 0x10b   : > { %1790 = vmatpush1.bf16.msra.mxu0 %v2836_v29  ;;  %2554 = vmatprep.subr.bf16.mxu1 %v2844_v32 }
 0x10c   : > { %1791 = vmatprep.subr.bf16.mxu0 %v2843_v31 }
 0x10e   : > { %2555 = vmatpush3.bf16.msra.mxu1 %v2845_v34 }
 0x10f   : > { %1792 = vmatpush1.bf16.msra.mxu0 %v2841_v33  ;;  %2556 = vmatprep.subr.bf16.mxu1 %v2849_v36 }
 0x110   : > { %1793 = vmatprep.subr.bf16.mxu0 %v2848_v35 }
 0x112   : > { %2557 = vmatpush3.bf16.msra.mxu1 %v2850_v38 }
 0x113   : > { %1794 = vmatpush1.bf16.msra.mxu0 %v2846_v37  ;;  %2558 = vmatprep.subr.bf16.mxu1 %v2854_v40 }
 0x114   : > { %1795 = vmatprep.subr.bf16.mxu0 %v2853_v39  ;;  %v693_v39 = vld [vmem:[#allocation2] sm:$0xff] }
 0x116   : > { %2559 = vmatpush3.bf16.msra.mxu1 %v2855_v42 }
 0x117   : > { %1796 = vmatpush1.bf16.msra.mxu0 %v2851_v41  ;;  %2566 = vmatprep.subr.bf16.mxu1 %v2859_v44 }
 0x118   : > { %1797 = vmatprep.subr.bf16.mxu0 %v2858_v43  ;;  %v694_v43 = vld [vmem:[#allocation2 + $0x8] sm:$0xff] }
 0x119   : > { %1857 = vmatmul.mubr.bf16.vlgmr.msra.gmra.mrb[4].mxu1 %v3616_v10  ;;  %v2891_v10 = vld [vmem:[%s3540_s1 + $0x468] ss:$12 sps:$4 sm:$0xff]  }
 0x11a   : > { %2567 = vmatpush3.bf16.msra.mxu1 %v2860_v46  ;;  %1897 = vmatprep.mubr.bf16.mxu1 %v3597_v58  ;;  %v2879_v58 = vld [vmem:[%s3540_s1 + $0x2a8] ss:$12 sps:$4 sm:$0xff]  }
 0x11b   : > { %1798 = vmatpush1.bf16.msra.mxu0 %v2856_v45  ;;  %2568 = vmatprep.subr.bf16.mxu1 %v2864_v48  ;;  %v696_v48 = vld [vmem:[#allocation2 + $0x18] sm:$0xff] }
 0x11c   : > { %1799 = vmatprep.subr.bf16.mxu0 %v2863_v47 }
 0x11e   : > { %2569 = vmatpush3.bf16.msra.mxu1 %v2865_v50 }
 0x11f   : > { %1800 = vmatpush1.bf16.msra.mxu0 %v2861_v49  ;;  %2570 = vmatprep.subr.bf16.mxu1 %v2869_v53  ;;  %v697_v53 = vld [vmem:[#allocation2 + $0x20] sm:$0xff] }
 0x120   : > { %1801 = vmatprep.subr.bf16.mxu0 %v2868_v52 }
 0x122   : > { %2571 = vmatpush3.bf16.msra.mxu1 %v2870_v55 }
 0x123   : > { %1802 = vmatpush1.bf16.msra.mxu0 %v2866_v54  ;;  %2572 = vmatprep.subr.bf16.mxu1 %v2874_v57 }
 0x124   : > { %1803 = vmatprep.subr.bf16.mxu0 %v2873_v56 }
 0x126   : > { %2573 = vmatpush3.bf16.msra.mxu1 %v2875_v60 }
 0x127   : > { %1804 = vmatpush1.bf16.msra.mxu0 %v2871_v59  ;;  %2574 = vmatprep.subr.bf16.mxu1 %v2879_v58 }
 0x128   : > { %1805 = vmatprep.subr.bf16.mxu0 %v2878_v61 }
 0x12a   : > { %2575 = vmatpush3.bf16.msra.mxu1 %v2880_v63 }
 0x12b   : > { %1806 = vmatpush1.bf16.msra.mxu0 %v2876_v62  ;;  %2576 = vmatprep.subr.bf16.mxu1 %v2884_v1 }
 0x12c   : > { %1807 = vmatprep.subr.bf16.mxu0 %v2883_v0 }
 0x12e   : > { %2577 = vmatpush3.bf16.msra.mxu1 %v2885_v3  ;;  %v695_v3 = vld [vmem:[#allocation2 + $0x10] sm:$0xff] }
 0x12f   : > { %1808 = vmatpush1.bf16.msra.mxu0 %v2881_v2  ;;  %2578 = vmatprep.subr.bf16.mxu1 %v2889_v5 }
 0x130   : > { %1809 = vmatprep.subr.bf16.mxu0 %v2888_v4 }
 0x132   : > { %2579 = vmatpush3.bf16.msra.mxu1 %v2890_v7  ;;  %v698_v7 = vld [vmem:[#allocation2 + $0x28] sm:$0xff] }
 0x133   : > { %1810 = vmatpush1.bf16.msra.mxu0 %v2886_v6  ;;  %2580 = vmatprep.subr.bf16.mxu1 %v2894_v9 }
 0x134   : > { %1811 = vmatprep.subr.bf16.mxu0 %v2893_v8 }
 0x136   : > { %2581 = vmatpush3.bf16.msra.mxu1 %v2895_v12  ;;  %v1971_v12 = vlaneseq (!%p2526_p5) }
 0x137   : > { %1812 = vmatpush1.bf16.msra.mxu0 %v2891_v10  ;;  %2588 = vmatprep.subr.bf16.mxu1 %v2899_v13 }
 0x138   : > { %v1972_v13 = vshrl.u32 (!%p2526_p5), %v1971_v12, 7 }
 0x139   : > { %1898 = vmatmul.mubr.bf16.vlgmr.msra.gmra.mrb[8].mxu1 %v3619_v11  ;;  %v2907_v11 = vld [vmem:[%s3540_s1 + $0x428] ss:$12 sps:$4 sm:$0xff]  }
 0x13a   : > { %1814 = vmatmul.mubr.bf16.vlgmr.msra.gmra.mrb[0].mxu0 %v2896_v14  ;;  %2589 = vmatpush3.bf16.msra.mxu1 %v2900_v15 }
 0x13b   : > { %1938 = vmatprep.mubr.bf16.mxu1 %v3664_v51  ;;  %2590 = vmatprep.subr.bf16.mxu1 %v2901_v16  ;;  %v1973_v16 = vsub.s32 (!%p2526_p5), 0, %v1972_v13 }
 0x13e   : > { %2591 = vmatpush3.bf16.msra.mxu1 %v2902_v17  ;;  %v1977_v17 = vsub.s32 (!%p2526_p5), 1, %v1972_v13 }
 0x13f   : > { %2592 = vmatprep.subr.bf16.mxu1 %v2903_v18  ;;  %v1981_v18 = vsub.s32 (!%p2526_p5), 2, %v1972_v13 }
 0x142   : > { %2593 = vmatpush3.bf16.msra.mxu1 %v2904_v19 }
 0x143   : > { %2594 = vmatprep.subr.bf16.mxu1 %v2905_v20 }
 0x146   : > { %2595 = vmatpush3.bf16.msra.mxu1 %v2906_v21 }
 0x147   : > { %2596 = vmatprep.subr.bf16.mxu1 %v2907_v11 }
 0x14a   : > { %2597 = vmatpush3.bf16.msra.mxu1 %v2908_v22 }
 0x14b   : > { %2598 = vmatprep.subr.bf16.mxu1 %v2909_v23 }
 0x14e   : > { %2599 = vmatpush3.bf16.msra.mxu1 %v2910_v24 }
 0x14f   : > { %2600 = vmatprep.subr.bf16.mxu1 %v2911_v25 }
 0x152   : > { %2601 = vmatpush3.bf16.msra.mxu1 %v2912_v26 }
 0x153   : > { %2602 = vmatprep.subr.bf16.mxu1 %v2913_v27 }
 0x156   : > { %2603 = vmatpush3.bf16.msra.mxu1 %v2914_v28 }
 0x159   : > { %1939 = vmatmul.mubr.bf16.vlgmr.msra.gmra.mrb[12].mxu1 %v2896_v14  ;;  %v1969_v14 = vld [vmem:[%s678_s5] sm:$0x7] (!%p2526_p5) }
 0x15a   : > { %v1974_v11 = vrot.slane (!%p2526_p5), %v1969_v14, %v1973_v16  ;;  %v1978_v22 = vrot.slane (!%p2526_p5), %v1969_v14, %v1977_v17  ;;  %v1982_v23 = vrot.slane (!%p2526_p5), %v1969_v14, %v1981_v18 }
 0x1cc   : > { %v1729_v29 = vpop.f32.mrb[0].mxu1 }
 0x1cd   : > { %v1731_v30 = vpop.f32.mrb[1].mxu1 }
 0x1ce   : > { %v1733_v31 = vpop.f32.mrb[2].mxu1 }
 0x1cf   : > { %v1735_v32 = vpop.f32.mrb[3].mxu1 }
 0x1ec   : > { %v2560_v33 = vpop.f32.mrb[4].mxu1 }
 0x1ed   : > { %v2561_v34 = vpop.f32.mrb[5].mxu1 }
 0x1ee   : > { %v2562_v35 = vadd.f32 %v2561_v34, %v2560_v33  ;;  %v2563_v36 = vpop.f32.mrb[6].mxu1 }
 0x1ef   : > { %v2564_v37 = vpop.f32.mrb[7].mxu1 }
 0x1f0   : > { %v2565_v38 = vadd.f32 %v2564_v37, %v2563_v36 }
 0x20c   : > { %v2582_v41 = vpop.f32.mrb[8].mxu1 }
 0x20d   : > { %v1815_v40 = vpop.f32.mrb[0].mxu0  ;;  %v2583_v45 = vpop.f32.mrb[9].mxu1 }
 0x20e   : > { %v2610_v42 = vadd.f32 %v1815_v40, %v1729_v29  ;;  %v1817_v44 = vpop.f32.mrb[1].mxu0  ;;  %v2584_v47 = vadd.f32 %v2583_v45, %v2582_v41  ;;  %v2585_v50 = vpop.f32.mrb[10].mxu1 }
 0x20f   : > { %v2611_v46 = vadd.f32 %v1817_v44, %v1731_v30  ;;  %v1819_v49 = vpop.f32.mrb[2].mxu0  ;;  %v2586_v55 = vpop.f32.mrb[11].mxu1 }
 0x210   : > { %v1947_v51 = vadd.f32 %v2610_v42, %v693_v39  ;;  %v2612_v52 = vadd.f32 %v1819_v49, %v1733_v31  ;;  %v1821_v54 = vpop.f32.mrb[3].mxu0  ;;  %v1900_v57 = vadd.f32 %v2584_v47, %v2562_v35  ;;  %v2587_v60 = vadd.f32 %v2586_v55, %v2585_v50 }
 0x211   : > { %v1948_v56 = vadd.f32 %v2611_v46, %v694_v43  ;;  %v2613_v59 = vadd.f32 %v1821_v54, %v1735_v32 }
 0x212   : > { %1953 = vst [vmem:[#allocation2] sm:$0xff] %v1947_v51  ;;  %v1950_v61 = vadd.f32 %v2612_v52, %v696_v48  ;;  %v1903_v62 = vadd.f32 %v2587_v60, %v2565_v38 }
 0x213   : > { %1954 = vst [vmem:[#allocation2 + $0x8] sm:$0xff] %v1948_v56  ;;  %v1951_v58 = vadd.f32 %v2613_v59, %v697_v53 }
 0x214   : > { %1956 = vst [vmem:[#allocation2 + $0x18] sm:$0xff] %v1950_v61 }
 0x215   : > { %1957 = vst [vmem:[#allocation2 + $0x20] sm:$0xff] %v1951_v58 }
 0x219   : > { %v1963_v15 = vld [vmem:[#allocation2] sm:$0xff] (!%p2526_p5) }
 0x21a   : > { %v1964_v19 = vld [vmem:[#allocation2 + $0x8] sm:$0xff] (!%p2526_p5)  ;;  %v1986_v26 = vadd.f32 (!%p2526_p5), %v1974_v11, %v1963_v15 }
 0x21b   : > { %v1966_v21 = vld [vmem:[#allocation2 + $0x18] sm:$0xff] (!%p2526_p5)  ;;  %v1987_v27 = vadd.f32 (!%p2526_p5), %v1978_v22, %v1964_v19 }
 0x21c   : > { %v1967_v24 = vld [vmem:[#allocation2 + $0x20] sm:$0xff] (!%p2526_p5)  ;;  %v1989_v29 = vadd.f32 (!%p2526_p5), %v1974_v11, %v1966_v21 }
 0x21d   : > { %v1990_v30 = vadd.f32 (!%p2526_p5), %v1978_v22, %v1967_v24  ;;  %v2539_v32 = vpack.c.bf16 (!%p2526_p5), %v1987_v27, %v1986_v26 }
 0x21f   : > { %v2541_v34 = vpack.c.bf16 (!%p2526_p5), %v1990_v30, %v1989_v29  ;;  %2012 = vst [vmem:[%s3542_s25] sm:$0xff] (!%p2526_p5), %v2539_v32 }
 0x221   : > { %2014 = vst [vmem:[%s3542_s25 + $0xc] sm:$0xff] (!%p2526_p5), %v2541_v34 }
 0x22c   : > { %v2604_v63 = vpop.f32.mrb[12].mxu1 }
 0x22d   : > { %v2605_v0 = vpop.f32.mrb[13].mxu1 }
 0x22e   : > { %v2606_v1 = vadd.f32 %v2605_v0, %v2604_v63  ;;  %v2607_v2 = vpop.f32.mrb[14].mxu1 }
 0x22f   : > { %v2608_v4 = vpop.f32.mrb[15].mxu1 }
 0x230   : > { %v1941_v5 = vadd.f32 %v2606_v1, %v1900_v57  ;;  %v2609_v6 = vadd.f32 %v2608_v4, %v2607_v2  ;;  %1962 = sbr.rel (%p2526_p5) target bundleno = 579 (0x243), region = 89 }
 0x232   : > { %v1949_v8 = vadd.f32 %v1941_v5, %v695_v3  ;;  %v1944_v9 = vadd.f32 %v2609_v6, %v1903_v62 }
 0x234   : > { %1955 = vst [vmem:[#allocation2 + $0x10] sm:$0xff] %v1949_v8  ;;  %v1952_v10 = vadd.f32 %v1944_v9, %v698_v7 }
 0x236   : > { %1958 = vst [vmem:[#allocation2 + $0x28] sm:$0xff] %v1952_v10 }
 0x23b   : > { %v1965_v20 = vld [vmem:[#allocation2 + $0x10] sm:$0xff] }
 0x23c   : > { %v1988_v28 = vadd.f32 %v1982_v23, %v1965_v20 }
 0x23d   : > { %v1968_v25 = vld [vmem:[#allocation2 + $0x28] sm:$0xff] }
 0x23e   : > { %v1991_v31 = vadd.f32 %v1982_v23, %v1968_v25  ;;  %v2540_v33 = vpack.c.bf16 %v1988_v28, %v1988_v28 }
 0x240   : > { %v2542_v35 = vpack.c.bf16 %v1991_v31, %v1991_v31  ;;  %2013 = vst [vmem:[%s3542_s25 + $0x8] sm:$0xf] %v2540_v33 }
 0x242   : > { %2015 = vst [vmem:[%s3542_s25 + $0x14] sm:$0xf] %v2542_v35 }
 0x243 PF: > { %2022 = sbr.rel (!%p3118_p12) target bundleno = 587 (0x24b), region = 93  ;;  %v2043_v36 = vld [vmem:[%s3542_s25] sm:$0xff] (%p3118_p12)  ;;  %v2045_v37 = vld [vmem:[%s3542_s25 + $0xc] sm:$0xff] (%p3118_p12) }
 0x244   : > { %s2543_s14 = smul.u32 (%p3118_p12), 12, %s2989_s19 }
 0x246   : > { %s2028_s0 = scalar_lea.vmem (%p3118_p12), %s3767_s3, %s2543_s14 }
 0x247   : > { %v2532_v38 = vld [vmem:[%s3542_s25 + $0x8] sm:$0xf] (%p3118_p12)  ;;  %2044 = vst [vmem:[%s2028_s0] sm:$0xff] (%p3118_p12), %v2043_v36  ;;  %2046 = vst [vmem:[%s2028_s0 + $0x18] sm:$0xff] (%p3118_p12), %v2045_v37 }
 0x248   : > { %2533 = vst [vmem:[%s2028_s0 + $0x8] sm:$0xf] (%p3118_p12), %v2532_v38 }
 0x249   : > { %v2534_v39 = vld [vmem:[%s3542_s25 + $0x14] sm:$0xf] (%p3118_p12) }
 0x24a   : > { %2535 = vst [vmem:[%s2028_s0 + $0x20] sm:$0xf] %v2534_v39 }
 0x24b PF: > { %s13_s22 = sadd.s32 1, %s3001_s22   ;;  %s3777_s25 = sld [smem:[#allocation6_spill]] }
 0x24c   : > { %p10_p6 = scmp.ge.s32.totalorder %s13_s22, 10   ;;  %s3778_s12 = smov %s2965_s13 }
 0x24d   : > { %s3779_s13 = smov %s3116_s9  ;;  %s3780_s14 = smov %s2973_s15 }
 0x24e   : > { %s3781_s15 = smov %s3113_s8  ;;  %s3782_s16 = smov %s2981_s17 }
 0x24f   : > { %s3783_s17 = smov %s3099_s30  ;;  %s3784_s18 = smov %s2993_s20 }
 0x250   : > { %s3785_s19 = smov %s2997_s21  ;;  %s3786_s20 = smov %s3789_s24 }
 0x251   : > { %s3787_s21 = smov %s3777_s25  ;;  %12 = sbr.rel (!%p10_p6) target bundleno = 9 (0x9), region = 173 }

// kernel: weighted_bce_bert_forward.24
= control target key start
LH: loop header
LB: loop body
LE: loop exit
PB: predicated region body
PF: predicated region fallthrough
CT: control target
= control target key end

     0   :  { %s2900_s12 = smov 0   ;;  %s2902_s13 = smov 0   ;;  %s3552_s0 = inlined_call_operand.vmem [shape: bf16[16,768], index: 0, kind: input, shape index: {}]   ;;  %s3553_s1 = inlined_call_operand.vmem [shape: bf16[768,2304], index: 1, kind: input, shape index: {}]   ;;  %s3554_s2 = inlined_call_operand.vmem [shape: f32[1,2304], index: 2, kind: input, shape index: {}]   ;;  %s3555_s3 = inlined_call_operand.vmem [shape: bf16[16,2304], index: 3, kind: output, shape index: {}]  }
   0x1   :  { %s2904_s14 = smov 0   ;;  %s2906_s15 = smov 0  }
   0x2   :  { %s2908_s16 = smov 0  }
   0x3 LB: > { %s28_s17 = sadd.s32 1, %s2874_s15  ;;  %s2156_s18 = sadd.s32 4294967295, %s2878_s16   ;;  %s2878_s16 = sphi %s2908_s16, %s13_s16   ;;  %s2874_s15 = sphi %s2906_s15, %s3560_s15   ;;  %s2870_s14 = sphi %s2904_s14, %s3559_s14   ;;  %s2866_s13 = sphi %s2902_s13, %s3558_s13   ;;  %s2862_s12 = sphi %s2900_s12, %s3557_s12  }
   0x4   : > { %p30_p0 = scmp.ge.s32.totalorder %s28_s17, 6  ;;  %p76_p1 = scmp.ne.s32.totalorder %s2866_s13, %s2862_s12 }
   0x5   : > { %p77_p2 = scmp.eq.s32.totalorder %s2878_s16, 0  ;;  %p134_p4 = scmp.eq.s32.totalorder %s2156_s18, 5 }
   0x6   : > { %s3562_s17 = smov (%p30_p0, %s28_s17), 0  ;;  %s69_s20 = sadd.s32 1, %s2866_s13 }
   0x7   : > { %p78_p3 = por %p77_p2, %p76_p1  ;;  %s65_s19 = ssub.s32 %s2874_s15, %s3562_s17 }
   0x8   : > { %p67_p5 = scmp.eq.s32.totalorder %s65_s19, 0  ;;  %p2935_p6 = por %p134_p4, %p76_p1 }
   0x9   : > { %p2160_p7 = scmp.ge.s32.totalorder %s2878_s16, 6 }
   0xa   : > { %s2940_s22 = scalar_select %p67_p5, %s2866_s13, %s69_s20  }
   0xb   : > { %171 = sbr.rel (%p2160_p7) target bundleno = 135 (0x87), region = 20 }
  0x12   : > { %174 = sbr.rel (!%p78_p3) target bundleno = 135 (0x87), region = 24  ;;  %s176_s23 = sand.u32 (%p78_p3), 1, %s2866_s13  }
  0x13   : > { %s2516_s24 = smul.u32 (%p78_p3), 12, %s2874_s15 }
  0x14   : > { %s2596_s25 = smul.u32 (%p78_p3), 1152, %s176_s23 }
  0x15   : > { %s2948_s28 = scalar_lea.vmem (%p78_p3), %s3553_s1, %s2516_s24 }
  0x16   : > { %v199_v0 = vld [vmem:[%s2948_s28] sm:$0xff] (%p78_p3)  ;;  %v201_v1 = vld [vmem:[%s2948_s28 + $0x48] sm:$0xff] (%p78_p3)  ;;  %v203_v2 = vld [vmem:[%s2948_s28 + $0x90] sm:$0xff] (%p78_p3)  ;;  %s2953_s29 = scalar_lea.vmem (%p78_p3), [#allocation3], %s2596_s25 }
  0x17   : > { %200 = vst [vmem:[%s2953_s29] sm:$0xff] (%p78_p3), %v199_v0  ;;  %202 = vst [vmem:[%s2953_s29 + $0xc] sm:$0xff] (%p78_p3), %v201_v1  ;;  %v205_v3 = vld [vmem:[%s2948_s28 + $0xd8] sm:$0xff] (%p78_p3)  ;;  %v207_v4 = vld [vmem:[%s2948_s28 + $0x120] sm:$0xff] (%p78_p3) }
  0x18   : > { %204 = vst [vmem:[%s2953_s29 + $0x18] sm:$0xff] (%p78_p3), %v203_v2  ;;  %v209_v5 = vld [vmem:[%s2948_s28 + $0x168] sm:$0xff] (%p78_p3)  ;;  %206 = vst [vmem:[%s2953_s29 + $0x24] sm:$0xff] (%p78_p3), %v205_v3  ;;  %v211_v6 = vld [vmem:[%s2948_s28 + $0x1b0] sm:$0xff] (%p78_p3) }
  0x19   : > { %208 = vst [vmem:[%s2953_s29 + $0x30] sm:$0xff] %v207_v4  ;;  %210 = vst [vmem:[%s2953_s29 + $0x3c] sm:$0xff] %v209_v5  ;;  %v213_v7 = vld [vmem:[%s2948_s28 + $0x1f8] sm:$0xff]  ;;  %v215_v8 = vld [vmem:[%s2948_s28 + $0x240] sm:$0xff] }
  0x1a   : > { %212 = vst [vmem:[%s2953_s29 + $0x48] sm:$0xff] %v211_v6  ;;  %214 = vst [vmem:[%s2953_s29 + $0x54] sm:$0xff] %v213_v7  ;;  %v217_v9 = vld [vmem:[%s2948_s28 + $0x288] sm:$0xff]  ;;  %v219_v10 = vld [vmem:[%s2948_s28 + $0x2d0] sm:$0xff] }
  0x1b   : > { %216 = vst [vmem:[%s2953_s29 + $0x60] sm:$0xff] %v215_v8  ;;  %v221_v11 = vld [vmem:[%s2948_s28 + $0x318] sm:$0xff]  ;;  %218 = vst [vmem:[%s2953_s29 + $0x6c] sm:$0xff] %v217_v9  ;;  %v223_v12 = vld [vmem:[%s2948_s28 + $0x360] sm:$0xff] }
  0x1c   : > { %220 = vst [vmem:[%s2953_s29 + $0x78] sm:$0xff] %v219_v10  ;;  %222 = vst [vmem:[%s2953_s29 + $0x84] sm:$0xff] %v221_v11  ;;  %v225_v13 = vld [vmem:[%s2948_s28 + $0x3a8] sm:$0xff]  ;;  %v227_v14 = vld [vmem:[%s2948_s28 + $0x3f0] sm:$0xff] }
  0x1d   : > { %224 = vst [vmem:[%s2953_s29 + $0x90] sm:$0xff] %v223_v12  ;;  %226 = vst [vmem:[%s2953_s29 + $0x9c] sm:$0xff] %v225_v13  ;;  %v229_v15 = vld [vmem:[%s2948_s28 + $0x438] sm:$0xff]  ;;  %v231_v16 = vld [vmem:[%s2948_s28 + $0x480] sm:$0xff] }
  0x1e   : > { %228 = vst [vmem:[%s2953_s29 + $0xa8] sm:$0xff] %v227_v14  ;;  %v233_v17 = vld [vmem:[%s2948_s28 + $0x4c8] sm:$0xff]  ;;  %230 = vst [vmem:[%s2953_s29 + $0xb4] sm:$0xff] %v229_v15  ;;  %v235_v18 = vld [vmem:[%s2948_s28 + $0x510] sm:$0xff] }
  0x1f   : > { %232 = vst [vmem:[%s2953_s29 + $0xc0] sm:$0xff] %v231_v16  ;;  %234 = vst [vmem:[%s2953_s29 + $0xcc] sm:$0xff] %v233_v17  ;;  %v237_v19 = vld [vmem:[%s2948_s28 + $0x558] sm:$0xff]  ;;  %v239_v20 = vld [vmem:[%s2948_s28 + $0x5a0] sm:$0xff] }
  0x20   : > { %236 = vst [vmem:[%s2953_s29 + $0xd8] sm:$0xff] %v235_v18  ;;  %238 = vst [vmem:[%s2953_s29 + $0xe4] sm:$0xff] %v237_v19  ;;  %v241_v21 = vld [vmem:[%s2948_s28 + $0x5e8] sm:$0xff]  ;;  %v243_v22 = vld [vmem:[%s2948_s28 + $0x630] sm:$0xff] }
  0x21   : > { %240 = vst [vmem:[%s2953_s29 + $0xf0] sm:$0xff] %v239_v20  ;;  %v245_v23 = vld [vmem:[%s2948_s28 + $0x678] sm:$0xff]  ;;  %242 = vst [vmem:[%s2953_s29 + $0xfc] sm:$0xff] %v241_v21  ;;  %v247_v24 = vld [vmem:[%s2948_s28 + $0x6c0] sm:$0xff] }
  0x22   : > { %244 = vst [vmem:[%s2953_s29 + $0x108] sm:$0xff] %v243_v22  ;;  %246 = vst [vmem:[%s2953_s29 + $0x114] sm:$0xff] %v245_v23  ;;  %v249_v25 = vld [vmem:[%s2948_s28 + $0x708] sm:$0xff]  ;;  %v251_v26 = vld [vmem:[%s2948_s28 + $0x750] sm:$0xff] }
  0x23   : > { %248 = vst [vmem:[%s2953_s29 + $0x120] sm:$0xff] %v247_v24  ;;  %250 = vst [vmem:[%s2953_s29 + $0x12c] sm:$0xff] %v249_v25  ;;  %v253_v27 = vld [vmem:[%s2948_s28 + $0x798] sm:$0xff]  ;;  %v255_v28 = vld [vmem:[%s2948_s28 + $0x7e0] sm:$0xff] }
  0x24   : > { %252 = vst [vmem:[%s2953_s29 + $0x138] sm:$0xff] %v251_v26  ;;  %v257_v29 = vld [vmem:[%s2948_s28 + $0x828] sm:$0xff]  ;;  %254 = vst [vmem:[%s2953_s29 + $0x144] sm:$0xff] %v253_v27  ;;  %v259_v30 = vld [vmem:[%s2948_s28 + $0x870] sm:$0xff] }
  0x25   : > { %256 = vst [vmem:[%s2953_s29 + $0x150] sm:$0xff] %v255_v28  ;;  %258 = vst [vmem:[%s2953_s29 + $0x15c] sm:$0xff] %v257_v29  ;;  %v261_v31 = vld [vmem:[%s2948_s28 + $0x8b8] sm:$0xff]  ;;  %v263_v32 = vld [vmem:[%s2948_s28 + $0x900] sm:$0xff] }
  0x26   : > { %260 = vst [vmem:[%s2953_s29 + $0x168] sm:$0xff] %v259_v30  ;;  %262 = vst [vmem:[%s2953_s29 + $0x174] sm:$0xff] %v261_v31  ;;  %v265_v33 = vld [vmem:[%s2948_s28 + $0x948] sm:$0xff]  ;;  %v267_v34 = vld [vmem:[%s2948_s28 + $0x990] sm:$0xff] }
  0x27   : > { %264 = vst [vmem:[%s2953_s29 + $0x180] sm:$0xff] %v263_v32  ;;  %v269_v35 = vld [vmem:[%s2948_s28 + $0x9d8] sm:$0xff]  ;;  %266 = vst [vmem:[%s2953_s29 + $0x18c] sm:$0xff] %v265_v33  ;;  %v271_v36 = vld [vmem:[%s2948_s28 + $0xa20] sm:$0xff] }
  0x28   : > { %268 = vst [vmem:[%s2953_s29 + $0x198] sm:$0xff] %v267_v34  ;;  %270 = vst [vmem:[%s2953_s29 + $0x1a4] sm:$0xff] %v269_v35  ;;  %v273_v37 = vld [vmem:[%s2948_s28 + $0xa68] sm:$0xff]  ;;  %v275_v38 = vld [vmem:[%s2948_s28 + $0xab0] sm:$0xff] }
  0x29   : > { %272 = vst [vmem:[%s2953_s29 + $0x1b0] sm:$0xff] %v271_v36  ;;  %274 = vst [vmem:[%s2953_s29 + $0x1bc] sm:$0xff] %v273_v37  ;;  %v277_v39 = vld [vmem:[%s2948_s28 + $0xaf8] sm:$0xff]  ;;  %v279_v40 = vld [vmem:[%s2948_s28 + $0xb40] sm:$0xff] }
  0x2a   : > { %276 = vst [vmem:[%s2953_s29 + $0x1c8] sm:$0xff] %v275_v38  ;;  %v281_v41 = vld [vmem:[%s2948_s28 + $0xb88] sm:$0xff]  ;;  %278 = vst [vmem:[%s2953_s29 + $0x1d4] sm:$0xff] %v277_v39  ;;  %v283_v42 = vld [vmem:[%s2948_s28 + $0xbd0] sm:$0xff] }
  0x2b   : > { %280 = vst [vmem:[%s2953_s29 + $0x1e0] sm:$0xff] %v279_v40  ;;  %282 = vst [vmem:[%s2953_s29 + $0x1ec] sm:$0xff] %v281_v41  ;;  %v285_v43 = vld [vmem:[%s2948_s28 + $0xc18] sm:$0xff]  ;;  %v287_v44 = vld [vmem:[%s2948_s28 + $0xc60] sm:$0xff] }
  0x2c   : > { %284 = vst [vmem:[%s2953_s29 + $0x1f8] sm:$0xff] %v283_v42  ;;  %286 = vst [vmem:[%s2953_s29 + $0x204] sm:$0xff] %v285_v43  ;;  %v289_v45 = vld [vmem:[%s2948_s28 + $0xca8] sm:$0xff]  ;;  %v291_v46 = vld [vmem:[%s2948_s28 + $0xcf0] sm:$0xff] }
  0x2d   : > { %288 = vst [vmem:[%s2953_s29 + $0x210] sm:$0xff] %v287_v44  ;;  %v293_v47 = vld [vmem:[%s2948_s28 + $0xd38] sm:$0xff]  ;;  %290 = vst [vmem:[%s2953_s29 + $0x21c] sm:$0xff] %v289_v45  ;;  %v295_v48 = vld [vmem:[%s2948_s28 + $0xd80] sm:$0xff] }
  0x2e   : > { %292 = vst [vmem:[%s2953_s29 + $0x228] sm:$0xff] %v291_v46  ;;  %294 = vst [vmem:[%s2953_s29 + $0x234] sm:$0xff] %v293_v47  ;;  %v297_v49 = vld [vmem:[%s2948_s28 + $0xdc8] sm:$0xff]  ;;  %v299_v50 = vld [vmem:[%s2948_s28 + $0xe10] sm:$0xff] }
  0x2f   : > { %296 = vst [vmem:[%s2953_s29 + $0x240] sm:$0xff] %v295_v48  ;;  %298 = vst [vmem:[%s2953_s29 + $0x24c] sm:$0xff] %v297_v49  ;;  %v301_v51 = vld [vmem:[%s2948_s28 + $0xe58] sm:$0xff]  ;;  %v303_v52 = vld [vmem:[%s2948_s28 + $0xea0] sm:$0xff] }
  0x30   : > { %300 = vst [vmem:[%s2953_s29 + $0x258] sm:$0xff] %v299_v50  ;;  %v305_v53 = vld [vmem:[%s2948_s28 + $0xee8] sm:$0xff]  ;;  %302 = vst [vmem:[%s2953_s29 + $0x264] sm:$0xff] %v301_v51  ;;  %v307_v54 = vld [vmem:[%s2948_s28 + $0xf30] sm:$0xff] }
  0x31   : > { %304 = vst [vmem:[%s2953_s29 + $0x270] sm:$0xff] %v303_v52  ;;  %306 = vst [vmem:[%s2953_s29 + $0x27c] sm:$0xff] %v305_v53  ;;  %v309_v55 = vld [vmem:[%s2948_s28 + $0xf78] sm:$0xff]  ;;  %v311_v56 = vld [vmem:[%s2948_s28 + $0xfc0] sm:$0xff] }
  0x32   : > { %308 = vst [vmem:[%s2953_s29 + $0x288] sm:$0xff] %v307_v54  ;;  %310 = vst [vmem:[%s2953_s29 + $0x294] sm:$0xff] %v309_v55  ;;  %v313_v57 = vld [vmem:[%s2948_s28 + $0x1008] sm:$0xff]  ;;  %v315_v58 = vld [vmem:[%s2948_s28 + $0x1050] sm:$0xff] }
  0x33   : > { %312 = vst [vmem:[%s2953_s29 + $0x2a0] sm:$0xff] %v311_v56  ;;  %v317_v59 = vld [vmem:[%s2948_s28 + $0x1098] sm:$0xff]  ;;  %314 = vst [vmem:[%s2953_s29 + $0x2ac] sm:$0xff] %v313_v57  ;;  %v319_v60 = vld [vmem:[%s2948_s28 + $0x10e0] sm:$0xff] }
  0x34   : > { %316 = vst [vmem:[%s2953_s29 + $0x2b8] sm:$0xff] %v315_v58  ;;  %318 = vst [vmem:[%s2953_s29 + $0x2c4] sm:$0xff] %v317_v59  ;;  %v321_v61 = vld [vmem:[%s2948_s28 + $0x1128] sm:$0xff]  ;;  %v323_v62 = vld [vmem:[%s2948_s28 + $0x1170] sm:$0xff] }
  0x35   : > { %320 = vst [vmem:[%s2953_s29 + $0x2d0] sm:$0xff] %v319_v60  ;;  %322 = vst [vmem:[%s2953_s29 + $0x2dc] sm:$0xff] %v321_v61  ;;  %v325_v63 = vld [vmem:[%s2948_s28 + $0x11b8] sm:$0xff]  ;;  %v327_v0 = vld [vmem:[%s2948_s28 + $0x1200] sm:$0xff] }
  0x36   : > { %324 = vst [vmem:[%s2953_s29 + $0x2e8] sm:$0xff] %v323_v62  ;;  %v329_v1 = vld [vmem:[%s2948_s28 + $0x1248] sm:$0xff]  ;;  %326 = vst [vmem:[%s2953_s29 + $0x2f4] sm:$0xff] %v325_v63  ;;  %v331_v2 = vld [vmem:[%s2948_s28 + $0x1290] sm:$0xff] }
  0x37   : > { %328 = vst [vmem:[%s2953_s29 + $0x300] sm:$0xff] %v327_v0  ;;  %330 = vst [vmem:[%s2953_s29 + $0x30c] sm:$0xff] %v329_v1  ;;  %v333_v3 = vld [vmem:[%s2948_s28 + $0x12d8] sm:$0xff]  ;;  %v335_v4 = vld [vmem:[%s2948_s28 + $0x1320] sm:$0xff] }
  0x38   : > { %332 = vst [vmem:[%s2953_s29 + $0x318] sm:$0xff] %v331_v2  ;;  %334 = vst [vmem:[%s2953_s29 + $0x324] sm:$0xff] %v333_v3  ;;  %v337_v5 = vld [vmem:[%s2948_s28 + $0x1368] sm:$0xff]  ;;  %v339_v6 = vld [vmem:[%s2948_s28 + $0x13b0] sm:$0xff] }
  0x39   : > { %336 = vst [vmem:[%s2953_s29 + $0x330] sm:$0xff] %v335_v4  ;;  %v341_v7 = vld [vmem:[%s2948_s28 + $0x13f8] sm:$0xff]  ;;  %338 = vst [vmem:[%s2953_s29 + $0x33c] sm:$0xff] %v337_v5  ;;  %v343_v8 = vld [vmem:[%s2948_s28 + $0x1440] sm:$0xff] }
  0x3a   : > { %340 = vst [vmem:[%s2953_s29 + $0x348] sm:$0xff] %v339_v6  ;;  %342 = vst [vmem:[%s2953_s29 + $0x354] sm:$0xff] %v341_v7  ;;  %v345_v9 = vld [vmem:[%s2948_s28 + $0x1488] sm:$0xff]  ;;  %v347_v10 = vld [vmem:[%s2948_s28 + $0x14d0] sm:$0xff] }
  0x3b   : > { %344 = vst [vmem:[%s2953_s29 + $0x360] sm:$0xff] %v343_v8  ;;  %346 = vst [vmem:[%s2953_s29 + $0x36c] sm:$0xff] %v345_v9  ;;  %v349_v11 = vld [vmem:[%s2948_s28 + $0x1518] sm:$0xff]  ;;  %v351_v12 = vld [vmem:[%s2948_s28 + $0x1560] sm:$0xff] }
  0x3c   : > { %348 = vst [vmem:[%s2953_s29 + $0x378] sm:$0xff] %v347_v10  ;;  %v353_v13 = vld [vmem:[%s2948_s28 + $0x15a8] sm:$0xff]  ;;  %350 = vst [vmem:[%s2953_s29 + $0x384] sm:$0xff] %v349_v11  ;;  %v355_v14 = vld [vmem:[%s2948_s28 + $0x15f0] sm:$0xff] }
  0x3d   : > { %352 = vst [vmem:[%s2953_s29 + $0x390] sm:$0xff] %v351_v12  ;;  %354 = vst [vmem:[%s2953_s29 + $0x39c] sm:$0xff] %v353_v13  ;;  %v357_v15 = vld [vmem:[%s2948_s28 + $0x1638] sm:$0xff]  ;;  %v359_v16 = vld [vmem:[%s2948_s28 + $0x1680] sm:$0xff] }
  0x3e   : > { %356 = vst [vmem:[%s2953_s29 + $0x3a8] sm:$0xff] %v355_v14  ;;  %358 = vst [vmem:[%s2953_s29 + $0x3b4] sm:$0xff] %v357_v15  ;;  %v361_v17 = vld [vmem:[%s2948_s28 + $0x16c8] sm:$0xff]  ;;  %v363_v18 = vld [vmem:[%s2948_s28 + $0x1710] sm:$0xff] }
  0x3f   : > { %360 = vst [vmem:[%s2953_s29 + $0x3c0] sm:$0xff] %v359_v16  ;;  %v365_v19 = vld [vmem:[%s2948_s28 + $0x1758] sm:$0xff]  ;;  %362 = vst [vmem:[%s2953_s29 + $0x3cc] sm:$0xff] %v361_v17  ;;  %v367_v20 = vld [vmem:[%s2948_s28 + $0x17a0] sm:$0xff] }
  0x40   : > { %364 = vst [vmem:[%s2953_s29 + $0x3d8] sm:$0xff] %v363_v18  ;;  %366 = vst [vmem:[%s2953_s29 + $0x3e4] sm:$0xff] %v365_v19  ;;  %v369_v21 = vld [vmem:[%s2948_s28 + $0x17e8] sm:$0xff]  ;;  %v371_v22 = vld [vmem:[%s2948_s28 + $0x1830] sm:$0xff] }
  0x41   : > { %368 = vst [vmem:[%s2953_s29 + $0x3f0] sm:$0xff] %v367_v20  ;;  %370 = vst [vmem:[%s2953_s29 + $0x3fc] sm:$0xff] %v369_v21  ;;  %v373_v23 = vld [vmem:[%s2948_s28 + $0x1878] sm:$0xff]  ;;  %v375_v24 = vld [vmem:[%s2948_s28 + $0x18c0] sm:$0xff] }
  0x42   : > { %372 = vst [vmem:[%s2953_s29 + $0x408] sm:$0xff] %v371_v22  ;;  %v377_v25 = vld [vmem:[%s2948_s28 + $0x1908] sm:$0xff]  ;;  %374 = vst [vmem:[%s2953_s29 + $0x414] sm:$0xff] %v373_v23  ;;  %v379_v26 = vld [vmem:[%s2948_s28 + $0x1950] sm:$0xff] }
  0x43   : > { %376 = vst [vmem:[%s2953_s29 + $0x420] sm:$0xff] %v375_v24  ;;  %378 = vst [vmem:[%s2953_s29 + $0x42c] sm:$0xff] %v377_v25  ;;  %v381_v27 = vld [vmem:[%s2948_s28 + $0x1998] sm:$0xff]  ;;  %v383_v28 = vld [vmem:[%s2948_s28 + $0x19e0] sm:$0xff] }
  0x44   : > { %380 = vst [vmem:[%s2953_s29 + $0x438] sm:$0xff] %v379_v26  ;;  %382 = vst [vmem:[%s2953_s29 + $0x444] sm:$0xff] %v381_v27  ;;  %v385_v29 = vld [vmem:[%s2948_s28 + $0x1a28] sm:$0xff]  ;;  %v387_v30 = vld [vmem:[%s2948_s28 + $0x1a70] sm:$0xff] }
  0x45   : > { %384 = vst [vmem:[%s2953_s29 + $0x450] sm:$0xff] %v383_v28  ;;  %v389_v31 = vld [vmem:[%s2948_s28 + $0x1ab8] sm:$0xff]  ;;  %386 = vst [vmem:[%s2953_s29 + $0x45c] sm:$0xff] %v385_v29  ;;  %v2162_v32 = vld [vmem:[%s2948_s28 + $0x8] sm:$0xf] }
  0x46   : > { %388 = vst [vmem:[%s2953_s29 + $0x468] sm:$0xff] %v387_v30  ;;  %390 = vst [vmem:[%s2953_s29 + $0x474] sm:$0xff] %v389_v31  ;;  %v2164_v33 = vld [vmem:[%s2948_s28 + $0x50] sm:$0xf]  ;;  %v2166_v34 = vld [vmem:[%s2948_s28 + $0x98] sm:$0xf] }
  0x47   : > { %2163 = vst [vmem:[%s2953_s29 + $0x8] sm:$0xf] %v2162_v32  ;;  %2165 = vst [vmem:[%s2953_s29 + $0x14] sm:$0xf] %v2164_v33  ;;  %v2168_v35 = vld [vmem:[%s2948_s28 + $0xe0] sm:$0xf] }
  0x48   : > { %2167 = vst [vmem:[%s2953_s29 + $0x20] sm:$0xf] %v2166_v34  ;;  %v2170_v36 = vld [vmem:[%s2948_s28 + $0x128] sm:$0xf]  ;;  %v2172_v37 = vld [vmem:[%s2948_s28 + $0x170] sm:$0xf] }
  0x49   : > { %2169 = vst [vmem:[%s2953_s29 + $0x2c] sm:$0xf] %v2168_v35  ;;  %2171 = vst [vmem:[%s2953_s29 + $0x38] sm:$0xf] %v2170_v36  ;;  %v2174_v38 = vld [vmem:[%s2948_s28 + $0x1b8] sm:$0xf] }
  0x4a   : > { %2173 = vst [vmem:[%s2953_s29 + $0x44] sm:$0xf] %v2172_v37  ;;  %v2176_v39 = vld [vmem:[%s2948_s28 + $0x200] sm:$0xf]  ;;  %v2178_v40 = vld [vmem:[%s2948_s28 + $0x248] sm:$0xf] }
  0x4b   : > { %2175 = vst [vmem:[%s2953_s29 + $0x50] sm:$0xf] %v2174_v38  ;;  %2177 = vst [vmem:[%s2953_s29 + $0x5c] sm:$0xf] %v2176_v39  ;;  %v2180_v41 = vld [vmem:[%s2948_s28 + $0x290] sm:$0xf] }
  0x4c   : > { %2179 = vst [vmem:[%s2953_s29 + $0x68] sm:$0xf] %v2178_v40  ;;  %v2182_v42 = vld [vmem:[%s2948_s28 + $0x2d8] sm:$0xf]  ;;  %v2184_v43 = vld [vmem:[%s2948_s28 + $0x320] sm:$0xf] }
  0x4d   : > { %2181 = vst [vmem:[%s2953_s29 + $0x74] sm:$0xf] %v2180_v41  ;;  %2183 = vst [vmem:[%s2953_s29 + $0x80] sm:$0xf] %v2182_v42  ;;  %v2186_v44 = vld [vmem:[%s2948_s28 + $0x368] sm:$0xf] }
  0x4e   : > { %2185 = vst [vmem:[%s2953_s29 + $0x8c] sm:$0xf] %v2184_v43  ;;  %v2188_v45 = vld [vmem:[%s2948_s28 + $0x3b0] sm:$0xf]  ;;  %v2190_v46 = vld [vmem:[%s2948_s28 + $0x3f8] sm:$0xf] }
  0x4f   : > { %2187 = vst [vmem:[%s2953_s29 + $0x98] sm:$0xf] %v2186_v44  ;;  %2189 = vst [vmem:[%s2953_s29 + $0xa4] sm:$0xf] %v2188_v45  ;;  %v2192_v47 = vld [vmem:[%s2948_s28 + $0x440] sm:$0xf] }
  0x50   : > { %2191 = vst [vmem:[%s2953_s29 + $0xb0] sm:$0xf] %v2190_v46  ;;  %v2194_v48 = vld [vmem:[%s2948_s28 + $0x488] sm:$0xf]  ;;  %v2196_v49 = vld [vmem:[%s2948_s28 + $0x4d0] sm:$0xf] }
  0x51   : > { %2193 = vst [vmem:[%s2953_s29 + $0xbc] sm:$0xf] %v2192_v47  ;;  %2195 = vst [vmem:[%s2953_s29 + $0xc8] sm:$0xf] %v2194_v48  ;;  %v2198_v50 = vld [vmem:[%s2948_s28 + $0x518] sm:$0xf] }
  0x52   : > { %2197 = vst [vmem:[%s2953_s29 + $0xd4] sm:$0xf] %v2196_v49  ;;  %v2200_v51 = vld [vmem:[%s2948_s28 + $0x560] sm:$0xf]  ;;  %v2202_v52 = vld [vmem:[%s2948_s28 + $0x5a8] sm:$0xf] }
  0x53   : > { %2199 = vst [vmem:[%s2953_s29 + $0xe0] sm:$0xf] %v2198_v50  ;;  %2201 = vst [vmem:[%s2953_s29 + $0xec] sm:$0xf] %v2200_v51  ;;  %v2204_v53 = vld [vmem:[%s2948_s28 + $0x5f0] sm:$0xf] }
  0x54   : > { %2203 = vst [vmem:[%s2953_s29 + $0xf8] sm:$0xf] %v2202_v52  ;;  %v2206_v54 = vld [vmem:[%s2948_s28 + $0x638] sm:$0xf]  ;;  %v2208_v55 = vld [vmem:[%s2948_s28 + $0x680] sm:$0xf] }
  0x55   : > { %2205 = vst [vmem:[%s2953_s29 + $0x104] sm:$0xf] %v2204_v53  ;;  %2207 = vst [vmem:[%s2953_s29 + $0x110] sm:$0xf] %v2206_v54  ;;  %v2210_v56 = vld [vmem:[%s2948_s28 + $0x6c8] sm:$0xf] }
  0x56   : > { %2209 = vst [vmem:[%s2953_s29 + $0x11c] sm:$0xf] %v2208_v55  ;;  %v2212_v57 = vld [vmem:[%s2948_s28 + $0x710] sm:$0xf]  ;;  %v2214_v58 = vld [vmem:[%s2948_s28 + $0x758] sm:$0xf] }
  0x57   : > { %2211 = vst [vmem:[%s2953_s29 + $0x128] sm:$0xf] %v2210_v56  ;;  %2213 = vst [vmem:[%s2953_s29 + $0x134] sm:$0xf] %v2212_v57  ;;  %v2216_v59 = vld [vmem:[%s2948_s28 + $0x7a0] sm:$0xf] }
  0x58   : > { %2215 = vst [vmem:[%s2953_s29 + $0x140] sm:$0xf] %v2214_v58  ;;  %v2218_v60 = vld [vmem:[%s2948_s28 + $0x7e8] sm:$0xf]  ;;  %v2220_v61 = vld [vmem:[%s2948_s28 + $0x830] sm:$0xf] }
  0x59   : > { %2217 = vst [vmem:[%s2953_s29 + $0x14c] sm:$0xf] %v2216_v59  ;;  %2219 = vst [vmem:[%s2953_s29 + $0x158] sm:$0xf] %v2218_v60  ;;  %v2222_v62 = vld [vmem:[%s2948_s28 + $0x878] sm:$0xf] }
  0x5a   : > { %2221 = vst [vmem:[%s2953_s29 + $0x164] sm:$0xf] %v2220_v61  ;;  %v2224_v63 = vld [vmem:[%s2948_s28 + $0x8c0] sm:$0xf]  ;;  %v2226_v0 = vld [vmem:[%s2948_s28 + $0x908] sm:$0xf] }
  0x5b   : > { %2223 = vst [vmem:[%s2953_s29 + $0x170] sm:$0xf] %v2222_v62  ;;  %2225 = vst [vmem:[%s2953_s29 + $0x17c] sm:$0xf] %v2224_v63  ;;  %v2228_v1 = vld [vmem:[%s2948_s28 + $0x950] sm:$0xf] }
  0x5c   : > { %2227 = vst [vmem:[%s2953_s29 + $0x188] sm:$0xf] %v2226_v0  ;;  %v2230_v2 = vld [vmem:[%s2948_s28 + $0x998] sm:$0xf]  ;;  %v2232_v3 = vld [vmem:[%s2948_s28 + $0x9e0] sm:$0xf] }
  0x5d   : > { %2229 = vst [vmem:[%s2953_s29 + $0x194] sm:$0xf] %v2228_v1  ;;  %2231 = vst [vmem:[%s2953_s29 + $0x1a0] sm:$0xf] %v2230_v2  ;;  %v2234_v4 = vld [vmem:[%s2948_s28 + $0xa28] sm:$0xf] }
  0x5e   : > { %2233 = vst [vmem:[%s2953_s29 + $0x1ac] sm:$0xf] %v2232_v3  ;;  %v2236_v5 = vld [vmem:[%s2948_s28 + $0xa70] sm:$0xf]  ;;  %v2238_v6 = vld [vmem:[%s2948_s28 + $0xab8] sm:$0xf] }
  0x5f   : > { %2235 = vst [vmem:[%s2953_s29 + $0x1b8] sm:$0xf] %v2234_v4  ;;  %2237 = vst [vmem:[%s2953_s29 + $0x1c4] sm:$0xf] %v2236_v5  ;;  %v2240_v7 = vld [vmem:[%s2948_s28 + $0xb00] sm:$0xf] }
  0x60   : > { %2239 = vst [vmem:[%s2953_s29 + $0x1d0] sm:$0xf] %v2238_v6  ;;  %v2242_v8 = vld [vmem:[%s2948_s28 + $0xb48] sm:$0xf]  ;;  %v2244_v9 = vld [vmem:[%s2948_s28 + $0xb90] sm:$0xf] }
  0x61   : > { %2241 = vst [vmem:[%s2953_s29 + $0x1dc] sm:$0xf] %v2240_v7  ;;  %2243 = vst [vmem:[%s2953_s29 + $0x1e8] sm:$0xf] %v2242_v8  ;;  %v2246_v10 = vld [vmem:[%s2948_s28 + $0xbd8] sm:$0xf] }
  0x62   : > { %2245 = vst [vmem:[%s2953_s29 + $0x1f4] sm:$0xf] %v2244_v9  ;;  %v2248_v11 = vld [vmem:[%s2948_s28 + $0xc20] sm:$0xf]  ;;  %v2250_v12 = vld [vmem:[%s2948_s28 + $0xc68] sm:$0xf] }
  0x63   : > { %2247 = vst [vmem:[%s2953_s29 + $0x200] sm:$0xf] %v2246_v10  ;;  %2249 = vst [vmem:[%s2953_s29 + $0x20c] sm:$0xf] %v2248_v11  ;;  %v2252_v13 = vld [vmem:[%s2948_s28 + $0xcb0] sm:$0xf] }
  0x64   : > { %2251 = vst [vmem:[%s2953_s29 + $0x218] sm:$0xf] %v2250_v12  ;;  %v2254_v14 = vld [vmem:[%s2948_s28 + $0xcf8] sm:$0xf]  ;;  %v2256_v15 = vld [vmem:[%s2948_s28 + $0xd40] sm:$0xf] }
  0x65   : > { %2253 = vst [vmem:[%s2953_s29 + $0x224] sm:$0xf] %v2252_v13  ;;  %2255 = vst [vmem:[%s2953_s29 + $0x230] sm:$0xf] %v2254_v14  ;;  %v2258_v16 = vld [vmem:[%s2948_s28 + $0xd88] sm:$0xf] }
  0x66   : > { %2257 = vst [vmem:[%s2953_s29 + $0x23c] sm:$0xf] %v2256_v15  ;;  %v2260_v17 = vld [vmem:[%s2948_s28 + $0xdd0] sm:$0xf]  ;;  %v2262_v18 = vld [vmem:[%s2948_s28 + $0xe18] sm:$0xf] }
  0x67   : > { %2259 = vst [vmem:[%s2953_s29 + $0x248] sm:$0xf] %v2258_v16  ;;  %2261 = vst [vmem:[%s2953_s29 + $0x254] sm:$0xf] %v2260_v17  ;;  %v2264_v19 = vld [vmem:[%s2948_s28 + $0xe60] sm:$0xf] }
  0x68   : > { %2263 = vst [vmem:[%s2953_s29 + $0x260] sm:$0xf] %v2262_v18  ;;  %v2266_v20 = vld [vmem:[%s2948_s28 + $0xea8] sm:$0xf]  ;;  %v2268_v21 = vld [vmem:[%s2948_s28 + $0xef0] sm:$0xf] }
  0x69   : > { %2265 = vst [vmem:[%s2953_s29 + $0x26c] sm:$0xf] %v2264_v19  ;;  %2267 = vst [vmem:[%s2953_s29 + $0x278] sm:$0xf] %v2266_v20  ;;  %v2270_v22 = vld [vmem:[%s2948_s28 + $0xf38] sm:$0xf] }
  0x6a   : > { %2269 = vst [vmem:[%s2953_s29 + $0x284] sm:$0xf] %v2268_v21  ;;  %v2272_v23 = vld [vmem:[%s2948_s28 + $0xf80] sm:$0xf]  ;;  %v2274_v24 = vld [vmem:[%s2948_s28 + $0xfc8] sm:$0xf] }
  0x6b   : > { %2271 = vst [vmem:[%s2953_s29 + $0x290] sm:$0xf] %v2270_v22  ;;  %2273 = vst [vmem:[%s2953_s29 + $0x29c] sm:$0xf] %v2272_v23  ;;  %v2276_v25 = vld [vmem:[%s2948_s28 + $0x1010] sm:$0xf] }
  0x6c   : > { %2275 = vst [vmem:[%s2953_s29 + $0x2a8] sm:$0xf] %v2274_v24  ;;  %v2278_v26 = vld [vmem:[%s2948_s28 + $0x1058] sm:$0xf]  ;;  %v2280_v27 = vld [vmem:[%s2948_s28 + $0x10a0] sm:$0xf] }
  0x6d   : > { %2277 = vst [vmem:[%s2953_s29 + $0x2b4] sm:$0xf] %v2276_v25  ;;  %2279 = vst [vmem:[%s2953_s29 + $0x2c0] sm:$0xf] %v2278_v26  ;;  %v2282_v28 = vld [vmem:[%s2948_s28 + $0x10e8] sm:$0xf] }
  0x6e   : > { %2281 = vst [vmem:[%s2953_s29 + $0x2cc] sm:$0xf] %v2280_v27  ;;  %v2284_v29 = vld [vmem:[%s2948_s28 + $0x1130] sm:$0xf]  ;;  %v2286_v30 = vld [vmem:[%s2948_s28 + $0x1178] sm:$0xf] }
  0x6f   : > { %2283 = vst [vmem:[%s2953_s29 + $0x2d8] sm:$0xf] %v2282_v28  ;;  %2285 = vst [vmem:[%s2953_s29 + $0x2e4] sm:$0xf] %v2284_v29  ;;  %v2288_v31 = vld [vmem:[%s2948_s28 + $0x11c0] sm:$0xf] }
  0x70   : > { %2287 = vst [vmem:[%s2953_s29 + $0x2f0] sm:$0xf] %v2286_v30  ;;  %v2290_v32 = vld [vmem:[%s2948_s28 + $0x1208] sm:$0xf]  ;;  %v2292_v33 = vld [vmem:[%s2948_s28 + $0x1250] sm:$0xf] }
  0x71   : > { %2289 = vst [vmem:[%s2953_s29 + $0x2fc] sm:$0xf] %v2288_v31  ;;  %2291 = vst [vmem:[%s2953_s29 + $0x308] sm:$0xf] %v2290_v32  ;;  %v2294_v34 = vld [vmem:[%s2948_s28 + $0x1298] sm:$0xf] }
  0x72   : > { %2293 = vst [vmem:[%s2953_s29 + $0x314] sm:$0xf] %v2292_v33  ;;  %v2296_v35 = vld [vmem:[%s2948_s28 + $0x12e0] sm:$0xf]  ;;  %v2298_v36 = vld [vmem:[%s2948_s28 + $0x1328] sm:$0xf] }
  0x73   : > { %2295 = vst [vmem:[%s2953_s29 + $0x320] sm:$0xf] %v2294_v34  ;;  %2297 = vst [vmem:[%s2953_s29 + $0x32c] sm:$0xf] %v2296_v35  ;;  %v2300_v37 = vld [vmem:[%s2948_s28 + $0x1370] sm:$0xf] }
  0x74   : > { %2299 = vst [vmem:[%s2953_s29 + $0x338] sm:$0xf] %v2298_v36  ;;  %v2302_v38 = vld [vmem:[%s2948_s28 + $0x13b8] sm:$0xf]  ;;  %v2304_v39 = vld [vmem:[%s2948_s28 + $0x1400] sm:$0xf] }
  0x75   : > { %2301 = vst [vmem:[%s2953_s29 + $0x344] sm:$0xf] %v2300_v37  ;;  %2303 = vst [vmem:[%s2953_s29 + $0x350] sm:$0xf] %v2302_v38  ;;  %v2306_v40 = vld [vmem:[%s2948_s28 + $0x1448] sm:$0xf] }
  0x76   : > { %2305 = vst [vmem:[%s2953_s29 + $0x35c] sm:$0xf] %v2304_v39  ;;  %v2308_v41 = vld [vmem:[%s2948_s28 + $0x1490] sm:$0xf]  ;;  %v2310_v42 = vld [vmem:[%s2948_s28 + $0x14d8] sm:$0xf] }
  0x77   : > { %2307 = vst [vmem:[%s2953_s29 + $0x368] sm:$0xf] %v2306_v40  ;;  %2309 = vst [vmem:[%s2953_s29 + $0x374] sm:$0xf] %v2308_v41  ;;  %v2312_v43 = vld [vmem:[%s2948_s28 + $0x1520] sm:$0xf] }
  0x78   : > { %2311 = vst [vmem:[%s2953_s29 + $0x380] sm:$0xf] %v2310_v42  ;;  %v2314_v44 = vld [vmem:[%s2948_s28 + $0x1568] sm:$0xf]  ;;  %v2316_v45 = vld [vmem:[%s2948_s28 + $0x15b0] sm:$0xf] }
  0x79   : > { %2313 = vst [vmem:[%s2953_s29 + $0x38c] sm:$0xf] %v2312_v43  ;;  %2315 = vst [vmem:[%s2953_s29 + $0x398] sm:$0xf] %v2314_v44  ;;  %v2318_v46 = vld [vmem:[%s2948_s28 + $0x15f8] sm:$0xf] }
  0x7a   : > { %2317 = vst [vmem:[%s2953_s29 + $0x3a4] sm:$0xf] %v2316_v45  ;;  %v2320_v47 = vld [vmem:[%s2948_s28 + $0x1640] sm:$0xf]  ;;  %v2322_v48 = vld [vmem:[%s2948_s28 + $0x1688] sm:$0xf] }
  0x7b   : > { %2319 = vst [vmem:[%s2953_s29 + $0x3b0] sm:$0xf] %v2318_v46  ;;  %2321 = vst [vmem:[%s2953_s29 + $0x3bc] sm:$0xf] %v2320_v47  ;;  %v2324_v49 = vld [vmem:[%s2948_s28 + $0x16d0] sm:$0xf] }
  0x7c   : > { %2323 = vst [vmem:[%s2953_s29 + $0x3c8] sm:$0xf] %v2322_v48  ;;  %v2326_v50 = vld [vmem:[%s2948_s28 + $0x1718] sm:$0xf]  ;;  %v2328_v51 = vld [vmem:[%s2948_s28 + $0x1760] sm:$0xf] }
  0x7d   : > { %2325 = vst [vmem:[%s2953_s29 + $0x3d4] sm:$0xf] %v2324_v49  ;;  %2327 = vst [vmem:[%s2953_s29 + $0x3e0] sm:$0xf] %v2326_v50  ;;  %v2330_v52 = vld [vmem:[%s2948_s28 + $0x17a8] sm:$0xf] }
  0x7e   : > { %2329 = vst [vmem:[%s2953_s29 + $0x3ec] sm:$0xf] %v2328_v51  ;;  %v2332_v53 = vld [vmem:[%s2948_s28 + $0x17f0] sm:$0xf]  ;;  %v2334_v54 = vld [vmem:[%s2948_s28 + $0x1838] sm:$0xf] }
  0x7f   : > { %2331 = vst [vmem:[%s2953_s29 + $0x3f8] sm:$0xf] %v2330_v52  ;;  %2333 = vst [vmem:[%s2953_s29 + $0x404] sm:$0xf] %v2332_v53  ;;  %v2336_v55 = vld [vmem:[%s2948_s28 + $0x1880] sm:$0xf] }
  0x80   : > { %2335 = vst [vmem:[%s2953_s29 + $0x410] sm:$0xf] %v2334_v54  ;;  %v2338_v56 = vld [vmem:[%s2948_s28 + $0x18c8] sm:$0xf]  ;;  %v2340_v57 = vld [vmem:[%s2948_s28 + $0x1910] sm:$0xf] }
  0x81   : > { %2337 = vst [vmem:[%s2953_s29 + $0x41c] sm:$0xf] %v2336_v55  ;;  %2339 = vst [vmem:[%s2953_s29 + $0x428] sm:$0xf] %v2338_v56  ;;  %v2342_v58 = vld [vmem:[%s2948_s28 + $0x1958] sm:$0xf] }
  0x82   : > { %2341 = vst [vmem:[%s2953_s29 + $0x434] sm:$0xf] %v2340_v57  ;;  %v2344_v59 = vld [vmem:[%s2948_s28 + $0x19a0] sm:$0xf]  ;;  %v2346_v60 = vld [vmem:[%s2948_s28 + $0x19e8] sm:$0xf] }
  0x83   : > { %2343 = vst [vmem:[%s2953_s29 + $0x440] sm:$0xf] %v2342_v58  ;;  %2345 = vst [vmem:[%s2953_s29 + $0x44c] sm:$0xf] %v2344_v59  ;;  %v2348_v61 = vld [vmem:[%s2948_s28 + $0x1a30] sm:$0xf] }
  0x84   : > { %2347 = vst [vmem:[%s2953_s29 + $0x458] sm:$0xf] %v2346_v60  ;;  %v2350_v62 = vld [vmem:[%s2948_s28 + $0x1a78] sm:$0xf]  ;;  %v2352_v63 = vld [vmem:[%s2948_s28 + $0x1ac0] sm:$0xf] }
  0x85   : > { %2349 = vst [vmem:[%s2953_s29 + $0x464] sm:$0xf] %v2348_v61  ;;  %2351 = vst [vmem:[%s2953_s29 + $0x470] sm:$0xf] %v2350_v62 }
  0x86   : > { %2353 = vst [vmem:[%s2953_s29 + $0x47c] sm:$0xf] %v2352_v63 }
  0x87 PF: > { %p2354_p8 = scmp.ge.s32.totalorder %s2878_s16, 1  ;;  %p602_p9 = scmp.lt.s32.totalorder %s2878_s16, 7 }
  0x89   : > { %p603_p10 = pnand %p2354_p8, %p602_p9 }
  0x8a   : > { %s609_s30 = sand.u32 (!%p603_p10), 1, %s2862_s12   ;;  %v3344_v0 = vld [vmem:[%s3552_s0 + $0x4] ss:$24 sps:$4 sm:$0xff] (!%p603_p10)   ;;  %s659_s26 = smul.u32 (!%p603_p10), 3, %s2870_s14 }
  0x8b   : > { %606 = sbr.rel (%p603_p10) target bundleno = 536 (0x218), region = 54  ;;  %v3349_v1 = vld [vmem:[%s3552_s0 + $0xc] ss:$24 sps:$4 sm:$0xff] (!%p603_p10)   ;;  %1711 = vmatprep.mubr.bf16.mxu1 (!%p603_p10), %v3344_v0 }
  0x8c   : > { %s2597_s4 = smul.u32 (!%p603_p10), 1152, %s609_s30  ;;  %1754 = vmatprep.mubr.bf16.mxu0 (!%p603_p10), %v3349_v1  ;;  %p660_p11 = scmp.lt.s32.totalorder (!%p603_p10), %s659_s26, 17 }
  0x8e   : > { %s3352_s9 = scalar_lea.vmem (!%p603_p10), [#allocation3], %s2597_s4  ;;  %s2598_s4 = smul.u32 (!%p603_p10), 24, %s609_s30 }
  0x8f   : > { %v2639_v2 = vld [vmem:[%s3352_s9 + $0x4] ss:$12 sps:$4 sm:$0xff] (!%p603_p10)   ;;  %v2643_v4 = vld [vmem:[%s3352_s9] ss:$12 sps:$4 sm:$0xff] (!%p603_p10)   ;;  %v2645_v6 = vld [vmem:[%s3352_s9 + $0x1c] ss:$12 sps:$4 sm:$0xff] (!%p603_p10)  }
  0x90   : > { %v2641_v3 = vld [vmem:[%s3352_s9 + $0x184] ss:$12 sps:$4 sm:$0xff] (!%p603_p10)   ;;  %1679 = vmatprep.subr.bf16.mxu1 (!%p603_p10), %v2639_v2  ;;  %v2644_v5 = vld [vmem:[%s3352_s9 + $0x180] ss:$12 sps:$4 sm:$0xff] (!%p603_p10)   ;;  %v2647_v7 = vld [vmem:[%s3352_s9 + $0x19c] ss:$12 sps:$4 sm:$0xff] (!%p603_p10)  }
  0x91   : > { %1722 = vmatprep.subr.bf16.mxu0 (!%p603_p10), %v2641_v3  ;;  %1680 = vmatpush1.bf16.msra.mxu1 (!%p603_p10), %v2643_v4  ;;  %v2649_v8 = vld [vmem:[%s3352_s9 + $0x18] ss:$12 sps:$4 sm:$0xff] (!%p603_p10)   ;;  %v2651_v10 = vld [vmem:[%s3352_s9 + $0x34] ss:$12 sps:$4 sm:$0xff] (!%p603_p10)   ;;  %v2655_v12 = vld [vmem:[%s3352_s9 + $0x30] ss:$12 sps:$4 sm:$0xff] (!%p603_p10)  }
  0x92   : > { %1723 = vmatpush1.bf16.msra.mxu0 %v2644_v5  ;;  %1681 = vmatprep.subr.bf16.mxu1 %v2645_v6  ;;  %v2650_v9 = vld [vmem:[%s3352_s9 + $0x198] ss:$12 sps:$4 sm:$0xff]   ;;  %v2653_v11 = vld [vmem:[%s3352_s9 + $0x1b4] ss:$12 sps:$4 sm:$0xff]   ;;  %v2656_v13 = vld [vmem:[%s3352_s9 + $0x1b0] ss:$12 sps:$4 sm:$0xff]  }
  0x93   : > { %1724 = vmatprep.subr.bf16.mxu0 %v2647_v7  ;;  %v2657_v14 = vld [vmem:[%s3352_s9 + $0x4c] ss:$12 sps:$4 sm:$0xff]   ;;  %v2661_v16 = vld [vmem:[%s3352_s9 + $0x48] ss:$12 sps:$4 sm:$0xff]   ;;  %v2663_v18 = vld [vmem:[%s3352_s9 + $0x64] ss:$12 sps:$4 sm:$0xff]  }
  0x94   : > { %v2659_v15 = vld [vmem:[%s3352_s9 + $0x1cc] ss:$12 sps:$4 sm:$0xff]   ;;  %v2662_v17 = vld [vmem:[%s3352_s9 + $0x1c8] ss:$12 sps:$4 sm:$0xff]   ;;  %v2665_v19 = vld [vmem:[%s3352_s9 + $0x1e4] ss:$12 sps:$4 sm:$0xff]  }
  0x95   : > { %1682 = vmatpush1.bf16.msra.mxu1 %v2649_v8  ;;  %v2667_v20 = vld [vmem:[%s3352_s9 + $0x60] ss:$12 sps:$4 sm:$0xff]   ;;  %v2669_v22 = vld [vmem:[%s3352_s9 + $0x7c] ss:$12 sps:$4 sm:$0xff]   ;;  %v2673_v24 = vld [vmem:[%s3352_s9 + $0x78] ss:$12 sps:$4 sm:$0xff]  }
  0x96   : > { %1725 = vmatpush1.bf16.msra.mxu0 %v2650_v9  ;;  %1683 = vmatprep.subr.bf16.mxu1 %v2651_v10  ;;  %v2668_v21 = vld [vmem:[%s3352_s9 + $0x1e0] ss:$12 sps:$4 sm:$0xff]   ;;  %v2671_v23 = vld [vmem:[%s3352_s9 + $0x1fc] ss:$12 sps:$4 sm:$0xff]   ;;  %v2674_v25 = vld [vmem:[%s3352_s9 + $0x1f8] ss:$12 sps:$4 sm:$0xff]  }
  0x97   : > { %1726 = vmatprep.subr.bf16.mxu0 %v2653_v11  ;;  %v2675_v26 = vld [vmem:[%s3352_s9 + $0x94] ss:$12 sps:$4 sm:$0xff]   ;;  %v2679_v28 = vld [vmem:[%s3352_s9 + $0x90] ss:$12 sps:$4 sm:$0xff]   ;;  %v2681_v30 = vld [vmem:[%s3352_s9 + $0xac] ss:$12 sps:$4 sm:$0xff]  }
  0x98   : > { %v2677_v27 = vld [vmem:[%s3352_s9 + $0x214] ss:$12 sps:$4 sm:$0xff]   ;;  %v2680_v29 = vld [vmem:[%s3352_s9 + $0x210] ss:$12 sps:$4 sm:$0xff]   ;;  %v2683_v31 = vld [vmem:[%s3352_s9 + $0x22c] ss:$12 sps:$4 sm:$0xff]  }
  0x99   : > { %1684 = vmatpush1.bf16.msra.mxu1 %v2655_v12  ;;  %v2685_v32 = vld [vmem:[%s3352_s9 + $0xa8] ss:$12 sps:$4 sm:$0xff]   ;;  %v2687_v34 = vld [vmem:[%s3352_s9 + $0xc4] ss:$12 sps:$4 sm:$0xff]   ;;  %v2691_v36 = vld [vmem:[%s3352_s9 + $0xc0] ss:$12 sps:$4 sm:$0xff]  }
  0x9a   : > { %1727 = vmatpush1.bf16.msra.mxu0 %v2656_v13  ;;  %1685 = vmatprep.subr.bf16.mxu1 %v2657_v14  ;;  %v2686_v33 = vld [vmem:[%s3352_s9 + $0x228] ss:$12 sps:$4 sm:$0xff]   ;;  %v2689_v35 = vld [vmem:[%s3352_s9 + $0x244] ss:$12 sps:$4 sm:$0xff]   ;;  %v2692_v37 = vld [vmem:[%s3352_s9 + $0x240] ss:$12 sps:$4 sm:$0xff]  }
  0x9b   : > { %1728 = vmatprep.subr.bf16.mxu0 %v2659_v15  ;;  %v2693_v38 = vld [vmem:[%s3352_s9 + $0xdc] ss:$12 sps:$4 sm:$0xff]   ;;  %v2697_v40 = vld [vmem:[%s3352_s9 + $0xd8] ss:$12 sps:$4 sm:$0xff]   ;;  %v2699_v42 = vld [vmem:[%s3352_s9 + $0xf4] ss:$12 sps:$4 sm:$0xff]  }
  0x9c   : > { %v2695_v39 = vld [vmem:[%s3352_s9 + $0x25c] ss:$12 sps:$4 sm:$0xff]   ;;  %v2698_v41 = vld [vmem:[%s3352_s9 + $0x258] ss:$12 sps:$4 sm:$0xff]   ;;  %v2701_v43 = vld [vmem:[%s3352_s9 + $0x274] ss:$12 sps:$4 sm:$0xff]  }
  0x9d   : > { %1686 = vmatpush1.bf16.msra.mxu1 %v2661_v16  ;;  %v2703_v44 = vld [vmem:[%s3352_s9 + $0xf0] ss:$12 sps:$4 sm:$0xff]   ;;  %v2705_v46 = vld [vmem:[%s3352_s9 + $0x10c] ss:$12 sps:$4 sm:$0xff]   ;;  %v2709_v48 = vld [vmem:[%s3352_s9 + $0x108] ss:$12 sps:$4 sm:$0xff]  }
  0x9e   : > { %1729 = vmatpush1.bf16.msra.mxu0 %v2662_v17  ;;  %1687 = vmatprep.subr.bf16.mxu1 %v2663_v18  ;;  %v2704_v45 = vld [vmem:[%s3352_s9 + $0x270] ss:$12 sps:$4 sm:$0xff]   ;;  %v2707_v47 = vld [vmem:[%s3352_s9 + $0x28c] ss:$12 sps:$4 sm:$0xff]   ;;  %v2710_v49 = vld [vmem:[%s3352_s9 + $0x288] ss:$12 sps:$4 sm:$0xff]  }
  0x9f   : > { %1730 = vmatprep.subr.bf16.mxu0 %v2665_v19  ;;  %v2711_v50 = vld [vmem:[%s3352_s9 + $0x124] ss:$12 sps:$4 sm:$0xff]   ;;  %v2715_v52 = vld [vmem:[%s3352_s9 + $0x120] ss:$12 sps:$4 sm:$0xff]   ;;  %v2717_v54 = vld [vmem:[%s3352_s9 + $0x13c] ss:$12 sps:$4 sm:$0xff]  }
  0xa0   : > { %v2713_v51 = vld [vmem:[%s3352_s9 + $0x2a4] ss:$12 sps:$4 sm:$0xff]   ;;  %v2716_v53 = vld [vmem:[%s3352_s9 + $0x2a0] ss:$12 sps:$4 sm:$0xff]   ;;  %v2719_v55 = vld [vmem:[%s3352_s9 + $0x2bc] ss:$12 sps:$4 sm:$0xff]  }
  0xa1   : > { %1688 = vmatpush1.bf16.msra.mxu1 %v2667_v20  ;;  %v2721_v56 = vld [vmem:[%s3352_s9 + $0x138] ss:$12 sps:$4 sm:$0xff]   ;;  %v2723_v58 = vld [vmem:[%s3352_s9 + $0x154] ss:$12 sps:$4 sm:$0xff]   ;;  %v2727_v60 = vld [vmem:[%s3352_s9 + $0x150] ss:$12 sps:$4 sm:$0xff]  }
  0xa2   : > { %1731 = vmatpush1.bf16.msra.mxu0 %v2668_v21  ;;  %1689 = vmatprep.subr.bf16.mxu1 %v2669_v22  ;;  %v2722_v57 = vld [vmem:[%s3352_s9 + $0x2b8] ss:$12 sps:$4 sm:$0xff]   ;;  %v2725_v59 = vld [vmem:[%s3352_s9 + $0x2d4] ss:$12 sps:$4 sm:$0xff]   ;;  %v2728_v61 = vld [vmem:[%s3352_s9 + $0x2d0] ss:$12 sps:$4 sm:$0xff]  }
  0xa3   : > { %1732 = vmatprep.subr.bf16.mxu0 %v2671_v23  ;;  %v2729_v62 = vld [vmem:[%s3352_s9 + $0x16c] ss:$12 sps:$4 sm:$0xff]   ;;  %v2733_v2 = vld [vmem:[%s3352_s9 + $0x168] ss:$12 sps:$4 sm:$0xff]   ;;  %v2743_v4 = vld [vmem:[%s3352_s9 + $0x304] ss:$12 sps:$4 sm:$0xff]  }
  0xa4   : > { %v2731_v63 = vld [vmem:[%s3352_s9 + $0x2ec] ss:$12 sps:$4 sm:$0xff]   ;;  %v2734_v3 = vld [vmem:[%s3352_s9 + $0x2e8] ss:$12 sps:$4 sm:$0xff]   ;;  %v2751_v16 = vld [vmem:[%s3352_s9 + $0x330] ss:$12 sps:$4 sm:$0xff]  }
  0xa5   : > { %1690 = vmatpush1.bf16.msra.mxu1 %v2673_v24  ;;  %v3423_v5 = vld [vmem:[%s3552_s0] ss:$24 sps:$4 sm:$0xff]   ;;  %v2744_v6 = vld [vmem:[%s3352_s9 + $0xc8] ss:$12 sps:$4 sm:$0xff]   ;;  %v2759_v19 = vld [vmem:[%s3352_s9 + $0x110] ss:$12 sps:$4 sm:$0xff]  }
  0xa6   : > { %1733 = vmatpush1.bf16.msra.mxu0 %v2674_v25  ;;  %1691 = vmatprep.subr.bf16.mxu1 %v2675_v26  ;;  %v3429_v7 = vld [vmem:[%s3552_s0 + $0x8] ss:$24 sps:$4 sm:$0xff]   ;;  %v2746_v12 = vld [vmem:[%s3352_s9 + $0x318] ss:$12 sps:$4 sm:$0xff]   ;;  %v2760_v21 = vld [vmem:[%s3352_s9 + $0x50] ss:$12 sps:$4 sm:$0xff]  }
  0xa7   : > { %1734 = vmatprep.subr.bf16.mxu0 %v2677_v27  ;;  %v2741_v8 = vld [vmem:[%s3352_s9 + $0x300] ss:$12 sps:$4 sm:$0xff]   ;;  %v2745_v9 = vld [vmem:[%s3352_s9 + $0x8] ss:$12 sps:$4 sm:$0xff]   ;;  %v2754_v15 = vld [vmem:[%s3352_s9 + $0xf8] ss:$12 sps:$4 sm:$0xff]  }
  0xa8   : > { %v2748_v10 = vld [vmem:[%s3352_s9 + $0x31c] ss:$12 sps:$4 sm:$0xff]   ;;  %v2749_v11 = vld [vmem:[%s3352_s9 + $0xe0] ss:$12 sps:$4 sm:$0xff]   ;;  %v2755_v17 = vld [vmem:[%s3352_s9 + $0x38] ss:$12 sps:$4 sm:$0xff]  }
  0xa9   : > { %1692 = vmatpush1.bf16.msra.mxu1 %v2679_v28  ;;  %v2750_v13 = vld [vmem:[%s3352_s9 + $0x20] ss:$12 sps:$4 sm:$0xff]   ;;  %v2756_v20 = vld [vmem:[%s3352_s9 + $0x348] ss:$12 sps:$4 sm:$0xff]   ;;  %v2766_v27 = vld [vmem:[%s3352_s9 + $0x378] ss:$12 sps:$4 sm:$0xff]  }
  0xaa   : > { %1735 = vmatpush1.bf16.msra.mxu0 %v2680_v29  ;;  %1693 = vmatprep.subr.bf16.mxu1 %v2681_v30  ;;  %v2753_v14 = vld [vmem:[%s3352_s9 + $0x334] ss:$12 sps:$4 sm:$0xff]   ;;  %v2758_v18 = vld [vmem:[%s3352_s9 + $0x34c] ss:$12 sps:$4 sm:$0xff]   ;;  %v2768_v25 = vld [vmem:[%s3352_s9 + $0x37c] ss:$12 sps:$4 sm:$0xff]  }
  0xab   : > { %1736 = vmatprep.subr.bf16.mxu0 %v2683_v31  ;;  %v2764_v22 = vld [vmem:[%s3352_s9 + $0x128] ss:$12 sps:$4 sm:$0xff]   ;;  %v2761_v23 = vld [vmem:[%s3352_s9 + $0x360] ss:$12 sps:$4 sm:$0xff]   ;;  %v2774_v30 = vld [vmem:[%s3352_s9 + $0x158] ss:$12 sps:$4 sm:$0xff]  }
  0xac   : > { %v2765_v24 = vld [vmem:[%s3352_s9 + $0x68] ss:$12 sps:$4 sm:$0xff]   ;;  %v2769_v26 = vld [vmem:[%s3352_s9 + $0x140] ss:$12 sps:$4 sm:$0xff]   ;;  %v2771_v31 = vld [vmem:[%s3352_s9 + $0x390] ss:$12 sps:$4 sm:$0xff]  }
  0xad   : > { %1694 = vmatpush1.bf16.msra.mxu1 %v2685_v32  ;;  %v2770_v28 = vld [vmem:[%s3352_s9 + $0x80] ss:$12 sps:$4 sm:$0xff]   ;;  %v2775_v32 = vld [vmem:[%s3352_s9 + $0x98] ss:$12 sps:$4 sm:$0xff]   ;;  %s3564_s26 = smov (!%p660_p11, %s659_s26), 17  ;;  %s644_s12 = scalar_lea.vmem [#allocation4], %s2598_s4 }
  0xae   : > { %1737 = vmatpush1.bf16.msra.mxu0 %v2686_v33  ;;  %1695 = vmatprep.subr.bf16.mxu1 %v2687_v34  ;;  %v2773_v29 = vld [vmem:[%s3352_s9 + $0x394] ss:$12 sps:$4 sm:$0xff]   ;;  %v2778_v33 = vld [vmem:[%s3352_s9 + $0x3ac] ss:$12 sps:$4 sm:$0xff]   ;;  %v2779_v34 = vld [vmem:[%s3352_s9 + $0x170] ss:$12 sps:$4 sm:$0xff]   ;;  %s662_s29 = scalar_lea.vmem %s3554_s2, %s3564_s26 }
  0xaf   : > { %1738 = vmatprep.subr.bf16.mxu0 %v2689_v35  ;;  %v2776_v35 = vld [vmem:[%s3352_s9 + $0x3a8] ss:$12 sps:$4 sm:$0xff]   ;;  %s2521_s30 = smul.u32 (%p2935_p6), 12, %s2870_s14 }
  0xb1   : > { %1696 = vmatpush1.bf16.msra.mxu1 %v2691_v36  ;;  %v2780_v36 = vld [vmem:[%s3352_s9 + $0xb0] ss:$12 sps:$4 sm:$0xff]   ;;  %s2011_s7 = scalar_lea.vmem (%p2935_p6), %s3555_s3, %s2521_s30 }
  0xb2   : > { %1739 = vmatpush1.bf16.msra.mxu0 %v2692_v37  ;;  %1697 = vmatprep.subr.bf16.mxu1 %v2693_v38  ;;  %v2783_v37 = vld [vmem:[%s3352_s9 + $0x3c4] ss:$12 sps:$4 sm:$0xff]   ;;  %v2784_v38 = vld [vmem:[%s3352_s9 + $0x248] ss:$12 sps:$4 sm:$0xff]  }
  0xb3   : > { %1740 = vmatprep.subr.bf16.mxu0 %v2695_v39  ;;  %v2781_v39 = vld [vmem:[%s3352_s9 + $0x3c0] ss:$12 sps:$4 sm:$0xff]  }
  0xb5   : > { %1698 = vmatpush1.bf16.msra.mxu1 %v2697_v40  ;;  %v2785_v40 = vld [vmem:[%s3352_s9 + $0x188] ss:$12 sps:$4 sm:$0xff]  }
  0xb6   : > { %1741 = vmatpush1.bf16.msra.mxu0 %v2698_v41  ;;  %1699 = vmatprep.subr.bf16.mxu1 %v2699_v42  ;;  %v2788_v41 = vld [vmem:[%s3352_s9 + $0x3dc] ss:$12 sps:$4 sm:$0xff]   ;;  %v3472_v42 = vld [vmem:[%s3552_s0 + $0x14] ss:$24 sps:$4 sm:$0xff]  }
  0xb7   : > { %1742 = vmatprep.subr.bf16.mxu0 %v2701_v43  ;;  %v2789_v43 = vld [vmem:[%s3352_s9 + $0x260] ss:$12 sps:$4 sm:$0xff]  }
  0xb9   : > { %1700 = vmatpush1.bf16.msra.mxu1 %v2703_v44  ;;  %v2786_v44 = vld [vmem:[%s3352_s9 + $0x3d8] ss:$12 sps:$4 sm:$0xff]  }
  0xba   : > { %1743 = vmatpush1.bf16.msra.mxu0 %v2704_v45  ;;  %1701 = vmatprep.subr.bf16.mxu1 %v2705_v46  ;;  %v2790_v45 = vld [vmem:[%s3352_s9 + $0x1a0] ss:$12 sps:$4 sm:$0xff]  }
  0xbb   : > { %1744 = vmatprep.subr.bf16.mxu0 %v2707_v47  ;;  %v2793_v46 = vld [vmem:[%s3352_s9 + $0x3f4] ss:$12 sps:$4 sm:$0xff]   ;;  %v2794_v47 = vld [vmem:[%s3352_s9 + $0x278] ss:$12 sps:$4 sm:$0xff]  }
  0xbd   : > { %1702 = vmatpush1.bf16.msra.mxu1 %v2709_v48  ;;  %v2791_v48 = vld [vmem:[%s3352_s9 + $0x3f0] ss:$12 sps:$4 sm:$0xff]  }
  0xbe   : > { %1745 = vmatpush1.bf16.msra.mxu0 %v2710_v49  ;;  %1703 = vmatprep.subr.bf16.mxu1 %v2711_v50  ;;  %v2795_v49 = vld [vmem:[%s3352_s9 + $0x1b8] ss:$12 sps:$4 sm:$0xff]  }
  0xbf   : > { %1746 = vmatprep.subr.bf16.mxu0 %v2713_v51  ;;  %v2798_v50 = vld [vmem:[%s3352_s9 + $0x40c] ss:$12 sps:$4 sm:$0xff]   ;;  %v2799_v51 = vld [vmem:[%s3352_s9 + $0x290] ss:$12 sps:$4 sm:$0xff]  }
  0xc1   : > { %1704 = vmatpush1.bf16.msra.mxu1 %v2715_v52  ;;  %v2796_v52 = vld [vmem:[%s3352_s9 + $0x408] ss:$12 sps:$4 sm:$0xff]  }
  0xc2   : > { %1747 = vmatpush1.bf16.msra.mxu0 %v2716_v53  ;;  %1705 = vmatprep.subr.bf16.mxu1 %v2717_v54  ;;  %v2800_v53 = vld [vmem:[%s3352_s9 + $0x1d0] ss:$12 sps:$4 sm:$0xff]  }
  0xc3   : > { %1748 = vmatprep.subr.bf16.mxu0 %v2719_v55  ;;  %v2803_v54 = vld [vmem:[%s3352_s9 + $0x424] ss:$12 sps:$4 sm:$0xff]   ;;  %v2801_v55 = vld [vmem:[%s3352_s9 + $0x420] ss:$12 sps:$4 sm:$0xff]  }
  0xc5   : > { %1706 = vmatpush1.bf16.msra.mxu1 %v2721_v56  ;;  %v2805_v56 = vld [vmem:[%s3352_s9 + $0x1e8] ss:$12 sps:$4 sm:$0xff]  }
  0xc6   : > { %1749 = vmatpush1.bf16.msra.mxu0 %v2722_v57  ;;  %1707 = vmatprep.subr.bf16.mxu1 %v2723_v58  ;;  %v2808_v57 = vld [vmem:[%s3352_s9 + $0x43c] ss:$12 sps:$4 sm:$0xff]   ;;  %v2809_v58 = vld [vmem:[%s3352_s9 + $0x2c0] ss:$12 sps:$4 sm:$0xff]  }
  0xc7   : > { %1750 = vmatprep.subr.bf16.mxu0 %v2725_v59  ;;  %v2806_v59 = vld [vmem:[%s3352_s9 + $0x438] ss:$12 sps:$4 sm:$0xff]  }
  0xc9   : > { %1708 = vmatpush1.bf16.msra.mxu1 %v2727_v60  ;;  %v2810_v60 = vld [vmem:[%s3352_s9 + $0x200] ss:$12 sps:$4 sm:$0xff]  }
  0xca   : > { %1751 = vmatpush1.bf16.msra.mxu0 %v2728_v61  ;;  %1709 = vmatprep.subr.bf16.mxu1 %v2729_v62  ;;  %v2813_v61 = vld [vmem:[%s3352_s9 + $0x454] ss:$12 sps:$4 sm:$0xff]   ;;  %v2814_v62 = vld [vmem:[%s3352_s9 + $0x2d8] ss:$12 sps:$4 sm:$0xff]  }
  0xcb   : > { %1752 = vmatprep.subr.bf16.mxu0 %v2731_v63  ;;  %v2811_v63 = vld [vmem:[%s3352_s9 + $0x450] ss:$12 sps:$4 sm:$0xff]  }
  0xcd   : > { %1710 = vmatpush1.bf16.msra.mxu1 %v2733_v2  ;;  %v2815_v2 = vld [vmem:[%s3352_s9 + $0x218] ss:$12 sps:$4 sm:$0xff]  }
  0xce   : > { %1753 = vmatpush1.bf16.msra.mxu0 %v2734_v3  ;;  %2522 = vmatprep.subr.bf16.mxu1 %v2744_v6  ;;  %v2818_v3 = vld [vmem:[%s3352_s9 + $0x46c] ss:$12 sps:$4 sm:$0xff]   ;;  %v2820_v6 = vld [vmem:[%s3352_s9 + $0x230] ss:$12 sps:$4 sm:$0xff]  }
  0xcf   : > { %1765 = vmatprep.subr.bf16.mxu0 %v2743_v4  ;;  %v2819_v4 = vld [vmem:[%s3352_s9 + $0x2f0] ss:$12 sps:$4 sm:$0xff]  }
  0xd0   : > { %1712 = vmatmul.mubr.bf16.vlgmr.msra.gmra.mrb[0].mxu1 %v3423_v5 }
  0xd1   : > { %1755 = vmatmul.mubr.bf16.vlgmr.msra.gmra.mrb[0].mxu0 %v3429_v7  ;;  %2523 = vmatpush3.bf16.msra.mxu1 %v2745_v9  ;;  %v2821_v9 = vld [vmem:[%s3552_s0 + $0x10] ss:$24 sps:$4 sm:$0xff]  }
  0xd2   : > { %1766 = vmatpush1.bf16.msra.mxu0 %v2741_v8  ;;  %2524 = vmatprep.subr.bf16.mxu1 %v2749_v11  ;;  %v2824_v8 = vld [vmem:[%s3352_s9 + $0x3c8] ss:$12 sps:$4 sm:$0xff]   ;;  %v2826_v11 = vld [vmem:[%s3352_s9 + $0x3e0] ss:$12 sps:$4 sm:$0xff]  }
  0xd3   : > { %1767 = vmatprep.subr.bf16.mxu0 %v2748_v10  ;;  %1840 = vmatprep.mubr.bf16.mxu1 %v3344_v0  ;;  %v2763_v0 = vld [vmem:[%s3352_s9 + $0x364] ss:$12 sps:$4 sm:$0xff]   ;;  %v2825_v10 = vld [vmem:[%s3352_s9 + $0x308] ss:$12 sps:$4 sm:$0xff]  }
  0xd4   : > { %1797 = vmatprep.mubr.bf16.mxu0 %v3472_v42 }
  0xd5   : > { %2525 = vmatpush3.bf16.msra.mxu1 %v2750_v13  ;;  %v2828_v13 = vld [vmem:[%s3352_s9 + $0x3f8] ss:$12 sps:$4 sm:$0xff]  }
  0xd6   : > { %1768 = vmatpush1.bf16.msra.mxu0 %v2746_v12  ;;  %2526 = vmatprep.subr.bf16.mxu1 %v2754_v15  ;;  %v2827_v12 = vld [vmem:[%s3352_s9 + $0x320] ss:$12 sps:$4 sm:$0xff]   ;;  %v2830_v15 = vld [vmem:[%s3352_s9 + $0x410] ss:$12 sps:$4 sm:$0xff]  }
  0xd7   : > { %1769 = vmatprep.subr.bf16.mxu0 %v2753_v14  ;;  %v2829_v14 = vld [vmem:[%s3352_s9 + $0x338] ss:$12 sps:$4 sm:$0xff]  }
  0xd9   : > { %2527 = vmatpush3.bf16.msra.mxu1 %v2755_v17  ;;  %v2833_v17 = vld [vmem:[%s3352_s9 + $0x368] ss:$12 sps:$4 sm:$0xff]  }
  0xda   : > { %1770 = vmatpush1.bf16.msra.mxu0 %v2751_v16  ;;  %2528 = vmatprep.subr.bf16.mxu1 %v2759_v19  ;;  %v2831_v16 = vld [vmem:[%s3352_s9 + $0x350] ss:$12 sps:$4 sm:$0xff]   ;;  %v2835_v19 = vld [vmem:[%s3352_s9 + $0x380] ss:$12 sps:$4 sm:$0xff]  }
  0xdb   : > { %1771 = vmatprep.subr.bf16.mxu0 %v2758_v18  ;;  %v2834_v18 = vld [vmem:[%s3352_s9 + $0x440] ss:$12 sps:$4 sm:$0xff]  }
  0xdd   : > { %2529 = vmatpush3.bf16.msra.mxu1 %v2760_v21  ;;  %v2837_v21 = vld [vmem:[%s3352_s9 + $0x398] ss:$12 sps:$4 sm:$0xff]  }
  0xde   : > { %1772 = vmatpush1.bf16.msra.mxu0 %v2756_v20  ;;  %2530 = vmatprep.subr.bf16.mxu1 %v2764_v22  ;;  %v2836_v20 = vld [vmem:[%s3352_s9 + $0x458] ss:$12 sps:$4 sm:$0xff]   ;;  %v2839_v22 = vld [vmem:[%s3352_s9 + $0x3b0] ss:$12 sps:$4 sm:$0xff]  }
  0xdf   : > { %1773 = vmatprep.subr.bf16.mxu0 %v2763_v0  ;;  %v2838_v0 = vld [vmem:[%s3352_s9 + $0x470] ss:$12 sps:$4 sm:$0xff]  }
  0xe1   : > { %2531 = vmatpush3.bf16.msra.mxu1 %v2765_v24 }
  0xe2   : > { %1774 = vmatpush1.bf16.msra.mxu0 %v2761_v23  ;;  %2532 = vmatprep.subr.bf16.mxu1 %v2769_v26 }
  0xe3   : > { %1775 = vmatprep.subr.bf16.mxu0 %v2768_v25 }
  0xe5   : > { %2533 = vmatpush3.bf16.msra.mxu1 %v2770_v28 }
  0xe6   : > { %1776 = vmatpush1.bf16.msra.mxu0 %v2766_v27  ;;  %2534 = vmatprep.subr.bf16.mxu1 %v2774_v30 }
  0xe7   : > { %1777 = vmatprep.subr.bf16.mxu0 %v2773_v29 }
  0xe9   : > { %2535 = vmatpush3.bf16.msra.mxu1 %v2775_v32 }
  0xea   : > { %1778 = vmatpush1.bf16.msra.mxu0 %v2771_v31  ;;  %2536 = vmatprep.subr.bf16.mxu1 %v2779_v34 }
  0xeb   : > { %1779 = vmatprep.subr.bf16.mxu0 %v2778_v33  ;;  %v1954_v33 = vlaneseq }
  0xed   : > { %2537 = vmatpush3.bf16.msra.mxu1 %v2780_v36  ;;  %v1955_v34 = vshrl.u32 %v1954_v33, 7  ;;  %v1952_v36 = vld [vmem:[%s662_s29] sm:$0x7] }
  0xee   : > { %1780 = vmatpush1.bf16.msra.mxu0 %v2776_v35  ;;  %2544 = vmatprep.subr.bf16.mxu1 %v2784_v38 }
  0xef   : > { %1781 = vmatprep.subr.bf16.mxu0 %v2783_v37  ;;  %v1956_v35 = vsub.s32 0, %v1955_v34  ;;  %v1960_v37 = vsub.s32 1, %v1955_v34 }
  0xf0   : > { %1841 = vmatmul.mubr.bf16.vlgmr.msra.gmra.mrb[4].mxu1 %v3423_v5  ;;  %v2816_v5 = vld [vmem:[%s3352_s9 + $0x468] ss:$12 sps:$4 sm:$0xff]  }
  0xf1   : > { %2545 = vmatpush3.bf16.msra.mxu1 %v2785_v40  ;;  %1881 = vmatprep.mubr.bf16.mxu1 %v3349_v1  ;;  %v2804_v1 = vld [vmem:[%s3352_s9 + $0x2a8] ss:$12 sps:$4 sm:$0xff]   ;;  %v1957_v38 = vrot.slane %v1952_v36, %v1956_v35 }
  0xf2   : > { %1782 = vmatpush1.bf16.msra.mxu0 %v2781_v39  ;;  %2546 = vmatprep.subr.bf16.mxu1 %v2789_v43 }
  0xf3   : > { %1783 = vmatprep.subr.bf16.mxu0 %v2788_v41  ;;  %v1961_v41 = vrot.slane %v1952_v36, %v1960_v37 }
  0xf5   : > { %2547 = vmatpush3.bf16.msra.mxu1 %v2790_v45 }
  0xf6   : > { %1784 = vmatpush1.bf16.msra.mxu0 %v2786_v44  ;;  %2548 = vmatprep.subr.bf16.mxu1 %v2794_v47 }
  0xf7   : > { %1785 = vmatprep.subr.bf16.mxu0 %v2793_v46 }
  0xf9   : > { %2549 = vmatpush3.bf16.msra.mxu1 %v2795_v49 }
  0xfa   : > { %1786 = vmatpush1.bf16.msra.mxu0 %v2791_v48  ;;  %2550 = vmatprep.subr.bf16.mxu1 %v2799_v51 }
  0xfb   : > { %1787 = vmatprep.subr.bf16.mxu0 %v2798_v50 }
  0xfd   : > { %2551 = vmatpush3.bf16.msra.mxu1 %v2800_v53 }
  0xfe   : > { %1788 = vmatpush1.bf16.msra.mxu0 %v2796_v52  ;;  %2552 = vmatprep.subr.bf16.mxu1 %v2804_v1 }
  0xff   : > { %1789 = vmatprep.subr.bf16.mxu0 %v2803_v54 }
 0x101   : > { %2553 = vmatpush3.bf16.msra.mxu1 %v2805_v56 }
 0x102   : > { %1790 = vmatpush1.bf16.msra.mxu0 %v2801_v55  ;;  %2554 = vmatprep.subr.bf16.mxu1 %v2809_v58 }
 0x103   : > { %1791 = vmatprep.subr.bf16.mxu0 %v2808_v57 }
 0x105   : > { %2555 = vmatpush3.bf16.msra.mxu1 %v2810_v60 }
 0x106   : > { %1792 = vmatpush1.bf16.msra.mxu0 %v2806_v59  ;;  %2556 = vmatprep.subr.bf16.mxu1 %v2814_v62 }
 0x107   : > { %1793 = vmatprep.subr.bf16.mxu0 %v2813_v61  ;;  %v1964_v61 = vsub.s32 2, %v1955_v34 }
 0x109   : > { %2557 = vmatpush3.bf16.msra.mxu1 %v2815_v2 }
 0x10a   : > { %1794 = vmatpush1.bf16.msra.mxu0 %v2811_v63  ;;  %2558 = vmatprep.subr.bf16.mxu1 %v2819_v4 }
 0x10b   : > { %1795 = vmatprep.subr.bf16.mxu0 %v2818_v3  ;;  %v1965_v3 = vrot.slane %v1952_v36, %v1964_v61 }
 0x10d   : > { %2559 = vmatpush3.bf16.msra.mxu1 %v2820_v6 }
 0x10e   : > { %1796 = vmatpush1.bf16.msra.mxu0 %v2816_v5  ;;  %2566 = vmatprep.subr.bf16.mxu1 %v2824_v8 }
 0x110   : > { %1882 = vmatmul.mubr.bf16.vlgmr.msra.gmra.mrb[8].mxu1 %v3429_v7  ;;  %v2832_v7 = vld [vmem:[%s3352_s9 + $0x428] ss:$12 sps:$4 sm:$0xff]  }
 0x111   : > { %1798 = vmatmul.mubr.bf16.vlgmr.msra.gmra.mrb[0].mxu0 %v2821_v9  ;;  %2567 = vmatpush3.bf16.msra.mxu1 %v2825_v10 }
 0x112   : > { %1922 = vmatprep.mubr.bf16.mxu1 %v3472_v42  ;;  %2568 = vmatprep.subr.bf16.mxu1 %v2826_v11 }
 0x115   : > { %2569 = vmatpush3.bf16.msra.mxu1 %v2827_v12 }
 0x116   : > { %2570 = vmatprep.subr.bf16.mxu1 %v2828_v13 }
 0x119   : > { %2571 = vmatpush3.bf16.msra.mxu1 %v2829_v14 }
 0x11a   : > { %2572 = vmatprep.subr.bf16.mxu1 %v2830_v15 }
 0x11d   : > { %2573 = vmatpush3.bf16.msra.mxu1 %v2831_v16 }
 0x11e   : > { %2574 = vmatprep.subr.bf16.mxu1 %v2832_v7 }
 0x121   : > { %2575 = vmatpush3.bf16.msra.mxu1 %v2833_v17 }
 0x122   : > { %2576 = vmatprep.subr.bf16.mxu1 %v2834_v18 }
 0x125   : > { %2577 = vmatpush3.bf16.msra.mxu1 %v2835_v19 }
 0x126   : > { %2578 = vmatprep.subr.bf16.mxu1 %v2836_v20 }
 0x129   : > { %2579 = vmatpush3.bf16.msra.mxu1 %v2837_v21 }
 0x12a   : > { %2580 = vmatprep.subr.bf16.mxu1 %v2838_v0 }
 0x12d   : > { %2581 = vmatpush3.bf16.msra.mxu1 %v2839_v22 }
 0x130   : > { %1923 = vmatmul.mubr.bf16.vlgmr.msra.gmra.mrb[12].mxu1 %v2821_v9 }
 0x1a3   : > { %v1713_v23 = vpop.f32.mrb[0].mxu1 }
 0x1a4   : > { %v1715_v24 = vpop.f32.mrb[1].mxu1 }
 0x1a5   : > { %v1717_v25 = vpop.f32.mrb[2].mxu1 }
 0x1a6   : > { %v1719_v26 = vpop.f32.mrb[3].mxu1 }
 0x1c3   : > { %v2538_v27 = vpop.f32.mrb[4].mxu1 }
 0x1c4   : > { %v2539_v28 = vpop.f32.mrb[5].mxu1 }
 0x1c5   : > { %v2540_v29 = vadd.f32 %v2539_v28, %v2538_v27  ;;  %v2541_v30 = vpop.f32.mrb[6].mxu1 }
 0x1c6   : > { %v2542_v31 = vpop.f32.mrb[7].mxu1 }
 0x1c7   : > { %v2543_v32 = vadd.f32 %v2542_v31, %v2541_v30 }
 0x1e3   : > { %v2560_v40 = vpop.f32.mrb[8].mxu1 }
 0x1e4   : > { %v1799_v39 = vpop.f32.mrb[0].mxu0  ;;  %v2561_v44 = vpop.f32.mrb[9].mxu1 }
 0x1e5   : > { %v2588_v42 = vadd.f32 %v1799_v39, %v1713_v23  ;;  %v1801_v43 = vpop.f32.mrb[1].mxu0  ;;  %v2562_v46 = vadd.f32 %v2561_v44, %v2560_v40  ;;  %v2563_v48 = vpop.f32.mrb[10].mxu1 }
 0x1e6   : > { %v2589_v45 = vadd.f32 %v1801_v43, %v1715_v24  ;;  %v1803_v47 = vpop.f32.mrb[2].mxu0  ;;  %v2564_v52 = vpop.f32.mrb[11].mxu1 }
 0x1e7   : > { %v1969_v49 = vadd.f32 %v2588_v42, %v1957_v38  ;;  %v2590_v50 = vadd.f32 %v1803_v47, %v1717_v25  ;;  %v1805_v51 = vpop.f32.mrb[3].mxu0  ;;  %v1884_v54 = vadd.f32 %v2562_v46, %v2540_v29  ;;  %v2565_v55 = vadd.f32 %v2564_v52, %v2563_v48 }
 0x1e8   : > { %v1970_v53 = vadd.f32 %v2589_v45, %v1961_v41  ;;  %v2591_v1 = vadd.f32 %v1805_v51, %v1719_v26 }
 0x1e9   : > { %v1972_v56 = vadd.f32 %v2590_v50, %v1957_v38  ;;  %v1887_v59 = vadd.f32 %v2565_v55, %v2543_v32 }
 0x1ea   : > { %v2517_v57 = vpack.c.bf16 %v1970_v53, %v1969_v49  ;;  %v1973_v58 = vadd.f32 %v2591_v1, %v1961_v41 }
 0x1ec   : > { %1995 = vst [vmem:[%s644_s12] sm:$0xff] %v2517_v57  ;;  %v2519_v60 = vpack.c.bf16 %v1973_v58, %v1972_v56 }
 0x1ee   : > { %1997 = vst [vmem:[%s644_s12 + $0xc] sm:$0xff] %v2519_v60 }
 0x1f3   : > { %v2026_v14 = vld [vmem:[%s644_s12] sm:$0xff] (%p2935_p6) }
 0x1f4   : > { %2027 = vst [vmem:[%s2011_s7] sm:$0xff] (%p2935_p6), %v2026_v14 }
 0x1f5   : > { %v2028_v15 = vld [vmem:[%s644_s12 + $0xc] sm:$0xff] (%p2935_p6) }
 0x1f6   : > { %2029 = vst [vmem:[%s2011_s7 + $0x48] sm:$0xff] (%p2935_p6), %v2028_v15 }
 0x203   : > { %v2582_v62 = vpop.f32.mrb[12].mxu1 }
 0x204   : > { %v2583_v63 = vpop.f32.mrb[13].mxu1 }
 0x205   : > { %v2584_v2 = vadd.f32 %v2583_v63, %v2582_v62  ;;  %v2585_v4 = vpop.f32.mrb[14].mxu1 }
 0x206   : > { %v2586_v5 = vpop.f32.mrb[15].mxu1 }
 0x207   : > { %v1925_v6 = vadd.f32 %v2584_v2, %v1884_v54  ;;  %v2587_v8 = vadd.f32 %v2586_v5, %v2585_v4 }
 0x209   : > { %v1971_v9 = vadd.f32 %v1965_v3, %v1925_v6  ;;  %v1928_v10 = vadd.f32 %v2587_v8, %v1887_v59  ;;  %2005 = sbr.rel (!%p2935_p6) target bundleno = 536 (0x218), region = 70 }
 0x20b   : > { %v2518_v11 = vpack.c.bf16 %v1971_v9, %v1971_v9  ;;  %v1974_v12 = vadd.f32 %v1965_v3, %v1928_v10 }
 0x20d   : > { %1996 = vst [vmem:[%s644_s12 + $0x8] sm:$0xf] %v2518_v11  ;;  %v2520_v13 = vpack.c.bf16 %v1974_v12, %v1974_v12 }
 0x20f   : > { %1998 = vst [vmem:[%s644_s12 + $0x14] sm:$0xf] %v2520_v13 }
 0x214   : > { %v2510_v16 = vld [vmem:[%s644_s12 + $0x8] sm:$0xf] }
 0x215   : > { %2511 = vst [vmem:[%s2011_s7 + $0x8] sm:$0xf] %v2510_v16 }
 0x216   : > { %v2512_v7 = vld [vmem:[%s644_s12 + $0x14] sm:$0xf] }
 0x217   : > { %2513 = vst [vmem:[%s2011_s7 + $0x50] sm:$0xf] %v2512_v7 }
 0x218 PF: > { %s13_s16 = sadd.s32 1, %s2878_s16   ;;  %s3557_s12 = smov %s2866_s13 }
 0x219   : > { %p10_p12 = scmp.ge.s32.totalorder %s13_s16, 8   ;;  %s3558_s13 = smov %s2940_s22 }
 0x21a   : > { %s3559_s14 = smov %s2874_s15  ;;  %s3560_s15 = smov %s3562_s17 }
 0x21b   :  { %12 = sbr.rel (!%p10_p12) target bundleno = 3 (0x3), region = 145 }

// kernel: weighted_bce_bert_forward.31
= control target key start
LH: loop header
LB: loop body
LE: loop exit
PB: predicated region body
PF: predicated region fallthrough
CT: control target
= control target key end

     0   :  { %14 = vsyncpa [#allocation3], 0  ;;  %v321_v36 = vlaneseq  ;;  %v3635_v37 = vmov 1966171168   ;;  %s4941_s0 = inlined_call_operand.vmem [shape: bf16[2,768], index: 0, kind: input, shape index: {}]   ;;  %s4942_s1 = inlined_call_operand.vmem [shape: bf16[768,768], index: 1, kind: input, shape index: {}]   ;;  %s4943_s2 = inlined_call_operand.vmem [shape: f32[1,768], index: 2, kind: input, shape index: {}]   ;;  %s4944_s3 = inlined_call_operand.vmem [shape: f32[768,2], index: 3, kind: input, shape index: {}]   ;;  %s4945_s4 = inlined_call_operand.vmem [shape: f32[1,2], index: 4, kind: input, shape index: {}]   ;;  %s4946_s5 = inlined_call_operand.vmem [shape: f32[2,2], index: 5, kind: input, shape index: {}]   ;;  %s4947_s6 = inlined_call_operand.vmem [shape: f32[1,2], index: 6, kind: input, shape index: {}]   ;;  %s4948_s7 = inlined_call_operand.hbm [shape: f32[2,2], index: 7, kind: output, shape index: {0}]   ;;  %s4949_s8 = inlined_call_operand.hbm [shape: f32[1,1], index: 8, kind: output, shape index: {1}]  }
   0x1   :  { %v3134_v0 = vld [vmem:[%s4942_s1 + $0x4] ss:$24 sps:$4 sm:$0xff]   ;;  %v3138_v2 = vld [vmem:[%s4942_s1] ss:$24 sps:$4 sm:$0xff]   ;;  %v3140_v4 = vld [vmem:[%s4942_s1 + $0x34] ss:$24 sps:$4 sm:$0xff]   ;;  %v354_v38 = vunpack.c.l.s4 %v3635_v37 }
   0x2   :  { %v3136_v1 = vld [vmem:[%s4942_s1 + $0x304] ss:$24 sps:$4 sm:$0xff]   ;;  %1845 = vmatprep.subr.bf16.mxu1 %v3134_v0  ;;  %v3139_v3 = vld [vmem:[%s4942_s1 + $0x300] ss:$24 sps:$4 sm:$0xff]   ;;  %v3142_v5 = vld [vmem:[%s4942_s1 + $0x334] ss:$24 sps:$4 sm:$0xff]  }
   0x3   :  { %1886 = vmatprep.subr.bf16.mxu0 %v3136_v1  ;;  %1846 = vmatpush1.bf16.msra.mxu1 %v3138_v2  ;;  %v3144_v6 = vld [vmem:[%s4942_s1 + $0x30] ss:$24 sps:$4 sm:$0xff]   ;;  %v3146_v8 = vld [vmem:[%s4942_s1 + $0x64] ss:$24 sps:$4 sm:$0xff]   ;;  %v3150_v10 = vld [vmem:[%s4942_s1 + $0x60] ss:$24 sps:$4 sm:$0xff]   ;;  %v355_v43 = vunpack.c.0.s8 %v354_v38 }
   0x4   :  { %1887 = vmatpush1.bf16.msra.mxu0 %v3139_v3  ;;  %1847 = vmatprep.subr.bf16.mxu1 %v3140_v4  ;;  %v3145_v7 = vld [vmem:[%s4942_s1 + $0x330] ss:$24 sps:$4 sm:$0xff]   ;;  %v3148_v9 = vld [vmem:[%s4942_s1 + $0x364] ss:$24 sps:$4 sm:$0xff]   ;;  %v3151_v11 = vld [vmem:[%s4942_s1 + $0x360] ss:$24 sps:$4 sm:$0xff]  }
   0x5   :  { %1888 = vmatprep.subr.bf16.mxu0 %v3142_v5  ;;  %v3152_v12 = vld [vmem:[%s4942_s1 + $0x94] ss:$24 sps:$4 sm:$0xff]   ;;  %v3156_v14 = vld [vmem:[%s4942_s1 + $0x90] ss:$24 sps:$4 sm:$0xff]   ;;  %v3158_v16 = vld [vmem:[%s4942_s1 + $0xc4] ss:$24 sps:$4 sm:$0xff]  }
   0x6   :  { %v3154_v13 = vld [vmem:[%s4942_s1 + $0x394] ss:$24 sps:$4 sm:$0xff]   ;;  %v3157_v15 = vld [vmem:[%s4942_s1 + $0x390] ss:$24 sps:$4 sm:$0xff]   ;;  %v3160_v17 = vld [vmem:[%s4942_s1 + $0x3c4] ss:$24 sps:$4 sm:$0xff]  }
   0x7   :  { %1848 = vmatpush1.bf16.msra.mxu1 %v3144_v6  ;;  %v3162_v18 = vld [vmem:[%s4942_s1 + $0xc0] ss:$24 sps:$4 sm:$0xff]   ;;  %v3164_v20 = vld [vmem:[%s4942_s1 + $0xf4] ss:$24 sps:$4 sm:$0xff]   ;;  %v3168_v22 = vld [vmem:[%s4942_s1 + $0xf0] ss:$24 sps:$4 sm:$0xff]  }
   0x8   :  { %1889 = vmatpush1.bf16.msra.mxu0 %v3145_v7  ;;  %1849 = vmatprep.subr.bf16.mxu1 %v3146_v8  ;;  %v3163_v19 = vld [vmem:[%s4942_s1 + $0x3c0] ss:$24 sps:$4 sm:$0xff]   ;;  %v3166_v21 = vld [vmem:[%s4942_s1 + $0x3f4] ss:$24 sps:$4 sm:$0xff]   ;;  %v3169_v23 = vld [vmem:[%s4942_s1 + $0x3f0] ss:$24 sps:$4 sm:$0xff]  }
   0x9   :  { %1890 = vmatprep.subr.bf16.mxu0 %v3148_v9  ;;  %v3170_v24 = vld [vmem:[%s4942_s1 + $0x124] ss:$24 sps:$4 sm:$0xff]   ;;  %v3174_v26 = vld [vmem:[%s4942_s1 + $0x120] ss:$24 sps:$4 sm:$0xff]   ;;  %v3176_v28 = vld [vmem:[%s4942_s1 + $0x154] ss:$24 sps:$4 sm:$0xff]  }
   0xa   :  { %v3172_v25 = vld [vmem:[%s4942_s1 + $0x424] ss:$24 sps:$4 sm:$0xff]   ;;  %v3175_v27 = vld [vmem:[%s4942_s1 + $0x420] ss:$24 sps:$4 sm:$0xff]   ;;  %v3178_v29 = vld [vmem:[%s4942_s1 + $0x454] ss:$24 sps:$4 sm:$0xff]  }
   0xb   :  { %1850 = vmatpush1.bf16.msra.mxu1 %v3150_v10  ;;  %v3180_v30 = vld [vmem:[%s4942_s1 + $0x150] ss:$24 sps:$4 sm:$0xff]   ;;  %v3182_v32 = vld [vmem:[%s4942_s1 + $0x184] ss:$24 sps:$4 sm:$0xff]   ;;  %v3186_v34 = vld [vmem:[%s4942_s1 + $0x180] ss:$24 sps:$4 sm:$0xff]  }
   0xc   :  { %1891 = vmatpush1.bf16.msra.mxu0 %v3151_v11  ;;  %1851 = vmatprep.subr.bf16.mxu1 %v3152_v12  ;;  %v3181_v31 = vld [vmem:[%s4942_s1 + $0x450] ss:$24 sps:$4 sm:$0xff]   ;;  %v3184_v33 = vld [vmem:[%s4942_s1 + $0x484] ss:$24 sps:$4 sm:$0xff]   ;;  %v3187_v35 = vld [vmem:[%s4942_s1 + $0x480] ss:$24 sps:$4 sm:$0xff]  }
   0xd   :  { %1892 = vmatprep.subr.bf16.mxu0 %v3154_v13  ;;  %v3188_v39 = vld [vmem:[%s4942_s1 + $0x1b4] ss:$24 sps:$4 sm:$0xff]   ;;  %v3192_v41 = vld [vmem:[%s4942_s1 + $0x1b0] ss:$24 sps:$4 sm:$0xff]   ;;  %v3800_v42 = vshrl.u32 %v321_v36, 7 }
   0xe   :  { %v3190_v40 = vld [vmem:[%s4942_s1 + $0x4b4] ss:$24 sps:$4 sm:$0xff]   ;;  %v3193_v44 = vld [vmem:[%s4942_s1 + $0x4b0] ss:$24 sps:$4 sm:$0xff]   ;;  %v3194_v45 = vld [vmem:[%s4942_s1 + $0x1e4] ss:$24 sps:$4 sm:$0xff]  }
   0xf   :  { %1852 = vmatpush1.bf16.msra.mxu1 %v3156_v14  ;;  %v3196_v46 = vld [vmem:[%s4942_s1 + $0x4e4] ss:$24 sps:$4 sm:$0xff]   ;;  %v3198_v47 = vld [vmem:[%s4942_s1 + $0x1e0] ss:$24 sps:$4 sm:$0xff]   ;;  %v3818_v49 = vsub.s32 %v355_v43, %v3800_v42  ;;  %v3200_v50 = vld [vmem:[%s4942_s1 + $0x214] ss:$24 sps:$4 sm:$0xff]  }
  0x10   :  { %1893 = vmatpush1.bf16.msra.mxu0 %v3157_v15  ;;  %1853 = vmatprep.subr.bf16.mxu1 %v3158_v16  ;;  %v3199_v48 = vld [vmem:[%s4942_s1 + $0x4e0] ss:$24 sps:$4 sm:$0xff]   ;;  %v3202_v51 = vld [vmem:[%s4942_s1 + $0x514] ss:$24 sps:$4 sm:$0xff]   ;;  %v3204_v53 = vld [vmem:[%s4942_s1 + $0x210] ss:$24 sps:$4 sm:$0xff]  }
  0x11   :  { %1894 = vmatprep.subr.bf16.mxu0 %v3160_v17  ;;  %v30_v52 = vld [vmem:[%s4941_s0] sm:$0x3f]  ;;  %v3205_v56 = vld [vmem:[%s4942_s1 + $0x510] ss:$24 sps:$4 sm:$0xff]   ;;  %v3212_v1 = vld [vmem:[%s4942_s1 + $0x274] ss:$24 sps:$4 sm:$0xff]  }
  0x12   :  { %v359_v54 = vrot.slane %v30_v52, %v3818_v49  ;;  %v352_v55 = vcombine.high %v30_v52, %v30_v52  ;;  %v3206_v57 = vld [vmem:[%s4942_s1 + $0x244] ss:$24 sps:$4 sm:$0xff]   ;;  %v3210_v61 = vld [vmem:[%s4942_s1 + $0x240] ss:$24 sps:$4 sm:$0xff]   ;;  %v3214_v2 = vld [vmem:[%s4942_s1 + $0x574] ss:$24 sps:$4 sm:$0xff]  }
  0x13   :  { %1854 = vmatpush1.bf16.msra.mxu1 %v3162_v18  ;;  %v3208_v58 = vld [vmem:[%s4942_s1 + $0x544] ss:$24 sps:$4 sm:$0xff]   ;;  %v3211_v0 = vld [vmem:[%s4942_s1 + $0x540] ss:$24 sps:$4 sm:$0xff]   ;;  %v3216_v4 = vld [vmem:[%s4942_s1 + $0x270] ss:$24 sps:$4 sm:$0xff]  }
  0x14   :  { %1895 = vmatpush1.bf16.msra.mxu0 %v3163_v19  ;;  %1855 = vmatprep.subr.bf16.mxu1 %v3164_v20  ;;  %v367_v59 = vcombine.high %v359_v54, %v359_v54  ;;  %v366_v60 = vrot.slane %v352_v55, %v3818_v49  ;;  %v3217_v5 = vld [vmem:[%s4942_s1 + $0x570] ss:$24 sps:$4 sm:$0xff]   ;;  %v3218_v6 = vld [vmem:[%s4942_s1 + $0x2a4] ss:$24 sps:$4 sm:$0xff]   ;;  %v3222_v8 = vld [vmem:[%s4942_s1 + $0x2a0] ss:$24 sps:$4 sm:$0xff]   ;;  %v3895_v13 = vrot.slane %v359_v54, %v3818_v49 }
  0x15   :  { %1896 = vmatprep.subr.bf16.mxu0 %v3166_v21  ;;  %v3220_v7 = vld [vmem:[%s4942_s1 + $0x5a4] ss:$24 sps:$4 sm:$0xff]   ;;  %v3223_v9 = vld [vmem:[%s4942_s1 + $0x5a0] ss:$24 sps:$4 sm:$0xff]   ;;  %v3224_v10 = vld [vmem:[%s4942_s1 + $0x2d4] ss:$24 sps:$4 sm:$0xff]  }
  0x16   :  { %v3847_v62 = vrot.slane %v367_v59, %v3818_v49  ;;  %v3850_v63 = vrot.slane %v366_v60, %v3818_v49  ;;  %v3226_v11 = vld [vmem:[%s4942_s1 + $0x5d4] ss:$24 sps:$4 sm:$0xff]   ;;  %v3228_v12 = vld [vmem:[%s4942_s1 + $0x2d0] ss:$24 sps:$4 sm:$0xff]   ;;  %v3232_v15 = vld [vmem:[%s4942_s1 + $0x604] ss:$24 sps:$4 sm:$0xff]   ;;  %v368_v17 = vcombine.high %v366_v60, %v366_v60  ;;  %v3911_v19 = vcombine.high %v3895_v13, %v3895_v13 }
  0x17   :  { %1856 = vmatpush1.bf16.msra.mxu1 %v3168_v22  ;;  %v3229_v14 = vld [vmem:[%s4942_s1 + $0x5d0] ss:$24 sps:$4 sm:$0xff]   ;;  %v3235_v16 = vld [vmem:[%s4942_s1 + $0xc] ss:$24 sps:$4 sm:$0xff]   ;;  %v3230_v18 = vld [vmem:[%s4942_s1 + $0x600] ss:$24 sps:$4 sm:$0xff]  }
  0x18   :  { %1897 = vmatpush1.bf16.msra.mxu0 %v3169_v23  ;;  %1857 = vmatprep.subr.bf16.mxu1 %v3170_v24  ;;  %v3863_v3 = vcombine.high %v3847_v62, %v3847_v62  ;;  %v3233_v20 = vld [vmem:[%s4942_s1 + $0x8] ss:$24 sps:$4 sm:$0xff]   ;;  %v3238_v21 = vld [vmem:[%s4942_s1 + $0x634] ss:$24 sps:$4 sm:$0xff]   ;;  %v3923_v23 = vrot.slane %v368_v17, %v3818_v49  ;;  %v3268_v43 = vld [vmem:[%s4942_s1 + $0x724] ss:$24 sps:$4 sm:$0xff]  }
  0x19   :  { %1898 = vmatprep.subr.bf16.mxu0 %v3172_v25  ;;  %1877 = vmatprep.mubr.bf16.mxu1 %v3847_v62  ;;  %v3241_v22 = vld [vmem:[%s4942_s1 + $0x3c] ss:$24 sps:$4 sm:$0xff]   ;;  %v3236_v24 = vld [vmem:[%s4942_s1 + $0x630] ss:$24 sps:$4 sm:$0xff]   ;;  %v3254_v36 = vld [vmem:[%s4942_s1 + $0x6c0] ss:$24 sps:$4 sm:$0xff]  }
  0x1a   :  { %1918 = vmatprep.mubr.bf16.mxu0 %v3863_v3  ;;  %v3239_v25 = vld [vmem:[%s4942_s1 + $0x38] ss:$24 sps:$4 sm:$0xff]   ;;  %v3257_v37 = vld [vmem:[%s4942_s1 + $0xc8] ss:$24 sps:$4 sm:$0xff]   ;;  %v3262_v38 = vld [vmem:[%s4942_s1 + $0x6f4] ss:$24 sps:$4 sm:$0xff]  }
  0x1b   :  { %1858 = vmatpush1.bf16.msra.mxu1 %v3174_v26  ;;  %v3244_v26 = vld [vmem:[%s4942_s1 + $0x664] ss:$24 sps:$4 sm:$0xff]   ;;  %v3272_v49 = vld [vmem:[%s4942_s1 + $0x750] ss:$24 sps:$4 sm:$0xff]   ;;  %v3286_v55 = vld [vmem:[%s4942_s1 + $0x7b4] ss:$24 sps:$4 sm:$0xff]  }
  0x1c   :  { %1899 = vmatpush1.bf16.msra.mxu0 %v3175_v27  ;;  %1859 = vmatprep.subr.bf16.mxu1 %v3176_v28  ;;  %v3247_v27 = vld [vmem:[%s4942_s1 + $0x6c] ss:$24 sps:$4 sm:$0xff]   ;;  %v3242_v28 = vld [vmem:[%s4942_s1 + $0x660] ss:$24 sps:$4 sm:$0xff]  }
  0x1d   :  { %1900 = vmatprep.subr.bf16.mxu0 %v3178_v29  ;;  %v3245_v29 = vld [vmem:[%s4942_s1 + $0x68] ss:$24 sps:$4 sm:$0xff]   ;;  %v3283_v52 = vld [vmem:[%s4942_s1 + $0x18c] ss:$24 sps:$4 sm:$0xff]  }
  0x1e   :  { %v3281_v54 = vld [vmem:[%s4942_s1 + $0x188] ss:$24 sps:$4 sm:$0xff]   ;;  %v3292_v59 = vld [vmem:[%s4942_s1 + $0x7e4] ss:$24 sps:$4 sm:$0xff]  }
  0x1f   :  { %1860 = vmatpush1.bf16.msra.mxu1 %v3180_v30  ;;  %v3250_v30 = vld [vmem:[%s4942_s1 + $0x694] ss:$24 sps:$4 sm:$0xff]   ;;  %v3314_v17 = vld [vmem:[%s4942_s1 + $0x8a0] ss:$24 sps:$4 sm:$0xff]  }
  0x20   :  { %1901 = vmatpush1.bf16.msra.mxu0 %v3181_v31  ;;  %1861 = vmatprep.subr.bf16.mxu1 %v3182_v32  ;;  %v3253_v31 = vld [vmem:[%s4942_s1 + $0x9c] ss:$24 sps:$4 sm:$0xff]   ;;  %v3248_v32 = vld [vmem:[%s4942_s1 + $0x690] ss:$24 sps:$4 sm:$0xff]   ;;  %v3295_v60 = vld [vmem:[%s4942_s1 + $0x1ec] ss:$24 sps:$4 sm:$0xff]  }
  0x21   :  { %1902 = vmatprep.subr.bf16.mxu0 %v3184_v33  ;;  %v3251_v33 = vld [vmem:[%s4942_s1 + $0x98] ss:$24 sps:$4 sm:$0xff]  }
  0x23   :  { %1862 = vmatpush1.bf16.msra.mxu1 %v3186_v34  ;;  %v3256_v34 = vld [vmem:[%s4942_s1 + $0x6c4] ss:$24 sps:$4 sm:$0xff]  }
  0x24   :  { %1903 = vmatpush1.bf16.msra.mxu0 %v3187_v35  ;;  %1863 = vmatprep.subr.bf16.mxu1 %v3188_v39  ;;  %v3259_v35 = vld [vmem:[%s4942_s1 + $0xcc] ss:$24 sps:$4 sm:$0xff]   ;;  %v3265_v39 = vld [vmem:[%s4942_s1 + $0xfc] ss:$24 sps:$4 sm:$0xff]  }
  0x25   :  { %1904 = vmatprep.subr.bf16.mxu0 %v3190_v40  ;;  %v3260_v40 = vld [vmem:[%s4942_s1 + $0x6f0] ss:$24 sps:$4 sm:$0xff]  }
  0x27   :  { %1864 = vmatpush1.bf16.msra.mxu1 %v3192_v41  ;;  %v3263_v41 = vld [vmem:[%s4942_s1 + $0xf8] ss:$24 sps:$4 sm:$0xff]  }
  0x28   :  { %1905 = vmatpush1.bf16.msra.mxu0 %v3193_v44  ;;  %1865 = vmatprep.subr.bf16.mxu1 %v3194_v45  ;;  %v3271_v44 = vld [vmem:[%s4942_s1 + $0x12c] ss:$24 sps:$4 sm:$0xff]   ;;  %v3266_v45 = vld [vmem:[%s4942_s1 + $0x720] ss:$24 sps:$4 sm:$0xff]  }
  0x29   :  { %1906 = vmatprep.subr.bf16.mxu0 %v3196_v46  ;;  %v3269_v46 = vld [vmem:[%s4942_s1 + $0x128] ss:$24 sps:$4 sm:$0xff]  }
  0x2b   :  { %1866 = vmatpush1.bf16.msra.mxu1 %v3198_v47  ;;  %v3274_v47 = vld [vmem:[%s4942_s1 + $0x754] ss:$24 sps:$4 sm:$0xff]  }
  0x2c   :  { %1907 = vmatpush1.bf16.msra.mxu0 %v3199_v48  ;;  %1867 = vmatprep.subr.bf16.mxu1 %v3200_v50  ;;  %v3277_v48 = vld [vmem:[%s4942_s1 + $0x15c] ss:$24 sps:$4 sm:$0xff]   ;;  %v3275_v50 = vld [vmem:[%s4942_s1 + $0x158] ss:$24 sps:$4 sm:$0xff]  }
  0x2d   :  { %1908 = vmatprep.subr.bf16.mxu0 %v3202_v51  ;;  %v3280_v51 = vld [vmem:[%s4942_s1 + $0x784] ss:$24 sps:$4 sm:$0xff]  }
  0x2f   :  { %1868 = vmatpush1.bf16.msra.mxu1 %v3204_v53  ;;  %v3278_v53 = vld [vmem:[%s4942_s1 + $0x780] ss:$24 sps:$4 sm:$0xff]  }
  0x30   :  { %1909 = vmatpush1.bf16.msra.mxu0 %v3205_v56  ;;  %1869 = vmatprep.subr.bf16.mxu1 %v3206_v57  ;;  %v3289_v56 = vld [vmem:[%s4942_s1 + $0x1bc] ss:$24 sps:$4 sm:$0xff]   ;;  %v3284_v57 = vld [vmem:[%s4942_s1 + $0x7b0] ss:$24 sps:$4 sm:$0xff]  }
  0x31   :  { %1910 = vmatprep.subr.bf16.mxu0 %v3208_v58  ;;  %v3287_v58 = vld [vmem:[%s4942_s1 + $0x1b8] ss:$24 sps:$4 sm:$0xff]  }
  0x33   :  { %1870 = vmatpush1.bf16.msra.mxu1 %v3210_v61  ;;  %v3290_v61 = vld [vmem:[%s4942_s1 + $0x7e0] ss:$24 sps:$4 sm:$0xff]  }
  0x34   :  { %1911 = vmatpush1.bf16.msra.mxu0 %v3211_v0  ;;  %1871 = vmatprep.subr.bf16.mxu1 %v3212_v1  ;;  %v3293_v0 = vld [vmem:[%s4942_s1 + $0x1e8] ss:$24 sps:$4 sm:$0xff]   ;;  %v3298_v1 = vld [vmem:[%s4942_s1 + $0x814] ss:$24 sps:$4 sm:$0xff]  }
  0x35   :  { %1912 = vmatprep.subr.bf16.mxu0 %v3214_v2  ;;  %v3301_v2 = vld [vmem:[%s4942_s1 + $0x21c] ss:$24 sps:$4 sm:$0xff]  }
  0x37   :  { %1872 = vmatpush1.bf16.msra.mxu1 %v3216_v4  ;;  %v3296_v4 = vld [vmem:[%s4942_s1 + $0x810] ss:$24 sps:$4 sm:$0xff]  }
  0x38   :  { %1913 = vmatpush1.bf16.msra.mxu0 %v3217_v5  ;;  %1873 = vmatprep.subr.bf16.mxu1 %v3218_v6  ;;  %v3299_v5 = vld [vmem:[%s4942_s1 + $0x218] ss:$24 sps:$4 sm:$0xff]   ;;  %v3304_v6 = vld [vmem:[%s4942_s1 + $0x844] ss:$24 sps:$4 sm:$0xff]  }
  0x39   :  { %1914 = vmatprep.subr.bf16.mxu0 %v3220_v7  ;;  %v3307_v7 = vld [vmem:[%s4942_s1 + $0x24c] ss:$24 sps:$4 sm:$0xff]  }
  0x3b   :  { %1874 = vmatpush1.bf16.msra.mxu1 %v3222_v8  ;;  %v3302_v8 = vld [vmem:[%s4942_s1 + $0x840] ss:$24 sps:$4 sm:$0xff]  }
  0x3c   :  { %1915 = vmatpush1.bf16.msra.mxu0 %v3223_v9  ;;  %1875 = vmatprep.subr.bf16.mxu1 %v3224_v10  ;;  %v3305_v9 = vld [vmem:[%s4942_s1 + $0x248] ss:$24 sps:$4 sm:$0xff]   ;;  %v3310_v10 = vld [vmem:[%s4942_s1 + $0x874] ss:$24 sps:$4 sm:$0xff]  }
  0x3d   :  { %1916 = vmatprep.subr.bf16.mxu0 %v3226_v11  ;;  %v3313_v11 = vld [vmem:[%s4942_s1 + $0x27c] ss:$24 sps:$4 sm:$0xff]  }
  0x3f   :  { %1876 = vmatpush1.bf16.msra.mxu1 %v3228_v12  ;;  %v3308_v12 = vld [vmem:[%s4942_s1 + $0x870] ss:$24 sps:$4 sm:$0xff]  }
  0x40   :  { %1917 = vmatpush1.bf16.msra.mxu0 %v3229_v14  ;;  %1968 = vmatprep.subr.bf16.mxu1 %v3235_v16  ;;  %v3311_v14 = vld [vmem:[%s4942_s1 + $0x278] ss:$24 sps:$4 sm:$0xff]   ;;  %v3319_v16 = vld [vmem:[%s4942_s1 + $0x2ac] ss:$24 sps:$4 sm:$0xff]  }
  0x41   :  { %1927 = vmatprep.subr.bf16.mxu0 %v3232_v15  ;;  %v3316_v15 = vld [vmem:[%s4942_s1 + $0x8a4] ss:$24 sps:$4 sm:$0xff]  }
  0x42   :  { %1878 = vmatmul.mubr.bf16.vlgmr.msra.gmra.mrb[0].mxu1 %v3895_v13 }
  0x43   :  { %1919 = vmatmul.mubr.bf16.vlgmr.msra.gmra.mrb[0].mxu0 %v3911_v19  ;;  %1969 = vmatpush1.bf16.msra.mxu1 %v3233_v20  ;;  %v3322_v20 = vld [vmem:[%s4942_s1 + $0x8d4] ss:$24 sps:$4 sm:$0xff]  }
  0x44   :  { %1928 = vmatpush1.bf16.msra.mxu0 %v3230_v18  ;;  %1970 = vmatprep.subr.bf16.mxu1 %v3241_v22  ;;  %v3317_v18 = vld [vmem:[%s4942_s1 + $0x2a8] ss:$24 sps:$4 sm:$0xff]  }
  0x45   :  { %1929 = vmatprep.subr.bf16.mxu0 %v3238_v21  ;;  %1959 = vmatprep.mubr.bf16.mxu0 %v3923_v23  ;;  %v3325_v21 = vld [vmem:[%s4942_s1 + $0x2dc] ss:$24 sps:$4 sm:$0xff]   ;;  %v3320_v22 = vld [vmem:[%s4942_s1 + $0x8d0] ss:$24 sps:$4 sm:$0xff]  }
  0x46   :  { %2000 = vmatprep.mubr.bf16.mxu1 %v3847_v62 }
  0x47   :  { %1971 = vmatpush1.bf16.msra.mxu1 %v3239_v25  ;;  %v3329_v25 = vld [vmem:[%s4942_s1 + $0x30c] ss:$24 sps:$4 sm:$0xff]  }
  0x48   :  { %1930 = vmatpush1.bf16.msra.mxu0 %v3236_v24  ;;  %1972 = vmatprep.subr.bf16.mxu1 %v3247_v27  ;;  %v3323_v24 = vld [vmem:[%s4942_s1 + $0x2d8] ss:$24 sps:$4 sm:$0xff]   ;;  %v3327_v27 = vld [vmem:[%s4942_s1 + $0x308] ss:$24 sps:$4 sm:$0xff]  }
  0x49   :  { %1931 = vmatprep.subr.bf16.mxu0 %v3244_v26  ;;  %v3332_v26 = vld [vmem:[%s4942_s1 + $0x14] ss:$24 sps:$4 sm:$0xff]  }
  0x4b   :  { %1973 = vmatpush1.bf16.msra.mxu1 %v3245_v29  ;;  %v3335_v29 = vld [vmem:[%s4942_s1 + $0x33c] ss:$24 sps:$4 sm:$0xff]  }
  0x4c   :  { %1932 = vmatpush1.bf16.msra.mxu0 %v3242_v28  ;;  %1974 = vmatprep.subr.bf16.mxu1 %v3253_v31  ;;  %v3330_v28 = vld [vmem:[%s4942_s1 + $0x10] ss:$24 sps:$4 sm:$0xff]  }
  0x4d   :  { %1933 = vmatprep.subr.bf16.mxu0 %v3250_v30  ;;  %v3338_v30 = vld [vmem:[%s4942_s1 + $0x44] ss:$24 sps:$4 sm:$0xff]   ;;  %v3333_v31 = vld [vmem:[%s4942_s1 + $0x338] ss:$24 sps:$4 sm:$0xff]  }
  0x4f   :  { %1975 = vmatpush1.bf16.msra.mxu1 %v3251_v33  ;;  %v3341_v33 = vld [vmem:[%s4942_s1 + $0x36c] ss:$24 sps:$4 sm:$0xff]  }
  0x50   :  { %1934 = vmatpush1.bf16.msra.mxu0 %v3248_v32  ;;  %1976 = vmatprep.subr.bf16.mxu1 %v3259_v35  ;;  %v3336_v32 = vld [vmem:[%s4942_s1 + $0x40] ss:$24 sps:$4 sm:$0xff]  }
  0x51   :  { %1935 = vmatprep.subr.bf16.mxu0 %v3256_v34  ;;  %v3344_v34 = vld [vmem:[%s4942_s1 + $0x74] ss:$24 sps:$4 sm:$0xff]   ;;  %v3339_v35 = vld [vmem:[%s4942_s1 + $0x368] ss:$24 sps:$4 sm:$0xff]  }
  0x53   :  { %1977 = vmatpush1.bf16.msra.mxu1 %v3257_v37  ;;  %v3347_v37 = vld [vmem:[%s4942_s1 + $0x39c] ss:$24 sps:$4 sm:$0xff]  }
  0x54   :  { %1936 = vmatpush1.bf16.msra.mxu0 %v3254_v36  ;;  %1978 = vmatprep.subr.bf16.mxu1 %v3265_v39  ;;  %v3342_v36 = vld [vmem:[%s4942_s1 + $0x70] ss:$24 sps:$4 sm:$0xff]   ;;  %v3348_v39 = vld [vmem:[%s4942_s1 + $0xa0] ss:$24 sps:$4 sm:$0xff]  }
  0x55   :  { %1937 = vmatprep.subr.bf16.mxu0 %v3262_v38  ;;  %v3345_v38 = vld [vmem:[%s4942_s1 + $0x398] ss:$24 sps:$4 sm:$0xff]  }
  0x57   :  { %1979 = vmatpush1.bf16.msra.mxu1 %v3263_v41  ;;  %v3356_v41 = vld [vmem:[%s4942_s1 + $0xd4] ss:$24 sps:$4 sm:$0xff]  }
  0x58   :  { %1938 = vmatpush1.bf16.msra.mxu0 %v3260_v40  ;;  %1980 = vmatprep.subr.bf16.mxu1 %v3271_v44  ;;  %v3353_v40 = vld [vmem:[%s4942_s1 + $0x3cc] ss:$24 sps:$4 sm:$0xff]   ;;  %v3354_v44 = vld [vmem:[%s4942_s1 + $0xd0] ss:$24 sps:$4 sm:$0xff]  }
  0x59   :  { %1939 = vmatprep.subr.bf16.mxu0 %v3268_v43  ;;  %v3351_v43 = vld [vmem:[%s4942_s1 + $0x3c8] ss:$24 sps:$4 sm:$0xff]  }
  0x5b   :  { %1981 = vmatpush1.bf16.msra.mxu1 %v3269_v46  ;;  %v3362_v46 = vld [vmem:[%s4942_s1 + $0x104] ss:$24 sps:$4 sm:$0xff]  }
  0x5c   :  { %1940 = vmatpush1.bf16.msra.mxu0 %v3266_v45  ;;  %1982 = vmatprep.subr.bf16.mxu1 %v3277_v48  ;;  %v3359_v45 = vld [vmem:[%s4942_s1 + $0x3fc] ss:$24 sps:$4 sm:$0xff]   ;;  %v3360_v48 = vld [vmem:[%s4942_s1 + $0x100] ss:$24 sps:$4 sm:$0xff]  }
  0x5d   :  { %1941 = vmatprep.subr.bf16.mxu0 %v3274_v47  ;;  %v3357_v47 = vld [vmem:[%s4942_s1 + $0x3f8] ss:$24 sps:$4 sm:$0xff]  }
  0x5f   :  { %1983 = vmatpush1.bf16.msra.mxu1 %v3275_v50  ;;  %v3368_v50 = vld [vmem:[%s4942_s1 + $0x134] ss:$24 sps:$4 sm:$0xff]  }
  0x60   :  { %1942 = vmatpush1.bf16.msra.mxu0 %v3272_v49  ;;  %1984 = vmatprep.subr.bf16.mxu1 %v3283_v52  ;;  %v3365_v49 = vld [vmem:[%s4942_s1 + $0x42c] ss:$24 sps:$4 sm:$0xff]   ;;  %v3366_v52 = vld [vmem:[%s4942_s1 + $0x130] ss:$24 sps:$4 sm:$0xff]  }
  0x61   :  { %1943 = vmatprep.subr.bf16.mxu0 %v3280_v51  ;;  %v3363_v51 = vld [vmem:[%s4942_s1 + $0x428] ss:$24 sps:$4 sm:$0xff]  }
  0x63   :  { %1985 = vmatpush1.bf16.msra.mxu1 %v3281_v54  ;;  %v3374_v54 = vld [vmem:[%s4942_s1 + $0x164] ss:$24 sps:$4 sm:$0xff]  }
  0x64   :  { %1944 = vmatpush1.bf16.msra.mxu0 %v3278_v53  ;;  %1986 = vmatprep.subr.bf16.mxu1 %v3289_v56  ;;  %v3371_v53 = vld [vmem:[%s4942_s1 + $0x45c] ss:$24 sps:$4 sm:$0xff]   ;;  %v3372_v56 = vld [vmem:[%s4942_s1 + $0x160] ss:$24 sps:$4 sm:$0xff]  }
  0x65   :  { %1945 = vmatprep.subr.bf16.mxu0 %v3286_v55  ;;  %v3369_v55 = vld [vmem:[%s4942_s1 + $0x458] ss:$24 sps:$4 sm:$0xff]  }
  0x67   :  { %1987 = vmatpush1.bf16.msra.mxu1 %v3287_v58  ;;  %v3380_v58 = vld [vmem:[%s4942_s1 + $0x194] ss:$24 sps:$4 sm:$0xff]  }
  0x68   :  { %1946 = vmatpush1.bf16.msra.mxu0 %v3284_v57  ;;  %1988 = vmatprep.subr.bf16.mxu1 %v3295_v60  ;;  %v3377_v57 = vld [vmem:[%s4942_s1 + $0x48c] ss:$24 sps:$4 sm:$0xff]   ;;  %v3378_v60 = vld [vmem:[%s4942_s1 + $0x190] ss:$24 sps:$4 sm:$0xff]  }
  0x69   :  { %1947 = vmatprep.subr.bf16.mxu0 %v3292_v59  ;;  %v3375_v59 = vld [vmem:[%s4942_s1 + $0x488] ss:$24 sps:$4 sm:$0xff]  }
  0x6b   :  { %1989 = vmatpush1.bf16.msra.mxu1 %v3293_v0  ;;  %v3386_v0 = vld [vmem:[%s4942_s1 + $0x1c4] ss:$24 sps:$4 sm:$0xff]  }
  0x6c   :  { %1948 = vmatpush1.bf16.msra.mxu0 %v3290_v61  ;;  %1990 = vmatprep.subr.bf16.mxu1 %v3301_v2  ;;  %v3383_v61 = vld [vmem:[%s4942_s1 + $0x4bc] ss:$24 sps:$4 sm:$0xff]   ;;  %v3384_v2 = vld [vmem:[%s4942_s1 + $0x1c0] ss:$24 sps:$4 sm:$0xff]  }
  0x6d   :  { %1949 = vmatprep.subr.bf16.mxu0 %v3298_v1  ;;  %v3381_v1 = vld [vmem:[%s4942_s1 + $0x4b8] ss:$24 sps:$4 sm:$0xff]  }
  0x6f   :  { %1991 = vmatpush1.bf16.msra.mxu1 %v3299_v5  ;;  %v3392_v5 = vld [vmem:[%s4942_s1 + $0x1f4] ss:$24 sps:$4 sm:$0xff]  }
  0x70   :  { %1950 = vmatpush1.bf16.msra.mxu0 %v3296_v4  ;;  %1992 = vmatprep.subr.bf16.mxu1 %v3307_v7  ;;  %v3389_v4 = vld [vmem:[%s4942_s1 + $0x4ec] ss:$24 sps:$4 sm:$0xff]   ;;  %v3390_v7 = vld [vmem:[%s4942_s1 + $0x1f0] ss:$24 sps:$4 sm:$0xff]  }
  0x71   :  { %1951 = vmatprep.subr.bf16.mxu0 %v3304_v6  ;;  %v3387_v6 = vld [vmem:[%s4942_s1 + $0x4e8] ss:$24 sps:$4 sm:$0xff]  }
  0x73   :  { %1993 = vmatpush1.bf16.msra.mxu1 %v3305_v9  ;;  %v3398_v9 = vld [vmem:[%s4942_s1 + $0x224] ss:$24 sps:$4 sm:$0xff]  }
  0x74   :  { %1952 = vmatpush1.bf16.msra.mxu0 %v3302_v8  ;;  %1994 = vmatprep.subr.bf16.mxu1 %v3313_v11  ;;  %v3395_v8 = vld [vmem:[%s4942_s1 + $0x51c] ss:$24 sps:$4 sm:$0xff]   ;;  %v3396_v11 = vld [vmem:[%s4942_s1 + $0x220] ss:$24 sps:$4 sm:$0xff]  }
  0x75   :  { %1953 = vmatprep.subr.bf16.mxu0 %v3310_v10  ;;  %v3393_v10 = vld [vmem:[%s4942_s1 + $0x518] ss:$24 sps:$4 sm:$0xff]  }
  0x77   :  { %1995 = vmatpush1.bf16.msra.mxu1 %v3311_v14  ;;  %v3404_v14 = vld [vmem:[%s4942_s1 + $0x254] ss:$24 sps:$4 sm:$0xff]  }
  0x78   :  { %1954 = vmatpush1.bf16.msra.mxu0 %v3308_v12  ;;  %1996 = vmatprep.subr.bf16.mxu1 %v3319_v16  ;;  %v3401_v12 = vld [vmem:[%s4942_s1 + $0x54c] ss:$24 sps:$4 sm:$0xff]   ;;  %v3402_v16 = vld [vmem:[%s4942_s1 + $0x250] ss:$24 sps:$4 sm:$0xff]  }
  0x79   :  { %1955 = vmatprep.subr.bf16.mxu0 %v3316_v15  ;;  %v3399_v15 = vld [vmem:[%s4942_s1 + $0x548] ss:$24 sps:$4 sm:$0xff]  }
  0x7b   :  { %1997 = vmatpush1.bf16.msra.mxu1 %v3317_v18  ;;  %v3410_v18 = vld [vmem:[%s4942_s1 + $0x284] ss:$24 sps:$4 sm:$0xff]  }
  0x7c   :  { %1956 = vmatpush1.bf16.msra.mxu0 %v3314_v17  ;;  %1998 = vmatprep.subr.bf16.mxu1 %v3325_v21  ;;  %v3407_v17 = vld [vmem:[%s4942_s1 + $0x57c] ss:$24 sps:$4 sm:$0xff]   ;;  %v3408_v21 = vld [vmem:[%s4942_s1 + $0x280] ss:$24 sps:$4 sm:$0xff]  }
  0x7d   :  { %1957 = vmatprep.subr.bf16.mxu0 %v3322_v20  ;;  %v3405_v20 = vld [vmem:[%s4942_s1 + $0x578] ss:$24 sps:$4 sm:$0xff]  }
  0x7f   :  { %1999 = vmatpush1.bf16.msra.mxu1 %v3323_v24  ;;  %v3416_v24 = vld [vmem:[%s4942_s1 + $0x2b4] ss:$24 sps:$4 sm:$0xff]  }
  0x80   :  { %1958 = vmatpush1.bf16.msra.mxu0 %v3320_v22  ;;  %2009 = vmatprep.subr.bf16.mxu1 %v3329_v25  ;;  %v3413_v22 = vld [vmem:[%s4942_s1 + $0x5ac] ss:$24 sps:$4 sm:$0xff]   ;;  %v3411_v25 = vld [vmem:[%s4942_s1 + $0x5a8] ss:$24 sps:$4 sm:$0xff]  }
  0x81   :  { %2091 = vmatprep.subr.bf16.mxu0 %v3332_v26  ;;  %v3414_v26 = vld [vmem:[%s4942_s1 + $0x2b0] ss:$24 sps:$4 sm:$0xff]  }
  0x82   :  { %2001 = vmatmul.mubr.bf16.vlgmr.msra.gmra.mrb[4].mxu1 %v3895_v13 }
  0x83   :  { %1960 = vmatmul.mubr.bf16.vlgmr.msra.gmra.mrb[0].mxu0 %v3850_v63  ;;  %2010 = vmatpush1.bf16.msra.mxu1 %v3327_v27  ;;  %v3419_v27 = vld [vmem:[%s4942_s1 + $0x5dc] ss:$24 sps:$4 sm:$0xff]  }
  0x84   :  { %2092 = vmatpush1.bf16.msra.mxu0 %v3330_v28  ;;  %2011 = vmatprep.subr.bf16.mxu1 %v3335_v29  ;;  %v3422_v28 = vld [vmem:[%s4942_s1 + $0x2e4] ss:$24 sps:$4 sm:$0xff]   ;;  %v3417_v29 = vld [vmem:[%s4942_s1 + $0x5d8] ss:$24 sps:$4 sm:$0xff]  }
  0x85   :  { %2093 = vmatprep.subr.bf16.mxu0 %v3338_v30  ;;  %2041 = vmatprep.mubr.bf16.mxu1 %v3863_v3  ;;  %v3420_v30 = vld [vmem:[%s4942_s1 + $0x2e0] ss:$24 sps:$4 sm:$0xff]  }
  0x86   :  { %2123 = vmatprep.mubr.bf16.mxu0 %v3847_v62  ;;  %v3350_v62 = vld [vmem:[%s4942_s1 + $0xa4] ss:$24 sps:$4 sm:$0xff]  }
  0x87   :  { %2012 = vmatpush1.bf16.msra.mxu1 %v3333_v31  ;;  %v3425_v31 = vld [vmem:[%s4942_s1 + $0x60c] ss:$24 sps:$4 sm:$0xff]  }
  0x88   :  { %2094 = vmatpush1.bf16.msra.mxu0 %v3336_v32  ;;  %2013 = vmatprep.subr.bf16.mxu1 %v3341_v33  ;;  %v3428_v32 = vld [vmem:[%s4942_s1 + $0x314] ss:$24 sps:$4 sm:$0xff]   ;;  %v3423_v33 = vld [vmem:[%s4942_s1 + $0x608] ss:$24 sps:$4 sm:$0xff]  }
  0x89   :  { %2095 = vmatprep.subr.bf16.mxu0 %v3344_v34  ;;  %v3426_v34 = vld [vmem:[%s4942_s1 + $0x310] ss:$24 sps:$4 sm:$0xff]  }
  0x8b   :  { %2014 = vmatpush1.bf16.msra.mxu1 %v3339_v35 }
  0x8c   :  { %2096 = vmatpush1.bf16.msra.mxu0 %v3342_v36  ;;  %2015 = vmatprep.subr.bf16.mxu1 %v3347_v37 }
  0x8d   :  { %2097 = vmatprep.subr.bf16.mxu0 %v3350_v62 }
  0x8f   :  { %2016 = vmatpush1.bf16.msra.mxu1 %v3345_v38 }
  0x90   :  { %2098 = vmatpush1.bf16.msra.mxu0 %v3348_v39  ;;  %2017 = vmatprep.subr.bf16.mxu1 %v3353_v40 }
  0x91   :  { %2099 = vmatprep.subr.bf16.mxu0 %v3356_v41 }
  0x93   :  { %2018 = vmatpush1.bf16.msra.mxu1 %v3351_v43 }
  0x94   :  { %2100 = vmatpush1.bf16.msra.mxu0 %v3354_v44  ;;  %2019 = vmatprep.subr.bf16.mxu1 %v3359_v45 }
  0x95   :  { %2101 = vmatprep.subr.bf16.mxu0 %v3362_v46 }
  0x97   :  { %2020 = vmatpush1.bf16.msra.mxu1 %v3357_v47 }
  0x98   :  { %2102 = vmatpush1.bf16.msra.mxu0 %v3360_v48  ;;  %2021 = vmatprep.subr.bf16.mxu1 %v3365_v49 }
  0x99   :  { %2103 = vmatprep.subr.bf16.mxu0 %v3368_v50 }
  0x9b   :  { %2022 = vmatpush1.bf16.msra.mxu1 %v3363_v51 }
  0x9c   :  { %2104 = vmatpush1.bf16.msra.mxu0 %v3366_v52  ;;  %2023 = vmatprep.subr.bf16.mxu1 %v3371_v53 }
  0x9d   :  { %2105 = vmatprep.subr.bf16.mxu0 %v3374_v54 }
  0x9f   :  { %2024 = vmatpush1.bf16.msra.mxu1 %v3369_v55 }
  0xa0   :  { %2106 = vmatpush1.bf16.msra.mxu0 %v3372_v56  ;;  %2025 = vmatprep.subr.bf16.mxu1 %v3377_v57 }
  0xa1   :  { %2107 = vmatprep.subr.bf16.mxu0 %v3380_v58 }
  0xa3   :  { %2026 = vmatpush1.bf16.msra.mxu1 %v3375_v59 }
  0xa4   :  { %2108 = vmatpush1.bf16.msra.mxu0 %v3378_v60  ;;  %2027 = vmatprep.subr.bf16.mxu1 %v3383_v61 }
  0xa5   :  { %2109 = vmatprep.subr.bf16.mxu0 %v3386_v0 }
  0xa7   :  { %2028 = vmatpush1.bf16.msra.mxu1 %v3381_v1 }
  0xa8   :  { %2110 = vmatpush1.bf16.msra.mxu0 %v3384_v2  ;;  %2029 = vmatprep.subr.bf16.mxu1 %v3389_v4 }
  0xa9   :  { %2111 = vmatprep.subr.bf16.mxu0 %v3392_v5 }
  0xab   :  { %2030 = vmatpush1.bf16.msra.mxu1 %v3387_v6 }
  0xac   :  { %2112 = vmatpush1.bf16.msra.mxu0 %v3390_v7  ;;  %2031 = vmatprep.subr.bf16.mxu1 %v3395_v8 }
  0xad   :  { %2113 = vmatprep.subr.bf16.mxu0 %v3398_v9 }
  0xaf   :  { %2032 = vmatpush1.bf16.msra.mxu1 %v3393_v10 }
  0xb0   :  { %2114 = vmatpush1.bf16.msra.mxu0 %v3396_v11  ;;  %2033 = vmatprep.subr.bf16.mxu1 %v3401_v12 }
  0xb1   :  { %2115 = vmatprep.subr.bf16.mxu0 %v3404_v14 }
  0xb3   :  { %2034 = vmatpush1.bf16.msra.mxu1 %v3399_v15 }
  0xb4   :  { %2116 = vmatpush1.bf16.msra.mxu0 %v3402_v16  ;;  %2035 = vmatprep.subr.bf16.mxu1 %v3407_v17 }
  0xb5   :  { %2117 = vmatprep.subr.bf16.mxu0 %v3410_v18 }
  0xb7   :  { %2036 = vmatpush1.bf16.msra.mxu1 %v3405_v20 }
  0xb8   :  { %2118 = vmatpush1.bf16.msra.mxu0 %v3408_v21  ;;  %2037 = vmatprep.subr.bf16.mxu1 %v3413_v22 }
  0xb9   :  { %2119 = vmatprep.subr.bf16.mxu0 %v3416_v24 }
  0xbb   :  { %2038 = vmatpush1.bf16.msra.mxu1 %v3411_v25 }
  0xbc   :  { %2120 = vmatpush1.bf16.msra.mxu0 %v3414_v26  ;;  %2039 = vmatprep.subr.bf16.mxu1 %v3419_v27 }
  0xbd   :  { %2121 = vmatprep.subr.bf16.mxu0 %v3422_v28 }
  0xbf   :  { %2040 = vmatpush1.bf16.msra.mxu1 %v3417_v29 }
  0xc0   :  { %2122 = vmatpush1.bf16.msra.mxu0 %v3420_v30 }
  0xc1   :  { %15 = vsyncpa [#allocation5], 0  ;;  %2050 = vmatprep.subr.bf16.mxu1 %v3425_v31  ;;  %2132 = vmatprep.subr.bf16.mxu0 %v3428_v32  ;;  %v3431_v35 = vld [vmem:[%s4942_s1 + $0x63c] ss:$24 sps:$4 sm:$0xff]   ;;  %v3429_v37 = vld [vmem:[%s4942_s1 + $0x638] ss:$24 sps:$4 sm:$0xff]  }
  0xc2   :  { %v3434_v36 = vld [vmem:[%s4942_s1 + $0x344] ss:$24 sps:$4 sm:$0xff]   ;;  %2042 = vmatmul.mubr.bf16.vlgmr.msra.gmra.mrb[4].mxu1 %v3911_v19  ;;  %v3432_v62 = vld [vmem:[%s4942_s1 + $0x340] ss:$24 sps:$4 sm:$0xff]   ;;  %v3438_v40 = vld [vmem:[%s4942_s1 + $0x370] ss:$24 sps:$4 sm:$0xff]  }
  0xc3   :  { %2124 = vmatmul.mubr.bf16.vlgmr.msra.gmra.mrb[4].mxu0 %v3895_v13  ;;  %2051 = vmatpush1.bf16.msra.mxu1 %v3423_v33  ;;  %v3437_v38 = vld [vmem:[%s4942_s1 + $0x66c] ss:$24 sps:$4 sm:$0xff]   ;;  %v3435_v39 = vld [vmem:[%s4942_s1 + $0x668] ss:$24 sps:$4 sm:$0xff]   ;;  %v3443_v41 = vld [vmem:[%s4942_s1 + $0x69c] ss:$24 sps:$4 sm:$0xff]  }
  0xc4   :  { %2133 = vmatpush1.bf16.msra.mxu0 %v3426_v34  ;;  %2052 = vmatprep.subr.bf16.mxu1 %v3431_v35  ;;  %v3440_v13 = vld [vmem:[%s4942_s1 + $0x374] ss:$24 sps:$4 sm:$0xff]   ;;  %v3441_v43 = vld [vmem:[%s4942_s1 + $0x698] ss:$24 sps:$4 sm:$0xff]   ;;  %v3447_v47 = vld [vmem:[%s4942_s1 + $0x6c8] ss:$24 sps:$4 sm:$0xff]  }
  0xc5   :  { %2134 = vmatprep.subr.bf16.mxu0 %v3434_v36  ;;  %2082 = vmatprep.mubr.bf16.mxu1 %v3923_v23  ;;  %v3444_v44 = vld [vmem:[%s4942_s1 + $0x3a0] ss:$24 sps:$4 sm:$0xff]   ;;  %v3449_v45 = vld [vmem:[%s4942_s1 + $0x6cc] ss:$24 sps:$4 sm:$0xff]   ;;  %v3450_v48 = vld [vmem:[%s4942_s1 + $0x3d0] ss:$24 sps:$4 sm:$0xff]  }
  0xc6   :  { %2164 = vmatprep.mubr.bf16.mxu0 %v3863_v3  ;;  %v3446_v3 = vld [vmem:[%s4942_s1 + $0x3a4] ss:$24 sps:$4 sm:$0xff]   ;;  %v3452_v46 = vld [vmem:[%s4942_s1 + $0x3d4] ss:$24 sps:$4 sm:$0xff]   ;;  %v3453_v51 = vld [vmem:[%s4942_s1 + $0x6f8] ss:$24 sps:$4 sm:$0xff]  }
  0xc7   :  { %2053 = vmatpush1.bf16.msra.mxu1 %v3429_v37  ;;  %v3455_v49 = vld [vmem:[%s4942_s1 + $0x6fc] ss:$24 sps:$4 sm:$0xff]   ;;  %v3456_v52 = vld [vmem:[%s4942_s1 + $0x400] ss:$24 sps:$4 sm:$0xff]   ;;  %v3461_v53 = vld [vmem:[%s4942_s1 + $0x72c] ss:$24 sps:$4 sm:$0xff]  }
  0xc8   :  { %2135 = vmatpush1.bf16.msra.mxu0 %v3432_v62  ;;  %2054 = vmatprep.subr.bf16.mxu1 %v3437_v38  ;;  %v3458_v50 = vld [vmem:[%s4942_s1 + $0x404] ss:$24 sps:$4 sm:$0xff]   ;;  %v3464_v54 = vld [vmem:[%s4942_s1 + $0x434] ss:$24 sps:$4 sm:$0xff]   ;;  %v3459_v55 = vld [vmem:[%s4942_s1 + $0x728] ss:$24 sps:$4 sm:$0xff]  }
  0xc9   :  { %2136 = vmatprep.subr.bf16.mxu0 %v3440_v13  ;;  %v3462_v56 = vld [vmem:[%s4942_s1 + $0x430] ss:$24 sps:$4 sm:$0xff]   ;;  %v3467_v57 = vld [vmem:[%s4942_s1 + $0x75c] ss:$24 sps:$4 sm:$0xff]   ;;  %v3468_v60 = vld [vmem:[%s4942_s1 + $0x460] ss:$24 sps:$4 sm:$0xff]  }
  0xca   :  { %v3470_v58 = vld [vmem:[%s4942_s1 + $0x464] ss:$24 sps:$4 sm:$0xff]   ;;  %v3465_v59 = vld [vmem:[%s4942_s1 + $0x758] ss:$24 sps:$4 sm:$0xff]   ;;  %v3476_v0 = vld [vmem:[%s4942_s1 + $0x494] ss:$24 sps:$4 sm:$0xff]  }
  0xcb   :  { %2055 = vmatpush1.bf16.msra.mxu1 %v3435_v39  ;;  %v3473_v61 = vld [vmem:[%s4942_s1 + $0x78c] ss:$24 sps:$4 sm:$0xff]   ;;  %v3471_v1 = vld [vmem:[%s4942_s1 + $0x788] ss:$24 sps:$4 sm:$0xff]   ;;  %v3479_v4 = vld [vmem:[%s4942_s1 + $0x7bc] ss:$24 sps:$4 sm:$0xff]  }
  0xcc   :  { %2137 = vmatpush1.bf16.msra.mxu0 %v3438_v40  ;;  %2056 = vmatprep.subr.bf16.mxu1 %v3443_v41  ;;  %v3474_v2 = vld [vmem:[%s4942_s1 + $0x490] ss:$24 sps:$4 sm:$0xff]   ;;  %v3482_v5 = vld [vmem:[%s4942_s1 + $0x4c4] ss:$24 sps:$4 sm:$0xff]   ;;  %v3480_v7 = vld [vmem:[%s4942_s1 + $0x4c0] ss:$24 sps:$4 sm:$0xff]  }
  0xcd   :  { %2138 = vmatprep.subr.bf16.mxu0 %v3446_v3  ;;  %v3477_v6 = vld [vmem:[%s4942_s1 + $0x7b8] ss:$24 sps:$4 sm:$0xff]   ;;  %v3485_v8 = vld [vmem:[%s4942_s1 + $0x7ec] ss:$24 sps:$4 sm:$0xff]   ;;  %v3483_v10 = vld [vmem:[%s4942_s1 + $0x7e8] ss:$24 sps:$4 sm:$0xff]  }
  0xce   :  { %v3488_v9 = vld [vmem:[%s4942_s1 + $0x4f4] ss:$24 sps:$4 sm:$0xff]   ;;  %v3486_v11 = vld [vmem:[%s4942_s1 + $0x4f0] ss:$24 sps:$4 sm:$0xff]   ;;  %v3494_v14 = vld [vmem:[%s4942_s1 + $0x524] ss:$24 sps:$4 sm:$0xff]  }
  0xcf   :  { %2057 = vmatpush1.bf16.msra.mxu1 %v3441_v43  ;;  %v3491_v12 = vld [vmem:[%s4942_s1 + $0x81c] ss:$24 sps:$4 sm:$0xff]   ;;  %v3489_v15 = vld [vmem:[%s4942_s1 + $0x818] ss:$24 sps:$4 sm:$0xff]   ;;  %v3497_v17 = vld [vmem:[%s4942_s1 + $0x84c] ss:$24 sps:$4 sm:$0xff]  }
  0xd0   :  { %2139 = vmatpush1.bf16.msra.mxu0 %v3444_v44  ;;  %2058 = vmatprep.subr.bf16.mxu1 %v3449_v45  ;;  %v3492_v16 = vld [vmem:[%s4942_s1 + $0x520] ss:$24 sps:$4 sm:$0xff]   ;;  %v3500_v18 = vld [vmem:[%s4942_s1 + $0x554] ss:$24 sps:$4 sm:$0xff]   ;;  %v3498_v21 = vld [vmem:[%s4942_s1 + $0x550] ss:$24 sps:$4 sm:$0xff]  }
  0xd1   :  { %2140 = vmatprep.subr.bf16.mxu0 %v3452_v46  ;;  %v3495_v20 = vld [vmem:[%s4942_s1 + $0x848] ss:$24 sps:$4 sm:$0xff]   ;;  %v3503_v22 = vld [vmem:[%s4942_s1 + $0x87c] ss:$24 sps:$4 sm:$0xff]   ;;  %v3501_v25 = vld [vmem:[%s4942_s1 + $0x878] ss:$24 sps:$4 sm:$0xff]  }
  0xd2   :  { %v3506_v24 = vld [vmem:[%s4942_s1 + $0x584] ss:$24 sps:$4 sm:$0xff]   ;;  %v3504_v26 = vld [vmem:[%s4942_s1 + $0x580] ss:$24 sps:$4 sm:$0xff]   ;;  %v3512_v28 = vld [vmem:[%s4942_s1 + $0x5b4] ss:$24 sps:$4 sm:$0xff]  }
  0xd3   :  { %2059 = vmatpush1.bf16.msra.mxu1 %v3447_v47  ;;  %v3509_v27 = vld [vmem:[%s4942_s1 + $0x8ac] ss:$24 sps:$4 sm:$0xff]   ;;  %v3507_v29 = vld [vmem:[%s4942_s1 + $0x8a8] ss:$24 sps:$4 sm:$0xff]   ;;  %v3515_v31 = vld [vmem:[%s4942_s1 + $0x8dc] ss:$24 sps:$4 sm:$0xff]  }
  0xd4   :  { %2141 = vmatpush1.bf16.msra.mxu0 %v3450_v48  ;;  %2060 = vmatprep.subr.bf16.mxu1 %v3455_v49  ;;  %v3510_v30 = vld [vmem:[%s4942_s1 + $0x5b0] ss:$24 sps:$4 sm:$0xff]   ;;  %v3518_v32 = vld [vmem:[%s4942_s1 + $0x5e4] ss:$24 sps:$4 sm:$0xff]   ;;  %v3516_v36 = vld [vmem:[%s4942_s1 + $0x5e0] ss:$24 sps:$4 sm:$0xff]  }
  0xd5   :  { %2142 = vmatprep.subr.bf16.mxu0 %v3458_v50  ;;  %v2236_v33 = vld [vmem:[%s4944_s3 + $0x80] sm:$0xff]  ;;  %v2237_v34 = vld [vmem:[%s4944_s3 + $0x88] sm:$0xff]  ;;  %v3513_v35 = vld [vmem:[%s4942_s1 + $0x8d8] ss:$24 sps:$4 sm:$0xff]   ;;  %vm2533_vm0 = vcmask 9216  }
  0xd6   :  { %v3521_v37 = vld [vmem:[%s4942_s1 + $0x614] ss:$24 sps:$4 sm:$0xff]   ;;  %v3005_v62 = vpack.c.bf16 %v2237_v34, %v2236_v33  ;;  %v2220_v38 = vld [vmem:[%s4944_s3] sm:$0xff]  ;;  %v2239_v40 = vld [vmem:[%s4944_s3 + $0x98] sm:$0xff] }
  0xd7   :  { %2061 = vmatpush1.bf16.msra.mxu1 %v3453_v51  ;;  %v2221_v13 = vld [vmem:[%s4944_s3 + $0x8] sm:$0xff]  ;;  %v2238_v39 = vld [vmem:[%s4944_s3 + $0x90] sm:$0xff]  ;;  %v3524_v3 = vld [vmem:[%s4942_s1 + $0x644] ss:$24 sps:$4 sm:$0xff]  }
  0xd8   :  { %2143 = vmatpush1.bf16.msra.mxu0 %v3456_v52  ;;  %2062 = vmatprep.subr.bf16.mxu1 %v3461_v53  ;;  %v3519_v41 = vld [vmem:[%s4942_s1 + $0x610] ss:$24 sps:$4 sm:$0xff]   ;;  %v3007_v43 = vpack.c.bf16 %v2221_v13, %v2220_v38  ;;  %v3009_v44 = vpack.c.bf16 %v2239_v40, %v2238_v39  ;;  %v2223_v46 = vld [vmem:[%s4944_s3 + $0x18] sm:$0xff]  ;;  %v2240_v47 = vld [vmem:[%s4944_s3 + $0xa0] sm:$0xff] }
  0xd9   :  { %2144 = vmatprep.subr.bf16.mxu0 %v3464_v54  ;;  %v2222_v45 = vld [vmem:[%s4944_s3 + $0x10] sm:$0xff]  ;;  %v2241_v48 = vld [vmem:[%s4944_s3 + $0xa8] sm:$0xff]  ;;  %v3522_v49 = vld [vmem:[%s4942_s1 + $0x640] ss:$24 sps:$4 sm:$0xff]  }
  0xda   :  { %v3011_v50 = vpack.c.bf16 %v2223_v46, %v2222_v45  ;;  %v3013_v51 = vpack.c.bf16 %v2241_v48, %v2240_v47  ;;  %v2224_v52 = vld [vmem:[%s4944_s3 + $0x20] sm:$0xff]  ;;  %v2225_v53 = vld [vmem:[%s4944_s3 + $0x28] sm:$0xff]  ;;  %v2243_v54 = vld [vmem:[%s4944_s3 + $0xb8] sm:$0xff] }
  0xdb   :  { %2063 = vmatpush1.bf16.msra.mxu1 %v3459_v55  ;;  %v3525_v55 = vld [vmem:[%s4942_s1 + $0x670] ss:$24 sps:$4 sm:$0xff]   ;;  %v3542_v33 = vld [vmem:[%s4942_s1 + $0x764] ss:$24 sps:$4 sm:$0xff]   ;;  %v3540_v39 = vld [vmem:[%s4942_s1 + $0x760] ss:$24 sps:$4 sm:$0xff]  }
  0xdc   :  { %2145 = vmatpush1.bf16.msra.mxu0 %v3462_v56  ;;  %2064 = vmatprep.subr.bf16.mxu1 %v3467_v57  ;;  %v3530_v56 = vld [vmem:[%s4942_s1 + $0x6a4] ss:$24 sps:$4 sm:$0xff]   ;;  %v3015_v57 = vpack.c.bf16 %v2225_v53, %v2224_v52  ;;  %v2269_v13 = vld [vmem:[%s4944_s3 + $0x188] sm:$0xff]  ;;  %v3546_v45 = vld [vmem:[%s4942_s1 + $0x7c0] ss:$24 sps:$4 sm:$0xff]  }
  0xdd   :  { %2146 = vmatprep.subr.bf16.mxu0 %v3470_v58  ;;  %v2268_v38 = vld [vmem:[%s4944_s3 + $0x180] sm:$0xff]  ;;  %v3545_v40 = vld [vmem:[%s4942_s1 + $0x794] ss:$24 sps:$4 sm:$0xff]   ;;  %v3549_v47 = vld [vmem:[%s4942_s1 + $0x7f0] ss:$24 sps:$4 sm:$0xff]  }
  0xde   :  { %v3551_v46 = vld [vmem:[%s4942_s1 + $0x7f4] ss:$24 sps:$4 sm:$0xff]   ;;  %v3554_v48 = vld [vmem:[%s4942_s1 + $0x824] ss:$24 sps:$4 sm:$0xff]   ;;  %v3558_v52 = vld [vmem:[%s4942_s1 + $0x880] ss:$24 sps:$4 sm:$0xff]  }
  0xdf   :  { %2065 = vmatpush1.bf16.msra.mxu1 %v3465_v59  ;;  %v2226_v59 = vld [vmem:[%s4944_s3 + $0x30] sm:$0xff] }
  0xe0   :  { %2147 = vmatpush1.bf16.msra.mxu0 %v3468_v60  ;;  %2066 = vmatprep.subr.bf16.mxu1 %v3473_v61  ;;  %v2227_v60 = vld [vmem:[%s4944_s3 + $0x38] sm:$0xff]  ;;  %v2244_v61 = vld [vmem:[%s4944_s3 + $0xc0] sm:$0xff]  ;;  %v3563_v53 = vld [vmem:[%s4942_s1 + $0x8b4] ss:$24 sps:$4 sm:$0xff]  }
  0xe1   :  { %2148 = vmatprep.subr.bf16.mxu0 %v3476_v0  ;;  %v2245_v0 = vld [vmem:[%s4944_s3 + $0xc8] sm:$0xff] }
  0xe3   :  { %2067 = vmatpush1.bf16.msra.mxu1 %v3471_v1  ;;  %v3528_v1 = vld [vmem:[%s4942_s1 + $0x6a0] ss:$24 sps:$4 sm:$0xff]  }
  0xe4   :  { %2149 = vmatpush1.bf16.msra.mxu0 %v3474_v2  ;;  %2068 = vmatprep.subr.bf16.mxu1 %v3479_v4  ;;  %v3533_v2 = vld [vmem:[%s4942_s1 + $0x6d4] ss:$24 sps:$4 sm:$0xff]   ;;  %v3019_v4 = vpack.c.bf16 %v2227_v60, %v2226_v59 }
  0xe5   :  { %2150 = vmatprep.subr.bf16.mxu0 %v3482_v5  ;;  %v3021_v5 = vpack.c.bf16 %v2245_v0, %v2244_v61 }
  0xe7   :  { %2069 = vmatpush1.bf16.msra.mxu1 %v3477_v6  ;;  %v2228_v6 = vld [vmem:[%s4944_s3 + $0x40] sm:$0xff] }
  0xe8   :  { %2151 = vmatpush1.bf16.msra.mxu0 %v3480_v7  ;;  %2070 = vmatprep.subr.bf16.mxu1 %v3485_v8  ;;  %v2229_v7 = vld [vmem:[%s4944_s3 + $0x48] sm:$0xff]  ;;  %v2246_v8 = vld [vmem:[%s4944_s3 + $0xd0] sm:$0xff] }
  0xe9   :  { %2152 = vmatprep.subr.bf16.mxu0 %v3488_v9  ;;  %v2247_v9 = vld [vmem:[%s4944_s3 + $0xd8] sm:$0xff] }
  0xeb   :  { %2071 = vmatpush1.bf16.msra.mxu1 %v3483_v10  ;;  %v3531_v10 = vld [vmem:[%s4942_s1 + $0x6d0] ss:$24 sps:$4 sm:$0xff]  }
  0xec   :  { %2153 = vmatpush1.bf16.msra.mxu0 %v3486_v11  ;;  %2072 = vmatprep.subr.bf16.mxu1 %v3491_v12  ;;  %v3536_v11 = vld [vmem:[%s4942_s1 + $0x704] ss:$24 sps:$4 sm:$0xff]   ;;  %v3023_v12 = vpack.c.bf16 %v2229_v7, %v2228_v6 }
  0xed   :  { %2154 = vmatprep.subr.bf16.mxu0 %v3494_v14  ;;  %v3025_v14 = vpack.c.bf16 %v2247_v9, %v2246_v8  ;;  %v2252_v7 = vld [vmem:[%s4944_s3 + $0x100] sm:$0xff]  ;;  %v2253_v8 = vld [vmem:[%s4944_s3 + $0x108] sm:$0xff]  ;;  %v2270_v9 = vld [vmem:[%s4944_s3 + $0x190] sm:$0xff] }
  0xef   :  { %2073 = vmatpush1.bf16.msra.mxu1 %v3489_v15  ;;  %v2230_v15 = vld [vmem:[%s4944_s3 + $0x50] sm:$0xff] }
  0xf0   :  { %2155 = vmatpush1.bf16.msra.mxu0 %v3492_v16  ;;  %2074 = vmatprep.subr.bf16.mxu1 %v3497_v17  ;;  %v2231_v16 = vld [vmem:[%s4944_s3 + $0x58] sm:$0xff]  ;;  %v2248_v17 = vld [vmem:[%s4944_s3 + $0xe0] sm:$0xff] }
  0xf1   :  { %2156 = vmatprep.subr.bf16.mxu0 %v3500_v18  ;;  %v2249_v18 = vld [vmem:[%s4944_s3 + $0xe8] sm:$0xff] }
  0xf3   :  { %2075 = vmatpush1.bf16.msra.mxu1 %v3495_v20  ;;  %v3534_v20 = vld [vmem:[%s4942_s1 + $0x700] ss:$24 sps:$4 sm:$0xff]  }
  0xf4   :  { %2157 = vmatpush1.bf16.msra.mxu0 %v3498_v21  ;;  %2076 = vmatprep.subr.bf16.mxu1 %v3503_v22  ;;  %v3539_v21 = vld [vmem:[%s4942_s1 + $0x734] ss:$24 sps:$4 sm:$0xff]   ;;  %v3027_v22 = vpack.c.bf16 %v2231_v16, %v2230_v15  ;;  %v2255_v16 = vld [vmem:[%s4944_s3 + $0x118] sm:$0xff] }
  0xf5   :  { %2158 = vmatprep.subr.bf16.mxu0 %v3506_v24  ;;  %v2254_v15 = vld [vmem:[%s4944_s3 + $0x110] sm:$0xff] }
  0xf7   :  { %2077 = vmatpush1.bf16.msra.mxu1 %v3501_v25  ;;  %v3029_v25 = vpack.c.bf16 %v2249_v18, %v2248_v17  ;;  %v2272_v18 = vld [vmem:[%s4944_s3 + $0x1a0] sm:$0xff] }
  0xf8   :  { %2159 = vmatpush1.bf16.msra.mxu0 %v3504_v26  ;;  %2078 = vmatprep.subr.bf16.mxu1 %v3509_v27  ;;  %v2232_v26 = vld [vmem:[%s4944_s3 + $0x60] sm:$0xff]  ;;  %v2233_v27 = vld [vmem:[%s4944_s3 + $0x68] sm:$0xff] }
  0xf9   :  { %2160 = vmatprep.subr.bf16.mxu0 %v3512_v28 }
  0xfb   :  { %2079 = vmatpush1.bf16.msra.mxu1 %v3507_v29  ;;  %v2250_v29 = vld [vmem:[%s4944_s3 + $0xf0] sm:$0xff] }
  0xfc   :  { %2161 = vmatpush1.bf16.msra.mxu0 %v3510_v30  ;;  %2080 = vmatprep.subr.bf16.mxu1 %v3515_v31  ;;  %v2251_v30 = vld [vmem:[%s4944_s3 + $0xf8] sm:$0xff]  ;;  %v3537_v31 = vld [vmem:[%s4942_s1 + $0x730] ss:$24 sps:$4 sm:$0xff]  }
  0xfd   :  { %2162 = vmatprep.subr.bf16.mxu0 %v3518_v32 }
  0xff   :  { %2081 = vmatpush1.bf16.msra.mxu1 %v3513_v35  ;;  %v3031_v35 = vpack.c.bf16 %v2233_v27, %v2232_v26  ;;  %v2274_v26 = vld [vmem:[%s4944_s3 + $0x1b0] sm:$0xff]  ;;  %v2275_v27 = vld [vmem:[%s4944_s3 + $0x1b8] sm:$0xff] }
 0x100   :  { %2163 = vmatpush1.bf16.msra.mxu0 %v3516_v36  ;;  %3006 = vmatprep.subr.bf16.mxu1 %v3005_v62  ;;  %v3033_v36 = vpack.c.bf16 %v2251_v30, %v2250_v29  ;;  %v2235_v62 = vld [vmem:[%s4944_s3 + $0x78] sm:$0xff]  ;;  %v3049_v29 = vpack.c.bf16 %v2275_v27, %v2274_v26  ;;  %v2258_v30 = vld [vmem:[%s4944_s3 + $0x130] sm:$0xff] }
 0x101   :  { %2173 = vmatprep.subr.bf16.mxu0 %v3521_v37  ;;  %v2234_v37 = vld [vmem:[%s4944_s3 + $0x70] sm:$0xff] }
 0x102   :  { %2083 = vmatmul.mubr.bf16.vlgmr.msra.gmra.mrb[4].mxu1 %v3850_v63 }
 0x103   :  { %2165 = vmatmul.mubr.bf16.vlgmr.msra.gmra.mrb[4].mxu0 %v3911_v19  ;;  %v3527_v19 = vld [vmem:[%s4942_s1 + $0x674] ss:$24 sps:$4 sm:$0xff]   ;;  %3008 = vmatpush3.bf16.msra.mxu1 %v3007_v43  ;;  %v3543_v43 = vld [vmem:[%s4942_s1 + $0x790] ss:$24 sps:$4 sm:$0xff]  }
 0x104   :  { %2174 = vmatpush1.bf16.msra.mxu0 %v3519_v41  ;;  %2205 = vmatprep.mubr.bf16.mxu0 %v3923_v23  ;;  %v2242_v23 = vld [vmem:[%s4944_s3 + $0xb0] sm:$0xff]  ;;  %v3035_v41 = vpack.c.bf16 %v2235_v62, %v2234_v37  ;;  %v2261_v37 = vld [vmem:[%s4944_s3 + $0x148] sm:$0xff] }
 0x105   :  { %2175 = vmatprep.subr.bf16.mxu0 %v3524_v3  ;;  %3010 = vmatprep.subr.bf16.mxu1 %v3009_v44  ;;  %v3017_v58 = vpack.c.bf16 %v2243_v54, %v2242_v23  ;;  %v3037_v3 = vpack.c.bf16 %v2269_v13, %v2268_v38  ;;  %v3548_v44 = vld [vmem:[%s4942_s1 + $0x7c4] ss:$24 sps:$4 sm:$0xff]   ;;  %v3561_v23 = vld [vmem:[%s4942_s1 + $0x8b0] ss:$24 sps:$4 sm:$0xff]  }
 0x106   :  { %v3566_v54 = vld [vmem:[%s4942_s1 + $0x8e4] ss:$24 sps:$4 sm:$0xff]   ;;  %v2278_v62 = vld [vmem:[%s4944_s3 + $0x1d0] sm:$0xff] }
 0x107   :  { %3012 = vmatpush3.bf16.msra.mxu1 %v3011_v50  ;;  %v3555_v50 = vld [vmem:[%s4942_s1 + $0x850] ss:$24 sps:$4 sm:$0xff]   ;;  %v2279_v38 = vld [vmem:[%s4944_s3 + $0x1d8] sm:$0xff] }
 0x108   :  { %2176 = vmatpush1.bf16.msra.mxu0 %v3522_v49  ;;  %3014 = vmatprep.subr.bf16.mxu1 %v3013_v51  ;;  %v3552_v49 = vld [vmem:[%s4942_s1 + $0x820] ss:$24 sps:$4 sm:$0xff]   ;;  %v3560_v51 = vld [vmem:[%s4942_s1 + $0x884] ss:$24 sps:$4 sm:$0xff]  }
 0x109   :  { %2177 = vmatprep.subr.bf16.mxu0 %v3527_v19  ;;  %v3557_v19 = vld [vmem:[%s4942_s1 + $0x854] ss:$24 sps:$4 sm:$0xff]  }
 0x10b   :  { %3016 = vmatpush3.bf16.msra.mxu1 %v3015_v57  ;;  %v4705_v57 = vld [vmem:[%s4943_s2] sm:$0x3f] }
 0x10c   :  { %2178 = vmatpush1.bf16.msra.mxu0 %v3525_v55  ;;  %3018 = vmatprep.subr.bf16.mxu1 %v3017_v58  ;;  %v3564_v55 = vld [vmem:[%s4942_s1 + $0x8e0] ss:$24 sps:$4 sm:$0xff]   ;;  %v327_v58 = vsub.s32 1, %v3800_v42 }
 0x10d   :  { %2179 = vmatprep.subr.bf16.mxu0 %v3530_v56  ;;  %v323_v56 = vsub.s32 0, %v3800_v42 }
 0x10e   :  { %v328_v60 = vrot.slane %v4705_v57, %v327_v58  ;;  %v335_v58 = vsub.s32 3, %v3800_v42 }
 0x10f   :  { %3020 = vmatpush3.bf16.msra.mxu1 %v3019_v4  ;;  %v324_v59 = vrot.slane %v4705_v57, %v323_v56  ;;  %v331_v56 = vsub.s32 2, %v3800_v42 }
 0x110   :  { %2180 = vmatpush1.bf16.msra.mxu0 %v3528_v1  ;;  %3022 = vmatprep.subr.bf16.mxu1 %v3021_v5 }
 0x111   :  { %2181 = vmatprep.subr.bf16.mxu0 %v3533_v2 }
 0x113   :  { %3024 = vmatpush3.bf16.msra.mxu1 %v3023_v12 }
 0x114   :  { %2182 = vmatpush1.bf16.msra.mxu0 %v3531_v10  ;;  %3026 = vmatprep.subr.bf16.mxu1 %v3025_v14  ;;  %v2271_v10 = vld [vmem:[%s4944_s3 + $0x198] sm:$0xff] }
 0x115   :  { %2183 = vmatprep.subr.bf16.mxu0 %v3536_v11  ;;  %v4615_v24 = vpop.f32.mrb[0].mxu1  ;;  %v3039_v11 = vpack.c.bf16 %v2253_v8, %v2252_v7  ;;  %v3041_v14 = vpack.c.bf16 %v2271_v10, %v2270_v9  ;;  %v2302_v7 = vld [vmem:[%s4944_s3 + $0x290] sm:$0xff]  ;;  %v2303_v8 = vld [vmem:[%s4944_s3 + $0x298] sm:$0xff] }
 0x116   :  { %v4623_v28 = vpop.f32.mrb[1].mxu1  ;;  %v1880_v61 = vadd.f32 %v4615_v24, %v324_v59  ;;  %v2256_v24 = vld [vmem:[%s4944_s3 + $0x120] sm:$0xff]  ;;  %v332_v59 = vrot.slane %v4705_v57, %v331_v56 }
 0x117   :  { %v1883_v32 = vpop.f32.mrb[2].mxu1  ;;  %3028 = vmatpush3.bf16.msra.mxu1 %v3027_v22  ;;  %v1882_v0 = vadd.f32 %v4623_v28, %v328_v60  ;;  %v336_v60 = vrot.slane %v4705_v57, %v335_v58 }
 0x118   :  { %2184 = vmatpush1.bf16.msra.mxu0 %v3534_v20  ;;  %v1884_v34 = vpop.f32.mrb[3].mxu1  ;;  %3030 = vmatprep.subr.bf16.mxu1 %v3029_v25  ;;  %v2273_v20 = vld [vmem:[%s4944_s3 + $0x1a8] sm:$0xff]  ;;  %v2276_v32 = vld [vmem:[%s4944_s3 + $0x1c0] sm:$0xff] }
 0x119   :  { %2185 = vmatprep.subr.bf16.mxu0 %v3539_v21  ;;  %v3043_v21 = vpack.c.bf16 %v2255_v16, %v2254_v15  ;;  %v3045_v22 = vpack.c.bf16 %v2273_v20, %v2272_v18  ;;  %v2257_v25 = vld [vmem:[%s4944_s3 + $0x128] sm:$0xff]  ;;  %v2304_v16 = vld [vmem:[%s4944_s3 + $0x2a0] sm:$0xff] }
 0x11a   :  { %v3047_v28 = vpack.c.bf16 %v2257_v25, %v2256_v24  ;;  %v2306_v24 = vld [vmem:[%s4944_s3 + $0x2b0] sm:$0xff]  ;;  %v2307_v25 = vld [vmem:[%s4944_s3 + $0x2b8] sm:$0xff] }
 0x11b   :  { %3032 = vmatpush3.bf16.msra.mxu1 %v3031_v35  ;;  %v3081_v27 = vpack.c.bf16 %v2307_v25, %v2306_v24 }
 0x11c   :  { %2186 = vmatpush1.bf16.msra.mxu0 %v3537_v31  ;;  %3034 = vmatprep.subr.bf16.mxu1 %v3033_v36  ;;  %v2259_v31 = vld [vmem:[%s4944_s3 + $0x138] sm:$0xff]  ;;  %v2260_v36 = vld [vmem:[%s4944_s3 + $0x140] sm:$0xff] }
 0x11d   :  { %2187 = vmatprep.subr.bf16.mxu0 %v3542_v33  ;;  %v2277_v33 = vld [vmem:[%s4944_s3 + $0x1c8] sm:$0xff]  ;;  %v3051_v34 = vpack.c.bf16 %v2259_v31, %v2258_v30  ;;  %v3055_v13 = vpack.c.bf16 %v2261_v37, %v2260_v36  ;;  %v2308_v30 = vld [vmem:[%s4944_s3 + $0x2c0] sm:$0xff]  ;;  %v2310_v36 = vld [vmem:[%s4944_s3 + $0x2d0] sm:$0xff] }
 0x11e   :  { %v3053_v35 = vpack.c.bf16 %v2277_v33, %v2276_v32  ;;  %v2309_v31 = vld [vmem:[%s4944_s3 + $0x2c8] sm:$0xff]  ;;  %v2311_v37 = vld [vmem:[%s4944_s3 + $0x2d8] sm:$0xff] }
 0x11f   :  { %3036 = vmatpush3.bf16.msra.mxu1 %v3035_v41  ;;  %v2263_v41 = vld [vmem:[%s4944_s3 + $0x158] sm:$0xff]  ;;  %v3085_v33 = vpack.c.bf16 %v2309_v31, %v2308_v30 }
 0x120   :  { %2188 = vmatpush1.bf16.msra.mxu0 %v3540_v39  ;;  %3038 = vmatprep.subr.bf16.mxu1 %v3037_v3  ;;  %v3057_v39 = vpack.c.bf16 %v2279_v38, %v2278_v62  ;;  %v2280_v3 = vld [vmem:[%s4944_s3 + $0x1e0] sm:$0xff]  ;;  %v3089_v38 = vpack.c.bf16 %v2311_v37, %v2310_v36 }
 0x121   :  { %2189 = vmatprep.subr.bf16.mxu0 %v3545_v40  ;;  %v2262_v40 = vld [vmem:[%s4944_s3 + $0x150] sm:$0xff] }
 0x124   :  { %2190 = vmatpush1.bf16.msra.mxu0 %v3543_v43  ;;  %v2281_v43 = vld [vmem:[%s4944_s3 + $0x1e8] sm:$0xff] }
 0x125   :  { %2191 = vmatprep.subr.bf16.mxu0 %v3548_v44  ;;  %v3059_v44 = vpack.c.bf16 %v2263_v41, %v2262_v40  ;;  %v2312_v40 = vld [vmem:[%s4944_s3 + $0x2e0] sm:$0xff]  ;;  %v2313_v41 = vld [vmem:[%s4944_s3 + $0x2e8] sm:$0xff] }
 0x128   :  { %2192 = vmatpush1.bf16.msra.mxu0 %v3546_v45  ;;  %v3061_v45 = vpack.c.bf16 %v2281_v43, %v2280_v3  ;;  %v3093_v43 = vpack.c.bf16 %v2313_v41, %v2312_v40 }
 0x129   :  { %2193 = vmatprep.subr.bf16.mxu0 %v3551_v46  ;;  %v2264_v46 = vld [vmem:[%s4944_s3 + $0x160] sm:$0xff] }
 0x12c   :  { %2194 = vmatpush1.bf16.msra.mxu0 %v3549_v47  ;;  %v2265_v47 = vld [vmem:[%s4944_s3 + $0x168] sm:$0xff] }
 0x12d   :  { %2195 = vmatprep.subr.bf16.mxu0 %v3554_v48  ;;  %v2282_v48 = vld [vmem:[%s4944_s3 + $0x1f0] sm:$0xff] }
 0x130   :  { %2196 = vmatpush1.bf16.msra.mxu0 %v3552_v49  ;;  %v2283_v49 = vld [vmem:[%s4944_s3 + $0x1f8] sm:$0xff] }
 0x131   :  { %2197 = vmatprep.subr.bf16.mxu0 %v3557_v19  ;;  %v3063_v19 = vpack.c.bf16 %v2265_v47, %v2264_v46  ;;  %v2314_v46 = vld [vmem:[%s4944_s3 + $0x2f0] sm:$0xff]  ;;  %v2315_v47 = vld [vmem:[%s4944_s3 + $0x2f8] sm:$0xff] }
 0x134   :  { %2198 = vmatpush1.bf16.msra.mxu0 %v3555_v50  ;;  %v3065_v50 = vpack.c.bf16 %v2283_v49, %v2282_v48  ;;  %v3097_v49 = vpack.c.bf16 %v2315_v47, %v2314_v46 }
 0x135   :  { %2199 = vmatprep.subr.bf16.mxu0 %v3560_v51  ;;  %v2266_v51 = vld [vmem:[%s4944_s3 + $0x170] sm:$0xff] }
 0x138   :  { %2200 = vmatpush1.bf16.msra.mxu0 %v3558_v52  ;;  %v2267_v52 = vld [vmem:[%s4944_s3 + $0x178] sm:$0xff] }
 0x139   :  { %2201 = vmatprep.subr.bf16.mxu0 %v3563_v53  ;;  %v2300_v53 = vld [vmem:[%s4944_s3 + $0x280] sm:$0xff] }
 0x13c   :  { %2202 = vmatpush1.bf16.msra.mxu0 %v3561_v23  ;;  %v2301_v23 = vld [vmem:[%s4944_s3 + $0x288] sm:$0xff] }
 0x13d   :  { %2203 = vmatprep.subr.bf16.mxu0 %v3566_v54  ;;  %v3067_v54 = vpack.c.bf16 %v2267_v52, %v2266_v51  ;;  %v339_v52 = vsub.s32 4, %v3800_v42 }
 0x140   :  { %2204 = vmatpush1.bf16.msra.mxu0 %v3564_v55  ;;  %v3069_v55 = vpack.c.bf16 %v2301_v23, %v2300_v53  ;;  %v343_v53 = vsub.s32 5, %v3800_v42  ;;  %v340_v23 = vrot.slane %v4705_v57, %v339_v52  ;;  %v2898_v42 = vld [vmem:[%s4945_s4] ss:$0 sm:$0xff] }
 0x143   :  { %2206 = vmatmul.mubr.bf16.vlgmr.msra.gmra.mrb[4].mxu0 %v3850_v63 }
 0x156   :  { %v1961_v1 = vpop.f32.mrb[0].mxu0 }
 0x157   :  { %v3102_v2 = vadd.f32 %v1961_v1, %v1880_v61  ;;  %v1963_v63 = vpop.f32.mrb[1].mxu0 }
 0x158   :  { %v3104_v4 = vadd.f32 %v1963_v63, %v1882_v0  ;;  %v1965_v5 = vpop.f32.mrb[2].mxu0 }
 0x159   :  { %v1966_v6 = vpop.f32.mrb[3].mxu0  ;;  %v2284_v5 = vld [vmem:[%s4944_s3 + $0x200] sm:$0xff] }
 0x15a   :  { %3567 = vtanh.f32 %v3104_v4  ;;  %v2285_v6 = vld [vmem:[%s4944_s3 + $0x208] sm:$0xff] }
 0x15b   :  { %3569 = vtanh.f32 %v3102_v2  ;;  %v3071_v9 = vpack.c.bf16 %v2285_v6, %v2284_v5 }
 0x164   :  { %v3568_v12 = vpop.eup %3567 }
 0x165   :  { %v3570_v17 = vpop.eup %3569  ;;  %2387 = vmatprep.mubr.f32.mxu1 %v3568_v12  ;;  %v2286_v12 = vld [vmem:[%s4944_s3 + $0x210] sm:$0xff] }
 0x166   :  { %2388 = vmatmul.mubr.f32.vlgmr.msra.gmra.mrb[8].mxu1 %v3570_v17  ;;  %v2305_v17 = vld [vmem:[%s4944_s3 + $0x2a8] sm:$0xff] }
 0x167   :  { %3040 = vmatpush3.bf16.msra.mxu1 %v3039_v11  ;;  %v3073_v11 = vpack.c.bf16 %v2303_v8, %v2302_v7  ;;  %v3077_v20 = vpack.c.bf16 %v2305_v17, %v2304_v16 }
 0x168   :  { %3042 = vmatprep.subr.bf16.mxu1 %v3041_v14  ;;  %v2287_v14 = vld [vmem:[%s4944_s3 + $0x218] sm:$0xff] }
 0x169   :  { %v3075_v18 = vpack.c.bf16 %v2287_v14, %v2286_v12 }
 0x16b   :  { %3044 = vmatpush3.bf16.msra.mxu1 %v3043_v21  ;;  %v2288_v21 = vld [vmem:[%s4944_s3 + $0x220] sm:$0xff] }
 0x16c   :  { %3046 = vmatprep.subr.bf16.mxu1 %v3045_v22  ;;  %v2289_v22 = vld [vmem:[%s4944_s3 + $0x228] sm:$0xff] }
 0x16d   :  { %v3079_v26 = vpack.c.bf16 %v2289_v22, %v2288_v21 }
 0x16f   :  { %3048 = vmatpush3.bf16.msra.mxu1 %v3047_v28  ;;  %v2290_v28 = vld [vmem:[%s4944_s3 + $0x230] sm:$0xff] }
 0x170   :  { %3050 = vmatprep.subr.bf16.mxu1 %v3049_v29  ;;  %v2291_v29 = vld [vmem:[%s4944_s3 + $0x238] sm:$0xff] }
 0x171   :  { %v3083_v32 = vpack.c.bf16 %v2291_v29, %v2290_v28  ;;  %v2535_v29 = vld [vmem:[%s4946_s5] sm:$0x3] }
 0x172   :  { %v2555_v36 = vsub.f32 1.0, %v2535_v29 }
 0x173   :  { %3052 = vmatpush3.bf16.msra.mxu1 %v3051_v34  ;;  %v2292_v34 = vld [vmem:[%s4944_s3 + $0x240] sm:$0xff] }
 0x174   :  { %3054 = vmatprep.subr.bf16.mxu1 %v3053_v35  ;;  %v2293_v35 = vld [vmem:[%s4944_s3 + $0x248] sm:$0xff] }
 0x175   :  { %v3087_v62 = vpack.c.bf16 %v2293_v35, %v2292_v34 }
 0x177   :  { %3056 = vmatpush3.bf16.msra.mxu1 %v3055_v13  ;;  %v2294_v13 = vld [vmem:[%s4944_s3 + $0x250] sm:$0xff] }
 0x178   :  { %3058 = vmatprep.subr.bf16.mxu1 %v3057_v39  ;;  %v2295_v39 = vld [vmem:[%s4944_s3 + $0x258] sm:$0xff] }
 0x179   :  { %v3091_v3 = vpack.c.bf16 %v2295_v39, %v2294_v13 }
 0x17b   :  { %3060 = vmatpush3.bf16.msra.mxu1 %v3059_v44  ;;  %v2296_v44 = vld [vmem:[%s4944_s3 + $0x260] sm:$0xff] }
 0x17c   :  { %3062 = vmatprep.subr.bf16.mxu1 %v3061_v45  ;;  %v2297_v45 = vld [vmem:[%s4944_s3 + $0x268] sm:$0xff] }
 0x17d   :  { %v3095_v48 = vpack.c.bf16 %v2297_v45, %v2296_v44 }
 0x17f   :  { %3064 = vmatpush3.bf16.msra.mxu1 %v3063_v19  ;;  %v2298_v19 = vld [vmem:[%s4944_s3 + $0x270] sm:$0xff] }
 0x180   :  { %3066 = vmatprep.subr.bf16.mxu1 %v3065_v50  ;;  %v2299_v50 = vld [vmem:[%s4944_s3 + $0x278] sm:$0xff] }
 0x181   :  { %v3099_v51 = vpack.c.bf16 %v2299_v50, %v2298_v19 }
 0x183   :  { %3068 = vmatpush3.bf16.msra.mxu1 %v3067_v54  ;;  %v344_v54 = vrot.slane %v4705_v57, %v343_v53 }
 0x184   :  { %3070 = vmatprep.subr.bf16.mxu1 %v3069_v55 }
 0x1d5   :  { %v2084_v61 = vpop.f32.mrb[4].mxu1 }
 0x1d6   :  { %v3105_v0 = vadd.f32 %v2084_v61, %v332_v59  ;;  %v2086_v1 = vpop.f32.mrb[5].mxu1 }
 0x1d7   :  { %v3106_v2 = vadd.f32 %v2086_v1, %v336_v60  ;;  %v2088_v63 = vpop.f32.mrb[6].mxu1 }
 0x1d8   :  { %v2089_v4 = vpop.f32.mrb[7].mxu1 }
 0x1d9   :  { %3571 = vtanh.f32 %v3106_v2 }
 0x1da   :  { %3573 = vtanh.f32 %v3105_v0 }
 0x1e3   :  { %v3572_v10 = vpop.eup %3571 }
 0x1e4   :  { %v3574_v15 = vpop.eup %3573  ;;  %2457 = vmatprep.mubr.f32.mxu1 %v3572_v10 }
 0x1e5   :  { %2458 = vmatmul.mubr.f32.vlgmr.msra.gmra.mrb[10].mxu1 %v3574_v15 }
 0x1e6   :  { %3072 = vmatpush3.bf16.msra.mxu1 %v3071_v9 }
 0x1e7   :  { %3074 = vmatprep.subr.bf16.mxu1 %v3073_v11 }
 0x1ea   :  { %3076 = vmatpush3.bf16.msra.mxu1 %v3075_v18 }
 0x1eb   :  { %3078 = vmatprep.subr.bf16.mxu1 %v3077_v20 }
 0x1ee   :  { %3080 = vmatpush3.bf16.msra.mxu1 %v3079_v26 }
 0x1ef   :  { %3082 = vmatprep.subr.bf16.mxu1 %v3081_v27  ;;  %v2899_v27 = vld [vmem:[%s4947_s6] ss:$0 sm:$0xff]  ;;  %s3636_s6 = smov [#allocation2]  }
 0x1f0   :  { %s2588_s14 = sshll.u32 %s3636_s6, 4  ;;  %s2589_s14 = int_to_ptr.vmem [resolvable:$true] %s2588_s14 }
 0x1f1   :  { %s3587_s15 = scalar_lea.vmem %s2589_s14, 32  ;;  %p3592_p1 = scmp.lt.s32.totalorder %s2589_s14, %s2589_s14 }
 0x1f2   :  { %3084 = vmatpush3.bf16.msra.mxu1 %v3083_v32  ;;  %p3588_p0 = scmp.ne.s32.totalorder %s2589_s14, %s3587_s15  ;;  %p3593_p2 = scmp.lt.s32.totalorder %s3587_s15, %s3587_s15 }
 0x1f3   :  { %3086 = vmatprep.subr.bf16.mxu1 %v3085_v33  ;;  %v2543_v33 = vmul.f32 %v2899_v27, %v2535_v29 }
 0x1f4   :  { %p3594_p3 = por %p3593_p2, %p3592_p1 }
 0x1f6   :  { %3088 = vmatpush3.bf16.msra.mxu1 %v3087_v62  ;;  %p3595_p4 = pnand %p3594_p3, %p3588_p0 }
 0x1f7   :  { %3090 = vmatprep.subr.bf16.mxu1 %v3089_v38 }
 0x1fa   :  { %3092 = vmatpush3.bf16.msra.mxu1 %v3091_v3 }
 0x1fb   :  { %3094 = vmatprep.subr.bf16.mxu1 %v3093_v43 }
 0x1fe   :  { %3096 = vmatpush3.bf16.msra.mxu1 %v3095_v48 }
 0x1ff   :  { %3098 = vmatprep.subr.bf16.mxu1 %v3097_v49 }
 0x202   :  { %3100 = vmatpush3.bf16.msra.mxu1 %v3099_v51 }
 0x216   :  { %v2207_v55 = vpop.f32.mrb[4].mxu0 }
 0x217   :  { %v3107_v56 = vadd.f32 %v2207_v55, %v340_v23  ;;  %v2209_v58 = vpop.f32.mrb[5].mxu0 }
 0x218   :  { %v3108_v59 = vadd.f32 %v2209_v58, %v344_v54  ;;  %v2211_v60 = vpop.f32.mrb[6].mxu0 }
 0x219   :  { %v2212_v61 = vpop.f32.mrb[7].mxu0 }
 0x21a   :  { %3575 = vtanh.f32 %v3108_v59 }
 0x21b   :  { %3577 = vtanh.f32 %v3107_v56 }
 0x224   :  { %v3576_v0 = vpop.eup %3575 }
 0x225   :  { %v3578_v1 = vpop.eup %3577  ;;  %2527 = vmatprep.mubr.f32.mxu1 %v3576_v0 }
 0x226   :  { %2528 = vmatmul.mubr.f32.vlgmr.msra.gmra.mrb[12].mxu1 %v3578_v1 }
 0x239   :  { %v2932_v2 = vpop.f32.mrb[8].mxu1 }
 0x23a   :  { %v2933_v63 = vpop.f32.mrb[9].mxu1 }
 0x23b   :  { %v2934_v4 = vadd.f32 %v2933_v63, %v2932_v2 }
 0x23d   :  { %v2390_v6 = vadd.f32 %v2934_v4, %v2898_v42 }
 0x2b8   :  { %v2967_v57 = vpop.f32.mrb[10].mxu1 }
 0x2b9   :  { %v2968_v5 = vpop.f32.mrb[11].mxu1 }
 0x2ba   :  { %v2969_v7 = vadd.f32 %v2968_v5, %v2967_v57 }
 0x2bc   :  { %v2460_v8 = vadd.f32 %v2969_v7, %v2390_v6 }
 0x2f9   :  { %v3002_v9 = vpop.f32.mrb[12].mxu1 }
 0x2fa   :  { %v3003_v10 = vpop.f32.mrb[13].mxu1 }
 0x2fb   :  { %v3004_v11 = vadd.f32 %v3003_v10, %v3002_v9 }
 0x2fd   :  { %v2530_v12 = vadd.f32 %v3004_v11, %v2460_v8 }
 0x2ff   :  { %v2557_v14 = vand.u32 2147483647, %v2530_v12  ;;  %v2544_v15 = vsub.f32 0.0, %v2530_v12  ;;  %2534 = vst.msk [vmem:[#allocation2] sm:$0x3] %vm2533_vm0, %v2530_v12  ;;  %v2556_v30 = vmax.f32 %v2530_v12, 0.0 }
 0x301   :  { %v2558_v16 = vsub.f32 0.0, %v2557_v14  ;;  %v2546_v17 = vand.u32 2147483647, %v2544_v15  ;;  %v2545_v34 = vmax.f32 %v2544_v15, 0.0 }
 0x303   :  { %v2559_v18 = vmul.f32 1.442695, %v2558_v16  ;;  %v2547_v20 = vsub.f32 0.0, %v2546_v17 }
 0x305   :  { %3579 = vpow2.f32 %v2559_v18  ;;  %v2548_v21 = vmul.f32 1.442695, %v2547_v20 }
 0x307   :  { %3581 = vpow2.f32 %v2548_v21 }
 0x30f   :  { %v3580_v22 = vpop.eup %3579 }
 0x310   :  { %v2561_v24 = vadd.f32 1.0, %v3580_v22 }
 0x311   :  { %v3582_v25 = vpop.eup %3581 }
 0x312   :  { %v2550_v26 = vadd.f32 1.0, %v3582_v25  ;;  %3583 = vlog2.f32 %v2561_v24 }
 0x314   :  { %3585 = vlog2.f32 %v2550_v26 }
 0x31c   :  { %v3584_v28 = vpop.eup %3583 }
 0x31d   :  { %v2563_v31 = vmul.f32 0.6931472, %v3584_v28 }
 0x31e   :  { %v3586_v32 = vpop.eup %3585 }
 0x31f   :  { %v2552_v35 = vmul.f32 0.6931472, %v3586_v32  ;;  %v2564_v37 = vadd.f32 %v2563_v31, %v2556_v30 }
 0x321   :  { %v2553_v62 = vadd.f32 %v2552_v35, %v2545_v34  ;;  %v2565_v13 = vmul.f32 %v2564_v37, %v2555_v36 }
 0x323   :  { %v2554_v38 = vmul.f32 %v2553_v62, %v2543_v33 }
 0x325   :  { %v2566_v39 = vadd.f32 %v2565_v13, %v2554_v38 }
 0x327   :  { %v2567_v40 = vsel %vm2533_vm0, %v2566_v39, 0.0 }
 0x328   :  { %2568 = vadd.xlane.f32.xlu0 %v2567_v40 }
 0x329   :  { %3598 = shalt.err (!%p3595_p4)
}
 0x32a   :  { %s3599_s0 = scalar_lea.hbm %s4948_s7, 32 }
 0x32b   :  { %p3600_p5 = scmp.ne.s32.totalorder %s4948_s7, %s3599_s0  ;;  %p3603_p6 = scmp.lt.u32.totalorder %s3599_s0, %s4948_s7 }
 0x32d   :  { %p3605_p7 = pnand %p3603_p6, %p3600_p5 }
 0x32f   :  { %3608 = shalt.err (!%p3605_p7)
}
 0x330   :  { %2591 = dma.vmem_to_hbm [thread:$0]  %s2589_s14, 32, %s4948_s7, [#allocation3]   ;;  %vm2580_vm1 = vcmask 0  }
 0x331   :  { %s3637_s23 = smov [#allocation4]  }
 0x332   :  { %s2598_s24 = sshll.u32 %s3637_s23, 4  ;;  %s2599_s24 = int_to_ptr.vmem [resolvable:$true] %s2598_s24 }
 0x333   :  { %s3609_s26 = scalar_lea.vmem %s2599_s24, 16  ;;  %s3613_s27 = scalar_lea.vmem %s2599_s24, 32 }
 0x334   :  { %p3610_p8 = scmp.ne.s32.totalorder %s2599_s24, %s3609_s26  ;;  %p3614_p9 = scmp.lt.s32.totalorder %s2599_s24, %s2599_s24 }
 0x335   :  { %p3615_p10 = scmp.lt.s32.totalorder %s3613_s27, %s3609_s26 }
 0x337   :  { %p3616_p11 = por %p3615_p10, %p3614_p9 }
 0x339   :  { %p3617_p12 = pnand %p3616_p11, %p3610_p8 }
 0x3b5   :  { %v2569_v41 = vpop.xlane.xlu0 %2568 }
 0x3b6   :  { %v2570_v3 = vrot.slane %v2569_v41, 4 }
 0x3b8   :  { %v2571_v43 = vadd.f32 %v2570_v3, %v2569_v41 }
 0x3ba   :  { %v2572_v44 = vrot.slane %v2571_v43, 2 }
 0x3bc   :  { %v2573_v45 = vadd.f32 %v2572_v44, %v2571_v43 }
 0x3be   :  { %v2574_v46 = vrot.slane %v2573_v45, 1 }
 0x3c0   :  { %v2575_v47 = vadd.f32 %v2574_v46, %v2573_v45 }
 0x3c2   :  { %3129 = vpush %v2575_v47 }
 0x3f3   :  { %s3130_s25 = spop %3129 }
 0x3f4   :  { %v2577_v48 = vstv %s3130_s25 }
 0x3f5   :  { %v2579_v49 = vmul.f32 0.25, %v2577_v48 }
 0x3f7   :  { %2581 = vst.msk [vmem:[#allocation4] sm:$0x1] %vm2580_vm1, %v2579_v49 }
 0x3f8   :  { %3620 = shalt.err (!%p3617_p12)
}
 0x3f9   :  { %s3621_s29 = scalar_lea.hbm %s4949_s8, 16 }
 0x3fa   :  { %p3622_p13 = scmp.ne.s32.totalorder %s4949_s8, %s3621_s29  ;;  %p3625_p0 = scmp.lt.u32.totalorder %s3621_s29, %s4949_s8 }
 0x3fc   :  { %p3627_p1 = pnand %p3625_p0, %p3622_p13 }
 0x3fe   :  { %3630 = shalt.err (!%p3627_p1)
}
 0x3ff   :  { %2601 = dma.vmem_to_hbm [thread:$0]  %s2599_s24, 16, %s4949_s8, [#allocation5]  }
 0x400   :  { %3631 = dma.done.wait [#allocation3], 32  }
 0x401   :  { %3632 = vsyncadd [#allocation3], 4294967264 }
 0x402   :  { %3633 = dma.done.wait [#allocation5], 16  }
 0x403   :  { %3634 = vsyncadd [#allocation5], 4294967280 }
 0x404   :  { %2608 = vsyncpa [#allocation3], 1 }
 0x405   :  { %2609 = vsyncpa [#allocation5], 1 }

</bundles_post_ra>
